<compile_context>
chip_gen: v5e
topology: v5e:2x2
jax: 0.10.0
libtpu: 0.0.40
codegen_flags: <defaults>
</compile_context>

<pallas_src>
import functools
import math

import jax
import jax.numpy as jnp
from jax import lax
from jax.experimental import pallas as pl
from jax.experimental.pallas import tpu as pltpu

F32 = jnp.float32
BF16 = jnp.bfloat16
NEG = -1e30   # "minus infinity" for masked (padded) edge logits


# -----------------------------------------------------------------------------
# In-kernel helpers
# -----------------------------------------------------------------------------
def _one_hot(idx_col, n, dtype):
    """idx_col: [tE, 1] int32 -> one-hot gather selector [tE, n] (sentinel idx>=n -> all-zero row)."""
    col = lax.broadcasted_iota(jnp.int32, (idx_col.shape[0], n), 1)
    return (idx_col == col).astype(dtype)


def _one_hot_t(idx_row, n, dtype):
    """idx_row: [1, tE] int32 -> transposed one-hot scatter selector [n, tE]."""
    rows = lax.broadcasted_iota(jnp.int32, (n, idx_row.shape[1]), 0)
    return (rows == idx_row).astype(dtype)


@functools.lru_cache(maxsize=None)
def _vmem_limit_bytes():
    cap = 64 * 1024 * 1024
    try:
        cap = int(pltpu.get_tpu_info().vmem_capacity_bytes)
    except Exception:
        pass
    return min(int(cap * 3 // 4), 100 * 1024 * 1024)


# -----------------------------------------------------------------------------
# Pass 1: hoisted h = x_n @ Wa_x, global per-column logit maxes and the
#         online (flash-style) rescaled scatter-sum z, all accumulated
#         directly in resident output refs.
# -----------------------------------------------------------------------------
def gat_stats_kernel(src_ref, dst_ref, dstrow_ref, xn_ref, xe_ref,
                     wae_ref, wax_ref,
                     maxp_ref, maxr_ref, z_ref, h_ref):
    n_nodes = xn_ref.shape[0]
    et = pl.program_id(0)

    @pl.when(et == 0)
    def _init():
        maxp_ref[...] = jnp.full_like(maxp_ref, NEG)
        maxr_ref[...] = jnp.full_like(maxr_ref, NEG)
        z_ref[...] = jnp.zeros_like(z_ref)
        # per-node projection hoisted out of the edge loop (reused by pass 2)
        h_ref[...] = jnp.dot(xn_ref[...], wax_ref[...],
                             preferred_element_type=F32).astype(BF16)

    valid = dst_ref[...] < n_nodes                        # [tE, 1]  (padding mask)
    s_b = _one_hot(src_ref[...], n_nodes, BF16)           # [tE, N]
    t_b = _one_hot(dst_ref[...], n_nodes, BF16)           # [tE, N]
    tt_b = _one_hot_t(dstrow_ref[...], n_nodes, BF16)     # [N, tE]

    h = h_ref[...]                                        # [N, D] bf16 (resident)
    ea = jnp.dot(xe_ref[...], wae_ref[...], preferred_element_type=F32)
    p_logit = jnp.where(valid, ea + jnp.dot(t_b, h, preferred_element_type=F32), NEG)
    r_logit = jnp.where(valid, ea + jnp.dot(s_b, h, preferred_element_type=F32), NEG)

    maxr_ref[...] = jnp.maximum(maxr_ref[...],
                                jnp.max(r_logit, axis=0, keepdims=True))

    # online rescaled scatter-sum:  z[n] = sum_{dst(e)=n} exp(p_logit[e] - max_p)
    m_old = maxp_ref[...]
    m_new = jnp.maximum(m_old, jnp.max(p_logit, axis=0, keepdims=True))
    a_p = jnp.exp(p_logit - m_new).astype(BF16)
    z_ref[...] = (z_ref[...] * jnp.exp(m_old - m_new)
                  + jnp.dot(tt_b, a_p, preferred_element_type=F32))
    maxp_ref[...] = m_new


# -----------------------------------------------------------------------------
# Pass 2: normalized attention, node update (fnup) + edge update (feup).
#         node_out_ref doubles as the z2 accumulator (finalized at last tile).
# -----------------------------------------------------------------------------
def gat_apply_kernel(src_ref, dst_ref, dstrow_ref, slab_ref, xe_ref,
                     wae_ref, wea_ref, wee_ref, wnz_ref, wnx_ref,
                     maxp_ref, maxr_ref,
                     node_out_ref, edge_out_ref, *, slope):
    n_nodes = slab_ref.shape[0]
    de = xe_ref.shape[1]
    et = pl.program_id(0)

    @pl.when(et == 0)
    def _init():
        node_out_ref[...] = jnp.zeros_like(node_out_ref)   # acts as z2 accumulator

    valid = dst_ref[...] < n_nodes
    s_b = _one_hot(src_ref[...], n_nodes, BF16)
    t_b = _one_hot(dst_ref[...], n_nodes, BF16)
    tt_b = _one_hot_t(dstrow_ref[...], n_nodes, BF16)

    xe = xe_ref[...]
    xe_f = xe.astype(F32)

    # fused gathers from the per-node slab [x_n | h | z] (bf16, resident)
    slab = slab_ref[...]
    dstg = jnp.dot(t_b, slab, preferred_element_type=F32)          # [tE, 3*D]
    srcg = jnp.dot(s_b, slab[:, :2 * de], preferred_element_type=F32)  # [tE, 2*D]
    dst_x, dst_h, dst_z = dstg[:, :de], dstg[:, de:2 * de], dstg[:, 2 * de:]
    src_x, src_h = srcg[:, :de], srcg[:, de:]

    ea = jnp.dot(xe, wae_ref[...], preferred_element_type=F32)
    p_shift = jnp.where(valid, ea + dst_h, NEG) - maxp_ref[...]
    r_shift = jnp.where(valid, ea + src_h, NEG) - maxr_ref[...]

    # --- node message path:  a = a_p / (z[dst] + eps);  z2 += scatter_dst(a * x_e)
    a_p = jnp.exp(p_shift)
    a = a_p * pl.reciprocal(dst_z + 1e-5, approx=True)
    a_x = (a * xe_f).astype(BF16)
    node_out_ref[...] += jnp.dot(tt_b, a_x, preferred_element_type=F32)

    # --- edge update:  mix = a_rn*src_x + a_pn*dst_x,  a_pn = sigmoid(p_shift - r_shift)
    a_pn = pl.reciprocal(1.0 + jnp.exp(r_shift - p_shift), approx=True)
    mix = (src_x + a_pn * (dst_x - src_x)).astype(BF16)
    e_up = (jnp.dot(mix, wea_ref[...], preferred_element_type=F32)
            + jnp.dot(xe, wee_ref[...], preferred_element_type=F32))
    edge_out_ref[...] = jnp.where(e_up >= 0, e_up, slope * e_up)

    # --- node update once every edge tile has been scattered into z2
    @pl.when(et == pl.num_programs(0) - 1)
    def _finalize():
        z2 = node_out_ref[...].astype(BF16)
        xn_b = slab_ref[:, :de]
        ft = (jnp.dot(z2, wnz_ref[...], preferred_element_type=F32)
              + jnp.dot(xn_b, wnx_ref[...], preferred_element_type=F32))
        node_out_ref[...] = jnp.where(ft >= 0, ft, slope * ft)


# -----------------------------------------------------------------------------
# Row-tiled, lane-dense classifier head (output columns padded to 128)
# -----------------------------------------------------------------------------
def classifier_kernel(x_ref, w_ref, o_ref):
    o_ref[...] = jnp.dot(x_ref[...], w_ref[...], preferred_element_type=F32)


def _row_tile(m):
    for t in (1024, 512, 256, 128):
        if m % t == 0:
            return t
    return m


def classifier(x, w_t):
    m, d = x.shape
    c = w_t.shape[1]
    cp = ((c + 127) // 128) * 128
    w_pad = jnp.zeros((d, cp), F32).at[:, :c].set(w_t).astype(BF16)
    tm = _row_tile(m)
    out = pl.pallas_call(
        classifier_kernel,
        grid=(m // tm,),
        in_specs=[pl.BlockSpec((tm, d), lambda i: (i, 0)),
                  pl.BlockSpec((d, cp), lambda i: (0, 0))],
        out_specs=pl.BlockSpec((tm, cp), lambda i: (i, 0)),
        out_shape=jax.ShapeDtypeStruct((m, cp), F32),
        compiler_params=pltpu.CompilerParams(
            dimension_semantics=("parallel",),
            vmem_limit_bytes=_vmem_limit_bytes()),
    )(x.astype(BF16), w_pad)
    return out[:, :c]


# -----------------------------------------------------------------------------
# Layer wrapper: two edge-tiled pallas_calls per GraphAttention layer
# -----------------------------------------------------------------------------
def _edge_tile(e_pad):
    for t in (512, 256):
        if e_pad % t == 0 and e_pad // t >= 2:
            return t
    return 128   # e_pad is always a multiple of 128


def gat_layer(node_x, edge_x, src_col, dst_col, dst_row, layer_params, *, slope):
    n, dn = node_x.shape
    e_pad, de = edge_x.shape
    t_e = _edge_tile(e_pad)
    n_tiles = e_pad // t_e

    xn_b = node_x.astype(BF16)
    xe_b = edge_x.astype(BF16)
    wa_e, wa_x, wn_z, wn_x, we_a, we_e = [w.astype(BF16) for w in layer_params]

    tile_ix = lambda et: (et, 0)
    row_ix = lambda et: (0, et)
    const_ix = lambda et: (0, 0)

    col_spec = pl.BlockSpec((t_e, 1), tile_ix)            # per-edge index column
    row_spec = pl.BlockSpec((1, t_e), row_ix)             # per-edge index row (scatter)
    xe_spec = pl.BlockSpec((t_e, de), tile_ix)
    w_spec = lambda w: pl.BlockSpec(w.shape, const_ix)    # weights resident
    vec_spec = pl.BlockSpec((1, de), const_ix)
    nodemat_spec = lambda cols: pl.BlockSpec((n, cols), const_ix)

    # The single edge axis carries cross-tile accumulators -> sequential.
    cparams = pltpu.CompilerParams(dimension_semantics=("arbitrary",),
                                   vmem_limit_bytes=_vmem_limit_bytes())

    # pass 1: column maxes + online scatter-sum z + hoisted per-node h
    maxp, maxr, z, h = pl.pallas_call(
        gat_stats_kernel,
        grid=(n_tiles,),
        in_specs=[col_spec, col_spec, row_spec, nodemat_spec(dn), xe_spec,
                  w_spec(wa_e), w_spec(wa_x)],
        out_specs=(vec_spec, vec_spec, nodemat_spec(de), nodemat_spec(de)),
        out_shape=(jax.ShapeDtypeStruct((1, de), F32),
                   jax.ShapeDtypeStruct((1, de), F32),
                   jax.ShapeDtypeStruct((n, de), F32),
                   jax.ShapeDtypeStruct((n, de), BF16)),
        compiler_params=cparams,
    )(src_col, dst_col, dst_row, xn_b, xe_b, wa_e, wa_x)

    # per-node gather slab: [x_n | h | z]  (bf16, built once per layer)
    slab = jnp.concatenate([xn_b, h, z.astype(BF16)], axis=1)

    # pass 2: normalized attention + node/edge feature updates
    node_out, edge_out = pl.pallas_call(
        functools.partial(gat_apply_kernel, slope=slope),
        grid=(n_tiles,),
        in_specs=[col_spec, col_spec, row_spec, nodemat_spec(3 * de), xe_spec,
                  w_spec(wa_e), w_spec(we_a), w_spec(we_e),
                  w_spec(wn_z), w_spec(wn_x),
                  vec_spec, vec_spec],
        out_specs=(pl.BlockSpec((n, dn), const_ix),
                   pl.BlockSpec((t_e, de), tile_ix)),
        out_shape=(jax.ShapeDtypeStruct((n, dn), F32),
                   jax.ShapeDtypeStruct((e_pad, de), F32)),
        compiler_params=cparams,
    )(src_col, dst_col, dst_row, slab, xe_b, wa_e, we_a, we_e, wn_z, wn_x,
      maxp, maxr)

    return node_out, edge_out


def gat_forward(node_feats, edge_feats, src_idx, dst_idx, params,
                *, alpha=0.1, act_slope=0.1):
    """Full GAT.forward: num_layers GraphAttention layers + classifier heads."""
    assert alpha > 0 and act_slope > 0           # required for LeakyReLU fusion
    slope = alpha * act_slope

    n, dn = node_feats.shape
    e, de = edge_feats.shape
    assert dn == de and de % 128 == 0

    # Pad the edge list once to a multiple of 128.  Padded edges use the
    # out-of-range sentinel index `n` (one-hot rows/cols all zero) and zero
    # features; their logits are masked, so they never affect real outputs.
    e_pad = ((e + 127) // 128) * 128
    pad = e_pad - e
    src = src_idx.reshape(-1).astype(jnp.int32)
    dst = dst_idx.reshape(-1).astype(jnp.int32)
    if pad:
        edge_feats = jnp.concatenate(
            [edge_feats, jnp.zeros((pad, de), edge_feats.dtype)], axis=0)
        sentinel = jnp.full((pad,), n, jnp.int32)
        src = jnp.concatenate([src, sentinel])
        dst = jnp.concatenate([dst, sentinel])
    src_col = src.reshape(e_pad, 1)
    dst_col = dst.reshape(e_pad, 1)
    dst_row = dst.reshape(1, e_pad)

    for layer_params in params["layers"]:
        node_feats, edge_feats = gat_layer(node_feats, edge_feats,
                                           src_col, dst_col, dst_row,
                                           layer_params, slope=slope)

    node_conf = classifier(node_feats, params["node_cls"])
    edge_conf = classifier(edge_feats, params["edge_cls"])[:e]
    return node_feats, edge_feats[:e], node_conf, edge_conf


# -----------------------------------------------------------------------------
# Deterministic parameter init (xavier_normal_, gain=1.414), stored transposed
# so kernels compute x @ W_t; concatenated inputs handled by splitting the
# weight into the edge/node (or msg/node) halves.
# -----------------------------------------------------------------------------
def xavier_t(key, fan_in, fan_out, gain=1.414):
    std = gain * math.sqrt(2.0 / (fan_in + fan_out))
    return (std * jax.random.normal(key, (fan_in, fan_out))).astype(F32)


def init_params(key, num_layers, node_dim, edge_dim, node_classes, edge_classes):
    layers = []
    for _ in range(num_layers):
        key, ka, kn, ke = jax.random.split(key, 4)
        wa = xavier_t(ka, edge_dim + node_dim, edge_dim)   # fa: cat(edge, other)
        wa_e, wa_x = wa[:edge_dim], wa[edge_dim:]
        wn = xavier_t(kn, edge_dim + node_dim, node_dim)   # fnup: cat(z, node)
        wn_z, wn_x = wn[:edge_dim], wn[edge_dim:]
        we = xavier_t(ke, node_dim + edge_dim, edge_dim)   # feup: cat(mix, edge)
        we_a, we_e = we[:node_dim], we[node_dim:]
        layers.append((wa_e, wa_x, wn_z, wn_x, we_a, we_e))
    key, kc1, kc2 = jax.random.split(key, 3)
    return {
        "layers": layers,
        "node_cls": xavier_t(kc1, node_dim, node_classes),
        "edge_cls": xavier_t(kc2, edge_dim, edge_classes),
    }


# -----------------------------------------------------------------------------
# Pure-JAX reference (gather / segment_sum formulation, mirroring the kernel's
# bf16 storage points so the comparison isolates algorithmic differences)
# -----------------------------------------------------------------------------
def gat_reference(node_feats, edge_feats, src_idx, dst_idx, params,
                  *, alpha=0.1, act_slope=0.1):
    src = src_idx.reshape(-1)
    dst = dst_idx.reshape(-1)
    n = node_feats.shape[0]

    def lrelu(v, s):
        return jnp.where(v >= 0, v, s * v)

    def mm(a, b):
        return jnp.dot(a.astype(BF16), b.astype(BF16),
                       preferred_element_type=F32)

    def rb(x):   # round-trip through bf16 (mirrors kernel storage precision)
        return x.astype(BF16).astype(F32)

    xn, xe = node_feats, edge_feats
    for (wa_e, wa_x, wn_z, wn_x, we_a, we_e) in params["layers"]:
        xn_b = rb(xn)
        xe_b = rb(xe)
        h = rb(mm(xn_b, wa_x))
        ea = mm(xe_b, wa_e)
        p_logit = ea + h[dst]
        r_logit = ea + h[src]
        a_p = jnp.exp(p_logit - jnp.max(p_logit, axis=0, keepdims=True))
        a_r = jnp.exp(r_logit - jnp.max(r_logit, axis=0, keepdims=True))
        z = jax.ops.segment_sum(rb(a_p), dst, num_segments=n)
        a = a_p / (rb(z)[dst] + 1e-5)
        a_x = rb(a * xe_b)
        z2 = jax.ops.segment_sum(a_x, dst, num_segments=n)
        ft = mm(z2, wn_z) + mm(xn_b, wn_x)
        a_sum = a_p + a_r
        mix = (a_r / a_sum) * xn_b[src] + (a_p / a_sum) * xn_b[dst]
        e_up = mm(mix, we_a) + mm(xe_b, we_e)
        xn = lrelu(lrelu(ft, alpha), act_slope)
        xe = lrelu(lrelu(e_up, alpha), act_slope)
    node_conf = mm(xn, params["node_cls"])
    edge_conf = mm(xe, params["edge_cls"])
    return xn, xe, node_conf, edge_conf


# -----------------------------------------------------------------------------
if __name__ == "__main__":
    # Small demo shapes (module defaults are 512/512/55/2, 5 layers; semantics
    # identical, only sizes reduced).  node_dim must equal edge_dim (the module
    # multiplies attention [E, edge_dim] elementwise with node features).
    # E = 500 is deliberately ragged to exercise the padded/masked tail tile.
    N, E = 64, 500
    node_dim = edge_dim = 128
    node_classes, edge_classes = 55, 2
    num_layers = 2

    key = jax.random.PRNGKey(0)
    key, kn, ke, kp = jax.random.split(key, 4)
    node_feats = jax.random.normal(kn, (N, node_dim), F32)
    edge_feats = jax.random.normal(ke, (E, edge_dim), F32)

    # deterministic int32 edge list
    eids = jnp.arange(E, dtype=jnp.int32)
    src_idx = eids % N
    dst_idx = (eids * 7 + 3) % N

    params = init_params(kp, num_layers, node_dim, edge_dim,
                         node_classes, edge_classes)

    fwd = jax.jit(gat_forward)
    nf, ef, nconf, econf = fwd(node_feats, edge_feats, src_idx, dst_idx, params)
    jax.block_until_ready((nf, ef, nconf, econf))

    assert nf.shape == (N, node_dim) and ef.shape == (E, edge_dim)
    assert nconf.shape == (N, node_classes) and econf.shape == (E, edge_classes)
    assert bool(jnp.all(jnp.isfinite(nf))) and bool(jnp.all(jnp.isfinite(ef)))
    assert bool(jnp.all(jnp.isfinite(nconf))) and bool(jnp.all(jnp.isfinite(econf)))

    # correctness vs. a pure-JAX gather/segment_sum reference
    rnf, refe, rnc, rec = gat_reference(node_feats, edge_feats,
                                        src_idx, dst_idx, params)

    def rel_err(got, want):
        return float(jnp.linalg.norm(got - want) /
                     (jnp.linalg.norm(want) + 1e-12))

    for got, want in ((nf, rnf), (ef, refe), (nconf, rnc), (econf, rec)):
        assert rel_err(got, want) < 5e-2, rel_err(got, want)

    print("KERNEL_OK")
</pallas_src>

<mosaic_0001>
module attributes {stable_mosaic.version = 11 : i64} {
  func.func @gat_stats_kernel(%arg0: i32, %arg1: memref<256x1xi32, #tpu.memory_space<vmem>>, %arg2: memref<256x1xi32, #tpu.memory_space<vmem>>, %arg3: memref<1x256xi32, #tpu.memory_space<vmem>>, %arg4: memref<64x128xbf16, #tpu.memory_space<vmem>>, %arg5: memref<256x128xbf16, #tpu.memory_space<vmem>>, %arg6: memref<128x128xbf16, #tpu.memory_space<vmem>>, %arg7: memref<128x128xbf16, #tpu.memory_space<vmem>>, %arg8: memref<1x128xf32, #tpu.memory_space<vmem>>, %arg9: memref<1x128xf32, #tpu.memory_space<vmem>>, %arg10: memref<64x128xf32, #tpu.memory_space<vmem>>, %arg11: memref<64x128xbf16, #tpu.memory_space<vmem>>) attributes {dimension_semantics = [#tpu.dimension_semantics<arbitrary>], iteration_bounds = array<i64: 2>, scalar_prefetch = 0 : i64, scratch_operands = 0 : i64, tpu.core_type = #tpu.core_type<tc>, window_params = [{transform_indices = @transform_0, window_bounds = array<i64: 256, 1>}, {transform_indices = @transform_1, window_bounds = array<i64: 256, 1>}, {transform_indices = @transform_2, window_bounds = array<i64: 1, 256>}, {pipeline_mode = #tpu.pipeline_mode<synchronous>, transform_indices = @transform_3, window_bounds = array<i64: 64, 128>}, {transform_indices = @transform_4, window_bounds = array<i64: 256, 128>}, {pipeline_mode = #tpu.pipeline_mode<synchronous>, transform_indices = @transform_5, window_bounds = array<i64: 128, 128>}, {pipeline_mode = #tpu.pipeline_mode<synchronous>, transform_indices = @transform_6, window_bounds = array<i64: 128, 128>}, {pipeline_mode = #tpu.pipeline_mode<synchronous>, transform_indices = @transform_7, window_bounds = array<i64: 1, 128>}, {pipeline_mode = #tpu.pipeline_mode<synchronous>, transform_indices = @transform_8, window_bounds = array<i64: 1, 128>}, {pipeline_mode = #tpu.pipeline_mode<synchronous>, transform_indices = @transform_9, window_bounds = array<i64: 64, 128>}, {pipeline_mode = #tpu.pipeline_mode<synchronous>, transform_indices = @transform_10, window_bounds = array<i64: 64, 128>}]} {
    %c0_i32 = arith.constant 0 : i32
    %0 = arith.cmpi eq, %arg0, %c0_i32 : i32
    %1 = arith.extui %0 : i1 to i32
    %c0_i32_0 = arith.constant 0 : i32
    %2 = arith.cmpi ne, %1, %c0_i32_0 : i32
    scf.if %2 {
      %cst_33 = arith.constant -1.000000e+30 : f32
      %65 = vector.broadcast %cst_33 : f32 to vector<1x128xf32>
      %c0_34 = arith.constant 0 : index
      %c0_35 = arith.constant 0 : index
      %66 = vector.load %arg8[%c0_34, %c0_35] : memref<1x128xf32, #tpu.memory_space<vmem>>, vector<1x128xf32>
      tpu.vector_store %arg8[%c0_34, %c0_35], %65 {strides = array<i32>} : memref<1x128xf32, #tpu.memory_space<vmem>>, vector<1x128xf32>,
      %cst_36 = arith.constant -1.000000e+30 : f32
      %67 = vector.broadcast %cst_36 : f32 to vector<1x128xf32>
      %c0_37 = arith.constant 0 : index
      %c0_38 = arith.constant 0 : index
      %68 = vector.load %arg9[%c0_37, %c0_38] : memref<1x128xf32, #tpu.memory_space<vmem>>, vector<1x128xf32>
      tpu.vector_store %arg9[%c0_37, %c0_38], %67 {strides = array<i32>} : memref<1x128xf32, #tpu.memory_space<vmem>>, vector<1x128xf32>,
      %cst_39 = arith.constant 0.000000e+00 : f32
      %69 = vector.broadcast %cst_39 : f32 to vector<64x128xf32>
      %c0_40 = arith.constant 0 : index
      %c0_41 = arith.constant 0 : index
      %70 = vector.load %arg10[%c0_40, %c0_41] : memref<64x128xf32, #tpu.memory_space<vmem>>, vector<64x128xf32>
      tpu.vector_store %arg10[%c0_40, %c0_41], %69 {strides = array<i32>} : memref<64x128xf32, #tpu.memory_space<vmem>>, vector<64x128xf32>,
      %c0_42 = arith.constant 0 : index
      %c0_43 = arith.constant 0 : index
      %71 = vector.load %arg4[%c0_42, %c0_43] : memref<64x128xbf16, #tpu.memory_space<vmem>>, vector<64x128xbf16>
      %c0_44 = arith.constant 0 : index
      %c0_45 = arith.constant 0 : index
      %72 = vector.load %arg7[%c0_44, %c0_45] : memref<128x128xbf16, #tpu.memory_space<vmem>>, vector<128x128xbf16>
      %cst_46 = arith.constant dense<0.000000e+00> : vector<64x128xf32>
      %73 = tpu.matmul %71, %72, %cst_46 {dimension_numbers = #tpu.dot_dimension_numbers<[1], [0], [0], [1], [0, 0, 1, 1], [], []>} : vector<64x128xbf16>, vector<128x128xbf16>, vector<64x128xf32> -> vector<64x128xf32>
      %74 = arith.truncf %73 : vector<64x128xf32> to vector<64x128xbf16>
      %c0_47 = arith.constant 0 : index
      %c0_48 = arith.constant 0 : index
      %75 = vector.load %arg11[%c0_47, %c0_48] : memref<64x128xbf16, #tpu.memory_space<vmem>>, vector<64x128xbf16>
      tpu.vector_store %arg11[%c0_47, %c0_48], %74 {strides = array<i32>} : memref<64x128xbf16, #tpu.memory_space<vmem>>, vector<64x128xbf16>,
    } else {
    }
    %c0 = arith.constant 0 : index
    %c0_1 = arith.constant 0 : index
    %3 = vector.load %arg2[%c0, %c0_1] : memref<256x1xi32, #tpu.memory_space<vmem>>, vector<256x1xi32>
    %c64_i32 = arith.constant 64 : i32
    %4 = vector.broadcast %c64_i32 : i32 to vector<256x1xi32>
    %5 = arith.cmpi slt, %3, %4 : vector<256x1xi32>
    %c0_2 = arith.constant 0 : index
    %c0_3 = arith.constant 0 : index
    %6 = vector.load %arg1[%c0_2, %c0_3] : memref<256x1xi32, #tpu.memory_space<vmem>>, vector<256x1xi32>
    %7 = tpu.iota {dimensions = array<i32: 1>} : vector<256x64xi32>
    %8 = vector.broadcast %6 : vector<256x1xi32> to vector<256x64xi32>
    %9 = arith.cmpi eq, %8, %7 : vector<256x64xi32>
    %10 = arith.extui %9 : vector<256x64xi1> to vector<256x64xi32>
    %11 = arith.sitofp %10 : vector<256x64xi32> to vector<256x64xf32>
    %12 = arith.truncf %11 : vector<256x64xf32> to vector<256x64xbf16>
    %c0_4 = arith.constant 0 : index
    %c0_5 = arith.constant 0 : index
    %13 = vector.load %arg2[%c0_4, %c0_5] : memref<256x1xi32, #tpu.memory_space<vmem>>, vector<256x1xi32>
    %14 = tpu.iota {dimensions = array<i32: 1>} : vector<256x64xi32>
    %15 = vector.broadcast %13 : vector<256x1xi32> to vector<256x64xi32>
    %16 = arith.cmpi eq, %15, %14 : vector<256x64xi32>
    %17 = arith.extui %16 : vector<256x64xi1> to vector<256x64xi32>
    %18 = arith.sitofp %17 : vector<256x64xi32> to vector<256x64xf32>
    %19 = arith.truncf %18 : vector<256x64xf32> to vector<256x64xbf16>
    %c0_6 = arith.constant 0 : index
    %c0_7 = arith.constant 0 : index
    %20 = vector.load %arg3[%c0_6, %c0_7] : memref<1x256xi32, #tpu.memory_space<vmem>>, vector<1x256xi32>
    %21 = tpu.iota {dimensions = array<i32: 0>} : vector<64x256xi32>
    %22 = vector.broadcast %20 : vector<1x256xi32> to vector<64x256xi32>
    %23 = arith.cmpi eq, %21, %22 : vector<64x256xi32>
    %24 = arith.extui %23 : vector<64x256xi1> to vector<64x256xi32>
    %25 = arith.sitofp %24 : vector<64x256xi32> to vector<64x256xf32>
    %26 = arith.truncf %25 : vector<64x256xf32> to vector<64x256xbf16>
    %c0_8 = arith.constant 0 : index
    %c0_9 = arith.constant 0 : index
    %27 = vector.load %arg11[%c0_8, %c0_9] : memref<64x128xbf16, #tpu.memory_space<vmem>>, vector<64x128xbf16>
    %c0_10 = arith.constant 0 : index
    %c0_11 = arith.constant 0 : index
    %28 = vector.load %arg5[%c0_10, %c0_11] : memref<256x128xbf16, #tpu.memory_space<vmem>>, vector<256x128xbf16>
    %c0_12 = arith.constant 0 : index
    %c0_13 = arith.constant 0 : index
    %29 = vector.load %arg6[%c0_12, %c0_13] : memref<128x128xbf16, #tpu.memory_space<vmem>>, vector<128x128xbf16>
    %cst = arith.constant dense<0.000000e+00> : vector<256x128xf32>
    %30 = tpu.matmul %28, %29, %cst {dimension_numbers = #tpu.dot_dimension_numbers<[1], [0], [0], [1], [0, 0, 1, 1], [], []>} : vector<256x128xbf16>, vector<128x128xbf16>, vector<256x128xf32> -> vector<256x128xf32>
    %cst_14 = arith.constant dense<0.000000e+00> : vector<256x128xf32>
    %31 = tpu.matmul %19, %27, %cst_14 {dimension_numbers = #tpu.dot_dimension_numbers<[1], [0], [0], [1], [0, 0, 1, 1], [], []>} : vector<256x64xbf16>, vector<64x128xbf16>, vector<256x128xf32> -> vector<256x128xf32>
    %32 = arith.addf %30, %31 : vector<256x128xf32>
    %cst_15 = arith.constant -1.000000e+30 : f32
    %33 = vector.shape_cast %5 : vector<256x1xi1> to vector<256x1xi1>
    %34 = vector.broadcast %33 : vector<256x1xi1> to vector<256x128xi1>
    %35 = vector.broadcast %cst_15 : f32 to vector<256x128xf32>
    %36 = arith.select %34, %32, %35 : vector<256x128xi1>, vector<256x128xf32>
    %cst_16 = arith.constant dense<0.000000e+00> : vector<256x128xf32>
    %37 = tpu.matmul %12, %27, %cst_16 {dimension_numbers = #tpu.dot_dimension_numbers<[1], [0], [0], [1], [0, 0, 1, 1], [], []>} : vector<256x64xbf16>, vector<64x128xbf16>, vector<256x128xf32> -> vector<256x128xf32>
    %38 = arith.addf %30, %37 : vector<256x128xf32>
    %cst_17 = arith.constant -1.000000e+30 : f32
    %39 = vector.shape_cast %5 : vector<256x1xi1> to vector<256x1xi1>
    %40 = vector.broadcast %39 : vector<256x1xi1> to vector<256x128xi1>
    %41 = vector.broadcast %cst_17 : f32 to vector<256x128xf32>
    %42 = arith.select %40, %38, %41 : vector<256x128xi1>, vector<256x128xf32>
    %c0_18 = arith.constant 0 : index
    %c0_19 = arith.constant 0 : index
    %43 = vector.load %arg9[%c0_18, %c0_19] : memref<1x128xf32, #tpu.memory_space<vmem>>, vector<1x128xf32>
    %cst_20 = arith.constant dense<0xFF800000> : vector<128xf32>
    %44 = vector.multi_reduction <maximumf>, %42, %cst_20 [0] : vector<256x128xf32> to vector<128xf32>
    %45 = vector.shape_cast %44 : vector<128xf32> to vector<1x128xf32>
    %46 = arith.maximumf %43, %45 : vector<1x128xf32>
    %c0_21 = arith.constant 0 : index
    %c0_22 = arith.constant 0 : index
    %47 = vector.load %arg9[%c0_21, %c0_22] : memref<1x128xf32, #tpu.memory_space<vmem>>, vector<1x128xf32>
    tpu.vector_store %arg9[%c0_21, %c0_22], %46 {strides = array<i32>} : memref<1x128xf32, #tpu.memory_space<vmem>>, vector<1x128xf32>,
    %c0_23 = arith.constant 0 : index
    %c0_24 = arith.constant 0 : index
    %48 = vector.load %arg8[%c0_23, %c0_24] : memref<1x128xf32, #tpu.memory_space<vmem>>, vector<1x128xf32>
    %cst_25 = arith.constant dense<0xFF800000> : vector<128xf32>
    %49 = vector.multi_reduction <maximumf>, %36, %cst_25 [0] : vector<256x128xf32> to vector<128xf32>
    %50 = vector.shape_cast %49 : vector<128xf32> to vector<1x128xf32>
    %51 = arith.maximumf %48, %50 : vector<1x128xf32>
    %52 = vector.broadcast %51 : vector<1x128xf32> to vector<256x128xf32>
    %53 = arith.subf %36, %52 : vector<256x128xf32>
    %54 = math.exp %53 : vector<256x128xf32>
    %55 = arith.truncf %54 : vector<256x128xf32> to vector<256x128xbf16>
    %c0_26 = arith.constant 0 : index
    %c0_27 = arith.constant 0 : index
    %56 = vector.load %arg10[%c0_26, %c0_27] : memref<64x128xf32, #tpu.memory_space<vmem>>, vector<64x128xf32>
    %57 = arith.subf %48, %51 : vector<1x128xf32>
    %58 = math.exp %57 : vector<1x128xf32>
    %59 = vector.broadcast %58 : vector<1x128xf32> to vector<64x128xf32>
    %60 = arith.mulf %56, %59 : vector<64x128xf32>
    %cst_28 = arith.constant dense<0.000000e+00> : vector<64x128xf32>
    %61 = tpu.matmul %26, %55, %cst_28 {dimension_numbers = #tpu.dot_dimension_numbers<[1], [0], [0], [1], [0, 0, 1, 1], [], []>} : vector<64x256xbf16>, vector<256x128xbf16>, vector<64x128xf32> -> vector<64x128xf32>
    %62 = arith.addf %60, %61 : vector<64x128xf32>
    %c0_29 = arith.constant 0 : index
    %c0_30 = arith.constant 0 : index
    %63 = vector.load %arg10[%c0_29, %c0_30] : memref<64x128xf32, #tpu.memory_space<vmem>>, vector<64x128xf32>
    tpu.vector_store %arg10[%c0_29, %c0_30], %62 {strides = array<i32>} : memref<64x128xf32, #tpu.memory_space<vmem>>, vector<64x128xf32>,
    %c0_31 = arith.constant 0 : index
    %c0_32 = arith.constant 0 : index
    %64 = vector.load %arg8[%c0_31, %c0_32] : memref<1x128xf32, #tpu.memory_space<vmem>>, vector<1x128xf32>
    tpu.vector_store %arg8[%c0_31, %c0_32], %51 {strides = array<i32>} : memref<1x128xf32, #tpu.memory_space<vmem>>, vector<1x128xf32>,
    return
  }
  func.func @transform_0(%arg0: i32) -> (i32, i32) {
    %c0_i32 = arith.constant 0 : i32
    %c0_i32_0 = arith.constant 0 : i32
    return %arg0, %c0_i32 : i32, i32
  }
  func.func @transform_1(%arg0: i32) -> (i32, i32) {
    %c0_i32 = arith.constant 0 : i32
    %c0_i32_0 = arith.constant 0 : i32
    return %arg0, %c0_i32 : i32, i32
  }
  func.func @transform_2(%arg0: i32) -> (i32, i32) {
    %c0_i32 = arith.constant 0 : i32
    %c0_i32_0 = arith.constant 0 : i32
    return %c0_i32, %arg0 : i32, i32
  }
  func.func @transform_3(%arg0: i32) -> (i32, i32) {
    %c0_i32 = arith.constant 0 : i32
    %c0_i32_0 = arith.constant 0 : i32
    %c0_i32_1 = arith.constant 0 : i32
    return %c0_i32, %c0_i32_0 : i32, i32
  }
  func.func @transform_4(%arg0: i32) -> (i32, i32) {
    %c0_i32 = arith.constant 0 : i32
    %c0_i32_0 = arith.constant 0 : i32
    return %arg0, %c0_i32 : i32, i32
  }
  func.func @transform_5(%arg0: i32) -> (i32, i32) {
    %c0_i32 = arith.constant 0 : i32
    %c0_i32_0 = arith.constant 0 : i32
    %c0_i32_1 = arith.constant 0 : i32
    return %c0_i32, %c0_i32_0 : i32, i32
  }
  func.func @transform_6(%arg0: i32) -> (i32, i32) {
    %c0_i32 = arith.constant 0 : i32
    %c0_i32_0 = arith.constant 0 : i32
    %c0_i32_1 = arith.constant 0 : i32
    return %c0_i32, %c0_i32_0 : i32, i32
  }
  func.func @transform_7(%arg0: i32) -> (i32, i32) {
    %c0_i32 = arith.constant 0 : i32
    %c0_i32_0 = arith.constant 0 : i32
    %c0_i32_1 = arith.constant 0 : i32
    return %c0_i32, %c0_i32_0 : i32, i32
  }
  func.func @transform_8(%arg0: i32) -> (i32, i32) {
    %c0_i32 = arith.constant 0 : i32
    %c0_i32_0 = arith.constant 0 : i32
    %c0_i32_1 = arith.constant 0 : i32
    return %c0_i32, %c0_i32_0 : i32, i32
  }
  func.func @transform_9(%arg0: i32) -> (i32, i32) {
    %c0_i32 = arith.constant 0 : i32
    %c0_i32_0 = arith.constant 0 : i32
    %c0_i32_1 = arith.constant 0 : i32
    return %c0_i32, %c0_i32_0 : i32, i32
  }
  func.func @transform_10(%arg0: i32) -> (i32, i32) {
    %c0_i32 = arith.constant 0 : i32
    %c0_i32_0 = arith.constant 0 : i32
    %c0_i32_1 = arith.constant 0 : i32
    return %c0_i32, %c0_i32_0 : i32, i32
  }
}

module attributes {stable_mosaic.version = 11 : i64} {
  func.func @gat_apply_kernel(%arg0: i32, %arg1: memref<256x1xi32, #tpu.memory_space<vmem>>, %arg2: memref<256x1xi32, #tpu.memory_space<vmem>>, %arg3: memref<1x256xi32, #tpu.memory_space<vmem>>, %arg4: memref<64x384xbf16, #tpu.memory_space<vmem>>, %arg5: memref<256x128xbf16, #tpu.memory_space<vmem>>, %arg6: memref<128x128xbf16, #tpu.memory_space<vmem>>, %arg7: memref<128x128xbf16, #tpu.memory_space<vmem>>, %arg8: memref<128x128xbf16, #tpu.memory_space<vmem>>, %arg9: memref<128x128xbf16, #tpu.memory_space<vmem>>, %arg10: memref<128x128xbf16, #tpu.memory_space<vmem>>, %arg11: memref<1x128xf32, #tpu.memory_space<vmem>>, %arg12: memref<1x128xf32, #tpu.memory_space<vmem>>, %arg13: memref<64x128xf32, #tpu.memory_space<vmem>>, %arg14: memref<256x128xf32, #tpu.memory_space<vmem>>) attributes {dimension_semantics = [#tpu.dimension_semantics<arbitrary>], iteration_bounds = array<i64: 2>, scalar_prefetch = 0 : i64, scratch_operands = 0 : i64, tpu.core_type = #tpu.core_type<tc>, window_params = [{transform_indices = @transform_0, window_bounds = array<i64: 256, 1>}, {transform_indices = @transform_1, window_bounds = array<i64: 256, 1>}, {transform_indices = @transform_2, window_bounds = array<i64: 1, 256>}, {pipeline_mode = #tpu.pipeline_mode<synchronous>, transform_indices = @transform_3, window_bounds = array<i64: 64, 384>}, {transform_indices = @transform_4, window_bounds = array<i64: 256, 128>}, {pipeline_mode = #tpu.pipeline_mode<synchronous>, transform_indices = @transform_5, window_bounds = array<i64: 128, 128>}, {pipeline_mode = #tpu.pipeline_mode<synchronous>, transform_indices = @transform_6, window_bounds = array<i64: 128, 128>}, {pipeline_mode = #tpu.pipeline_mode<synchronous>, transform_indices = @transform_7, window_bounds = array<i64: 128, 128>}, {pipeline_mode = #tpu.pipeline_mode<synchronous>, transform_indices = @transform_8, window_bounds = array<i64: 128, 128>}, {pipeline_mode = #tpu.pipeline_mode<synchronous>, transform_indices = @transform_9, window_bounds = array<i64: 128, 128>}, {pipeline_mode = #tpu.pipeline_mode<synchronous>, transform_indices = @transform_10, window_bounds = array<i64: 1, 128>}, {pipeline_mode = #tpu.pipeline_mode<synchronous>, transform_indices = @transform_11, window_bounds = array<i64: 1, 128>}, {pipeline_mode = #tpu.pipeline_mode<synchronous>, transform_indices = @transform_12, window_bounds = array<i64: 64, 128>}, {transform_indices = @transform_13, window_bounds = array<i64: 256, 128>}]} {
    %c0_i32 = arith.constant 0 : i32
    %0 = arith.cmpi eq, %arg0, %c0_i32 : i32
    %1 = arith.extui %0 : i1 to i32
    %c0_i32_0 = arith.constant 0 : i32
    %2 = arith.cmpi ne, %1, %c0_i32_0 : i32
    scf.if %2 {
      %cst_40 = arith.constant 0.000000e+00 : f32
      %90 = vector.broadcast %cst_40 : f32 to vector<64x128xf32>
      %c0_41 = arith.constant 0 : index
      %c0_42 = arith.constant 0 : index
      %91 = vector.load %arg13[%c0_41, %c0_42] : memref<64x128xf32, #tpu.memory_space<vmem>>, vector<64x128xf32>
      tpu.vector_store %arg13[%c0_41, %c0_42], %90 {strides = array<i32>} : memref<64x128xf32, #tpu.memory_space<vmem>>, vector<64x128xf32>,
    } else {
    }
    %c0 = arith.constant 0 : index
    %c0_1 = arith.constant 0 : index
    %3 = vector.load %arg2[%c0, %c0_1] : memref<256x1xi32, #tpu.memory_space<vmem>>, vector<256x1xi32>
    %c64_i32 = arith.constant 64 : i32
    %4 = vector.broadcast %c64_i32 : i32 to vector<256x1xi32>
    %5 = arith.cmpi slt, %3, %4 : vector<256x1xi32>
    %c0_2 = arith.constant 0 : index
    %c0_3 = arith.constant 0 : index
    %6 = vector.load %arg1[%c0_2, %c0_3] : memref<256x1xi32, #tpu.memory_space<vmem>>, vector<256x1xi32>
    %7 = tpu.iota {dimensions = array<i32: 1>} : vector<256x64xi32>
    %8 = vector.broadcast %6 : vector<256x1xi32> to vector<256x64xi32>
    %9 = arith.cmpi eq, %8, %7 : vector<256x64xi32>
    %10 = arith.extui %9 : vector<256x64xi1> to vector<256x64xi32>
    %11 = arith.sitofp %10 : vector<256x64xi32> to vector<256x64xf32>
    %12 = arith.truncf %11 : vector<256x64xf32> to vector<256x64xbf16>
    %c0_4 = arith.constant 0 : index
    %c0_5 = arith.constant 0 : index
    %13 = vector.load %arg2[%c0_4, %c0_5] : memref<256x1xi32, #tpu.memory_space<vmem>>, vector<256x1xi32>
    %14 = tpu.iota {dimensions = array<i32: 1>} : vector<256x64xi32>
    %15 = vector.broadcast %13 : vector<256x1xi32> to vector<256x64xi32>
    %16 = arith.cmpi eq, %15, %14 : vector<256x64xi32>
    %17 = arith.extui %16 : vector<256x64xi1> to vector<256x64xi32>
    %18 = arith.sitofp %17 : vector<256x64xi32> to vector<256x64xf32>
    %19 = arith.truncf %18 : vector<256x64xf32> to vector<256x64xbf16>
    %c0_6 = arith.constant 0 : index
    %c0_7 = arith.constant 0 : index
    %20 = vector.load %arg3[%c0_6, %c0_7] : memref<1x256xi32, #tpu.memory_space<vmem>>, vector<1x256xi32>
    %21 = tpu.iota {dimensions = array<i32: 0>} : vector<64x256xi32>
    %22 = vector.broadcast %20 : vector<1x256xi32> to vector<64x256xi32>
    %23 = arith.cmpi eq, %21, %22 : vector<64x256xi32>
    %24 = arith.extui %23 : vector<64x256xi1> to vector<64x256xi32>
    %25 = arith.sitofp %24 : vector<64x256xi32> to vector<64x256xf32>
    %26 = arith.truncf %25 : vector<64x256xf32> to vector<64x256xbf16>
    %c0_8 = arith.constant 0 : index
    %c0_9 = arith.constant 0 : index
    %27 = vector.load %arg5[%c0_8, %c0_9] : memref<256x128xbf16, #tpu.memory_space<vmem>>, vector<256x128xbf16>
    %28 = arith.extf %27 : vector<256x128xbf16> to vector<256x128xf32>
    %c0_10 = arith.constant 0 : index
    %c0_11 = arith.constant 0 : index
    %29 = vector.load %arg4[%c0_10, %c0_11] : memref<64x384xbf16, #tpu.memory_space<vmem>>, vector<64x384xbf16>
    %cst = arith.constant dense<0.000000e+00> : vector<256x384xf32>
    %30 = tpu.matmul %19, %29, %cst {dimension_numbers = #tpu.dot_dimension_numbers<[1], [0], [0], [1], [0, 0, 1, 1], [], []>} : vector<256x64xbf16>, vector<64x384xbf16>, vector<256x384xf32> -> vector<256x384xf32>
    %31 = vector.extract_strided_slice %29 {offsets = [0, 0], sizes = [64, 256], strides = [1, 1]} : vector<64x384xbf16> to vector<64x256xbf16>
    %cst_12 = arith.constant dense<0.000000e+00> : vector<256x256xf32>
    %32 = tpu.matmul %12, %31, %cst_12 {dimension_numbers = #tpu.dot_dimension_numbers<[1], [0], [0], [1], [0, 0, 1, 1], [], []>} : vector<256x64xbf16>, vector<64x256xbf16>, vector<256x256xf32> -> vector<256x256xf32>
    %33 = vector.extract_strided_slice %30 {offsets = [0, 0], sizes = [256, 128], strides = [1, 1]} : vector<256x384xf32> to vector<256x128xf32>
    %34 = vector.extract_strided_slice %30 {offsets = [0, 128], sizes = [256, 128], strides = [1, 1]} : vector<256x384xf32> to vector<256x128xf32>
    %35 = vector.extract_strided_slice %30 {offsets = [0, 256], sizes = [256, 128], strides = [1, 1]} : vector<256x384xf32> to vector<256x128xf32>
    %36 = vector.extract_strided_slice %32 {offsets = [0, 0], sizes = [256, 128], strides = [1, 1]} : vector<256x256xf32> to vector<256x128xf32>
    %37 = vector.extract_strided_slice %32 {offsets = [0, 128], sizes = [256, 128], strides = [1, 1]} : vector<256x256xf32> to vector<256x128xf32>
    %c0_13 = arith.constant 0 : index
    %c0_14 = arith.constant 0 : index
    %38 = vector.load %arg6[%c0_13, %c0_14] : memref<128x128xbf16, #tpu.memory_space<vmem>>, vector<128x128xbf16>
    %cst_15 = arith.constant dense<0.000000e+00> : vector<256x128xf32>
    %39 = tpu.matmul %27, %38, %cst_15 {dimension_numbers = #tpu.dot_dimension_numbers<[1], [0], [0], [1], [0, 0, 1, 1], [], []>} : vector<256x128xbf16>, vector<128x128xbf16>, vector<256x128xf32> -> vector<256x128xf32>
    %40 = arith.addf %39, %34 : vector<256x128xf32>
    %cst_16 = arith.constant -1.000000e+30 : f32
    %41 = vector.shape_cast %5 : vector<256x1xi1> to vector<256x1xi1>
    %42 = vector.broadcast %41 : vector<256x1xi1> to vector<256x128xi1>
    %43 = vector.broadcast %cst_16 : f32 to vector<256x128xf32>
    %44 = arith.select %42, %40, %43 : vector<256x128xi1>, vector<256x128xf32>
    %c0_17 = arith.constant 0 : index
    %c0_18 = arith.constant 0 : index
    %45 = vector.load %arg11[%c0_17, %c0_18] : memref<1x128xf32, #tpu.memory_space<vmem>>, vector<1x128xf32>
    %46 = vector.broadcast %45 : vector<1x128xf32> to vector<256x128xf32>
    %47 = arith.subf %44, %46 : vector<256x128xf32>
    %48 = arith.addf %39, %37 : vector<256x128xf32>
    %cst_19 = arith.constant -1.000000e+30 : f32
    %49 = vector.shape_cast %5 : vector<256x1xi1> to vector<256x1xi1>
    %50 = vector.broadcast %49 : vector<256x1xi1> to vector<256x128xi1>
    %51 = vector.broadcast %cst_19 : f32 to vector<256x128xf32>
    %52 = arith.select %50, %48, %51 : vector<256x128xi1>, vector<256x128xf32>
    %c0_20 = arith.constant 0 : index
    %c0_21 = arith.constant 0 : index
    %53 = vector.load %arg12[%c0_20, %c0_21] : memref<1x128xf32, #tpu.memory_space<vmem>>, vector<1x128xf32>
    %54 = vector.broadcast %53 : vector<1x128xf32> to vector<256x128xf32>
    %55 = arith.subf %52, %54 : vector<256x128xf32>
    %56 = math.exp %47 : vector<256x128xf32>
    %cst_22 = arith.constant 9.99999974E-6 : f32
    %57 = vector.broadcast %cst_22 : f32 to vector<256x128xf32>
    %58 = arith.addf %35, %57 : vector<256x128xf32>
    %59 = tpu.reciprocal %58 {approx = true} : vector<256x128xf32> -> vector<256x128xf32>
    %60 = arith.mulf %56, %59 : vector<256x128xf32>
    %61 = arith.mulf %60, %28 : vector<256x128xf32>
    %62 = arith.truncf %61 : vector<256x128xf32> to vector<256x128xbf16>
    %c0_23 = arith.constant 0 : index
    %c0_24 = arith.constant 0 : index
    %63 = vector.load %arg13[%c0_23, %c0_24] : memref<64x128xf32, #tpu.memory_space<vmem>>, vector<64x128xf32>
    %cst_25 = arith.constant dense<0.000000e+00> : vector<64x128xf32>
    %64 = tpu.matmul %26, %62, %cst_25 {dimension_numbers = #tpu.dot_dimension_numbers<[1], [0], [0], [1], [0, 0, 1, 1], [], []>} : vector<64x256xbf16>, vector<256x128xbf16>, vector<64x128xf32> -> vector<64x128xf32>
    %65 = arith.addf %63, %64 : vector<64x128xf32>
    %c0_26 = arith.constant 0 : index
    %c0_27 = arith.constant 0 : index
    %66 = vector.load %arg13[%c0_26, %c0_27] : memref<64x128xf32, #tpu.memory_space<vmem>>, vector<64x128xf32>
    tpu.vector_store %arg13[%c0_26, %c0_27], %65 {strides = array<i32>} : memref<64x128xf32, #tpu.memory_space<vmem>>, vector<64x128xf32>,
    %67 = arith.subf %55, %47 : vector<256x128xf32>
    %68 = math.exp %67 : vector<256x128xf32>
    %cst_28 = arith.constant 1.000000e+00 : f32
    %69 = vector.broadcast %cst_28 : f32 to vector<256x128xf32>
    %70 = arith.addf %69, %68 : vector<256x128xf32>
    %71 = tpu.reciprocal %70 {approx = true} : vector<256x128xf32> -> vector<256x128xf32>
    %72 = arith.subf %33, %36 : vector<256x128xf32>
    %73 = arith.mulf %71, %72 : vector<256x128xf32>
    %74 = arith.addf %36, %73 : vector<256x128xf32>
    %75 = arith.truncf %74 : vector<256x128xf32> to vector<256x128xbf16>
    %c0_29 = arith.constant 0 : index
    %c0_30 = arith.constant 0 : index
    %76 = vector.load %arg7[%c0_29, %c0_30] : memref<128x128xbf16, #tpu.memory_space<vmem>>, vector<128x128xbf16>
    %cst_31 = arith.constant dense<0.000000e+00> : vector<256x128xf32>
    %77 = tpu.matmul %75, %76, %cst_31 {dimension_numbers = #tpu.dot_dimension_numbers<[1], [0], [0], [1], [0, 0, 1, 1], [], []>} : vector<256x128xbf16>, vector<128x128xbf16>, vector<256x128xf32> -> vector<256x128xf32>
    %c0_32 = arith.constant 0 : index
    %c0_33 = arith.constant 0 : index
    %78 = vector.load %arg8[%c0_32, %c0_33] : memref<128x128xbf16, #tpu.memory_space<vmem>>, vector<128x128xbf16>
    %cst_34 = arith.constant dense<0.000000e+00> : vector<256x128xf32>
    %79 = tpu.matmul %27, %78, %cst_34 {dimension_numbers = #tpu.dot_dimension_numbers<[1], [0], [0], [1], [0, 0, 1, 1], [], []>} : vector<256x128xbf16>, vector<128x128xbf16>, vector<256x128xf32> -> vector<256x128xf32>
    %80 = arith.addf %77, %79 : vector<256x128xf32>
    %cst_35 = arith.constant 0.000000e+00 : f32
    %81 = vector.broadcast %cst_35 : f32 to vector<256x128xf32>
    %82 = arith.cmpf oge, %80, %81 : vector<256x128xf32>
    %cst_36 = arith.constant 0.00999999977 : f32
    %83 = vector.broadcast %cst_36 : f32 to vector<256x128xf32>
    %84 = arith.mulf %83, %80 : vector<256x128xf32>
    %85 = arith.select %82, %80, %84 : vector<256x128xi1>, vector<256x128xf32>
    %c0_37 = arith.constant 0 : index
    %c0_38 = arith.constant 0 : index
    %86 = vector.load %arg14[%c0_37, %c0_38] : memref<256x128xf32, #tpu.memory_space<vmem>>, vector<256x128xf32>
    tpu.vector_store %arg14[%c0_37, %c0_38], %85 {strides = array<i32>} : memref<256x128xf32, #tpu.memory_space<vmem>>, vector<256x128xf32>,
    %c1_i32 = arith.constant 1 : i32
    %87 = arith.cmpi eq, %arg0, %c1_i32 : i32
    %88 = arith.extui %87 : i1 to i32
    %c0_i32_39 = arith.constant 0 : i32
    %89 = arith.cmpi ne, %88, %c0_i32_39 : i32
    scf.if %89 {
      %c0_40 = arith.constant 0 : index
      %c0_41 = arith.constant 0 : index
      %90 = vector.load %arg13[%c0_40, %c0_41] : memref<64x128xf32, #tpu.memory_space<vmem>>, vector<64x128xf32>
      %91 = arith.truncf %90 : vector<64x128xf32> to vector<64x128xbf16>
      %c0_42 = arith.constant 0 : index
      %c0_43 = arith.constant 0 : index
      %92 = vector.load %arg4[%c0_42, %c0_43] : memref<64x384xbf16, #tpu.memory_space<vmem>>, vector<64x128xbf16>
      %c0_44 = arith.constant 0 : index
      %c0_45 = arith.constant 0 : index
      %93 = vector.load %arg9[%c0_44, %c0_45] : memref<128x128xbf16, #tpu.memory_space<vmem>>, vector<128x128xbf16>
      %cst_46 = arith.constant dense<0.000000e+00> : vector<64x128xf32>
      %94 = tpu.matmul %91, %93, %cst_46 {dimension_numbers = #tpu.dot_dimension_numbers<[1], [0], [0], [1], [0, 0, 1, 1], [], []>} : vector<64x128xbf16>, vector<128x128xbf16>, vector<64x128xf32> -> vector<64x128xf32>
      %c0_47 = arith.constant 0 : index
      %c0_48 = arith.constant 0 : index
      %95 = vector.load %arg10[%c0_47, %c0_48] : memref<128x128xbf16, #tpu.memory_space<vmem>>, vector<128x128xbf16>
      %cst_49 = arith.constant dense<0.000000e+00> : vector<64x128xf32>
      %96 = tpu.matmul %92, %95, %cst_49 {dimension_numbers = #tpu.dot_dimension_numbers<[1], [0], [0], [1], [0, 0, 1, 1], [], []>} : vector<64x128xbf16>, vector<128x128xbf16>, vector<64x128xf32> -> vector<64x128xf32>
      %97 = arith.addf %94, %96 : vector<64x128xf32>
      %cst_50 = arith.constant 0.000000e+00 : f32
      %98 = vector.broadcast %cst_50 : f32 to vector<64x128xf32>
      %99 = arith.cmpf oge, %97, %98 : vector<64x128xf32>
      %cst_51 = arith.constant 0.00999999977 : f32
      %100 = vector.broadcast %cst_51 : f32 to vector<64x128xf32>
      %101 = arith.mulf %100, %97 : vector<64x128xf32>
      %102 = arith.select %99, %97, %101 : vector<64x128xi1>, vector<64x128xf32>
      %c0_52 = arith.constant 0 : index
      %c0_53 = arith.constant 0 : index
      %103 = vector.load %arg13[%c0_52, %c0_53] : memref<64x128xf32, #tpu.memory_space<vmem>>, vector<64x128xf32>
      tpu.vector_store %arg13[%c0_52, %c0_53], %102 {strides = array<i32>} : memref<64x128xf32, #tpu.memory_space<vmem>>, vector<64x128xf32>,
    } else {
    }
    return
  }
  func.func @transform_0(%arg0: i32) -> (i32, i32) {
    %c0_i32 = arith.constant 0 : i32
    %c0_i32_0 = arith.constant 0 : i32
    return %arg0, %c0_i32 : i32, i32
  }
  func.func @transform_1(%arg0: i32) -> (i32, i32) {
    %c0_i32 = arith.constant 0 : i32
    %c0_i32_0 = arith.constant 0 : i32
    return %arg0, %c0_i32 : i32, i32
  }
  func.func @transform_2(%arg0: i32) -> (i32, i32) {
    %c0_i32 = arith.constant 0 : i32
    %c0_i32_0 = arith.constant 0 : i32
    return %c0_i32, %arg0 : i32, i32
  }
  func.func @transform_3(%arg0: i32) -> (i32, i32) {
    %c0_i32 = arith.constant 0 : i32
    %c0_i32_0 = arith.constant 0 : i32
    %c0_i32_1 = arith.constant 0 : i32
    return %c0_i32, %c0_i32_0 : i32, i32
  }
  func.func @transform_4(%arg0: i32) -> (i32, i32) {
    %c0_i32 = arith.constant 0 : i32
    %c0_i32_0 = arith.constant 0 : i32
    return %arg0, %c0_i32 : i32, i32
  }
  func.func @transform_5(%arg0: i32) -> (i32, i32) {
    %c0_i32 = arith.constant 0 : i32
    %c0_i32_0 = arith.constant 0 : i32
    %c0_i32_1 = arith.constant 0 : i32
    return %c0_i32, %c0_i32_0 : i32, i32
  }
  func.func @transform_6(%arg0: i32) -> (i32, i32) {
    %c0_i32 = arith.constant 0 : i32
    %c0_i32_0 = arith.constant 0 : i32
    %c0_i32_1 = arith.constant 0 : i32
    return %c0_i32, %c0_i32_0 : i32, i32
  }
  func.func @transform_7(%arg0: i32) -> (i32, i32) {
    %c0_i32 = arith.constant 0 : i32
    %c0_i32_0 = arith.constant 0 : i32
    %c0_i32_1 = arith.constant 0 : i32
    return %c0_i32, %c0_i32_0 : i32, i32
  }
  func.func @transform_8(%arg0: i32) -> (i32, i32) {
    %c0_i32 = arith.constant 0 : i32
    %c0_i32_0 = arith.constant 0 : i32
    %c0_i32_1 = arith.constant 0 : i32
    return %c0_i32, %c0_i32_0 : i32, i32
  }
  func.func @transform_9(%arg0: i32) -> (i32, i32) {
    %c0_i32 = arith.constant 0 : i32
    %c0_i32_0 = arith.constant 0 : i32
    %c0_i32_1 = arith.constant 0 : i32
    return %c0_i32, %c0_i32_0 : i32, i32
  }
  func.func @transform_10(%arg0: i32) -> (i32, i32) {
    %c0_i32 = arith.constant 0 : i32
    %c0_i32_0 = arith.constant 0 : i32
    %c0_i32_1 = arith.constant 0 : i32
    return %c0_i32, %c0_i32_0 : i32, i32
  }
  func.func @transform_11(%arg0: i32) -> (i32, i32) {
    %c0_i32 = arith.constant 0 : i32
    %c0_i32_0 = arith.constant 0 : i32
    %c0_i32_1 = arith.constant 0 : i32
    return %c0_i32, %c0_i32_0 : i32, i32
  }
  func.func @transform_12(%arg0: i32) -> (i32, i32) {
    %c0_i32 = arith.constant 0 : i32
    %c0_i32_0 = arith.constant 0 : i32
    %c0_i32_1 = arith.constant 0 : i32
    return %c0_i32, %c0_i32_0 : i32, i32
  }
  func.func @transform_13(%arg0: i32) -> (i32, i32) {
    %c0_i32 = arith.constant 0 : i32
    %c0_i32_0 = arith.constant 0 : i32
    return %arg0, %c0_i32 : i32, i32
  }
}

module attributes {stable_mosaic.version = 11 : i64} {
  func.func @classifier_kernel(%arg0: i32, %arg1: memref<512x128xbf16, #tpu.memory_space<vmem>>, %arg2: memref<128x128xbf16, #tpu.memory_space<vmem>>, %arg3: memref<512x128xf32, #tpu.memory_space<vmem>>) attributes {dimension_semantics = [#tpu.dimension_semantics<parallel>], iteration_bounds = array<i64: 1>, scalar_prefetch = 0 : i64, scratch_operands = 0 : i64, tpu.core_type = #tpu.core_type<tc>, window_params = [{transform_indices = @transform_0, window_bounds = array<i64: 512, 128>}, {pipeline_mode = #tpu.pipeline_mode<synchronous>, transform_indices = @transform_1, window_bounds = array<i64: 128, 128>}, {transform_indices = @transform_2, window_bounds = array<i64: 512, 128>}]} {
    %c0 = arith.constant 0 : index
    %c0_0 = arith.constant 0 : index
    %0 = vector.load %arg1[%c0, %c0_0] : memref<512x128xbf16, #tpu.memory_space<vmem>>, vector<512x128xbf16>
    %c0_1 = arith.constant 0 : index
    %c0_2 = arith.constant 0 : index
    %1 = vector.load %arg2[%c0_1, %c0_2] : memref<128x128xbf16, #tpu.memory_space<vmem>>, vector<128x128xbf16>
    %cst = arith.constant dense<0.000000e+00> : vector<512x128xf32>
    %2 = tpu.matmul %0, %1, %cst {dimension_numbers = #tpu.dot_dimension_numbers<[1], [0], [0], [1], [0, 0, 1, 1], [], []>} : vector<512x128xbf16>, vector<128x128xbf16>, vector<512x128xf32> -> vector<512x128xf32>
    %c0_3 = arith.constant 0 : index
    %c0_4 = arith.constant 0 : index
    %3 = vector.load %arg3[%c0_3, %c0_4] : memref<512x128xf32, #tpu.memory_space<vmem>>, vector<512x128xf32>
    tpu.vector_store %arg3[%c0_3, %c0_4], %2 {strides = array<i32>} : memref<512x128xf32, #tpu.memory_space<vmem>>, vector<512x128xf32>,
    return
  }
  func.func @transform_0(%arg0: i32) -> (i32, i32) {
    %c0_i32 = arith.constant 0 : i32
    %c0_i32_0 = arith.constant 0 : i32
    return %arg0, %c0_i32 : i32, i32
  }
  func.func @transform_1(%arg0: i32) -> (i32, i32) {
    %c0_i32 = arith.constant 0 : i32
    %c0_i32_0 = arith.constant 0 : i32
    %c0_i32_1 = arith.constant 0 : i32
    return %c0_i32, %c0_i32_0 : i32, i32
  }
  func.func @transform_2(%arg0: i32) -> (i32, i32) {
    %c0_i32 = arith.constant 0 : i32
    %c0_i32_0 = arith.constant 0 : i32
    return %arg0, %c0_i32 : i32, i32
  }
}

module attributes {stable_mosaic.version = 11 : i64} {
  func.func @classifier_kernel(%arg0: i32, %arg1: memref<64x128xbf16, #tpu.memory_space<vmem>>, %arg2: memref<128x128xbf16, #tpu.memory_space<vmem>>, %arg3: memref<64x128xf32, #tpu.memory_space<vmem>>) attributes {dimension_semantics = [#tpu.dimension_semantics<parallel>], iteration_bounds = array<i64: 1>, scalar_prefetch = 0 : i64, scratch_operands = 0 : i64, tpu.core_type = #tpu.core_type<tc>, window_params = [{transform_indices = @transform_0, window_bounds = array<i64: 64, 128>}, {pipeline_mode = #tpu.pipeline_mode<synchronous>, transform_indices = @transform_1, window_bounds = array<i64: 128, 128>}, {transform_indices = @transform_2, window_bounds = array<i64: 64, 128>}]} {
    %c0 = arith.constant 0 : index
    %c0_0 = arith.constant 0 : index
    %0 = vector.load %arg1[%c0, %c0_0] : memref<64x128xbf16, #tpu.memory_space<vmem>>, vector<64x128xbf16>
    %c0_1 = arith.constant 0 : index
    %c0_2 = arith.constant 0 : index
    %1 = vector.load %arg2[%c0_1, %c0_2] : memref<128x128xbf16, #tpu.memory_space<vmem>>, vector<128x128xbf16>
    %cst = arith.constant dense<0.000000e+00> : vector<64x128xf32>
    %2 = tpu.matmul %0, %1, %cst {dimension_numbers = #tpu.dot_dimension_numbers<[1], [0], [0], [1], [0, 0, 1, 1], [], []>} : vector<64x128xbf16>, vector<128x128xbf16>, vector<64x128xf32> -> vector<64x128xf32>
    %c0_3 = arith.constant 0 : index
    %c0_4 = arith.constant 0 : index
    %3 = vector.load %arg3[%c0_3, %c0_4] : memref<64x128xf32, #tpu.memory_space<vmem>>, vector<64x128xf32>
    tpu.vector_store %arg3[%c0_3, %c0_4], %2 {strides = array<i32>} : memref<64x128xf32, #tpu.memory_space<vmem>>, vector<64x128xf32>,
    return
  }
  func.func @transform_0(%arg0: i32) -> (i32, i32) {
    %c0_i32 = arith.constant 0 : i32
    %c0_i32_0 = arith.constant 0 : i32
    return %arg0, %c0_i32 : i32, i32
  }
  func.func @transform_1(%arg0: i32) -> (i32, i32) {
    %c0_i32 = arith.constant 0 : i32
    %c0_i32_0 = arith.constant 0 : i32
    %c0_i32_1 = arith.constant 0 : i32
    return %c0_i32, %c0_i32_0 : i32, i32
  }
  func.func @transform_2(%arg0: i32) -> (i32, i32) {
    %c0_i32 = arith.constant 0 : i32
    %c0_i32_0 = arith.constant 0 : i32
    return %arg0, %c0_i32 : i32, i32
  }
}

</mosaic_0001>

<bundles_post_ra>
// kernel: gat_forward.11
= control target key start
LH: loop header
LB: loop body
LE: loop exit
PB: predicated region body
PF: predicated region fallthrough
CT: control target
= control target key end

     0   :  { %s1119_s1 = inlined_call_operand.vmem [shape: bf16[128,128], index: 1, kind: input, shape index: {}]   ;;  %s1120_s0 = inlined_call_operand.vmem [shape: bf16[512,128], index: 0, kind: input, shape index: {}]   ;;  %s1121_s2 = inlined_call_operand.vmem [shape: f32[512,128], index: 2, kind: output, shape index: {}]  }
   0x1   :  { %v767_v0 = vld [vmem:[%s1119_s1 + $0x38] sm:$0xff]  ;;  %v766_v1 = vld [vmem:[%s1119_s1 + $0x30] sm:$0xff]  ;;  %v765_v2 = vld [vmem:[%s1119_s1 + $0x28] sm:$0xff] }
   0x2   :  { %331 = vmatpush.bf16.msra.mxu0 %v767_v0  ;;  %768 = vmatpush.bf16.msra.mxu1 %v767_v0  ;;  %v764_v3 = vld [vmem:[%s1119_s1 + $0x20] sm:$0xff]  ;;  %v763_v4 = vld [vmem:[%s1119_s1 + $0x18] sm:$0xff]  ;;  %v762_v5 = vld [vmem:[%s1119_s1 + $0x10] sm:$0xff] }
   0x3   :  { %769 = vmatpush.bf16.msra.mxu2 %v767_v0  ;;  %770 = vmatpush.bf16.msra.mxu3 %v767_v0  ;;  %v761_v6 = vld [vmem:[%s1119_s1 + $0x8] sm:$0xff]  ;;  %v760_v7 = vld [vmem:[%s1119_s1] sm:$0xff]  ;;  %v730_v16 = vld [vmem:[%s1120_s0 + $0x10] sm:$0xff] }
   0x4   :  { %v728_v8 = vld [vmem:[%s1120_s0] sm:$0xff]  ;;  %v729_v12 = vld [vmem:[%s1120_s0 + $0x8] sm:$0xff]  ;;  %v738_v17 = vld [vmem:[%s1120_s0 + $0x50] sm:$0xff] }
   0x5   :  { %v736_v9 = vld [vmem:[%s1120_s0 + $0x40] sm:$0xff]  ;;  %v737_v13 = vld [vmem:[%s1120_s0 + $0x48] sm:$0xff]  ;;  %v746_v18 = vld [vmem:[%s1120_s0 + $0x90] sm:$0xff] }
   0x6   :  { %332 = vmatpush.bf16.msra.mxu0 %v766_v1  ;;  %771 = vmatpush.bf16.msra.mxu1 %v766_v1  ;;  %v744_v10 = vld [vmem:[%s1120_s0 + $0x80] sm:$0xff]  ;;  %v745_v14 = vld [vmem:[%s1120_s0 + $0x88] sm:$0xff]  ;;  %v754_v19 = vld [vmem:[%s1120_s0 + $0xd0] sm:$0xff] }
   0x7   :  { %772 = vmatpush.bf16.msra.mxu2 %v766_v1  ;;  %773 = vmatpush.bf16.msra.mxu3 %v766_v1  ;;  %v752_v11 = vld [vmem:[%s1120_s0 + $0xc0] sm:$0xff]  ;;  %v753_v15 = vld [vmem:[%s1120_s0 + $0xc8] sm:$0xff]  ;;  %v731_v20 = vld [vmem:[%s1120_s0 + $0x18] sm:$0xff] }
   0x8   :  { %v739_v21 = vld [vmem:[%s1120_s0 + $0x58] sm:$0xff]  ;;  %v732_v24 = vld [vmem:[%s1120_s0 + $0x20] sm:$0xff]  ;;  %v733_v28 = vld [vmem:[%s1120_s0 + $0x28] sm:$0xff] }
   0x9   :  { %v747_v22 = vld [vmem:[%s1120_s0 + $0x98] sm:$0xff]  ;;  %v740_v25 = vld [vmem:[%s1120_s0 + $0x60] sm:$0xff]  ;;  %v741_v29 = vld [vmem:[%s1120_s0 + $0x68] sm:$0xff] }
   0xa   :  { %333 = vmatpush.bf16.msra.mxu0 %v765_v2  ;;  %774 = vmatpush.bf16.msra.mxu1 %v765_v2  ;;  %v755_v23 = vld [vmem:[%s1120_s0 + $0xd8] sm:$0xff]  ;;  %v748_v26 = vld [vmem:[%s1120_s0 + $0xa0] sm:$0xff]  ;;  %v749_v30 = vld [vmem:[%s1120_s0 + $0xa8] sm:$0xff] }
   0xb   :  { %775 = vmatpush.bf16.msra.mxu2 %v765_v2  ;;  %776 = vmatpush.bf16.msra.mxu3 %v765_v2  ;;  %v756_v27 = vld [vmem:[%s1120_s0 + $0xe0] sm:$0xff]  ;;  %v757_v31 = vld [vmem:[%s1120_s0 + $0xe8] sm:$0xff]  ;;  %v734_v32 = vld [vmem:[%s1120_s0 + $0x30] sm:$0xff] }
   0xc   :  { %v742_v33 = vld [vmem:[%s1120_s0 + $0x70] sm:$0xff]  ;;  %v735_v36 = vld [vmem:[%s1120_s0 + $0x38] sm:$0xff] }
   0xd   :  { %v750_v34 = vld [vmem:[%s1120_s0 + $0xb0] sm:$0xff]  ;;  %v743_v37 = vld [vmem:[%s1120_s0 + $0x78] sm:$0xff] }
   0xe   :  { %334 = vmatpush.bf16.msra.mxu0 %v764_v3  ;;  %777 = vmatpush.bf16.msra.mxu1 %v764_v3  ;;  %v758_v35 = vld [vmem:[%s1120_s0 + $0xf0] sm:$0xff]  ;;  %v751_v38 = vld [vmem:[%s1120_s0 + $0xb8] sm:$0xff] }
   0xf   :  { %778 = vmatpush.bf16.msra.mxu2 %v764_v3  ;;  %779 = vmatpush.bf16.msra.mxu3 %v764_v3  ;;  %v759_v39 = vld [vmem:[%s1120_s0 + $0xf8] sm:$0xff] }
  0x12   :  { %335 = vmatpush.bf16.msra.mxu0 %v763_v4  ;;  %780 = vmatpush.bf16.msra.mxu1 %v763_v4 }
  0x13   :  { %781 = vmatpush.bf16.msra.mxu2 %v763_v4  ;;  %782 = vmatpush.bf16.msra.mxu3 %v763_v4 }
  0x16   :  { %336 = vmatpush.bf16.msra.mxu0 %v762_v5  ;;  %783 = vmatpush.bf16.msra.mxu1 %v762_v5 }
  0x17   :  { %784 = vmatpush.bf16.msra.mxu2 %v762_v5  ;;  %785 = vmatpush.bf16.msra.mxu3 %v762_v5 }
  0x1a   :  { %337 = vmatpush.bf16.msra.mxu0 %v761_v6  ;;  %786 = vmatpush.bf16.msra.mxu1 %v761_v6 }
  0x1b   :  { %787 = vmatpush.bf16.msra.mxu2 %v761_v6  ;;  %788 = vmatpush.bf16.msra.mxu3 %v761_v6 }
  0x1e   :  { %338 = vmatpush.bf16.msra.mxu0 %v760_v7  ;;  %789 = vmatpush.bf16.msra.mxu1 %v760_v7 }
  0x1f   :  { %790 = vmatpush.bf16.msra.mxu2 %v760_v7  ;;  %791 = vmatpush.bf16.msra.mxu3 %v760_v7 }
  0x21   :  { %339 = vmatmul.bf16.vlgmr.msra.gmra.mxu0 %v728_v8  ;;  %379 = vmatmul.bf16.vlgmr.msra.gmra.mxu1 %v736_v9 }
  0x22   :  { %419 = vmatmul.bf16.vlgmr.msra.gmra.mxu2 %v744_v10  ;;  %459 = vmatmul.bf16.vlgmr.msra.gmra.mxu3 %v752_v11 }
  0x31   :  { %344 = vmatmul.bf16.gmra.mxu0 %v729_v12  ;;  %384 = vmatmul.bf16.gmra.mxu1 %v737_v13 }
  0x32   :  { %424 = vmatmul.bf16.gmra.mxu2 %v745_v14  ;;  %464 = vmatmul.bf16.gmra.mxu3 %v753_v15 }
  0x41   :  { %349 = vmatmul.bf16.gmra.mxu0 %v730_v16  ;;  %389 = vmatmul.bf16.gmra.mxu1 %v738_v17 }
  0x42   :  { %429 = vmatmul.bf16.gmra.mxu2 %v746_v18  ;;  %469 = vmatmul.bf16.gmra.mxu3 %v754_v19 }
  0x51   :  { %354 = vmatmul.bf16.gmra.mxu0 %v731_v20  ;;  %394 = vmatmul.bf16.gmra.mxu1 %v739_v21 }
  0x52   :  { %434 = vmatmul.bf16.gmra.mxu2 %v747_v22  ;;  %474 = vmatmul.bf16.gmra.mxu3 %v755_v23 }
  0x61   :  { %359 = vmatmul.bf16.gmra.mxu0 %v732_v24  ;;  %399 = vmatmul.bf16.gmra.mxu1 %v740_v25 }
  0x62   :  { %439 = vmatmul.bf16.gmra.mxu2 %v748_v26  ;;  %479 = vmatmul.bf16.gmra.mxu3 %v756_v27 }
  0x71   :  { %364 = vmatmul.bf16.gmra.mxu0 %v733_v28  ;;  %404 = vmatmul.bf16.gmra.mxu1 %v741_v29 }
  0x72   :  { %444 = vmatmul.bf16.gmra.mxu2 %v749_v30  ;;  %484 = vmatmul.bf16.gmra.mxu3 %v757_v31 }
  0x81   :  { %369 = vmatmul.bf16.gmra.mxu0 %v734_v32  ;;  %409 = vmatmul.bf16.gmra.mxu1 %v742_v33 }
  0x82   :  { %449 = vmatmul.bf16.gmra.mxu2 %v750_v34  ;;  %489 = vmatmul.bf16.gmra.mxu3 %v758_v35 }
  0x91   :  { %374 = vmatmul.bf16.gmra.mxu0 %v735_v36  ;;  %414 = vmatmul.bf16.gmra.mxu1 %v743_v37 }
  0x92   :  { %454 = vmatmul.bf16.gmra.mxu2 %v751_v38  ;;  %494 = vmatmul.bf16.gmra.mxu3 %v759_v39 }
  0x9e   :  { %v340_v40 = vpop.f32.mrf.mxu0  ;;  %v380_v41 = vpop.f32.mrf.mxu1 }
  0x9f   :  { %500 = vst [vmem:[%s1121_s2] sm:$0xff] %v340_v40 }
  0xa0   :  { %516 = vst [vmem:[%s1121_s2 + $0x80] sm:$0xff] %v380_v41 }
  0xa5   :  { %v420_v42 = vpop.f32.mrf.mxu2  ;;  %v460_v43 = vpop.f32.mrf.mxu3 }
  0xa6   :  { %532 = vst [vmem:[%s1121_s2 + $0x100] sm:$0xff] %v420_v42  ;;  %v342_v44 = vpop.f32.mrf.mxu0  ;;  %v382_v45 = vpop.f32.mrf.mxu1 }
  0xa7   :  { %548 = vst [vmem:[%s1121_s2 + $0x180] sm:$0xff] %v460_v43 }
  0xa8   :  { %501 = vst [vmem:[%s1121_s2 + $0x8] sm:$0xff] %v342_v44 }
  0xa9   :  { %517 = vst [vmem:[%s1121_s2 + $0x88] sm:$0xff] %v382_v45 }
  0xad   :  { %v422_v46 = vpop.f32.mrf.mxu2  ;;  %v462_v47 = vpop.f32.mrf.mxu3 }
  0xae   :  { %533 = vst [vmem:[%s1121_s2 + $0x108] sm:$0xff] %v422_v46  ;;  %v345_v48 = vpop.f32.mrf.mxu0  ;;  %v385_v49 = vpop.f32.mrf.mxu1 }
  0xaf   :  { %549 = vst [vmem:[%s1121_s2 + $0x188] sm:$0xff] %v462_v47 }
  0xb0   :  { %502 = vst [vmem:[%s1121_s2 + $0x10] sm:$0xff] %v345_v48 }
  0xb1   :  { %518 = vst [vmem:[%s1121_s2 + $0x90] sm:$0xff] %v385_v49 }
  0xb5   :  { %v425_v50 = vpop.f32.mrf.mxu2  ;;  %v465_v51 = vpop.f32.mrf.mxu3 }
  0xb6   :  { %534 = vst [vmem:[%s1121_s2 + $0x110] sm:$0xff] %v425_v50  ;;  %v347_v52 = vpop.f32.mrf.mxu0  ;;  %v387_v53 = vpop.f32.mrf.mxu1 }
  0xb7   :  { %550 = vst [vmem:[%s1121_s2 + $0x190] sm:$0xff] %v465_v51 }
  0xb8   :  { %503 = vst [vmem:[%s1121_s2 + $0x18] sm:$0xff] %v347_v52 }
  0xb9   :  { %519 = vst [vmem:[%s1121_s2 + $0x98] sm:$0xff] %v387_v53 }
  0xbd   :  { %v427_v54 = vpop.f32.mrf.mxu2  ;;  %v467_v55 = vpop.f32.mrf.mxu3 }
  0xbe   :  { %535 = vst [vmem:[%s1121_s2 + $0x118] sm:$0xff] %v427_v54  ;;  %v350_v56 = vpop.f32.mrf.mxu0  ;;  %v390_v57 = vpop.f32.mrf.mxu1 }
  0xbf   :  { %551 = vst [vmem:[%s1121_s2 + $0x198] sm:$0xff] %v467_v55 }
  0xc0   :  { %504 = vst [vmem:[%s1121_s2 + $0x20] sm:$0xff] %v350_v56 }
  0xc1   :  { %520 = vst [vmem:[%s1121_s2 + $0xa0] sm:$0xff] %v390_v57 }
  0xc5   :  { %v430_v58 = vpop.f32.mrf.mxu2  ;;  %v470_v59 = vpop.f32.mrf.mxu3 }
  0xc6   :  { %536 = vst [vmem:[%s1121_s2 + $0x120] sm:$0xff] %v430_v58  ;;  %v352_v60 = vpop.f32.mrf.mxu0  ;;  %v392_v61 = vpop.f32.mrf.mxu1 }
  0xc7   :  { %552 = vst [vmem:[%s1121_s2 + $0x1a0] sm:$0xff] %v470_v59 }
  0xc8   :  { %505 = vst [vmem:[%s1121_s2 + $0x28] sm:$0xff] %v352_v60 }
  0xc9   :  { %521 = vst [vmem:[%s1121_s2 + $0xa8] sm:$0xff] %v392_v61 }
  0xcd   :  { %v432_v62 = vpop.f32.mrf.mxu2  ;;  %v472_v63 = vpop.f32.mrf.mxu3 }
  0xce   :  { %537 = vst [vmem:[%s1121_s2 + $0x128] sm:$0xff] %v432_v62  ;;  %v355_v0 = vpop.f32.mrf.mxu0  ;;  %v395_v1 = vpop.f32.mrf.mxu1 }
  0xcf   :  { %553 = vst [vmem:[%s1121_s2 + $0x1a8] sm:$0xff] %v472_v63 }
  0xd0   :  { %506 = vst [vmem:[%s1121_s2 + $0x30] sm:$0xff] %v355_v0 }
  0xd1   :  { %522 = vst [vmem:[%s1121_s2 + $0xb0] sm:$0xff] %v395_v1 }
  0xd5   :  { %v435_v2 = vpop.f32.mrf.mxu2  ;;  %v475_v3 = vpop.f32.mrf.mxu3 }
  0xd6   :  { %538 = vst [vmem:[%s1121_s2 + $0x130] sm:$0xff] %v435_v2  ;;  %v357_v4 = vpop.f32.mrf.mxu0  ;;  %v397_v5 = vpop.f32.mrf.mxu1 }
  0xd7   :  { %554 = vst [vmem:[%s1121_s2 + $0x1b0] sm:$0xff] %v475_v3 }
  0xd8   :  { %507 = vst [vmem:[%s1121_s2 + $0x38] sm:$0xff] %v357_v4 }
  0xd9   :  { %523 = vst [vmem:[%s1121_s2 + $0xb8] sm:$0xff] %v397_v5 }
  0xdd   :  { %v437_v6 = vpop.f32.mrf.mxu2  ;;  %v477_v7 = vpop.f32.mrf.mxu3 }
  0xde   :  { %539 = vst [vmem:[%s1121_s2 + $0x138] sm:$0xff] %v437_v6  ;;  %v360_v8 = vpop.f32.mrf.mxu0  ;;  %v400_v9 = vpop.f32.mrf.mxu1 }
  0xdf   :  { %555 = vst [vmem:[%s1121_s2 + $0x1b8] sm:$0xff] %v477_v7 }
  0xe0   :  { %508 = vst [vmem:[%s1121_s2 + $0x40] sm:$0xff] %v360_v8 }
  0xe1   :  { %524 = vst [vmem:[%s1121_s2 + $0xc0] sm:$0xff] %v400_v9 }
  0xe5   :  { %v440_v10 = vpop.f32.mrf.mxu2  ;;  %v480_v11 = vpop.f32.mrf.mxu3 }
  0xe6   :  { %540 = vst [vmem:[%s1121_s2 + $0x140] sm:$0xff] %v440_v10  ;;  %v362_v12 = vpop.f32.mrf.mxu0  ;;  %v402_v13 = vpop.f32.mrf.mxu1 }
  0xe7   :  { %556 = vst [vmem:[%s1121_s2 + $0x1c0] sm:$0xff] %v480_v11 }
  0xe8   :  { %509 = vst [vmem:[%s1121_s2 + $0x48] sm:$0xff] %v362_v12 }
  0xe9   :  { %525 = vst [vmem:[%s1121_s2 + $0xc8] sm:$0xff] %v402_v13 }
  0xed   :  { %v442_v14 = vpop.f32.mrf.mxu2  ;;  %v482_v15 = vpop.f32.mrf.mxu3 }
  0xee   :  { %541 = vst [vmem:[%s1121_s2 + $0x148] sm:$0xff] %v442_v14  ;;  %v365_v16 = vpop.f32.mrf.mxu0  ;;  %v405_v17 = vpop.f32.mrf.mxu1 }
  0xef   :  { %557 = vst [vmem:[%s1121_s2 + $0x1c8] sm:$0xff] %v482_v15 }
  0xf0   :  { %510 = vst [vmem:[%s1121_s2 + $0x50] sm:$0xff] %v365_v16 }
  0xf1   :  { %526 = vst [vmem:[%s1121_s2 + $0xd0] sm:$0xff] %v405_v17 }
  0xf5   :  { %v445_v18 = vpop.f32.mrf.mxu2  ;;  %v485_v19 = vpop.f32.mrf.mxu3 }
  0xf6   :  { %542 = vst [vmem:[%s1121_s2 + $0x150] sm:$0xff] %v445_v18  ;;  %v367_v20 = vpop.f32.mrf.mxu0  ;;  %v407_v21 = vpop.f32.mrf.mxu1 }
  0xf7   :  { %558 = vst [vmem:[%s1121_s2 + $0x1d0] sm:$0xff] %v485_v19 }
  0xf8   :  { %511 = vst [vmem:[%s1121_s2 + $0x58] sm:$0xff] %v367_v20 }
  0xf9   :  { %527 = vst [vmem:[%s1121_s2 + $0xd8] sm:$0xff] %v407_v21 }
  0xfd   :  { %v447_v22 = vpop.f32.mrf.mxu2  ;;  %v487_v23 = vpop.f32.mrf.mxu3 }
  0xfe   :  { %543 = vst [vmem:[%s1121_s2 + $0x158] sm:$0xff] %v447_v22  ;;  %v370_v24 = vpop.f32.mrf.mxu0  ;;  %v410_v25 = vpop.f32.mrf.mxu1 }
  0xff   :  { %559 = vst [vmem:[%s1121_s2 + $0x1d8] sm:$0xff] %v487_v23 }
 0x100   :  { %512 = vst [vmem:[%s1121_s2 + $0x60] sm:$0xff] %v370_v24 }
 0x101   :  { %528 = vst [vmem:[%s1121_s2 + $0xe0] sm:$0xff] %v410_v25 }
 0x105   :  { %v450_v26 = vpop.f32.mrf.mxu2  ;;  %v490_v27 = vpop.f32.mrf.mxu3 }
 0x106   :  { %544 = vst [vmem:[%s1121_s2 + $0x160] sm:$0xff] %v450_v26  ;;  %v372_v28 = vpop.f32.mrf.mxu0  ;;  %v412_v29 = vpop.f32.mrf.mxu1 }
 0x107   :  { %560 = vst [vmem:[%s1121_s2 + $0x1e0] sm:$0xff] %v490_v27 }
 0x108   :  { %513 = vst [vmem:[%s1121_s2 + $0x68] sm:$0xff] %v372_v28 }
 0x109   :  { %529 = vst [vmem:[%s1121_s2 + $0xe8] sm:$0xff] %v412_v29 }
 0x10d   :  { %v452_v30 = vpop.f32.mrf.mxu2  ;;  %v492_v31 = vpop.f32.mrf.mxu3 }
 0x10e   :  { %545 = vst [vmem:[%s1121_s2 + $0x168] sm:$0xff] %v452_v30  ;;  %v375_v32 = vpop.f32.mrf.mxu0  ;;  %v415_v33 = vpop.f32.mrf.mxu1 }
 0x10f   :  { %561 = vst [vmem:[%s1121_s2 + $0x1e8] sm:$0xff] %v492_v31 }
 0x110   :  { %514 = vst [vmem:[%s1121_s2 + $0x70] sm:$0xff] %v375_v32 }
 0x111   :  { %530 = vst [vmem:[%s1121_s2 + $0xf0] sm:$0xff] %v415_v33 }
 0x115   :  { %v455_v34 = vpop.f32.mrf.mxu2  ;;  %v495_v35 = vpop.f32.mrf.mxu3 }
 0x116   :  { %546 = vst [vmem:[%s1121_s2 + $0x170] sm:$0xff] %v455_v34  ;;  %v377_v36 = vpop.f32.mrf.mxu0  ;;  %v417_v37 = vpop.f32.mrf.mxu1 }
 0x117   :  { %562 = vst [vmem:[%s1121_s2 + $0x1f0] sm:$0xff] %v495_v35 }
 0x118   :  { %515 = vst [vmem:[%s1121_s2 + $0x78] sm:$0xff] %v377_v36 }
 0x119   :  { %531 = vst [vmem:[%s1121_s2 + $0xf8] sm:$0xff] %v417_v37 }
 0x11d   :  { %v457_v38 = vpop.f32.mrf.mxu2  ;;  %v497_v39 = vpop.f32.mrf.mxu3 }
 0x11e   :  { %547 = vst [vmem:[%s1121_s2 + $0x178] sm:$0xff] %v457_v38 }
 0x11f   :  { %563 = vst [vmem:[%s1121_s2 + $0x1f8] sm:$0xff] %v497_v39 }

// kernel: gat_forward.6
= control target key start
LH: loop header
LB: loop body
LE: loop exit
PB: predicated region body
PF: predicated region fallthrough
CT: control target
= control target key end

     0   :  { %s2933_s13 = smov 0   ;;  %s4485_s0 = inlined_call_operand.vmem [shape: s32[512,1], index: 0, kind: input, shape index: {}]   ;;  %s4486_s1 = inlined_call_operand.vmem [shape: s32[512,1], index: 1, kind: input, shape index: {}]   ;;  %s4487_s2 = inlined_call_operand.vmem [shape: s32[1,512], index: 2, kind: input, shape index: {}]   ;;  %s4488_s3 = inlined_call_operand.vmem [shape: bf16[64,128], index: 3, kind: input, shape index: {}]   ;;  %s4489_s4 = inlined_call_operand.vmem [shape: bf16[512,128], index: 4, kind: input, shape index: {}]   ;;  %s4490_s5 = inlined_call_operand.vmem [shape: bf16[128,128], index: 5, kind: input, shape index: {}]   ;;  %s4491_s6 = inlined_call_operand.vmem [shape: bf16[128,128], index: 6, kind: input, shape index: {}]   ;;  %s4492_s7 = inlined_call_operand.vmem [shape: f32[1,128], index: 7, kind: output, shape index: {0}]   ;;  %s4493_s8 = inlined_call_operand.vmem [shape: f32[1,128], index: 8, kind: output, shape index: {1}]   ;;  %s4494_s9 = inlined_call_operand.vmem [shape: f32[64,128], index: 9, kind: output, shape index: {2}]   ;;  %s4495_s10 = inlined_call_operand.vmem [shape: bf16[64,128], index: 10, kind: output, shape index: {3}]  }
   0x1 LB: > { %s2386_s14 = sadd.s32 4294967295, %s2871_s13   ;;  %p2389_p0 = scmp.ge.s32.totalorder %s2871_s13, 1  ;;  %s2871_s13 = sphi %s2933_s13, %s21_s13  }
   0x2   : > { %p332_p1 = scmp.lt.s32.totalorder %s2871_s13, 3 }
   0x4   : > { %p333_p2 = pnand %p2389_p0, %p332_p1 }
   0x6   : > { %336 = sbr.rel (%p333_p2) target bundleno = 1036 (0x40c), region = 48 }
   0xb   : > { %s2390_s15 = sshll.u32 %s2386_s14, 5  ;;  %s2394_s16 = sshll.u32 %s2386_s14, 1 }
   0xc   : > { %p380_p3 = scmp.lt.s32.totalorder %s2390_s15, 63  ;;  %p392_p4 = scmp.lt.s32.totalorder %s2394_s16, 3 }
   0xd   : > { %p2397_p5 = scmp.ne.s32.totalorder %s2386_s14, 0 }
   0xe   : > { %s4641_s15 = smov (!%p380_p3, %s2390_s15), 63  ;;  %s4643_s16 = smov (!%p392_p4, %s2394_s16), 3 }
   0xf   : > { %s2391_s17 = sshll.u32 %s4641_s15, 3  ;;  %s2396_s18 = sshll.u32 %s4641_s15, 2 }
  0x10   : > { %s2946_s21 = scalar_lea.vmem %s4485_s0, %s2391_s17  ;;  %s2951_s24 = scalar_lea.vmem %s4486_s1, %s2391_s17 }
  0x11   : > { %s394_s27 = scalar_lea.vmem %s4487_s2, %s4643_s16  ;;  %s2960_s30 = scalar_lea.vmem %s4489_s4, %s2396_s18 }
  0x12   : > { %406 = sbr.rel (%p2397_p5) target bundleno = 200 (0xc8), region = 52 }
  0x17   : > { %v2699_v0 = vld [vmem:[%s4491_s6 + $0x38] sm:$0xff]  ;;  %v2873_v1 = vmov -1e+30   ;;  %v2698_v2 = vld [vmem:[%s4491_s6 + $0x30] sm:$0xff]  ;;  %v2874_v3 = vmov 0.0   ;;  %v2697_v4 = vld [vmem:[%s4491_s6 + $0x28] sm:$0xff] }
  0x18   : > { %407 = vst [vmem:[%s4492_s7] sm:$0x1] %v2873_v1  ;;  %513 = vmatpush.bf16.msra.mxu0 %v2699_v0  ;;  %2751 = vmatpush.bf16.msra.mxu1 %v2699_v0  ;;  %v2696_v5 = vld [vmem:[%s4491_s6 + $0x20] sm:$0xff]  ;;  %v2695_v6 = vld [vmem:[%s4491_s6 + $0x18] sm:$0xff]  ;;  %v2694_v7 = vld [vmem:[%s4491_s6 + $0x10] sm:$0xff] }
  0x19   : > { %408 = vst [vmem:[%s4493_s8] sm:$0x1] %v2873_v1  ;;  %2752 = vmatpush.bf16.msra.mxu2 %v2699_v0  ;;  %2753 = vmatpush.bf16.msra.mxu3 %v2699_v0  ;;  %v2693_v8 = vld [vmem:[%s4491_s6 + $0x8] sm:$0xff]  ;;  %v2692_v9 = vld [vmem:[%s4491_s6] sm:$0xff]  ;;  %v2690_v12 = vld [vmem:[%s4488_s3 + $0x10] sm:$0xff] }
  0x1a   : > { %409 = vst [vmem:[%s4494_s9] sm:$0xff] %v2874_v3  ;;  %v2688_v10 = vld [vmem:[%s4488_s3] sm:$0xff]  ;;  %v2689_v11 = vld [vmem:[%s4488_s3 + $0x8] sm:$0xff]  ;;  %v2691_v13 = vld [vmem:[%s4488_s3 + $0x18] sm:$0xff] }
  0x1b   : > { %410 = vst [vmem:[%s4494_s9 + $0x8] sm:$0xff] %v2874_v3 }
  0x1c   : > { %411 = vst [vmem:[%s4494_s9 + $0x10] sm:$0xff] %v2874_v3  ;;  %514 = vmatpush.bf16.msra.mxu0 %v2698_v2  ;;  %2754 = vmatpush.bf16.msra.mxu1 %v2698_v2 }
  0x1d   : > { %412 = vst [vmem:[%s4494_s9 + $0x18] sm:$0xff] %v2874_v3  ;;  %2755 = vmatpush.bf16.msra.mxu2 %v2698_v2  ;;  %2756 = vmatpush.bf16.msra.mxu3 %v2698_v2 }
  0x1e   : > { %413 = vst [vmem:[%s4494_s9 + $0x20] sm:$0xff] %v2874_v3 }
  0x1f   : > { %414 = vst [vmem:[%s4494_s9 + $0x28] sm:$0xff] %v2874_v3 }
  0x20   : > { %415 = vst [vmem:[%s4494_s9 + $0x30] sm:$0xff] %v2874_v3  ;;  %515 = vmatpush.bf16.msra.mxu0 %v2697_v4  ;;  %2757 = vmatpush.bf16.msra.mxu1 %v2697_v4 }
  0x21   : > { %416 = vst [vmem:[%s4494_s9 + $0x38] sm:$0xff] %v2874_v3  ;;  %2758 = vmatpush.bf16.msra.mxu2 %v2697_v4  ;;  %2759 = vmatpush.bf16.msra.mxu3 %v2697_v4 }
  0x24   : > { %516 = vmatpush.bf16.msra.mxu0 %v2696_v5  ;;  %2760 = vmatpush.bf16.msra.mxu1 %v2696_v5 }
  0x25   : > { %2761 = vmatpush.bf16.msra.mxu2 %v2696_v5  ;;  %2762 = vmatpush.bf16.msra.mxu3 %v2696_v5 }
  0x28   : > { %517 = vmatpush.bf16.msra.mxu0 %v2695_v6  ;;  %2763 = vmatpush.bf16.msra.mxu1 %v2695_v6 }
  0x29   : > { %2764 = vmatpush.bf16.msra.mxu2 %v2695_v6  ;;  %2765 = vmatpush.bf16.msra.mxu3 %v2695_v6 }
  0x2c   : > { %518 = vmatpush.bf16.msra.mxu0 %v2694_v7  ;;  %2766 = vmatpush.bf16.msra.mxu1 %v2694_v7 }
  0x2d   : > { %2767 = vmatpush.bf16.msra.mxu2 %v2694_v7  ;;  %2768 = vmatpush.bf16.msra.mxu3 %v2694_v7 }
  0x30   : > { %519 = vmatpush.bf16.msra.mxu0 %v2693_v8  ;;  %2769 = vmatpush.bf16.msra.mxu1 %v2693_v8 }
  0x31   : > { %2770 = vmatpush.bf16.msra.mxu2 %v2693_v8  ;;  %2771 = vmatpush.bf16.msra.mxu3 %v2693_v8 }
  0x34   : > { %520 = vmatpush.bf16.msra.mxu0 %v2692_v9  ;;  %2772 = vmatpush.bf16.msra.mxu1 %v2692_v9 }
  0x35   : > { %2773 = vmatpush.bf16.msra.mxu2 %v2692_v9  ;;  %2774 = vmatpush.bf16.msra.mxu3 %v2692_v9 }
  0x37   : > { %521 = vmatmul.bf16.vlgmr.msra.gmra.mxu0 %v2688_v10  ;;  %526 = vmatmul.bf16.vlgmr.msra.gmra.mxu1 %v2689_v11 }
  0x38   : > { %531 = vmatmul.bf16.vlgmr.msra.gmra.mxu2 %v2690_v12  ;;  %536 = vmatmul.bf16.vlgmr.msra.gmra.mxu3 %v2691_v13 }
  0xb4   : > { %v522_v14 = vpop.f32.mrf.mxu0  ;;  %v527_v15 = vpop.f32.mrf.mxu1 }
  0xbb   : > { %v532_v16 = vpop.f32.mrf.mxu2  ;;  %v537_v17 = vpop.f32.mrf.mxu3 }
  0xbc   : > { %v524_v18 = vpop.f32.mrf.mxu0  ;;  %v529_v19 = vpop.f32.mrf.mxu1 }
  0xbd   : > { %v2731_v20 = vpack.c.bf16 %v524_v18, %v522_v14  ;;  %v2736_v21 = vpack.c.bf16 %v529_v19, %v527_v15 }
  0xbf   : > { %2732 = vst [vmem:[%s4495_s10] sm:$0xff] %v2731_v20  }
  0xc0   : > { %2748 = vst [vmem:[%s4495_s10 + $0x8] sm:$0xff] %v2736_v21  }
  0xc3   : > { %v534_v22 = vpop.f32.mrf.mxu2  ;;  %v539_v23 = vpop.f32.mrf.mxu3 }
  0xc4   : > { %v2741_v24 = vpack.c.bf16 %v534_v22, %v532_v16  ;;  %v2746_v25 = vpack.c.bf16 %v539_v23, %v537_v17 }
  0xc6   : > { %2749 = vst [vmem:[%s4495_s10 + $0x10] sm:$0xff] %v2741_v24  }
  0xc7   : > { %2750 = vst [vmem:[%s4495_s10 + $0x18] sm:$0xff] %v2746_v25  }
  0xc8 PF: > { %v3041_v26 = vld [vmem:[%s2951_s24 + $0x20] sm:$0xff]  ;;  %v3044_v27 = vld [vmem:[%s2951_s24 + $0x10] sm:$0xff]  ;;  %v2875_v29 = vmov 0   ;;  %v3056_v30 = vld [vmem:[%s2951_s24 + $0x28] sm:$0xff]  ;;  %v4496_v25 = vlaneseq  ;;  %vm1453_vm11 = vcmask 523264  }
  0xc9   : > { %v3047_v28 = vld [vmem:[%s2951_s24] sm:$0xff]  ;;  %2798 = vset.pattern.permute.xlu2 %v2875_v29  ;;  %2797 = vset.pattern.permute.xlu1 %v2875_v29  ;;  %v3059_v31 = vld [vmem:[%s2951_s24 + $0x18] sm:$0xff]  ;;  %v3062_v32 = vld [vmem:[%s2951_s24 + $0x8] sm:$0xff]  ;;  %vm592_vm0 = vcmp.lt.s32.totalorder %v3044_v27, 64  ;;  %vm595_vm3 = vcmp.lt.s32.totalorder %v3056_v30, 64  ;;  %vm594_vm4 = vcmp.lt.s32.totalorder %v3041_v26, 64 }
  0xca   : > { %2796 = vset.pattern.permute.xlu0 %v2875_v29  ;;  %877 = vperm.xlu2 %2798, %v3041_v26   ;;  %v3068_v33 = vld [vmem:[%s2951_s24 + $0x40] sm:$0xff]  ;;  %v3071_v34 = vld [vmem:[%s2951_s24 + $0x38] sm:$0xff]  ;;  %v3074_v35 = vld [vmem:[%s2951_s24 + $0x30] sm:$0xff]  ;;  %vm590_vm1 = vcmp.lt.s32.totalorder %v3047_v28, 64  ;;  %vm591_vm2 = vcmp.lt.s32.totalorder %v3062_v32, 64  ;;  %v1625_v21 = vsel %vm592_vm0, 1, %v2875_v29 }
  0xcb   : > { %871 = vperm.xlu1 %2797, %v3044_v27   ;;  %865 = vperm.xlu0 %2796, %v3047_v28   ;;  %v3080_v36 = vld [vmem:[%s2951_s24 + $0x58] sm:$0xff]  ;;  %v3083_v37 = vld [vmem:[%s2951_s24 + $0x50] sm:$0xff]  ;;  %v3086_v38 = vld [vmem:[%s2951_s24 + $0x48] sm:$0xff]  ;;  %v1624_v22 = vsel %vm591_vm2, 1, %v2875_v29  ;;  %v1623_v23 = vsel %vm590_vm1, 1, %v2875_v29  ;;  %vm593_vm5 = vcmp.lt.s32.totalorder %v3059_v31, 64 }
  0xcc   : > { %v3092_v39 = vld [vmem:[%s2951_s24 + $0x70] sm:$0xff]  ;;  %v3095_v40 = vld [vmem:[%s2951_s24 + $0x68] sm:$0xff]  ;;  %v3098_v41 = vld [vmem:[%s2951_s24 + $0x60] sm:$0xff]  ;;  %vm598_vm7 = vcmp.lt.s32.totalorder %v3068_v33, 64  ;;  %vm597_vm8 = vcmp.lt.s32.totalorder %v3071_v34, 64  ;;  %vm596_vm9 = vcmp.lt.s32.totalorder %v3074_v35, 64 }
  0xcd   : > { %v3104_v42 = vld [vmem:[%s2951_s24 + $0x88] sm:$0xff]  ;;  %v3107_v43 = vld [vmem:[%s2951_s24 + $0x80] sm:$0xff]  ;;  %v3110_v44 = vld [vmem:[%s2951_s24 + $0x78] sm:$0xff]  ;;  %vm601_vm12 = vcmp.lt.s32.totalorder %v3080_v36, 64  ;;  %vm600_vm13 = vcmp.lt.s32.totalorder %v3083_v37, 64  ;;  %vm599_vm14 = vcmp.lt.s32.totalorder %v3086_v38, 64 }
  0xce   : > { %v3116_v45 = vld [vmem:[%s2951_s24 + $0xa0] sm:$0xff]  ;;  %v3119_v46 = vld [vmem:[%s2951_s24 + $0x98] sm:$0xff]  ;;  %v3122_v47 = vld [vmem:[%s2951_s24 + $0x90] sm:$0xff]  ;;  %vm604_vm2 = vcmp.lt.s32.totalorder %v3092_v39, 64 }
  0xcf   : > { %v3128_v48 = vld [vmem:[%s2951_s24 + $0xb8] sm:$0xff]  ;;  %v3131_v49 = vld [vmem:[%s2951_s24 + $0xb0] sm:$0xff]  ;;  %v3134_v50 = vld [vmem:[%s2951_s24 + $0xa8] sm:$0xff] }
  0xd0   : > { %v2727_v51 = vld [vmem:[%s4490_s5 + $0x38] sm:$0xff]  ;;  %v3143_v52 = vld [vmem:[%s2951_s24 + $0xd0] sm:$0xff]  ;;  %v3146_v53 = vld [vmem:[%s2951_s24 + $0xc8] sm:$0xff] }
  0xd1   : > { %v3149_v54 = vld [vmem:[%s2951_s24 + $0xc0] sm:$0xff]  ;;  %1340 = vmatpush.bf16.msra.mxu0 %v2727_v51  ;;  %2775 = vmatpush.bf16.msra.mxu3 %v2727_v51  ;;  %v2726_v55 = vld [vmem:[%s4490_s5 + $0x30] sm:$0xff]  ;;  %v3158_v56 = vld [vmem:[%s2951_s24 + $0xe8] sm:$0xff] }
  0xd2   : > { %880 = vperm.xlu2 %2798, %v3056_v30   ;;  %v3161_v57 = vld [vmem:[%s2951_s24 + $0xe0] sm:$0xff]  ;;  %v3164_v58 = vld [vmem:[%s2951_s24 + $0xd8] sm:$0xff]  ;;  %v2725_v59 = vld [vmem:[%s4490_s5 + $0x28] sm:$0xff] }
  0xd3   : > { %874 = vperm.xlu1 %2797, %v3059_v31   ;;  %868 = vperm.xlu0 %2796, %v3062_v32   ;;  %v2724_v60 = vld [vmem:[%s4490_s5 + $0x20] sm:$0xff]  ;;  %v2703_v61 = vld [vmem:[%s4495_s10 + $0x18] sm:$0xff]  ;;  %v3183_v0 = vld [vmem:[%s2951_s24 + $0xf0] sm:$0xff]  ;;  %v1628_v32 = vsel %vm595_vm3, 1, %v2875_v29  ;;  %vm603_vm3 = vcmp.lt.s32.totalorder %v3095_v40, 64 }
  0xd4   : > { %v622_v62 = vld [vmem:[%s2946_s21] sm:$0xff]  ;;  %v3180_v63 = vld [vmem:[%s2951_s24 + $0xf8] sm:$0xff]  ;;  %1506 = vmatpush.bf16.msra.mxu1 %v2703_v61  ;;  %1867 = vmatpush.bf16.msra.mxu2 %v2703_v61  ;;  %v2722_v2 = vld [vmem:[%s4490_s5 + $0x10] sm:$0xff]  ;;  %v4497_v61 = vmov 0.0  }
  0xd5   : > { %1341 = vmatpush.bf16.msra.mxu0 %v2726_v55  ;;  %2776 = vmatpush.bf16.msra.mxu3 %v2726_v55  ;;  %v2723_v1 = vld [vmem:[%s4490_s5 + $0x18] sm:$0xff]  ;;  %v2702_v3 = vld [vmem:[%s4495_s10 + $0x10] sm:$0xff]  ;;  %v623_v6 = vld [vmem:[%s2946_s21 + $0x8] sm:$0xff]  ;;  %v3236_v55 = vand.u32 127, %v4496_v25 }
  0xd6   : > { %v625_v4 = vld [vmem:[%s2946_s21 + $0x18] sm:$0xff]  ;;  %v624_v5 = vld [vmem:[%s2946_s21 + $0x10] sm:$0xff]  ;;  %v2721_v7 = vld [vmem:[%s4490_s5 + $0x8] sm:$0xff] }
  0xd7   : > { %v2701_v8 = vld [vmem:[%s4495_s10 + $0x8] sm:$0xff]  ;;  %v2720_v10 = vld [vmem:[%s4490_s5] sm:$0xff]  ;;  %v628_v12 = vld [vmem:[%s2946_s21 + $0x30] sm:$0xff] }
  0xd8   : > { %1507 = vmatpush.bf16.msra.mxu1 %v2702_v3  ;;  %1868 = vmatpush.bf16.msra.mxu2 %v2702_v3  ;;  %v2700_v11 = vld [vmem:[%s4495_s10] sm:$0xff]  ;;  %v627_v13 = vld [vmem:[%s2946_s21 + $0x28] sm:$0xff]  ;;  %v629_v19 = vld [vmem:[%s2946_s21 + $0x38] sm:$0xff] }
  0xd9   : > { %1342 = vmatpush.bf16.msra.mxu0 %v2725_v59  ;;  %2777 = vmatpush.bf16.msra.mxu3 %v2725_v59  ;;  %v626_v14 = vld [vmem:[%s2946_s21 + $0x20] sm:$0xff]  ;;  %v631_v17 = vld [vmem:[%s2946_s21 + $0x48] sm:$0xff]  ;;  %v1627_v59 = vsel %vm594_vm4, 1, %v2875_v29  ;;  %vm602_vm4 = vcmp.lt.s32.totalorder %v3098_v41, 64 }
  0xda   : > { %889 = vperm.xlu2 %2798, %v3068_v33   ;;  %v2704_v15 = vld [vmem:[%s2960_s30] sm:$0xff]  ;;  %v2705_v24 = vld [vmem:[%s2960_s30 + $0x8] sm:$0xff]  ;;  %v1629_v33 = vsel %vm596_vm9, 1, %v2875_v29 }
  0xdb   : > { %886 = vperm.xlu1 %2797, %v3071_v34   ;;  %883 = vperm.xlu0 %2796, %v3074_v35   ;;  %v630_v18 = vld [vmem:[%s2946_s21 + $0x40] sm:$0xff] }
  0xdc   : > { %1508 = vmatpush.bf16.msra.mxu1 %v2701_v8  ;;  %1869 = vmatpush.bf16.msra.mxu2 %v2701_v8  ;;  %v1633_v8 = vsel %vm600_vm13, 1, %v2875_v29 }
  0xdd   : > { %1343 = vmatpush.bf16.msra.mxu0 %v2724_v60  ;;  %2778 = vmatpush.bf16.msra.mxu3 %v2724_v60  ;;  %v1626_v60 = vsel %vm593_vm5, 1, %v2875_v29 }
  0xe0   : > { %1509 = vmatpush.bf16.msra.mxu1 %v2700_v11  ;;  %1870 = vmatpush.bf16.msra.mxu2 %v2700_v11 }
  0xe1   : > { %1344 = vmatpush.bf16.msra.mxu0 %v2723_v1  ;;  %2779 = vmatpush.bf16.msra.mxu3 %v2723_v1 }
  0xe2   : > { %898 = vperm.xlu2 %2798, %v3080_v36  }
  0xe3   : > { %895 = vperm.xlu1 %2797, %v3083_v37   ;;  %892 = vperm.xlu0 %2796, %v3086_v38  }
  0xe5   : > { %1345 = vmatpush.bf16.msra.mxu0 %v2722_v2  ;;  %2780 = vmatpush.bf16.msra.mxu3 %v2722_v2  ;;  %v1631_v2 = vsel %vm598_vm7, 1, %v2875_v29  ;;  %vm606_vm7 = vcmp.lt.s32.totalorder %v3107_v43, 64 }
  0xe9   : > { %1346 = vmatpush.bf16.msra.mxu0 %v2721_v7  ;;  %2781 = vmatpush.bf16.msra.mxu3 %v2721_v7  ;;  %v1634_v7 = vsel %vm601_vm12, 1, %v2875_v29 }
  0xea   : > { %907 = vperm.xlu2 %2798, %v3092_v39   ;;  %v1637_v39 = vsel %vm604_vm2, 1, %v2875_v29  ;;  %vm608_vm2 = vcmp.lt.s32.totalorder %v3122_v47, 64 }
  0xeb   : > { %904 = vperm.xlu1 %2797, %v3095_v40   ;;  %901 = vperm.xlu0 %2796, %v3098_v41  }
  0xed   : > { %1347 = vmatpush.bf16.msra.mxu0 %v2720_v10  ;;  %2782 = vmatpush.bf16.msra.mxu3 %v2720_v10  ;;  %v1632_v10 = vsel %vm599_vm14, 1, %v2875_v29 }
  0xf0   : > { %1348 = vmatmul.bf16.vlgmr.msra.gmra.mxu0 %v2704_v15 }
  0xf2   : > { %916 = vperm.xlu2 %2798, %v3104_v42  }
  0xf3   : > { %913 = vperm.xlu1 %2797, %v3107_v43   ;;  %910 = vperm.xlu0 %2796, %v3110_v44  }
  0xfa   : > { %925 = vperm.xlu2 %2798, %v3116_v45  }
  0xfb   : > { %922 = vperm.xlu1 %2797, %v3119_v46   ;;  %919 = vperm.xlu0 %2796, %v3122_v47  }
 0x100   : > { %1353 = vmatmul.bf16.gmra.mxu0 %v2705_v24 }
 0x102   : > { %934 = vperm.xlu2 %2798, %v3128_v48  }
 0x103   : > { %931 = vperm.xlu1 %2797, %v3131_v49   ;;  %928 = vperm.xlu0 %2796, %v3134_v50  }
 0x10a   : > { %943 = vperm.xlu2 %2798, %v3143_v52  }
 0x10b   : > { %940 = vperm.xlu1 %2797, %v3146_v53   ;;  %937 = vperm.xlu0 %2796, %v3149_v54  }
 0x112   : > { %952 = vperm.xlu2 %2798, %v3158_v56  }
 0x113   : > { %949 = vperm.xlu1 %2797, %v3161_v57   ;;  %946 = vperm.xlu0 %2796, %v3164_v58  }
 0x11a   : > { %657 = vperm.xlu2 %2798, %v622_v62  }
 0x11b   : > { %958 = vperm.xlu1 %2797, %v3180_v63   ;;  %955 = vperm.xlu0 %2796, %v3183_v0  }
 0x122   : > { %666 = vperm.xlu2 %2798, %v625_v4   ;;  %v1630_v4 = vsel %vm597_vm8, 1, %v2875_v29  ;;  %vm605_vm8 = vcmp.lt.s32.totalorder %v3110_v44, 64  ;;  %v1639_v44 = vsel %vm606_vm7, 1, %v2875_v29  ;;  %vm611_vm7 = vcmp.lt.s32.totalorder %v3134_v50, 64 }
 0x123   : > { %663 = vperm.xlu1 %2797, %v624_v5   ;;  %660 = vperm.xlu0 %2796, %v623_v6   ;;  %v2706_v5 = vld [vmem:[%s2960_s30 + $0x10] sm:$0xff] }
 0x124   : > { %v3205_v9 = vpop.permute.xlu2 %877  ;;  %1358 = vmatmul.bf16.gmra.mxu0 %v2706_v5 }
 0x125   : > { %vm964_vm12 = vcmp.eq.s32.totalorder %v3205_v9, %v3236_v55 }
 0x126   : > { %v2482_v9 = vsel %vm964_vm12, 1.0, %v4497_v61 }
 0x12a   : > { %675 = vperm.xlu2 %2798, %v628_v12  }
 0x12b   : > { %672 = vperm.xlu1 %2797, %v627_v13   ;;  %669 = vperm.xlu0 %2796, %v626_v14  }
 0x12c   : > { %v3217_v16 = vpop.permute.xlu2 %880 }
 0x12d   : > { %vm965_vm13 = vcmp.eq.s32.totalorder %v3217_v16, %v3236_v55 }
 0x132   : > { %684 = vperm.xlu2 %2798, %v631_v17   ;;  %v1636_v17 = vsel %vm603_vm3, 1, %v2875_v29 }
 0x133   : > { %681 = vperm.xlu1 %2797, %v630_v18   ;;  %678 = vperm.xlu0 %2796, %v629_v19   ;;  %v1635_v18 = vsel %vm602_vm4, 1, %v2875_v29  ;;  %v2707_v19 = vld [vmem:[%s2960_s30 + $0x18] sm:$0xff] }
 0x134   : > { %v3223_v20 = vpop.permute.xlu2 %889  ;;  %1363 = vmatmul.bf16.gmra.mxu0 %v2707_v19  ;;  %v633_v19 = vld [vmem:[%s2946_s21 + $0x58] sm:$0xff] }
 0x13a   : > { %1662 = vperm.xlu2 %2798, %v1625_v21  }
 0x13b   : > { %1659 = vperm.xlu1 %2797, %v1624_v22   ;;  %1656 = vperm.xlu0 %2796, %v1623_v23  }
 0x13c   : > { %v899_v51 = vpop.permute.xlu2 %898 }
 0x13d   : > { %v872_v27 = vpop.permute.xlu1 %871  ;;  %v866_v28 = vpop.permute.xlu0 %865  ;;  %vm971_vm15 = vcmp.eq.s32.totalorder %v899_v51, %v3236_v55  ;;  %v1638_v51 = vsel %vm605_vm8, 1, %v2875_v29 }
 0x13e   : > { %vm960_vm6 = vcmp.eq.s32.totalorder %v866_v28, %v3236_v55  ;;  %vm962_vm0 = vcmp.eq.s32.totalorder %v872_v27, %v3236_v55  ;;  %v3274_v37 = vsel %vm971_vm15, 1.0, %v4497_v61  ;;  %v2483_v27 = vsel %vm965_vm13, 1.0, %v4497_v61 }
 0x13f   : > { %v2478_v62 = vsel %vm960_vm6, 1.0, %v4497_v61  ;;  %v2480_v38 = vsel %vm962_vm0, 1.0, %v4497_v61  ;;  %vm607_vm6 = vcmp.lt.s32.totalorder %v3104_v42, 64  ;;  %vm610_vm0 = vcmp.lt.s32.totalorder %v3116_v45, 64 }
 0x140   : > { %v1640_v42 = vsel %vm607_vm6, 1, %v2875_v29  ;;  %vm612_vm6 = vcmp.lt.s32.totalorder %v3131_v49, 64  ;;  %v1644_v49 = vsel %vm611_vm7, 1, %v2875_v29  ;;  %vm968_vm7 = vcmp.eq.s32.totalorder %v3223_v20, %v3236_v55 }
 0x141   : > { %v2486_v20 = vsel %vm968_vm7, 1.0, %v4497_v61 }
 0x142   : > { %1671 = vperm.xlu2 %2798, %v1628_v32  }
 0x143   : > { %1668 = vperm.xlu1 %2797, %v1627_v59   ;;  %1665 = vperm.xlu0 %2796, %v1626_v60   ;;  %v1058_v59 = vpack.c.bf16 %v2483_v27, %v2482_v9 }
 0x144   : > { %v3241_v26 = vpop.permute.xlu2 %907 }
 0x145   : > { %v875_v30 = vpop.permute.xlu1 %874  ;;  %v869_v31 = vpop.permute.xlu0 %868  ;;  %vm974_vm14 = vcmp.eq.s32.totalorder %v3241_v26, %v3236_v55 }
 0x146   : > { %vm961_vm10 = vcmp.eq.s32.totalorder %v869_v31, %v3236_v55  ;;  %vm963_vm1 = vcmp.eq.s32.totalorder %v875_v30, %v3236_v55  ;;  %v3326_v60 = vsel %vm974_vm14, 1.0, %v4497_v61 }
 0x147   : > { %v2479_v1 = vsel %vm961_vm10, 1.0, %v4497_v61  ;;  %v2481_v11 = vsel %vm963_vm1, 1.0, %v4497_v61  ;;  %vm609_vm1 = vcmp.lt.s32.totalorder %v3119_v46, 64  ;;  %v1643_v46 = vsel %vm610_vm0, 1, %v2875_v29 }
 0x148   : > { %v1056_v3 = vpack.c.bf16 %v2479_v1, %v2478_v62  ;;  %v1057_v40 = vpack.c.bf16 %v2481_v11, %v2480_v38  ;;  %v1642_v62 = vsel %vm609_vm1, 1, %v2875_v29  ;;  %v1641_v1 = vsel %vm608_vm2, 1, %v2875_v29 }
 0x149   : > { %vm617_vm2 = vcmp.lt.s32.totalorder %v3164_v58, 64 }
 0x14a   : > { %2638 = vmatmul.msk.bf16.vlgmr.msra.gmra.mxu1 %vm1453_vm11, %v1056_v3  ;;  %1680 = vperm.xlu2 %2798, %v1631_v2   ;;  %v2708_v2 = vld [vmem:[%s2960_s30 + $0x20] sm:$0xff]  ;;  %v1650_v58 = vsel %vm617_vm2, 1, %v2875_v29 }
 0x14b   : > { %1677 = vperm.xlu1 %2797, %v1630_v4   ;;  %1674 = vperm.xlu0 %2796, %v1629_v33  }
 0x14c   : > { %v3254_v34 = vpop.permute.xlu2 %916  ;;  %1368 = vmatmul.bf16.gmra.mxu0 %v2708_v2  ;;  %v2717_v2 = vld [vmem:[%s2960_s30 + $0x68] sm:$0xff] }
 0x14d   : > { %v3257_v35 = vpop.permute.xlu1 %886  ;;  %v3259_v6 = vpop.permute.xlu0 %883  ;;  %vm977_vm15 = vcmp.eq.s32.totalorder %v3254_v34, %v3236_v55 }
 0x14e   : > { %v3331_v26 = vsel %vm977_vm15, 1.0, %v4497_v61  ;;  %vm966_vm12 = vcmp.eq.s32.totalorder %v3259_v6, %v3236_v55  ;;  %vm614_vm15 = vcmp.lt.s32.totalorder %v3149_v54, 64 }
 0x14f   : > { %v2484_v6 = vsel %vm966_vm12, 1.0, %v4497_v61  ;;  %vm620_vm12 = vcmp.lt.s32.totalorder %v3183_v0, 64 }
 0x152   : > { %1689 = vperm.xlu2 %2798, %v1634_v7  }
 0x153   : > { %1686 = vperm.xlu1 %2797, %v1633_v8   ;;  %1683 = vperm.xlu0 %2796, %v1632_v10   ;;  %v1645_v8 = vsel %vm612_vm6, 1, %v2875_v29 }
 0x154   : > { %v3269_v36 = vpop.permute.xlu2 %925 }
 0x155   : > { %v896_v12 = vpop.permute.xlu1 %895  ;;  %v3278_v13 = vpop.permute.xlu0 %892  ;;  %vm980_vm13 = vcmp.eq.s32.totalorder %v3269_v36, %v3236_v55 }
 0x156   : > { %vm970_vm5 = vcmp.eq.s32.totalorder %v896_v12, %v3236_v55  ;;  %v3380_v36 = vsel %vm980_vm13, 1.0, %v4497_v61  ;;  %vm619_vm13 = vcmp.lt.s32.totalorder %v3158_v56, 64  ;;  %v1653_v56 = vsel %vm620_vm12, 1, %v2875_v29 }
 0x157   : > { %v3283_v14 = vsel %vm970_vm5, 1.0, %v4497_v61  ;;  %vm613_vm5 = vcmp.lt.s32.totalorder %v3128_v48, 64 }
 0x158   : > { %v1061_v15 = vpack.c.bf16 %v3274_v37, %v3283_v14  ;;  %v1646_v7 = vsel %vm613_vm5, 1, %v2875_v29 }
 0x15a   : > { %2639 = vmatmul.msk.bf16.gmra.mxu1 %vm1453_vm11, %v1057_v40  ;;  %1698 = vperm.xlu2 %2798, %v1637_v39   ;;  %v1647_v39 = vsel %vm614_vm15, 1, %v2875_v29 }
 0x15b   : > { %1695 = vperm.xlu1 %2797, %v1636_v17   ;;  %1692 = vperm.xlu0 %2796, %v1635_v18  }
 0x15c   : > { %v3292_v41 = vpop.permute.xlu2 %934 }
 0x15d   : > { %v905_v21 = vpop.permute.xlu1 %904  ;;  %v902_v22 = vpop.permute.xlu0 %901  ;;  %vm983_vm14 = vcmp.eq.s32.totalorder %v3292_v41, %v3236_v55  ;;  %v632_v41 = vld [vmem:[%s2946_s21 + $0x50] sm:$0xff] }
 0x15e   : > { %vm973_vm9 = vcmp.eq.s32.totalorder %v905_v21, %v3236_v55  ;;  %vm972_vm10 = vcmp.eq.s32.totalorder %v902_v22, %v3236_v55  ;;  %v3385_v11 = vsel %vm983_vm14, 1.0, %v4497_v61  ;;  %v2709_v21 = vld [vmem:[%s2960_s30 + $0x28] sm:$0xff]  ;;  %vm618_vm14 = vcmp.lt.s32.totalorder %v3161_v57, 64 }
 0x15f   : > { %v3302_v23 = vsel %vm973_vm9, 1.0, %v4497_v61  ;;  %v3305_v24 = vsel %vm972_vm10, 1.0, %v4497_v61  ;;  %vm967_vm10 = vcmp.eq.s32.totalorder %v3257_v35, %v3236_v55  ;;  %1373 = vmatmul.bf16.gmra.mxu0 %v2709_v21 }
 0x160   : > { %v1062_v43 = vpack.c.bf16 %v3302_v23, %v3305_v24  ;;  %v2485_v35 = vsel %vm967_vm10, 1.0, %v4497_v61  ;;  %v645_v23 = vld [vmem:[%s2946_s21 + $0xb8] sm:$0xff] }
 0x161   : > { %v1059_v40 = vpack.c.bf16 %v2485_v35, %v2484_v6 }
 0x162   : > { %1707 = vperm.xlu2 %2798, %v1640_v42  }
 0x163   : > { %1704 = vperm.xlu1 %2797, %v1639_v44   ;;  %1701 = vperm.xlu0 %2796, %v1638_v51  }
 0x164   : > { %v3320_v16 = vpop.permute.xlu2 %943 }
 0x165   : > { %v914_v28 = vpop.permute.xlu1 %913  ;;  %v911_v32 = vpop.permute.xlu0 %910 }
 0x166   : > { %vm976_vm3 = vcmp.eq.s32.totalorder %v914_v28, %v3236_v55  ;;  %vm975_vm4 = vcmp.eq.s32.totalorder %v911_v32, %v3236_v55 }
 0x167   : > { %v3334_v45 = vsel %vm976_vm3, 1.0, %v4497_v61  ;;  %v3337_v30 = vsel %vm975_vm4, 1.0, %v4497_v61  ;;  %vm616_vm3 = vcmp.lt.s32.totalorder %v3143_v52, 64  ;;  %vm615_vm4 = vcmp.lt.s32.totalorder %v3146_v53, 64 }
 0x168   : > { %v1064_v47 = vpack.c.bf16 %v3331_v26, %v3334_v45  ;;  %v1063_v31 = vpack.c.bf16 %v3337_v30, %v3326_v60  ;;  %v1649_v53 = vsel %vm616_vm3, 1, %v2875_v29  ;;  %v1648_v27 = vsel %vm615_vm4, 1, %v2875_v29 }
 0x16a   : > { %2640 = vmatmul.msk.bf16.gmra.mxu1 %vm1453_vm11, %v1058_v59  ;;  %1716 = vperm.xlu2 %2798, %v1643_v46  }
 0x16b   : > { %1713 = vperm.xlu1 %2797, %v1642_v62   ;;  %1710 = vperm.xlu0 %2796, %v1641_v1  }
 0x16c   : > { %v3348_v3 = vpop.permute.xlu2 %952 }
 0x16d   : > { %v923_v4 = vpop.permute.xlu1 %922  ;;  %v920_v33 = vpop.permute.xlu0 %919  ;;  %vm989_vm10 = vcmp.eq.s32.totalorder %v3348_v3, %v3236_v55  ;;  %v1652_v3 = vsel %vm619_vm13, 1, %v2875_v29 }
 0x16e   : > { %vm979_vm8 = vcmp.eq.s32.totalorder %v923_v4, %v3236_v55  ;;  %vm978_vm9 = vcmp.eq.s32.totalorder %v920_v33, %v3236_v55  ;;  %v1651_v4 = vsel %vm618_vm14, 1, %v2875_v29  ;;  %v2710_v33 = vld [vmem:[%s2960_s30 + $0x30] sm:$0xff] }
 0x16f   : > { %v3356_v5 = vsel %vm979_vm8, 1.0, %v4497_v61  ;;  %v3359_v34 = vsel %vm978_vm9, 1.0, %v4497_v61  ;;  %vm969_vm8 = vcmp.eq.s32.totalorder %v3278_v13, %v3236_v55  ;;  %vm986_vm9 = vcmp.eq.s32.totalorder %v3320_v16, %v3236_v55  ;;  %1378 = vmatmul.bf16.gmra.mxu0 %v2710_v33  ;;  %v644_v33 = vld [vmem:[%s2946_s21 + $0xb0] sm:$0xff] }
 0x170   : > { %v1065_v48 = vpack.c.bf16 %v3356_v5, %v3359_v34  ;;  %v2487_v28 = vsel %vm969_vm8, 1.0, %v4497_v61  ;;  %v3436_v62 = vsel %vm986_vm9, 1.0, %v4497_v61  ;;  %v3441_v16 = vsel %vm989_vm10, 1.0, %v4497_v61  ;;  %v2716_v34 = vld [vmem:[%s2960_s30 + $0x60] sm:$0xff] }
 0x171   : > { %v1060_v46 = vpack.c.bf16 %v2487_v28, %v2486_v20 }
 0x172   : > { %1725 = vperm.xlu2 %2798, %v1646_v7  }
 0x173   : > { %1722 = vperm.xlu1 %2797, %v1645_v8   ;;  %1719 = vperm.xlu0 %2796, %v1644_v49  }
 0x174   : > { %v3374_v50 = vpop.permute.xlu2 %657 }
 0x175   : > { %v932_v10 = vpop.permute.xlu1 %931  ;;  %v929_v38 = vpop.permute.xlu0 %928  ;;  %vm752_vm4 = vcmp.eq.s32.totalorder %v3374_v50, %v3236_v55 }
 0x176   : > { %vm982_vm0 = vcmp.eq.s32.totalorder %v932_v10, %v3236_v55  ;;  %vm981_vm1 = vcmp.eq.s32.totalorder %v929_v38, %v3236_v55  ;;  %v635_v10 = vld [vmem:[%s2946_s21 + $0x68] sm:$0xff]  ;;  %v2446_v21 = vsel %vm752_vm4, 1.0, %v4497_v61 }
 0x177   : > { %v3388_v54 = vsel %vm982_vm0, 1.0, %v4497_v61  ;;  %v3391_v12 = vsel %vm981_vm1, 1.0, %v4497_v61  ;;  %vm621_vm1 = vcmp.lt.s32.totalorder %v3180_v63, 64 }
 0x178   : > { %v1067_v17 = vpack.c.bf16 %v3385_v11, %v3388_v54  ;;  %v1066_v18 = vpack.c.bf16 %v3391_v12, %v3380_v36  ;;  %v1654_v63 = vsel %vm621_vm1, 1, %v2875_v29  ;;  %v638_v29 = vld [vmem:[%s2946_s21 + $0x80] sm:$0xff]  ;;  %v4556_v54 = vmov 0.0  }
 0x17a   : > { %2641 = vmatmul.msk.bf16.gmra.mxu1 %vm1453_vm11, %v1059_v40  ;;  %1728 = vperm.xlu2 %2798, %v1647_v39   ;;  %v634_v39 = vld [vmem:[%s2946_s21 + $0x60] sm:$0xff] }
 0x17b   : > { %690 = vperm.xlu1 %2797, %v633_v19   ;;  %687 = vperm.xlu0 %2796, %v632_v41  }
 0x17c   : > { %v3402_v22 = vpop.permute.xlu2 %666 }
 0x17d   : > { %v941_v42 = vpop.permute.xlu1 %940  ;;  %v938_v44 = vpop.permute.xlu0 %937  ;;  %vm755_vm7 = vcmp.eq.s32.totalorder %v3402_v22, %v3236_v55  ;;  %v2712_v22 = vld [vmem:[%s2960_s30 + $0x40] sm:$0xff] }
 0x17e   : > { %vm985_vm5 = vcmp.eq.s32.totalorder %v941_v42, %v3236_v55  ;;  %vm984_vm6 = vcmp.eq.s32.totalorder %v938_v44, %v3236_v55 }
 0x17f   : > { %v3412_v51 = vsel %vm985_vm5, 1.0, %v4497_v61  ;;  %v3415_v9 = vsel %vm984_vm6, 1.0, %v4497_v61 }
 0x182   : > { %1737 = vperm.xlu2 %2798, %v1650_v58   ;;  %v637_v58 = vld [vmem:[%s2946_s21 + $0x78] sm:$0xff] }
 0x183   : > { %1734 = vperm.xlu1 %2797, %v1649_v53   ;;  %1731 = vperm.xlu0 %2796, %v1648_v27   ;;  %v2711_v53 = vld [vmem:[%s2960_s30 + $0x38] sm:$0xff]  ;;  %v636_v27 = vld [vmem:[%s2946_s21 + $0x70] sm:$0xff] }
 0x184   : > { %v3430_v13 = vpop.permute.xlu2 %675  ;;  %1383 = vmatmul.bf16.gmra.mxu0 %v2711_v53  ;;  %v650_v53 = vld [vmem:[%s2946_s21 + $0xe0] sm:$0xff] }
 0x185   : > { %v950_v32 = vpop.permute.xlu1 %949  ;;  %v947_v59 = vpop.permute.xlu0 %946  ;;  %vm758_vm12 = vcmp.eq.s32.totalorder %v3430_v13, %v3236_v55 }
 0x186   : > { %vm988_vm15 = vcmp.eq.s32.totalorder %v950_v32, %v3236_v55  ;;  %vm987_vm0 = vcmp.eq.s32.totalorder %v947_v59, %v3236_v55  ;;  %v641_v32 = vld [vmem:[%s2946_s21 + $0x98] sm:$0xff]  ;;  %v640_v59 = vld [vmem:[%s2946_s21 + $0x90] sm:$0xff] }
 0x187   : > { %v3444_v0 = vsel %vm988_vm15, 1.0, %v4497_v61  ;;  %v3447_v1 = vsel %vm987_vm0, 1.0, %v4497_v61 }
 0x18a   : > { %2642 = vmatmul.msk.bf16.gmra.mxu1 %vm1453_vm11, %v1060_v46  ;;  %1746 = vperm.xlu2 %2798, %v1653_v56   ;;  %v639_v46 = vld [vmem:[%s2946_s21 + $0x88] sm:$0xff] }
 0x18b   : > { %1743 = vperm.xlu1 %2797, %v1652_v3   ;;  %1740 = vperm.xlu0 %2796, %v1651_v4   ;;  %v2449_v3 = vsel %vm755_vm7, 1.0, %v4497_v61 }
 0x18c   : > { %v3458_v7 = vpop.permute.xlu2 %684 }
 0x18d   : > { %v959_v8 = vpop.permute.xlu1 %958  ;;  %v956_v49 = vpop.permute.xlu0 %955  ;;  %vm761_vm14 = vcmp.eq.s32.totalorder %v3458_v7, %v3236_v55 }
 0x18e   : > { %vm991_vm2 = vcmp.eq.s32.totalorder %v959_v8, %v3236_v55  ;;  %vm990_vm3 = vcmp.eq.s32.totalorder %v956_v49, %v3236_v55  ;;  %v643_v8 = vld [vmem:[%s2946_s21 + $0xa8] sm:$0xff]  ;;  %v642_v49 = vld [vmem:[%s2946_s21 + $0xa0] sm:$0xff] }
 0x18f   : > { %v3464_v35 = vsel %vm991_vm2, 1.0, %v4497_v61  ;;  %v3467_v6 = vsel %vm990_vm3, 1.0, %v4497_v61 }
 0x192   : > { %696 = vperm.xlu2 %2798, %v635_v10   ;;  %v3507_v10 = vpop.f32.mrf.mxu0 }
 0x193   : > { %693 = vperm.xlu1 %2797, %v634_v39   ;;  %1749 = vperm.xlu0 %2796, %v1654_v63  }
 0x194   : > { %v3476_v40 = vpop.permute.xlu2 %1662  ;;  %1388 = vmatmul.bf16.gmra.mxu0 %v2712_v22  ;;  %v2452_v22 = vsel %vm758_vm12, 1.0, %v4497_v61 }
 0x195   : > { %v664_v19 = vpop.permute.xlu1 %663  ;;  %v661_v41 = vpop.permute.xlu0 %660 }
 0x196   : > { %vm753_vm5 = vcmp.eq.s32.totalorder %v661_v41, %v3236_v55  ;;  %vm754_vm6 = vcmp.eq.s32.totalorder %v664_v19, %v3236_v55  ;;  %v647_v41 = vld [vmem:[%s2946_s21 + $0xc8] sm:$0xff] }
 0x197   : > { %v2447_v42 = vsel %vm753_vm5, 1.0, %v4497_v61  ;;  %v2448_v37 = vsel %vm754_vm6, 1.0, %v4497_v61 }
 0x198   : > { %v848_v44 = vpack.c.bf16 %v2447_v42, %v2446_v21  ;;  %v849_v4 = vpack.c.bf16 %v2449_v3, %v2448_v37  ;;  %v646_v21 = vld [vmem:[%s2946_s21 + $0xc0] sm:$0xff]  ;;  %v653_v3 = vld [vmem:[%s2946_s21 + $0xf8] sm:$0xff] }
 0x19a   : > { %2643 = vmatmul.msk.bf16.gmra.mxu1 %vm1453_vm11, %v1061_v15  ;;  %2654 = vmatmul.msk.bf16.vlgmr.msra.gmra.mxu2 %vm1453_vm11, %v848_v44  ;;  %v3524_v24 = vpop.f32.mrf.mxu0 }
 0x19b   : > { %705 = vperm.xlu2 %2798, %v638_v29   ;;  %702 = vperm.xlu1 %2797, %v637_v58  }
 0x19c   : > { %699 = vperm.xlu0 %2796, %v636_v27   ;;  %v3490_v50 = vpop.permute.xlu2 %1671  ;;  %v649_v27 = vld [vmem:[%s2946_s21 + $0xd8] sm:$0xff] }
 0x19d   : > { %v673_v20 = vpop.permute.xlu1 %672  ;;  %v670_v28 = vpop.permute.xlu0 %669 }
 0x19e   : > { %vm757_vm8 = vcmp.eq.s32.totalorder %v673_v20, %v3236_v55  ;;  %vm756_vm9 = vcmp.eq.s32.totalorder %v670_v28, %v3236_v55  ;;  %v648_v20 = vld [vmem:[%s2946_s21 + $0xd0] sm:$0xff] }
 0x19f   : > { %v2450_v42 = vsel %vm756_vm9, 1.0, %v4497_v61 }
 0x1a3   : > { %714 = vperm.xlu2 %2798, %v641_v32   ;;  %711 = vperm.xlu1 %2797, %v640_v59   ;;  %v2713_v32 = vld [vmem:[%s2960_s30 + $0x48] sm:$0xff]  ;;  %v3545_v59 = vpop.f32.mrf.mxu0 }
 0x1a4   : > { %708 = vperm.xlu0 %2796, %v639_v46   ;;  %v3501_v56 = vpop.permute.xlu2 %1680  ;;  %1393 = vmatmul.bf16.gmra.mxu0 %v2713_v32 }
 0x1a5   : > { %v3499_v14 = vpop.permute.xlu1 %681  ;;  %v679_v15 = vpop.permute.xlu0 %678 }
 0x1a6   : > { %vm759_vm10 = vcmp.eq.s32.totalorder %v679_v15, %v3236_v55  ;;  %vm760_vm13 = vcmp.eq.s32.totalorder %v3499_v14, %v3236_v55  ;;  %v2715_v14 = vld [vmem:[%s2960_s30 + $0x58] sm:$0xff] }
 0x1a7   : > { %v2454_v26 = vsel %vm760_vm13, 1.0, %v4497_v61 }
 0x1aa   : > { %2644 = vmatmul.msk.bf16.gmra.mxu1 %vm1453_vm11, %v1062_v43  ;;  %2655 = vmatmul.msk.bf16.gmra.mxu2 %vm1453_vm11, %v849_v4  ;;  %v2451_v43 = vsel %vm757_vm8, 1.0, %v4497_v61  ;;  %v652_v4 = vld [vmem:[%s2946_s21 + $0xf0] sm:$0xff] }
 0x1ab   : > { %723 = vperm.xlu2 %2798, %v644_v33   ;;  %720 = vperm.xlu1 %2797, %v643_v8   ;;  %v850_v58 = vpack.c.bf16 %v2451_v43, %v2450_v42  ;;  %v651_v33 = vld [vmem:[%s2946_s21 + $0xe8] sm:$0xff]  ;;  %v3559_v30 = vpop.f32.mrf.mxu0 }
 0x1ac   : > { %717 = vperm.xlu0 %2796, %v642_v49   ;;  %v3519_v19 = vpop.permute.xlu2 %1689 }
 0x1ad   : > { %v3515_v39 = vpop.permute.xlu1 %1659  ;;  %v3517_v63 = vpop.permute.xlu0 %1656 }
 0x1b3   : > { %732 = vperm.xlu2 %2798, %v647_v41   ;;  %729 = vperm.xlu1 %2797, %v646_v21   ;;  %v2714_v21 = vld [vmem:[%s2960_s30 + $0x50] sm:$0xff]  ;;  %v3581_v42 = vpop.f32.mrf.mxu0 }
 0x1b4   : > { %726 = vperm.xlu0 %2796, %v645_v23   ;;  %v3538_v28 = vpop.permute.xlu2 %1698  ;;  %1398 = vmatmul.bf16.gmra.mxu0 %v2714_v21 }
 0x1b5   : > { %v3530_v44 = vpop.permute.xlu1 %1668  ;;  %v3532_v29 = vpop.permute.xlu0 %1665  ;;  %vm1765_vm13 = vcmp.eq.s32.totalorder %v3538_v28, 1 }
 0x1ba   : > { %2645 = vmatmul.msk.bf16.gmra.mxu1 %vm1453_vm11, %v1063_v31  ;;  %2656 = vmatmul.msk.bf16.gmra.mxu2 %vm1453_vm11, %v850_v58  ;;  %v2453_v31 = vsel %vm759_vm10, 1.0, %v4497_v61  ;;  %vm1753_vm10 = vcmp.eq.s32.totalorder %v3476_v40, 1 }
 0x1bb   : > { %741 = vperm.xlu2 %2798, %v650_v53   ;;  %738 = vperm.xlu1 %2797, %v649_v27   ;;  %v851_v15 = vpack.c.bf16 %v2453_v31, %v2452_v22  ;;  %v2455_v53 = vsel %vm761_vm14, 1.0, %v4497_v61 }
 0x1bc   : > { %735 = vperm.xlu0 %2796, %v648_v20   ;;  %v3557_v60 = vpop.permute.xlu2 %1707  ;;  %v852_v20 = vpack.c.bf16 %v2455_v53, %v2454_v26 }
 0x1bd   : > { %v3547_v46 = vpop.permute.xlu1 %1677  ;;  %v3549_v37 = vpop.permute.xlu0 %1674 }
 0x1be   : > { %vm1757_vm8 = vcmp.eq.s32.totalorder %v3549_v37, 1  ;;  %vm1758_vm14 = vcmp.eq.s32.totalorder %v3547_v46, 1 }
 0x1c3   : > { %750 = vperm.xlu2 %2798, %v653_v3   ;;  %747 = vperm.xlu1 %2797, %v652_v4   ;;  %v3599_v3 = vpop.f32.mrf.mxu0 }
 0x1c4   : > { %744 = vperm.xlu0 %2796, %v651_v33   ;;  %v3579_v43 = vpop.permute.xlu2 %1716  ;;  %1403 = vmatmul.bf16.gmra.mxu0 %v2715_v14 }
 0x1c5   : > { %v3562_v8 = vpop.permute.xlu1 %1686  ;;  %v3564_v49 = vpop.permute.xlu0 %1683  ;;  %4540 = vst [vmem:[#allocation2_spill] sm:$0xff] %v3579_v43 }
 0x1c6   : > { %vm1761_vm12 = vcmp.eq.s32.totalorder %v3562_v8, 1 }
 0x1c7   : > { %v3567_v41 = vpop.f32.mrf.mxu1 }
 0x1ca   : > { %2646 = vmatmul.msk.bf16.gmra.mxu1 %vm1453_vm11, %v1064_v47  ;;  %2657 = vmatmul.msk.bf16.gmra.mxu2 %vm1453_vm11, %v851_v15 }
 0x1cb   : > { %v3615_v22 = vpop.f32.mrf.mxu0 }
 0x1cc   : > { %v3597_v32 = vpop.permute.xlu2 %1725 }
 0x1cd   : > { %v3575_v13 = vpop.permute.xlu1 %1695  ;;  %v3577_v23 = vpop.permute.xlu0 %1692  ;;  %4543 = vst [vmem:[#allocation5_spill] sm:$0xff] %v3597_v32 }
 0x1cf   : > { %v3583_v58 = vpop.f32.mrf.mxu1 }
 0x1d3   : > { %v3630_v26 = vpop.f32.mrf.mxu0 }
 0x1d4   : > { %v3613_v31 = vpop.permute.xlu2 %1728  ;;  %1408 = vmatmul.bf16.gmra.mxu0 %v2716_v34 }
 0x1d5   : > { %v3590_v45 = vpop.permute.xlu1 %1704  ;;  %v3592_v47 = vpop.permute.xlu0 %1701  ;;  %4546 = vst [vmem:[#allocation8_spill] sm:$0xff] %v3613_v31 }
 0x1d6   : > { %4541 = vst [vmem:[#allocation3_spill] sm:$0xff] %v3590_v45 }
 0x1d7   : > { %4542 = vst [vmem:[#allocation4_spill] sm:$0xff] %v3592_v47  ;;  %v3595_v27 = vpop.f32.mrf.mxu1 }
 0x1da   : > { %2647 = vmatmul.msk.bf16.gmra.mxu1 %vm1453_vm11, %v1065_v48  ;;  %2658 = vmatmul.msk.bf16.gmra.mxu2 %vm1453_vm11, %v852_v20 }
 0x1db   : > { %v3643_v34 = vpop.f32.mrf.mxu0 }
 0x1dc   : > { %v3628_v48 = vpop.permute.xlu2 %1737 }
 0x1dd   : > { %v3607_v7 = vpop.permute.xlu1 %1713  ;;  %v3609_v4 = vpop.permute.xlu0 %1710  ;;  %4549 = vst [vmem:[#allocation11_spill] sm:$0xff] %v3628_v48  ;;  %v4557_v48 = vpack.c.bf16 %v3412_v51, %v3415_v9 }
 0x1de   : > { %4544 = vst [vmem:[#allocation6_spill] sm:$0xff] %v3607_v7 }
 0x1df   : > { %4545 = vst [vmem:[#allocation7_spill] sm:$0xff] %v3609_v4  ;;  %v3611_v33 = vpop.f32.mrf.mxu1 }
 0x1e3   : > { %v3659_v52 = vpop.f32.mrf.mxu0 }
 0x1e4   : > { %v3645_v57 = vpop.permute.xlu2 %1746  ;;  %1413 = vmatmul.bf16.gmra.mxu0 %v2717_v2 }
 0x1e5   : > { %v3617_v15 = vpop.permute.xlu1 %1722  ;;  %v3619_v21 = vpop.permute.xlu0 %1719  ;;  %4552 = vst [vmem:[#allocation14_spill] sm:$0xff] %v3645_v57 }
 0x1e6   : > { %4547 = vst [vmem:[#allocation9_spill] sm:$0xff] %v3617_v15  ;;  %v2719_v15 = vld [vmem:[%s2960_s30 + $0x78] sm:$0xff] }
 0x1e7   : > { %4548 = vst [vmem:[#allocation10_spill] sm:$0xff] %v3619_v21  ;;  %v3621_v5 = vpop.f32.mrf.mxu1 }
 0x1ea   : > { %2648 = vmatmul.msk.bf16.gmra.mxu1 %vm1453_vm11, %v1066_v18 }
 0x1ed   : > { %v691_v53 = vpop.permute.xlu1 %690  ;;  %v688_v20 = vpop.permute.xlu0 %687 }
 0x1ee   : > { %vm763_vm15 = vcmp.eq.s32.totalorder %v691_v53, %v3236_v55  ;;  %vm762_vm0 = vcmp.eq.s32.totalorder %v688_v20, %v3236_v55  ;;  %v2718_v20 = vld [vmem:[%s2960_s30 + $0x70] sm:$0xff] }
 0x1ef   : > { %v2457_v14 = vsel %vm763_vm15, 1.0, %v4497_v61  ;;  %v2456_v25 = vsel %vm762_vm0, 1.0, %v4497_v61  ;;  %v3636_v36 = vpop.f32.mrf.mxu1  ;;  %1418 = vmatmul.bf16.vlgmr.msra.gmra.mxu3 %v2718_v20  ;;  %v697_v61 = vpop.permute.xlu2 %696  ;;  %vm1762_vm15 = vcmp.eq.s32.totalorder %v3519_v19, 1  ;;  %vm1754_vm0 = vcmp.eq.s32.totalorder %v3532_v29, 1 }
 0x1f0   : > { %v853_v12 = vpack.c.bf16 %v2457_v14, %v2456_v25  ;;  %vm765_vm1 = vcmp.eq.s32.totalorder %v697_v61, %v3236_v55  ;;  %v3674_v61 = vpop.f32.mrf.mxu0 }
 0x1f2   : > { %2659 = vmatmul.msk.bf16.gmra.mxu2 %vm1453_vm11, %v853_v12 }
 0x1f5   : > { %v3639_v18 = vpop.permute.xlu1 %1734  ;;  %v3641_v38 = vpop.permute.xlu0 %1731 }
 0x1f6   : > { %4550 = vst [vmem:[#allocation12_spill] sm:$0xff] %v3639_v18 }
 0x1f7   : > { %4551 = vst [vmem:[#allocation13_spill] sm:$0xff] %v3641_v38  ;;  %v1526_v53 = vpop.f32.mrf.mxu1  ;;  %v706_v7 = vpop.permute.xlu2 %705 }
 0x1f8   : > { %vm768_vm6 = vcmp.eq.s32.totalorder %v706_v7, %v3236_v55  ;;  %v1597_v38 = vadd.f32 %v1526_v53, %v3615_v22 }
 0x1fa   : > { %2649 = vmatmul.msk.bf16.gmra.mxu1 %vm1453_vm11, %v1067_v17  ;;  %v2459_v17 = vsel %vm765_vm1, 1.0, %v4556_v54  ;;  %vm1751_vm1 = vcmp.eq.s32.totalorder %v3517_v63, 1 }
 0x1fd   : > { %v3653_v25 = vpop.permute.xlu1 %1743  ;;  %v3655_v14 = vpop.permute.xlu0 %1740 }
 0x1fe   : > { %4553 = vst [vmem:[#allocation15_spill] sm:$0xff] %v3653_v25 }
 0x1ff   : > { %4554 = vst [vmem:[#allocation16_spill] sm:$0xff] %v3655_v14  ;;  %v3657_v12 = vpop.f32.mrf.mxu1  ;;  %1423 = vmatmul.bf16.gmra.mxu3 %v2719_v15  ;;  %v715_v31 = vpop.permute.xlu2 %714 }
 0x200   : > { %vm771_vm9 = vcmp.eq.s32.totalorder %v715_v31, %v3236_v55 }
 0x201   : > { %v2465_v31 = vsel %vm771_vm9, 1.0, %v4556_v54 }
 0x205   : > { %v694_v57 = vpop.permute.xlu1 %693  ;;  %v3663_v11 = vpop.permute.xlu0 %1749 }
 0x206   : > { %vm764_vm2 = vcmp.eq.s32.totalorder %v694_v57, %v3236_v55  ;;  %4555 = vst [vmem:[#allocation17_spill] sm:$0xff] %v3663_v11 }
 0x207   : > { %v2458_v2 = vsel %vm764_vm2, 1.0, %v4556_v54  ;;  %v3667_v20 = vpop.f32.mrf.mxu1  ;;  %vm1755_vm2 = vcmp.eq.s32.totalorder %v3530_v44, 1 }
 0x208   : > { %v854_v18 = vpack.c.bf16 %v2459_v17, %v2458_v2  ;;  %v3681_v17 = vpop.f32.mrf.mxu0  ;;  %v4558_v2 = vpack.c.bf16 %v3447_v1, %v3436_v62  ;;  %v2462_v62 = vsel %vm768_vm6, 1.0, %v4556_v54 }
 0x20a   : > { %2650 = vmatmul.msk.bf16.gmra.mxu1 %vm1453_vm11, %v4557_v48  ;;  %2660 = vmatmul.msk.bf16.gmra.mxu2 %vm1453_vm11, %v854_v18 }
 0x20d   : > { %v703_v57 = vpop.permute.xlu1 %702 }
 0x20e   : > { %v700_v11 = vpop.permute.xlu0 %699  ;;  %vm767_vm3 = vcmp.eq.s32.totalorder %v703_v57, %v3236_v55 }
 0x20f   : > { %v3677_v32 = vpop.f32.mrf.mxu1  ;;  %vm766_vm4 = vcmp.eq.s32.totalorder %v700_v11, %v3236_v55  ;;  %v2461_v51 = vsel %vm767_vm3, 1.0, %v4556_v54  ;;  %vm1766_vm3 = vcmp.eq.s32.totalorder %v3592_v47, 1 }
 0x210   : > { %v2460_v9 = vsel %vm766_vm4, 1.0, %v4556_v54  ;;  %v3690_v4 = vpop.f32.mrf.mxu0 }
 0x211   : > { %v855_v18 = vpack.c.bf16 %v2461_v51, %v2460_v9 }
 0x215   : > { %v712_v7 = vpop.permute.xlu1 %711 }
 0x216   : > { %v709_v57 = vpop.permute.xlu0 %708  ;;  %vm770_vm7 = vcmp.eq.s32.totalorder %v712_v7, %v3236_v55  ;;  %v1598_v7 = vadd.f32 %v3657_v12, %v3630_v26  ;;  %v4565_v12 = vpack.c.bf16 %v3464_v35, %v3467_v6 }
 0x217   : > { %v1536_v48 = vpop.f32.mrf.mxu1  ;;  %vm769_vm5 = vcmp.eq.s32.totalorder %v709_v57, %v3236_v55 }
 0x218   : > { %v2463_v25 = vsel %vm769_vm5, 1.0, %v4556_v54 }
 0x219   : > { %v856_v9 = vpack.c.bf16 %v2463_v25, %v2462_v62  ;;  %v1593_v25 = vadd.f32 %v3595_v27, %v3545_v59  ;;  %v1601_v62 = vadd.f32 %v1536_v48, %v3674_v61  ;;  %v2464_v27 = vsel %vm770_vm7, 1.0, %v4556_v54 }
 0x21a   : > { %2651 = vmatmul.msk.bf16.gmra.mxu1 %vm1453_vm11, %v4558_v2  ;;  %2661 = vmatmul.msk.bf16.gmra.mxu2 %vm1453_vm11, %v855_v18  ;;  %v3700_v18 = vpop.f32.mrf.mxu0  ;;  %v4559_v2 = vpack.c.bf16 %v3441_v16, %v3444_v0  ;;  %v3721_v0 = vsel %vm1757_vm8, %v1597_v38, -1e+30  ;;  %v857_v21 = vpack.c.bf16 %v2465_v31, %v2464_v27 }
 0x21b   : > { %4560 = vst [vmem:[#allocation18_spill] sm:$0xff] %v3721_v0  ;;  %v3729_v53 = vsel %vm1753_vm10, %v1593_v25, -1e+30  ;;  %v3733_v48 = vsel %vm1761_vm12, %v1601_v62, -1e+30  ;;  %v1594_v62 = vadd.f32 %v3611_v33, %v3559_v30 }
 0x21c   : > { %4561 = vst [vmem:[#allocation19_spill] sm:$0xff] %v3729_v53  ;;  %v2059_v38 = vmax.f32 %v3729_v53, %v3721_v0  ;;  %v3764_v33 = vsel %vm1758_vm14, %v1598_v7, -1e+30 }
 0x21d   : > { %v1872_v15 = vpop.f32.mrf.mxu2  ;;  %4562 = vst [vmem:[#allocation20_spill] sm:$0xff] %v3733_v48  ;;  %v3773_v6 = vsel %vm1754_vm0, %v1594_v62, -1e+30 }
 0x21e   : > { %v3745_v25 = vmax.f32 %v2059_v38, %v3733_v48  ;;  %4566 = vst [vmem:[#allocation23_spill] sm:$0xff] %v3764_v33  ;;  %v2060_v31 = vmax.f32 %v3773_v6, %v3764_v33 }
 0x21f   : > { %v1538_v11 = vpop.f32.mrf.mxu1  ;;  %4567 = vst [vmem:[#allocation24_spill] sm:$0xff] %v3773_v6 }
 0x220   : > { %4563 = vst [vmem:[#allocation21_spill] sm:$0xff] %v3745_v25  ;;  %v1602_v45 = vadd.f32 %v1538_v11, %v3681_v17 }
 0x222   : > { %v3717_v16 = vpop.f32.mrf.mxu0  ;;  %v3777_v11 = vsel %vm1762_vm15, %v1602_v45, -1e+30 }
 0x223   : > { %4568 = vst [vmem:[#allocation25_spill] sm:$0xff] %v3777_v11  ;;  %v3789_v62 = vmax.f32 %v2060_v31, %v3777_v11  ;;  %v724_v11 = vpop.permute.xlu2 %723 }
 0x224   : > { %vm774_vm7 = vcmp.eq.s32.totalorder %v724_v11, %v3236_v55 }
 0x225   : > { %v3695_v51 = vpop.f32.mrf.mxu2  ;;  %4569 = vst [vmem:[#allocation26_spill] sm:$0xff] %v3789_v62 }
 0x227   : > { %v3698_v1 = vpop.f32.mrf.mxu1 }
 0x22a   : > { %2652 = vmatmul.msk.bf16.gmra.mxu1 %vm1453_vm11, %v4559_v2  ;;  %2662 = vmatmul.msk.bf16.gmra.mxu2 %vm1453_vm11, %v856_v9  ;;  %v3769_v35 = vpop.f32.mrf.mxu0 }
 0x22b   : > { %v733_v11 = vpop.permute.xlu2 %732 }
 0x22d   : > { %v3707_v57 = vpop.f32.mrf.mxu2 }
 0x22f   : > { %v3709_v14 = vpop.f32.mrf.mxu1 }
 0x233   : > { %v742_v47 = vpop.permute.xlu2 %741 }
 0x235   : > { %v3735_v9 = vpop.f32.mrf.mxu2 }
 0x237   : > { %v1546_v2 = vpop.f32.mrf.mxu1 }
 0x238   : > { %v1605_v43 = vadd.f32 %v1546_v2, %v3717_v16  ;;  %v718_v2 = vpop.permute.xlu0 %717 }
 0x239   : > { %vm772_vm5 = vcmp.eq.s32.totalorder %v718_v2, %v3236_v55 }
 0x23a   : > { %v3752_v53 = vsel %vm1765_vm13, %v1605_v43, -1e+30  ;;  %2653 = vmatmul.msk.bf16.gmra.mxu1 %vm1453_vm11, %v4565_v12  ;;  %2663 = vmatmul.msk.bf16.gmra.mxu2 %vm1453_vm11, %v857_v21  ;;  %v1952_v43 = vadd.f32 %v1872_v15, %v3507_v10  ;;  %v721_v21 = vpop.permute.xlu1 %720  ;;  %v2466_v31 = vsel %vm772_vm5, 1.0, %v4556_v54 }
 0x23b   : > { %4564 = vst [vmem:[#allocation22_spill] sm:$0xff] %v3752_v53  ;;  %vm773_vm4 = vcmp.eq.s32.totalorder %v721_v21, %v3236_v55  ;;  %v3807_v21 = vpop.f32.mrf.mxu0 }
 0x23c   : > { %v1984_v45 = vsel %vm1751_vm1, %v1952_v43, -1e+30  ;;  %v2467_v43 = vsel %vm773_vm4, 1.0, %v4556_v54 }
 0x23d   : > { %v1882_v38 = vpop.f32.mrf.mxu2 }
 0x23e   : > { %v1956_v7 = vadd.f32 %v1882_v38, %v3581_v42 }
 0x23f   : > { %v1548_v12 = vpop.f32.mrf.mxu1 }
 0x240   : > { %v1606_v15 = vadd.f32 %v1548_v12, %v3769_v35  ;;  %v1988_v27 = vsel %vm1755_vm2, %v1956_v7, -1e+30  ;;  %v858_v7 = vpack.c.bf16 %v2467_v43, %v2466_v31 }
 0x241   : > { %v2017_v38 = vmax.f32 %v1984_v45, %v1988_v27  ;;  %v1954_v27 = vadd.f32 %v3707_v57, %v3545_v59 }
 0x242   : > { %v3797_v6 = vsel %vm1766_vm3, %v1606_v15, -1e+30  ;;  %v727_v15 = vpop.permute.xlu0 %726 }
 0x243   : > { %4570 = vst [vmem:[#allocation27_spill] sm:$0xff] %v3797_v6  ;;  %v1986_v48 = vsel %vm1753_vm10, %v1954_v27, -1e+30  ;;  %vm775_vm6 = vcmp.eq.s32.totalorder %v727_v15, %v3236_v55  ;;  %v730_v15 = vpop.permute.xlu1 %729  ;;  %vm777_vm10 = vcmp.eq.s32.totalorder %v733_v11, %v3236_v55 }
 0x244   : > { %v2469_v59 = vsel %vm775_vm6, 1.0, %v4556_v54  ;;  %vm776_vm9 = vcmp.eq.s32.totalorder %v730_v15, %v3236_v55 }
 0x245   : > { %v3803_v33 = vpop.f32.mrf.mxu2 }
 0x247   : > { %v3805_v0 = vpop.f32.mrf.mxu1 }
 0x248   : > { %v1607_v19 = vadd.f32 %v3805_v0, %v3807_v21 }
 0x24a   : > { %2664 = vmatmul.msk.bf16.gmra.mxu2 %vm1453_vm11, %v858_v7  ;;  %v3820_v7 = vpop.f32.mrf.mxu0 }
 0x24b   : > { %v739_v25 = vpop.permute.xlu1 %738 }
 0x24c   : > { %vm779_vm4 = vcmp.eq.s32.totalorder %v739_v25, %v3236_v55 }
 0x24d   : > { %v1887_v2 = vpop.f32.mrf.mxu2  ;;  %v2473_v15 = vsel %vm779_vm4, 1.0, %v4556_v54  ;;  %vm1752_vm4 = vcmp.eq.s32.totalorder %v3515_v39, 1 }
 0x24e   : > { %v1958_v45 = vadd.f32 %v1887_v2, %v3615_v22  ;;  %v2468_v22 = vsel %vm774_vm7, 1.0, %v4556_v54  ;;  %vm780_vm7 = vcmp.eq.s32.totalorder %v742_v47, %v3236_v55 }
 0x24f   : > { %v3813_v12 = vpop.f32.mrf.mxu1  ;;  %v859_v40 = vpack.c.bf16 %v2469_v59, %v2468_v22  ;;  %v2470_v59 = vsel %vm776_vm9, 1.0, %v4556_v54  ;;  %v2471_v22 = vsel %vm777_vm10, 1.0, %v4556_v54  ;;  %vm1756_vm9 = vcmp.eq.s32.totalorder %v3490_v50, 1 }
 0x250   : > { %v1990_v43 = vsel %vm1757_vm8, %v1958_v45, -1e+30  ;;  %vm1759_vm8 = vcmp.eq.s32.totalorder %v3501_v56, 1  ;;  %v860_v62 = vpack.c.bf16 %v2471_v22, %v2470_v59  ;;  %v1608_v63 = vadd.f32 %v3813_v12, %v3820_v7 }
 0x251   : > { %v2019_v31 = vmax.f32 %v1986_v48, %v1990_v43 }
 0x252   : > { %v3830_v37 = vpop.f32.mrf.mxu0 }
 0x253   : > { %4572 = vst [vmem:[#allocation29_spill] sm:$0xff] %v3830_v37 }
 0x255   : > { %v3824_v57 = vpop.f32.mrf.mxu2 }
 0x257   : > { %v3827_v2 = vpop.f32.mrf.mxu1 }
 0x258   : > { %4571 = vst [vmem:[#allocation28_spill] sm:$0xff] %v3827_v2 }
 0x25a   : > { %2665 = vmatmul.msk.bf16.gmra.mxu2 %vm1453_vm11, %v859_v40  ;;  %v3844_v40 = vpop.f32.mrf.mxu0 }
 0x25b   : > { %4574 = vst [vmem:[#allocation31_spill] sm:$0xff] %v3844_v40 }
 0x25d   : > { %v1892_v27 = vpop.f32.mrf.mxu2 }
 0x25e   : > { %v1960_v48 = vadd.f32 %v1892_v27, %v3643_v34 }
 0x25f   : > { %v3833_v45 = vpop.f32.mrf.mxu1 }
 0x260   : > { %4573 = vst [vmem:[#allocation30_spill] sm:$0xff] %v3833_v45  ;;  %v1992_v43 = vsel %vm1759_vm8, %v1960_v48, -1e+30  ;;  %v736_v48 = vpop.permute.xlu0 %735 }
 0x261   : > { %v3839_v6 = vmax.f32 %v2017_v38, %v1992_v43  ;;  %vm778_vm5 = vcmp.eq.s32.totalorder %v736_v48, %v3236_v55 }
 0x262   : > { %v3851_v38 = vpop.f32.mrf.mxu0  ;;  %v2472_v11 = vsel %vm778_vm5, 1.0, %v4556_v54  ;;  %vm1760_vm5 = vcmp.eq.s32.totalorder %v3564_v49, 1 }
 0x265   : > { %v1894_v53 = vpop.f32.mrf.mxu2 }
 0x267   : > { %v3846_v27 = vpop.f32.mrf.mxu1 }
 0x268   : > { %v745_v48 = vpop.permute.xlu0 %744 }
 0x269   : > { %vm781_vm6 = vcmp.eq.s32.totalorder %v745_v48, %v3236_v55 }
 0x26a   : > { %2666 = vmatmul.msk.bf16.gmra.mxu2 %vm1453_vm11, %v860_v62  ;;  %v861_v62 = vpack.c.bf16 %v2473_v15, %v2472_v11  ;;  %v3865_v25 = vpop.f32.mrf.mxu0 }
 0x26f   : > { %v3849_v45 = vpop.f32.mrf.mxu1 }
 0x270   : > { %v1612_v0 = vadd.f32 %v3849_v45, %v3865_v25 }
 0x272   : > { %v3872_v15 = vpop.f32.mrf.mxu0 }
 0x273   : > { %4577 = vst [vmem:[#allocation34_spill] sm:$0xff] %v3872_v15 }
 0x275   : > { %v1897_v43 = vpop.f32.mrf.mxu2 }
 0x276   : > { %v1962_v59 = vadd.f32 %v1897_v43, %v3674_v61  ;;  %v2475_v61 = vsel %vm781_vm6, 1.0, %v4556_v54 }
 0x277   : > { %v3858_v22 = vpop.f32.mrf.mxu1 }
 0x278   : > { %4575 = vst [vmem:[#allocation32_spill] sm:$0xff] %v3858_v22  ;;  %v1994_v40 = vsel %vm1761_vm12, %v1962_v59, -1e+30  ;;  %v748_v59 = vpop.permute.xlu1 %747  ;;  %vm1763_vm12 = vcmp.eq.s32.totalorder %v3577_v23, 1  ;;  %v1953_v22 = vadd.f32 %v3695_v51, %v3524_v24  ;;  %v4581_v23 = vld [vmem:[#allocation3_spill] sm:$0xff] }
 0x279   : > { %v3862_v2 = vmax.f32 %v2019_v31, %v1994_v40  ;;  %v2474_v31 = vsel %vm780_vm7, 1.0, %v4556_v54  ;;  %vm782_vm10 = vcmp.eq.s32.totalorder %v748_v59, %v3236_v55  ;;  %vm1764_vm7 = vcmp.eq.s32.totalorder %v3575_v13, 1  ;;  %v4610_v13 = vld [vmem:[#allocation26_spill] sm:$0xff] }
 0x27a   : > { %2667 = vmatmul.msk.bf16.gmra.mxu2 %vm1453_vm11, %v861_v62  ;;  %v862_v11 = vpack.c.bf16 %v2475_v61, %v2474_v31  ;;  %v1957_v62 = vadd.f32 %v3803_v33, %v3599_v3  ;;  %v3882_v47 = vpop.f32.mrf.mxu0  ;;  %v1961_v61 = vadd.f32 %v1894_v53, %v3659_v52  ;;  %v751_v33 = vpop.permute.xlu2 %750  ;;  %v1985_v51 = vsel %vm1752_vm4, %v1953_v22, -1e+30 }
 0x27b   : > { %4578 = vst [vmem:[#allocation35_spill] sm:$0xff] %v3882_v47  ;;  %vm783_vm6 = vcmp.eq.s32.totalorder %v751_v33, %v3236_v55 }
 0x27c   : > { %v1993_v53 = vsel %vm1760_vm5, %v1961_v61, -1e+30 }
 0x27d   : > { %v1899_v8 = vpop.f32.mrf.mxu2 }
 0x27f   : > { %v3867_v37 = vpop.f32.mrf.mxu1 }
 0x280   : > { %4576 = vst [vmem:[#allocation33_spill] sm:$0xff] %v3867_v37 }
 0x282   : > { %v3918_v61 = vpop.f32.mrf.mxu0 }
 0x287   : > { %v3875_v40 = vpop.f32.mrf.mxu1 }
 0x28a   : > { %2668 = vmatmul.msk.bf16.gmra.mxu2 %vm1453_vm11, %v862_v11 }
 0x28d   : > { %v1902_v43 = vpop.f32.mrf.mxu2 }
 0x28e   : > { %v1964_v48 = vadd.f32 %v1902_v43, %v3690_v4  ;;  %v1989_v43 = vsel %vm1756_vm9, %v1957_v62, -1e+30  ;;  %v2477_v62 = vsel %vm783_vm6, 1.0, %v4556_v54 }
 0x28f   : > { %v3884_v37 = vpop.f32.mrf.mxu1  ;;  %v2018_v11 = vmax.f32 %v1985_v51, %v1989_v43  ;;  %v1595_v43 = vadd.f32 %v3621_v5, %v3581_v42  ;;  %v1592_v42 = vadd.f32 %v3583_v58, %v3524_v24  ;;  %v1599_v5 = vadd.f32 %v3667_v20, %v3643_v34 }
 0x290   : > { %v3891_v31 = vsel %vm1763_vm12, %v1964_v48, -1e+30  ;;  %v2476_v48 = vsel %vm782_vm10, 1.0, %v4556_v54  ;;  %v1959_v54 = vadd.f32 %v3824_v57, %v3630_v26  ;;  %v1591_v26 = vadd.f32 %v3567_v41, %v3507_v10  ;;  %v3960_v41 = vpop.f32.mrf.mxu0 }
 0x291   : > { %4579 = vst [vmem:[#allocation36_spill] sm:$0xff] %v3891_v31  ;;  %v3910_v15 = vmax.f32 %v2018_v11, %v1993_v53  ;;  %v863_v55 = vpack.c.bf16 %v2477_v62, %v2476_v48  ;;  %v1596_v53 = vadd.f32 %v3636_v36, %v3599_v3  ;;  %v1955_v48 = vadd.f32 %v3735_v9, %v3559_v30  ;;  %v3947_v36 = vpop.f32.mrf.mxu3  ;;  %v4611_v3 = vld [vmem:[#allocation27_spill] sm:$0xff] }
 0x292   : > { %v1600_v30 = vadd.f32 %v3677_v32, %v3659_v52  ;;  %v1991_v28 = vsel %vm1758_vm14, %v1959_v54, -1e+30  ;;  %v3956_v10 = vsel %vm1755_vm2, %v1595_v43, -1e+30  ;;  %v1603_v24 = vadd.f32 %v3698_v1, %v3690_v4  ;;  %v4583_v54 = vld [vmem:[#allocation10_spill] sm:$0xff] }
 0x293   : > { %v3964_v58 = vsel %vm1756_vm9, %v1596_v53, -1e+30  ;;  %v1604_v52 = vadd.f32 %v3709_v14, %v3700_v18  ;;  %v1987_v46 = vsel %vm1754_vm0, %v1955_v48, -1e+30  ;;  %v3974_v32 = vsel %vm1751_vm1, %v1591_v26, -1e+30 }
 0x294   : > { %v3978_v4 = vsel %vm1752_vm4, %v1592_v42, -1e+30  ;;  %v3982_v50 = vsel %vm1759_vm8, %v1599_v5, -1e+30  ;;  %v2020_v34 = vmax.f32 %v1987_v46, %v1991_v28  ;;  %v3986_v29 = vsel %vm1760_vm5, %v1600_v30, -1e+30 }
 0x295   : > { %v1904_v47 = vpop.f32.mrf.mxu2  ;;  %v2057_v20 = vmax.f32 %v3974_v32, %v3956_v10  ;;  %v2058_v56 = vmax.f32 %v3978_v4, %v3964_v58  ;;  %v4585_v26 = vld [vmem:[#allocation13_spill] sm:$0xff] }
 0x296   : > { %v1965_v59 = vadd.f32 %v1904_v47, %v3700_v18  ;;  %v4005_v18 = vsel %vm1764_vm7, %v1604_v52, -1e+30  ;;  %vm1776_vm1 = vcmp.eq.s32.totalorder %v4585_v26, 1 }
 0x297   : > { %v3912_v31 = vpop.f32.mrf.mxu1  ;;  %v2061_v12 = vmax.f32 %v2057_v20, %v3982_v50  ;;  %v2062_v57 = vmax.f32 %v2058_v56, %v3986_v29  ;;  %v4588_v56 = vld [vmem:[#allocation15_spill] sm:$0xff] }
 0x298   : > { %v3916_v22 = vsel %vm1764_vm7, %v1965_v59, -1e+30  ;;  %v1963_v59 = vadd.f32 %v1899_v8, %v3681_v17  ;;  %v3999_v17 = vsel %vm1763_vm12, %v1603_v24, -1e+30  ;;  %v4051_v30 = vpop.f32.mrf.mxu0 }
 0x299   : > { %v2026_v33 = vmax.f32 %v3910_v15, %v3916_v22  ;;  %v2066_v43 = vmax.f32 %v2062_v57, %v4005_v18  ;;  %v4036_v53 = vpop.f32.mrf.mxu3  ;;  %4586 = vst [vmem:[#allocation4_spill] sm:$0xff] %v4051_v30 }
 0x29a   : > { %2669 = vmatmul.msk.bf16.gmra.mxu2 %vm1453_vm11, %v863_v55  ;;  %vm1768_vm11 = vcmp.eq.s32.totalorder %v3557_v60, 1  ;;  %v1995_v44 = vsel %vm1762_vm15, %v1963_v59, -1e+30  ;;  %v1616_v55 = vadd.f32 %v3884_v37, %v3960_v41  ;;  %vm1772_vm15 = vcmp.eq.s32.totalorder %v4583_v54, 1  ;;  %v4584_v59 = vld [vmem:[#allocation8_spill] sm:$0xff]  ;;  %v4620_v54 = vld [vmem:[#allocation18_spill] sm:$0xff] }
 0x29b   : > { %v4001_v49 = vmax.f32 %v2020_v34, %v1995_v44  ;;  %v4026_v45 = vsel %vm1768_vm11, %v1608_v63, -1e+30  ;;  %vm1775_vm0 = vcmp.eq.s32.totalorder %v4584_v59, 1  ;;  %v4587_v44 = vld [vmem:[#allocation16_spill] sm:$0xff]  ;;  %v1617_v60 = vadd.f32 %v3912_v31, %v4051_v30 }
 0x29c   : > { %v2070_v5 = vmax.f32 %v2066_v43, %v4026_v45  ;;  %v4059_v52 = vsel %vm1776_vm1, %v1616_v55, -1e+30  ;;  %vm1779_vm2 = vcmp.eq.s32.totalorder %v4587_v44, 1  ;;  %v4592_v43 = vld [vmem:[#allocation29_spill] sm:$0xff]  ;;  %v4606_v31 = vld [vmem:[#allocation12_spill] sm:$0xff] }
 0x29d   : > { %v1907_v47 = vpop.f32.mrf.mxu2  ;;  %vm1777_vm5 = vcmp.eq.s32.totalorder %v4606_v31, 1 }
 0x29e   : > { %v1966_v11 = vadd.f32 %v1907_v47, %v3717_v16  ;;  %v1611_v16 = vadd.f32 %v3846_v27, %v3851_v38  ;;  %v1615_v27 = vadd.f32 %v3875_v40, %v3918_v61  ;;  %v4582_v47 = vld [vmem:[#allocation2_spill] sm:$0xff]  ;;  %v4044_v40 = vsel %vm1772_vm15, %v1612_v0, -1e+30 }
 0x29f   : > { %v3928_v51 = vpop.f32.mrf.mxu1  ;;  %vm1771_vm14 = vcmp.eq.s32.totalorder %v4582_v47, 1 }
 0x2a0   : > { %v3937_v62 = vsel %vm1765_vm13, %v1966_v11, -1e+30  ;;  %vm1767_vm13 = vcmp.eq.s32.totalorder %v4581_v23, 1  ;;  %v2065_v11 = vmax.f32 %v2061_v12, %v3999_v17  ;;  %v4040_v48 = vsel %vm1771_vm14, %v1611_v16, -1e+30  ;;  %v4589_v16 = vld [vmem:[#allocation36_spill] sm:$0xff] }
 0x2a1   : > { %v4022_v8 = vsel %vm1767_vm13, %v1607_v19, -1e+30  ;;  %v4055_v24 = vsel %vm1775_vm0, %v1615_v27, -1e+30  ;;  %v4590_v0 = vmax.f32 %v3839_v6, %v4589_v16  ;;  %v4086_v27 = vpop.f32.mrf.mxu3 }
 0x2a2   : > { %v2069_v42 = vmax.f32 %v2065_v11, %v4022_v8  ;;  %4591 = vst [vmem:[#allocation3_spill] sm:$0xff] %v4086_v27 }
 0x2a4   : > { %v2073_v34 = vmax.f32 %v2069_v42, %v4040_v48 }
 0x2a5   : > { %v1909_v14 = vpop.f32.mrf.mxu2 }
 0x2a6   : > { %v1967_v39 = vadd.f32 %v1909_v14, %v3769_v35  ;;  %v2074_v14 = vmax.f32 %v2070_v5, %v4044_v40  ;;  %v4594_v5 = vld [vmem:[#allocation31_spill] sm:$0xff] }
 0x2a7   : > { %v1581_v1 = vpop.f32.mrf.mxu1 }
 0x2a8   : > { %v4013_v35 = vsel %vm1766_vm3, %v1967_v39, -1e+30  ;;  %v1619_v37 = vadd.f32 %v1581_v1, %v3947_v36  ;;  %vm1780_vm3 = vcmp.eq.s32.totalorder %v4588_v56, 1  ;;  %v2078_v1 = vmax.f32 %v2074_v14, %v4059_v52 }
 0x2aa   : > { %v4067_v63 = vsel %vm1779_vm2, %v1619_v37, -1e+30  ;;  %v4593_v37 = vld [vmem:[#allocation28_spill] sm:$0xff] }
 0x2ab   : > { %v1609_v42 = vadd.f32 %v4593_v37, %v4592_v43 }
 0x2ad   : > { %v1912_v28 = vpop.f32.mrf.mxu2 }
 0x2ae   : > { %v1968_v46 = vadd.f32 %v1912_v28, %v3807_v21  ;;  %v2077_v21 = vmax.f32 %v2073_v34, %v4055_v24  ;;  %v4595_v28 = vld [vmem:[#allocation30_spill] sm:$0xff]  ;;  %v4093_v34 = vpop.f32.mrf.mxu0 }
 0x2af   : > { %v1583_v19 = vpop.f32.mrf.mxu1  ;;  %v1610_v6 = vadd.f32 %v4595_v28, %v4594_v5  ;;  %4596 = vst [vmem:[#allocation2_spill] sm:$0xff] %v4093_v34  ;;  %v1618_v28 = vadd.f32 %v3928_v51, %v4093_v34  ;;  %v4607_v51 = vld [vmem:[#allocation21_spill] sm:$0xff] }
 0x2b0   : > { %v2000_v39 = vsel %vm1767_vm13, %v1968_v46, -1e+30  ;;  %v1620_v20 = vadd.f32 %v1583_v19, %v4036_v53  ;;  %v2081_v23 = vmax.f32 %v2077_v21, %v4067_v63  ;;  %v4597_v19 = vld [vmem:[#allocation34_spill] sm:$0xff]  ;;  %v4599_v21 = vld [vmem:[#allocation35_spill] sm:$0xff] }
 0x2b1   : > { %v4078_v9 = vmax.f32 %v4590_v0, %v2000_v39  ;;  %v4598_v39 = vld [vmem:[#allocation32_spill] sm:$0xff] }
 0x2b2   : > { %v4082_v12 = vsel %vm1780_vm3, %v1620_v20, -1e+30  ;;  %v1613_v20 = vadd.f32 %v4598_v39, %v4597_v19  ;;  %v4604_v39 = vld [vmem:[#allocation9_spill] sm:$0xff] }
 0x2b3   : > { %v2082_v57 = vmax.f32 %v2078_v1, %v4082_v12  ;;  %v4600_v1 = vld [vmem:[#allocation33_spill] sm:$0xff]  ;;  %vm1773_vm10 = vcmp.eq.s32.totalorder %v4604_v39, 1 }
 0x2b4   : > { %v1614_v16 = vadd.f32 %v4600_v1, %v4599_v21  ;;  %v4124_v15 = vsel %vm1773_vm10, %v1613_v20, -1e+30  ;;  %v4612_v20 = vmax.f32 %v4610_v13, %v4611_v3  ;;  %v4153_v21 = vpop.f32.mrf.mxu3 }
 0x2b5   : > { %v2085_v55 = vmax.f32 %v2081_v23, %v2082_v57  ;;  %v1914_v11 = vpop.f32.mrf.mxu2  ;;  %v4601_v23 = vld [vmem:[#allocation6_spill] sm:$0xff]  ;;  %v4602_v57 = vld [vmem:[#allocation7_spill] sm:$0xff]  ;;  %4614 = vst [vmem:[#allocation10_spill] sm:$0xff] %v4153_v21 }
 0x2b6   : > { %v1969_v46 = vadd.f32 %v1914_v11, %v3820_v7  ;;  %vm1770_vm8 = vcmp.eq.s32.totalorder %v4601_v23, 1  ;;  %vm1769_vm12 = vcmp.eq.s32.totalorder %v4602_v57, 1 }
 0x2b7   : > { %v1586_v14 = vpop.f32.mrf.mxu1  ;;  %v4110_v11 = vsel %vm1769_vm12, %v1609_v42, -1e+30  ;;  %v4114_v37 = vsel %vm1770_vm8, %v1610_v6, -1e+30  ;;  %v4605_v42 = vld [vmem:[#allocation11_spill] sm:$0xff]  ;;  %v4608_v6 = vld [vmem:[#allocation22_spill] sm:$0xff] }
 0x2b8   : > { %v2001_v0 = vsel %vm1768_vm11, %v1969_v46, -1e+30  ;;  %v4603_v46 = vld [vmem:[#allocation5_spill] sm:$0xff]  ;;  %vm1778_vm4 = vcmp.eq.s32.totalorder %v4605_v42, 1  ;;  %v4609_v1 = vmax.f32 %v4607_v51, %v4608_v6  ;;  %v2072_v34 = vmax.f32 %v4612_v20, %v4114_v37 }
 0x2b9   : > { %v4106_v7 = vmax.f32 %v2026_v33, %v2001_v0  ;;  %vm1774_vm9 = vcmp.eq.s32.totalorder %v4603_v46, 1  ;;  %v1621_v33 = vadd.f32 %v1586_v14, %v4086_v27  ;;  %v4147_v14 = vsel %vm1778_vm4, %v1618_v28, -1e+30  ;;  %v4613_v46 = vld [vmem:[#allocation14_spill] sm:$0xff]  ;;  %v4615_v42 = vld [vmem:[#allocation17_spill] sm:$0xff] }
 0x2ba   : > { %v4128_v22 = vsel %vm1774_vm9, %v1614_v16, -1e+30  ;;  %v2071_v0 = vmax.f32 %v4609_v1, %v4110_v11  ;;  %v4143_v16 = vsel %vm1777_vm5, %v1617_v60, -1e+30  ;;  %vm1781_vm6 = vcmp.eq.s32.totalorder %v4613_v46, 1 }
 0x2bb   : > { %v2076_v1 = vmax.f32 %v2072_v34, %v4128_v22  ;;  %v4157_v20 = vsel %vm1781_vm6, %v1621_v33, -1e+30  ;;  %vm1782_vm7 = vcmp.eq.s32.totalorder %v4615_v42, 1  ;;  %v4616_v34 = vmax.f32 %v3862_v2, %v3937_v62 }
 0x2bc   : > { %v2075_v51 = vmax.f32 %v2071_v0, %v4124_v15  ;;  %v4617_v2 = vmax.f32 %v4001_v49, %v4013_v35  ;;  %v4191_v49 = vld [vmem:[%s4492_s7] sm:$0x1] }
 0x2bd   : > { %v1917_v30 = vpop.f32.mrf.mxu2 }
 0x2be   : > { %v1970_v27 = vadd.f32 %v1917_v30, %v4592_v43  ;;  %v2079_v30 = vmax.f32 %v2075_v51, %v4143_v16  ;;  %v2080_v43 = vmax.f32 %v2076_v1, %v4147_v14 }
 0x2bf   : > { %v1588_v13 = vpop.f32.mrf.mxu1 }
 0x2c0   : > { %v2002_v60 = vsel %vm1769_vm12, %v1970_v27, -1e+30  ;;  %v1622_v28 = vadd.f32 %v1588_v13, %v4153_v21  ;;  %v2083_v46 = vmax.f32 %v2079_v30, %v4157_v20 }
 0x2c1   : > { %v4168_v0 = vmax.f32 %v4616_v34, %v2002_v60 }
 0x2c2   : > { %v1814_v33 = vsel %vm1782_vm7, %v1622_v28, -1e+30 }
 0x2c3   : > { %v2084_v57 = vmax.f32 %v2080_v43, %v1814_v33 }
 0x2c5   : > { %v2086_v27 = vmax.f32 %v2083_v46, %v2084_v57  ;;  %v1919_v31 = vpop.f32.mrf.mxu2  ;;  %v4618_v57 = vld [vmem:[#allocation20_spill] sm:$0xff] }
 0x2c6   : > { %v1971_v13 = vadd.f32 %v1919_v31, %v4594_v5 }
 0x2c7   : > { %v2087_v21 = vmax.f32 %v2085_v55, %v2086_v27 }
 0x2c8   : > { %v2003_v51 = vsel %vm1770_vm8, %v1971_v13, -1e+30  ;;  %v4619_v13 = vld [vmem:[#allocation25_spill] sm:$0xff] }
 0x2c9   : > { %v2088_v1 = vrot.slane %v2087_v21, 4  ;;  %v4179_v62 = vmax.f32 %v4617_v2, %v2003_v51 }
 0x2cb   : > { %v2089_v60 = vmax.f32 %v2087_v21, %v2088_v1 }
 0x2cd   : > { %v2090_v34 = vrot.slane %v2089_v60, 2  ;;  %v1922_v28 = vpop.f32.mrf.mxu2 }
 0x2ce   : > { %v1972_v30 = vadd.f32 %v1922_v28, %v3851_v38 }
 0x2cf   : > { %v2091_v43 = vmax.f32 %v2089_v60, %v2090_v34 }
 0x2d0   : > { %v4184_v46 = vsel %vm1771_vm14, %v1972_v30, -1e+30 }
 0x2d1   : > { %v2092_v55 = vrot.slane %v2091_v43, 1  ;;  %v2033_v5 = vmax.f32 %v4078_v9, %v4184_v46 }
 0x2d3   : > { %v2093_v35 = vmax.f32 %v2091_v43, %v2092_v55 }
 0x2d5   : > { %v4194_v21 = vmax.f32 %v4191_v49, %v2093_v35  ;;  %v1924_v31 = vpop.f32.mrf.mxu2 }
 0x2d7   : > { %v4197_v38 = vperm.slane %v4194_v21, 0  ;;  %2306 = vst [vmem:[%s4492_s7] sm:$0x1] %v4194_v21 }
 0x2d9   : > { %v2129_v23 = vsub.f32 %v1814_v33, %v4197_v38  ;;  %v2108_v27 = vsub.f32 %v4618_v57, %v4197_v38  ;;  %v2109_v51 = vsub.f32 %v4619_v13, %v4197_v38  ;;  %v2110_v1 = vsub.f32 %v3999_v17, %v4197_v38 }
 0x2da   : > { %v2111_v2 = vsub.f32 %v4005_v18, %v4197_v38  ;;  %v2112_v60 = vsub.f32 %v4608_v6, %v4197_v38  ;;  %v2113_v34 = vsub.f32 %v4611_v3, %v4197_v38  ;;  %v2125_v33 = vsub.f32 %v4147_v14, %v4197_v38 }
 0x2db   : > { %v2126_v28 = vsub.f32 %v4067_v63, %v4197_v38  ;;  %v2127_v30 = vsub.f32 %v4082_v12, %v4197_v38  ;;  %v2128_v17 = vsub.f32 %v4157_v20, %v4197_v38  ;;  %v1973_v18 = vadd.f32 %v1924_v31, %v3865_v25 }
 0x2dc   : > { %v2150_v55 = vmul.f32 1.442695, %v2108_v27  ;;  %v2152_v3 = vmul.f32 1.442695, %v2109_v51  ;;  %v2154_v57 = vmul.f32 1.442695, %v2110_v1  ;;  %v2104_v27 = vsub.f32 %v4620_v54, %v4197_v38 }
 0x2dd   : > { %v1927_v43 = vpop.f32.mrf.mxu2  ;;  %v4232_v14 = vsel %vm1772_vm15, %v1973_v18, -1e+30  ;;  %v2156_v63 = vmul.f32 1.442695, %v2111_v2  ;;  %v2158_v25 = vmul.f32 1.442695, %v2112_v60  ;;  %v2106_v2 = vsub.f32 %v3982_v50, %v4197_v38 }
 0x2de   : > { %v1974_v6 = vadd.f32 %v1927_v43, %v4597_v19  ;;  %v2034_v12 = vmax.f32 %v4106_v7, %v4232_v14  ;;  %2799 = vpow2.f32 %v2150_v55  ;;  %v2160_v31 = vmul.f32 1.442695, %v2113_v34  ;;  %v4621_v51 = vld [vmem:[#allocation23_spill] sm:$0xff] }
 0x2df   : > { %2801 = vpow2.f32 %v2152_v3  ;;  %v2105_v39 = vsub.f32 %v4621_v51, %v4197_v38  ;;  %v2192_v43 = vmul.f32 1.442695, %v2129_v23  ;;  %v2107_v34 = vsub.f32 %v3986_v29, %v4197_v38 }
 0x2e0   : > { %v4238_v20 = vsel %vm1773_vm10, %v1974_v6, -1e+30  ;;  %2803 = vpow2.f32 %v2154_v57  ;;  %v2124_v6 = vsub.f32 %v4143_v16, %v4197_v38  ;;  %v2142_v55 = vmul.f32 1.442695, %v2104_v27 }
 0x2e1   : > { %2805 = vpow2.f32 %v2156_v63  ;;  %v2144_v63 = vmul.f32 1.442695, %v2105_v39  ;;  %v2146_v54 = vmul.f32 1.442695, %v2106_v2  ;;  %v2148_v47 = vmul.f32 1.442695, %v2107_v34 }
 0x2e2   : > { %2807 = vpow2.f32 %v2158_v25  ;;  %v2182_v50 = vmul.f32 1.442695, %v2124_v6  ;;  %v2184_v29 = vmul.f32 1.442695, %v2125_v33  ;;  %v2102_v16 = vsub.f32 %v3956_v10, %v4197_v38  ;;  %v4622_v33 = vld [vmem:[#allocation19_spill] sm:$0xff] }
 0x2e3   : > { %2809 = vpow2.f32 %v2160_v31  ;;  %v2186_v27 = vmul.f32 1.442695, %v2126_v28  ;;  %v2103_v39 = vsub.f32 %v3964_v58, %v4197_v38  ;;  %v2190_v2 = vmul.f32 1.442695, %v2128_v17  ;;  %v4623_v28 = vld [vmem:[#allocation24_spill] sm:$0xff] }
 0x2e4   : > { %v2800_v1 = vpop.eup %2799  ;;  %2811 = vpow2.f32 %v2192_v43  ;;  %v2100_v34 = vsub.f32 %v4622_v33, %v4197_v38  ;;  %v2101_v6 = vsub.f32 %v4623_v28, %v4197_v38  ;;  %v2114_v9 = vsub.f32 %v4022_v8, %v4197_v38 }
 0x2e5   : > { %v4228_v35 = vpop.f32.mrf.mxu2  ;;  %v2802_v60 = vpop.eup %2801  ;;  %2813 = vpow2.f32 %v2142_v55  ;;  %v2140_v55 = vmul.f32 1.442695, %v2103_v39 }
 0x2e6   : > { %v2804_v18 = vpop.eup %2803  ;;  %v2199_v3 = vpack.c.bf16 %v2802_v60, %v2800_v1  ;;  %2815 = vpow2.f32 %v2144_v63  ;;  %v2188_v1 = vmul.f32 1.442695, %v2127_v30  ;;  %v2134_v63 = vmul.f32 1.442695, %v2100_v34 }
 0x2e7   : > { %v2806_v57 = vpop.eup %2805  ;;  %2817 = vpow2.f32 %v2146_v54  ;;  %v2099_v54 = vsub.f32 %v3978_v4, %v4197_v38  ;;  %v4624_v34 = vlaneseq }
 0x2e8   : > { %v2808_v25 = vpop.eup %2807  ;;  %v2200_v31 = vpack.c.bf16 %v2806_v57, %v2804_v18  ;;  %2819 = vpow2.f32 %v2148_v47  ;;  %v2138_v18 = vmul.f32 1.442695, %v2102_v16  ;;  %v2098_v57 = vsub.f32 %v3974_v32, %v4197_v38 }
 0x2e9   : > { %v2810_v51 = vpop.eup %2809  ;;  %2821 = vpow2.f32 %v2182_v50 }
 0x2ea   : > { %v2201_v23 = vpack.c.bf16 %v2810_v51, %v2808_v25  ;;  %v4260_v60 = vpop.eup %2811  ;;  %2823 = vpow2.f32 %v2184_v29  ;;  %v2130_v32 = vmul.f32 1.442695, %v2098_v57  ;;  %v2123_v57 = vsub.f32 %v4059_v52, %v4197_v38 }
 0x2eb   : > { %v2814_v43 = vpop.eup %2813  ;;  %2825 = vpow2.f32 %v2186_v27  ;;  %v2132_v27 = vmul.f32 1.442695, %v2099_v54  ;;  %v2121_v52 = vsub.f32 %v4128_v22, %v4197_v38 }
 0x2ec   : > { %2232 = vmatpush.bf16.msrb.mxu3 %v2201_v23  ;;  %v2816_v10 = vpop.eup %2815  ;;  %2827 = vpow2.f32 %v2188_v1 }
 0x2ed   : > { %v4244_v13 = vpop.f32.mrf.mxu2  ;;  %v2818_v58 = vpop.eup %2817  ;;  %2829 = vpow2.f32 %v2190_v2  ;;  %v2197_v1 = vpack.c.bf16 %v2816_v10, %v2814_v43  ;;  %v2122_v43 = vsub.f32 %v4055_v24, %v4197_v38 }
 0x2ee   : > { %v2820_v30 = vpop.eup %2819  ;;  %2831 = vpow2.f32 %v2138_v18  ;;  %v4288_v18 = vshrl.u32 %v4624_v34, 7  ;;  %v1976_v24 = vadd.f32 %v4244_v13, %v3918_v61  ;;  %v2119_v61 = vsub.f32 %v4044_v40, %v4197_v38 }
 0x2ef   : > { %v4268_v17 = vpop.eup %2821  ;;  %2833 = vpow2.f32 %v2140_v55  ;;  %v2198_v50 = vpack.c.bf16 %v2820_v30, %v2818_v58  ;;  %v4295_v55 = vld [vmem:[%s394_s27] sm:$0x3]  ;;  %v2176_v13 = vmul.f32 1.442695, %v2121_v52  ;;  %v2213_v52 = vld [vmem:[%s4494_s9 + $0x18] sm:$0xff] }
 0x2f0   : > { %2233 = vmatpush.bf16.msrb.mxu3 %v2200_v31  ;;  %v4272_v25 = vpop.eup %2823  ;;  %v2136_v31 = vmul.f32 1.442695, %v2101_v6  ;;  %2835 = vpow2.f32 %v2134_v63  ;;  %v4300_v10 = vadd.s32 8, %v4288_v18  ;;  %v4303_v58 = vperm.slane %v4295_v55, 0 }
 0x2f1   : > { %v4276_v51 = vpop.eup %2825  ;;  %v2207_v23 = vpack.c.bf16 %v4272_v25, %v4268_v17  ;;  %v4350_v56 = vadd.s32 16, %v4288_v18  ;;  %v4626_v17 = vld [vmem:[#allocation4_spill] sm:$0xff] }
 0x2f2   : > { %v4280_v29 = vpop.eup %2827  ;;  %2837 = vpow2.f32 %v2136_v31  ;;  %vm1084_vm11 = vcmp.eq.s32.totalorder %v4288_v18, %v4303_v58  ;;  %vm1086_vm13 = vcmp.eq.s32.totalorder %v4300_v10, %v4303_v58 }
 0x2f3   : > { %v2830_v16 = vpop.eup %2829  ;;  %2839 = vpow2.f32 %v2130_v32  ;;  %vm2670_vm14 = vmpackc.low %vm1086_vm13, %vm1084_vm11  ;;  %vm1088_vm15 = vcmp.eq.s32.totalorder %v4350_v56, %v4303_v58 }
 0x2f4   : > { %2234 = vmatpush.bf16.msrb.mxu3 %v2199_v3  ;;  %v2208_v3 = vpack.c.bf16 %v4280_v29, %v4276_v51  ;;  %v2209_v4 = vpack.c.bf16 %v4260_v60, %v2830_v16  ;;  %v2832_v39 = vpop.eup %2831  ;;  %2841 = vpow2.f32 %v2132_v27  ;;  %v2120_v51 = vsub.f32 %v4124_v15, %v4197_v38 }
 0x2f5   : > { %v4254_v19 = vpop.f32.mrf.mxu2  ;;  %v2834_v33 = vpop.eup %2833  ;;  %v2180_v16 = vmul.f32 1.442695, %v2123_v57  ;;  %v2118_v27 = vsub.f32 %v4040_v48, %v4197_v38  ;;  %v2162_v57 = vmul.f32 1.442695, %v2114_v9 }
 0x2f6   : > { %v2836_v28 = vpop.eup %2835  ;;  %v2196_v6 = vpack.c.bf16 %v2834_v33, %v2832_v39  ;;  %v1977_v29 = vadd.f32 %v4254_v19, %v3960_v41  ;;  %v2174_v41 = vmul.f32 1.442695, %v2120_v51  ;;  %v2008_v19 = vsel %vm1775_vm0, %v1976_v24, -1e+30 }
 0x2f7   : > { %v2877_v39 = vmov 1.0|1.0   ;;  %v2170_v59 = vmul.f32 1.442695, %v2118_v27  ;;  %v2037_v26 = vmax.f32 %v2033_v5, %v2008_v19  ;;  %v2172_v33 = vmul.f32 1.442695, %v2119_v61 }
 0x2f8   : > { %2235 = vmatpush.bf16.msrb.mxu3 %v2198_v50  ;;  %v2838_v60 = vpop.eup %2837  ;;  %v2178_v50 = vmul.f32 1.442695, %v2122_v43  ;;  %v2009_v22 = vsel %vm1776_vm1, %v1977_v29, -1e+30  ;;  %v2115_v5 = vsub.f32 %v4026_v45, %v4197_v38  ;;  %v4370_v51 = vperm.slane %v4295_v55, 1  ;;  %v4633_v19 = vld [vmem:[#allocation10_spill] sm:$0xff] }
 0x2f9   : > { %v2840_v30 = vpop.eup %2839  ;;  %v2195_v63 = vpack.c.bf16 %v2838_v60, %v2836_v28 }
 0x2fa   : > { %v2842_v31 = vpop.eup %2841  ;;  %2843 = vpow2.f32 %v2178_v50  ;;  %v4629_v50 = vld [vmem:[#allocation3_spill] sm:$0xff] }
 0x2fb   : > { %v2194_v32 = vpack.c.bf16 %v2842_v31, %v2840_v30  ;;  %2845 = vpow2.f32 %v2180_v16 }
 0x2fc   : > { %2236 = vmatpush.bf16.msrb.mxu3 %v2197_v1  ;;  %v2116_v1 = vsub.f32 %v4110_v11, %v4197_v38  ;;  %2847 = vpow2.f32 %v2174_v41 }
 0x2fd   : > { %v4266_v47 = vpop.f32.mrf.mxu2  ;;  %2849 = vpow2.f32 %v2176_v13 }
 0x2fe   : > { %v2166_v46 = vmul.f32 1.442695, %v2116_v1  ;;  %2851 = vpow2.f32 %v2170_v59  ;;  %v1978_v25 = vadd.f32 %v4266_v47, %v4626_v17 }
 0x2ff   : > { %2853 = vpow2.f32 %v2172_v33 }
 0x300   : > { %2237 = vmatpush.bf16.msrb.mxu3 %v2196_v6  ;;  %v2844_v28 = vpop.eup %2843  ;;  %2855 = vpow2.f32 %v2166_v46  ;;  %v2010_v29 = vsel %vm1777_vm5, %v1978_v25, -1e+30 }
 0x301   : > { %v2846_v6 = vpop.eup %2845 }
 0x302   : > { %v2848_v8 = vpop.eup %2847  ;;  %v2206_v43 = vpack.c.bf16 %v2846_v6, %v2844_v28 }
 0x303   : > { %v2850_v30 = vpop.eup %2849 }
 0x304   : > { %2238 = vmatpush.bf16.msrb.mxu3 %v2195_v63  ;;  %v2852_v45 = vpop.eup %2851  ;;  %v2205_v47 = vpack.c.bf16 %v2850_v30, %v2848_v8  ;;  %v1081_v8 = vadd.s32 56, %v4288_v18 }
 0x305   : > { %v4285_v2 = vpop.f32.mrf.mxu2 }
 0x306   : > { %vm1098_vm11 = vcmp.eq.s32.totalorder %v1081_v8, %v4303_v58 }
 0x308   : > { %2239 = vmatpush.bf16.msrb.mxu3 %v2194_v32 }
 0x30b   : > { %2671 = vmatmul.msk.bf16.vlgmr.msrb.gmra.mxu3 %vm2670_vm14, %v2877_v39 }
 0x30c   : > { %2261 = vmatpush.bf16.msra.mxu3 %v2209_v4  ;;  %v2038_v4 = vmax.f32 %v2034_v12, %v2009_v22 }
 0x30d   : > { %v1942_v54 = vpop.f32.mrf.mxu2 }
 0x30e   : > { %v1980_v15 = vadd.f32 %v1942_v54, %v3947_v36 }
 0x310   : > { %v2012_v48 = vsel %vm1779_vm2, %v1980_v15, -1e+30  ;;  %2262 = vmatpush.bf16.msra.mxu3 %v2208_v3  ;;  %v4625_v3 = vld [vmem:[#allocation35_spill] sm:$0xff]  ;;  %vm1085_vm2 = vcmp.eq.s32.totalorder %v4288_v18, %v4370_v51 }
 0x311   : > { %v2041_v11 = vmax.f32 %v2037_v26, %v2012_v48  ;;  %v1975_v60 = vadd.f32 %v4228_v35, %v4625_v3  ;;  %v2854_v35 = vpop.eup %2853 }
 0x312   : > { %v2856_v32 = vpop.eup %2855  ;;  %v2204_v27 = vpack.c.bf16 %v2854_v35, %v2852_v45 }
 0x313   : > { %v2007_v31 = vsel %vm1774_vm9, %v1975_v60, -1e+30 }
 0x314   : > { %2263 = vmatpush.bf16.msra.mxu3 %v2207_v23  ;;  %v4627_v23 = vld [vmem:[#allocation2_spill] sm:$0xff]  ;;  %v2036_v15 = vmax.f32 %v4179_v62, %v2007_v31 }
 0x315   : > { %v1944_v36 = vpop.f32.mrf.mxu2  ;;  %v1979_v63 = vadd.f32 %v4285_v2, %v4627_v23 }
 0x316   : > { %v1981_v40 = vadd.f32 %v1944_v36, %v4036_v53  ;;  %v2117_v53 = vsub.f32 %v4114_v37, %v4197_v38  ;;  %v4353_v37 = vadd.s32 24, %v4288_v18  ;;  %v2164_v38 = vmul.f32 1.442695, %v2115_v5 }
 0x317   : > { %v2011_v16 = vsel %vm1778_vm4, %v1979_v63, -1e+30  ;;  %v4634_v36 = vmax.f32 %v4168_v0, %v4238_v20  ;;  %v1079_v0 = vadd.s32 40, %v4288_v18  ;;  %vm1089_vm4 = vcmp.eq.s32.totalorder %v4350_v56, %v4370_v51  ;;  %v2210_v63 = vld [vmem:[%s4494_s9] sm:$0xff] }
 0x318   : > { %v2013_v44 = vsel %vm1780_vm3, %v1981_v40, -1e+30  ;;  %v2168_v14 = vmul.f32 1.442695, %v2117_v53  ;;  %2264 = vmatpush.bf16.msra.mxu3 %v2206_v43  ;;  %vm1090_vm0 = vcmp.eq.s32.totalorder %v4353_v37, %v4303_v58  ;;  %vm1087_vm3 = vcmp.eq.s32.totalorder %v4300_v10, %v4370_v51 }
 0x319   : > { %v2042_v34 = vmax.f32 %v2038_v4, %v2013_v44  ;;  %vm2672_vm1 = vmpackc.low %vm1090_vm0, %vm1088_vm15  ;;  %v2039_v62 = vmax.f32 %v4634_v36, %v2010_v29  ;;  %v2040_v48 = vmax.f32 %v2036_v15, %v2011_v16  ;;  %v1078_v53 = vadd.s32 32, %v4288_v18 }
 0x31a   : > { %2857 = vpow2.f32 %v2168_v14  ;;  %vm4389_vm8 = vmpackc.low %vm1087_vm3, %vm1085_vm2  ;;  %vm1094_vm9 = vcmp.eq.s32.totalorder %v1079_v0, %v4303_v58  ;;  %vm1091_vm5 = vcmp.eq.s32.totalorder %v4353_v37, %v4370_v51  ;;  %vm1095_vm15 = vcmp.eq.s32.totalorder %v1079_v0, %v4370_v51 }
 0x31b   : > { %v2045_v7 = vmax.f32 %v2041_v11, %v2042_v34  ;;  %2859 = vpow2.f32 %v2162_v57  ;;  %2673 = vmatmul.msk.bf16.gmra.mxu3 %vm2672_vm1, %v2877_v39  ;;  %vm1092_vm12 = vcmp.eq.s32.totalorder %v1078_v53, %v4303_v58  ;;  %vm1093_vm14 = vcmp.eq.s32.totalorder %v1078_v53, %v4370_v51 }
 0x31c   : > { %2265 = vmatpush.bf16.msra.mxu3 %v2205_v47  ;;  %2861 = vpow2.f32 %v2164_v38  ;;  %vm2674_vm10 = vmpackc.low %vm1094_vm9, %vm1092_vm12  ;;  %vm1099_vm2 = vcmp.eq.s32.totalorder %v1081_v8, %v4370_v51  ;;  %v4639_v43 = vsub.f32 %v4191_v49, %v4194_v21  ;;  %v2211_v49 = vld [vmem:[%s4494_s9 + $0x8] sm:$0xff]  ;;  %v2212_v47 = vld [vmem:[%s4494_s9 + $0x10] sm:$0xff] }
 0x31d   : > { %v1947_v12 = vpop.f32.mrf.mxu2  ;;  %vm2682_vm0 = vmpackc.low %vm1095_vm15, %vm1093_vm14 }
 0x31e   : > { %v1982_v2 = vadd.f32 %v1947_v12, %v4629_v50  ;;  %v1080_v12 = vadd.s32 48, %v4288_v18  ;;  %v2219_v30 = vmul.f32 1.442695, %v4639_v43 }
 0x320   : > { %v2014_v41 = vsel %vm1781_vm6, %v1982_v2, -1e+30  ;;  %v2858_v13 = vpop.eup %2857  ;;  %2266 = vmatpush.bf16.msra.mxu3 %v2204_v27  ;;  %vm4404_vm6 = vmpackc.low %vm1091_vm5, %vm1089_vm4  ;;  %vm1097_vm1 = vcmp.eq.s32.totalorder %v1080_v12, %v4370_v51  ;;  %2863 = vpow2.f32 %v2219_v30 }
 0x321   : > { %v2043_v59 = vmax.f32 %v2039_v62, %v2014_v41  ;;  %v2860_v4 = vpop.eup %2859  ;;  %v2203_v33 = vpack.c.bf16 %v2858_v13, %v2856_v32  ;;  %vm2684_vm3 = vmpackc.low %vm1099_vm2, %vm1097_vm1  ;;  %v2215_v13 = vld [vmem:[%s4494_s9 + $0x28] sm:$0xff] }
 0x322   : > { %v2862_v44 = vpop.eup %2861 }
 0x323   : > { %v2202_v11 = vpack.c.bf16 %v2862_v44, %v2860_v4  ;;  %v2217_v44 = vld [vmem:[%s4494_s9 + $0x38] sm:$0xff] }
 0x324   : > { %2267 = vmatpush.bf16.msra.mxu3 %v2203_v33 }
 0x325   : > { %v1949_v61 = vpop.f32.mrf.mxu2 }
 0x326   : > { %v1983_v22 = vadd.f32 %v1949_v61, %v4633_v19  ;;  %v2864_v25 = vpop.eup %2863  ;;  %v2214_v61 = vld [vmem:[%s4494_s9 + $0x20] sm:$0xff] }
 0x327   : > { %v2222_v23 = vperm.slane %v2864_v25, 0 }
 0x328   : > { %v2015_v1 = vsel %vm1782_vm7, %v1983_v22, -1e+30  ;;  %2268 = vmatpush.bf16.msra.mxu3 %v2202_v11  ;;  %vm1096_vm7 = vcmp.eq.s32.totalorder %v1080_v12, %v4303_v58 }
 0x329   : > { %v2044_v26 = vmax.f32 %v2040_v48, %v2015_v1  ;;  %vm2676_vm13 = vmpackc.low %vm1098_vm11, %vm1096_vm7  ;;  %v2224_v45 = vmul.f32 %v2222_v23, %v2210_v63  ;;  %v2225_v54 = vmul.f32 %v2222_v23, %v2211_v49  ;;  %v2226_v2 = vmul.f32 %v2222_v23, %v2212_v47  ;;  %v2216_v1 = vld [vmem:[%s4494_s9 + $0x30] sm:$0xff] }
 0x32a   : > { %v2227_v32 = vmul.f32 %v2222_v23, %v2213_v52  ;;  %v2228_v41 = vmul.f32 %v2222_v23, %v2214_v61  ;;  %v2229_v62 = vmul.f32 %v2222_v23, %v2215_v13  ;;  %v2231_v53 = vmul.f32 %v2222_v23, %v2217_v44 }
 0x32b   : > { %v2046_v10 = vmax.f32 %v2043_v59, %v2044_v26  ;;  %2675 = vmatmul.msk.bf16.gmra.mxu3 %vm2674_vm10, %v2877_v39  ;;  %v2230_v26 = vmul.f32 %v2222_v23, %v2216_v1 }
 0x32d   : > { %v2047_v20 = vmax.f32 %v2045_v7, %v2046_v10  ;;  %v2016_v7 = vld [vmem:[%s4493_s8] sm:$0x1] }
 0x32f   : > { %v2048_v34 = vrot.slane %v2047_v20, 4 }
 0x331   : > { %v2049_v42 = vmax.f32 %v2047_v20, %v2048_v34 }
 0x333   : > { %v2050_v28 = vrot.slane %v2049_v42, 2 }
 0x335   : > { %v2051_v6 = vmax.f32 %v2049_v42, %v2050_v28 }
 0x337   : > { %v2052_v9 = vrot.slane %v2051_v6, 1 }
 0x339   : > { %v2053_v5 = vmax.f32 %v2051_v6, %v2052_v9 }
 0x33b   : > { %v2054_v14 = vmax.f32 %v2016_v7, %v2053_v5  ;;  %2677 = vmatmul.msk.bf16.gmra.mxu3 %vm2676_vm13, %v2877_v39 }
 0x33d   : > { %2055 = vst [vmem:[%s4493_s8] sm:$0x1] %v2054_v14 }
 0x34b   : > { %2679 = vmatmul.msk.bf16.vlgmr.msra.gmra.mxu3 %vm4389_vm8, %v2877_v39 }
 0x35b   : > { %2681 = vmatmul.msk.bf16.gmra.mxu3 %vm4404_vm6, %v2877_v39 }
 0x36b   : > { %2683 = vmatmul.msk.bf16.gmra.mxu3 %vm2682_vm0, %v2877_v39 }
 0x37b   : > { %2685 = vmatmul.msk.bf16.gmra.mxu3 %vm2684_vm3, %v2877_v39 }
 0x38e   : > { %v2241_v18 = vpop.f32.mrf.mxu3 }
 0x396   : > { %v2243_v58 = vpop.f32.mrf.mxu3 }
 0x39e   : > { %v2246_v56 = vpop.f32.mrf.mxu3 }
 0x3a6   : > { %v2248_v37 = vpop.f32.mrf.mxu3 }
 0x3ae   : > { %v2251_v3 = vpop.f32.mrf.mxu3 }
 0x3b6   : > { %v2253_v60 = vpop.f32.mrf.mxu3 }
 0x3be   : > { %v2256_v57 = vpop.f32.mrf.mxu3 }
 0x3c6   : > { %v2258_v17 = vpop.f32.mrf.mxu3 }
 0x3ce   : > { %v2270_v39 = vpop.f32.mrf.mxu3 }
 0x3cf   : > { %v2271_v38 = vadd.f32 %v2270_v39, %v2241_v18 }
 0x3d1   : > { %v2290_v35 = vadd.f32 %v2271_v38, %v2224_v45 }
 0x3d3   : > { %2298 = vst [vmem:[%s4494_s9] sm:$0xff] %v2290_v35 }
 0x3d6   : > { %v2272_v21 = vpop.f32.mrf.mxu3 }
 0x3d7   : > { %v2273_v31 = vadd.f32 %v2272_v21, %v2243_v58 }
 0x3d9   : > { %v2291_v51 = vadd.f32 %v2273_v31, %v2225_v54 }
 0x3db   : > { %2299 = vst [vmem:[%s4494_s9 + $0x8] sm:$0xff] %v2291_v51 }
 0x3de   : > { %v2275_v50 = vpop.f32.mrf.mxu3 }
 0x3df   : > { %v2276_v24 = vadd.f32 %v2275_v50, %v2246_v56 }
 0x3e1   : > { %v2292_v29 = vadd.f32 %v2276_v24, %v2226_v2 }
 0x3e3   : > { %2300 = vst [vmem:[%s4494_s9 + $0x10] sm:$0xff] %v2292_v29 }
 0x3e6   : > { %v2277_v16 = vpop.f32.mrf.mxu3 }
 0x3e7   : > { %v2278_v15 = vadd.f32 %v2277_v16, %v2248_v37 }
 0x3e9   : > { %v2293_v27 = vadd.f32 %v2278_v15, %v2227_v32 }
 0x3eb   : > { %2301 = vst [vmem:[%s4494_s9 + $0x18] sm:$0xff] %v2293_v27 }
 0x3ee   : > { %v2280_v55 = vpop.f32.mrf.mxu3 }
 0x3ef   : > { %v2281_v19 = vadd.f32 %v2280_v55, %v2251_v3 }
 0x3f1   : > { %v2294_v22 = vadd.f32 %v2281_v19, %v2228_v41 }
 0x3f3   : > { %2302 = vst [vmem:[%s4494_s9 + $0x20] sm:$0xff] %v2294_v22 }
 0x3f6   : > { %v2282_v36 = vpop.f32.mrf.mxu3 }
 0x3f7   : > { %v2283_v48 = vadd.f32 %v2282_v36, %v2253_v60 }
 0x3f9   : > { %v2295_v40 = vadd.f32 %v2283_v48, %v2229_v62 }
 0x3fb   : > { %2303 = vst [vmem:[%s4494_s9 + $0x28] sm:$0xff] %v2295_v40 }
 0x3fe   : > { %v2285_v59 = vpop.f32.mrf.mxu3 }
 0x3ff   : > { %v2286_v4 = vadd.f32 %v2285_v59, %v2256_v57 }
 0x401   : > { %v2296_v33 = vadd.f32 %v2286_v4, %v2230_v26 }
 0x403   : > { %2304 = vst [vmem:[%s4494_s9 + $0x30] sm:$0xff] %v2296_v33 }
 0x406   : > { %v2287_v10 = vpop.f32.mrf.mxu3 }
 0x407   : > { %v2288_v0 = vadd.f32 %v2287_v10, %v2258_v17 }
 0x409   : > { %v2297_v20 = vadd.f32 %v2288_v0, %v2231_v53 }
 0x40b   : > { %2305 = vst [vmem:[%s4494_s9 + $0x38] sm:$0xff] %v2297_v20 }
 0x40c PF: > { %s21_s13 = sadd.s32 1, %s2871_s13  }
 0x40d   : > { %p18_p6 = scmp.ge.s32.totalorder %s21_s13, 4  }
 0x40f   :  { %20 = sbr.rel (!%p18_p6) target bundleno = 1 (0x1), region = 111 }

// kernel: gat_forward.10
= control target key start
LH: loop header
LB: loop body
LE: loop exit
PB: predicated region body
PF: predicated region fallthrough
CT: control target
= control target key end

     0   :  { %s307_s1 = inlined_call_operand.vmem [shape: bf16[128,128], index: 1, kind: input, shape index: {}]   ;;  %s308_s0 = inlined_call_operand.vmem [shape: bf16[64,128], index: 0, kind: input, shape index: {}]   ;;  %s309_s2 = inlined_call_operand.vmem [shape: f32[64,128], index: 2, kind: output, shape index: {}]  }
   0x1   :  { %v207_v0 = vld [vmem:[%s307_s1 + $0x38] sm:$0xff]  ;;  %v206_v1 = vld [vmem:[%s307_s1 + $0x30] sm:$0xff]  ;;  %v205_v2 = vld [vmem:[%s307_s1 + $0x28] sm:$0xff] }
   0x2   :  { %107 = vmatpush.bf16.msra.mxu0 %v207_v0  ;;  %208 = vmatpush.bf16.msra.mxu1 %v207_v0  ;;  %v204_v3 = vld [vmem:[%s307_s1 + $0x20] sm:$0xff]  ;;  %v203_v4 = vld [vmem:[%s307_s1 + $0x18] sm:$0xff]  ;;  %v202_v5 = vld [vmem:[%s307_s1 + $0x10] sm:$0xff] }
   0x3   :  { %209 = vmatpush.bf16.msra.mxu2 %v207_v0  ;;  %210 = vmatpush.bf16.msra.mxu3 %v207_v0  ;;  %v201_v6 = vld [vmem:[%s307_s1 + $0x8] sm:$0xff]  ;;  %v200_v7 = vld [vmem:[%s307_s1] sm:$0xff]  ;;  %v198_v10 = vld [vmem:[%s308_s0 + $0x10] sm:$0xff] }
   0x4   :  { %v196_v8 = vld [vmem:[%s308_s0] sm:$0xff]  ;;  %v197_v9 = vld [vmem:[%s308_s0 + $0x8] sm:$0xff]  ;;  %v199_v11 = vld [vmem:[%s308_s0 + $0x18] sm:$0xff] }
   0x6   :  { %108 = vmatpush.bf16.msra.mxu0 %v206_v1  ;;  %211 = vmatpush.bf16.msra.mxu1 %v206_v1 }
   0x7   :  { %212 = vmatpush.bf16.msra.mxu2 %v206_v1  ;;  %213 = vmatpush.bf16.msra.mxu3 %v206_v1 }
   0xa   :  { %109 = vmatpush.bf16.msra.mxu0 %v205_v2  ;;  %214 = vmatpush.bf16.msra.mxu1 %v205_v2 }
   0xb   :  { %215 = vmatpush.bf16.msra.mxu2 %v205_v2  ;;  %216 = vmatpush.bf16.msra.mxu3 %v205_v2 }
   0xe   :  { %110 = vmatpush.bf16.msra.mxu0 %v204_v3  ;;  %217 = vmatpush.bf16.msra.mxu1 %v204_v3 }
   0xf   :  { %218 = vmatpush.bf16.msra.mxu2 %v204_v3  ;;  %219 = vmatpush.bf16.msra.mxu3 %v204_v3 }
  0x12   :  { %111 = vmatpush.bf16.msra.mxu0 %v203_v4  ;;  %220 = vmatpush.bf16.msra.mxu1 %v203_v4 }
  0x13   :  { %221 = vmatpush.bf16.msra.mxu2 %v203_v4  ;;  %222 = vmatpush.bf16.msra.mxu3 %v203_v4 }
  0x16   :  { %112 = vmatpush.bf16.msra.mxu0 %v202_v5  ;;  %223 = vmatpush.bf16.msra.mxu1 %v202_v5 }
  0x17   :  { %224 = vmatpush.bf16.msra.mxu2 %v202_v5  ;;  %225 = vmatpush.bf16.msra.mxu3 %v202_v5 }
  0x1a   :  { %113 = vmatpush.bf16.msra.mxu0 %v201_v6  ;;  %226 = vmatpush.bf16.msra.mxu1 %v201_v6 }
  0x1b   :  { %227 = vmatpush.bf16.msra.mxu2 %v201_v6  ;;  %228 = vmatpush.bf16.msra.mxu3 %v201_v6 }
  0x1e   :  { %114 = vmatpush.bf16.msra.mxu0 %v200_v7  ;;  %229 = vmatpush.bf16.msra.mxu1 %v200_v7 }
  0x1f   :  { %230 = vmatpush.bf16.msra.mxu2 %v200_v7  ;;  %231 = vmatpush.bf16.msra.mxu3 %v200_v7 }
  0x21   :  { %115 = vmatmul.bf16.vlgmr.msra.gmra.mxu0 %v196_v8  ;;  %120 = vmatmul.bf16.vlgmr.msra.gmra.mxu1 %v197_v9 }
  0x22   :  { %125 = vmatmul.bf16.vlgmr.msra.gmra.mxu2 %v198_v10  ;;  %130 = vmatmul.bf16.vlgmr.msra.gmra.mxu3 %v199_v11 }
  0x9e   :  { %v116_v12 = vpop.f32.mrf.mxu0  ;;  %v121_v13 = vpop.f32.mrf.mxu1 }
  0x9f   :  { %136 = vst [vmem:[%s309_s2] sm:$0xff] %v116_v12 }
  0xa0   :  { %138 = vst [vmem:[%s309_s2 + $0x10] sm:$0xff] %v121_v13 }
  0xa5   :  { %v126_v14 = vpop.f32.mrf.mxu2  ;;  %v131_v15 = vpop.f32.mrf.mxu3 }
  0xa6   :  { %140 = vst [vmem:[%s309_s2 + $0x20] sm:$0xff] %v126_v14  ;;  %v118_v16 = vpop.f32.mrf.mxu0  ;;  %v123_v17 = vpop.f32.mrf.mxu1 }
  0xa7   :  { %142 = vst [vmem:[%s309_s2 + $0x30] sm:$0xff] %v131_v15 }
  0xa8   :  { %137 = vst [vmem:[%s309_s2 + $0x8] sm:$0xff] %v118_v16 }
  0xa9   :  { %139 = vst [vmem:[%s309_s2 + $0x18] sm:$0xff] %v123_v17 }
  0xad   :  { %v128_v18 = vpop.f32.mrf.mxu2  ;;  %v133_v19 = vpop.f32.mrf.mxu3 }
  0xae   :  { %141 = vst [vmem:[%s309_s2 + $0x28] sm:$0xff] %v128_v18 }
  0xaf   :  { %143 = vst [vmem:[%s309_s2 + $0x38] sm:$0xff] %v133_v19 }

// kernel: gat_forward.7
= control target key start
LH: loop header
LB: loop body
LE: loop exit
PB: predicated region body
PF: predicated region fallthrough
CT: control target
= control target key end

     0   :  { %s4703_s25 = smov 0   ;;  %s6713_s0 = inlined_call_operand.vmem [shape: s32[512,1], index: 0, kind: input, shape index: {}]   ;;  %s6714_s1 = inlined_call_operand.vmem [shape: s32[512,1], index: 1, kind: input, shape index: {}]   ;;  %s6715_s2 = inlined_call_operand.vmem [shape: s32[1,512], index: 2, kind: input, shape index: {}]   ;;  %s6716_s3 = inlined_call_operand.vmem [shape: bf16[64,384], index: 3, kind: input, shape index: {}]   ;;  %s6717_s4 = inlined_call_operand.vmem [shape: bf16[512,128], index: 4, kind: input, shape index: {}]   ;;  %s6718_s5 = inlined_call_operand.vmem [shape: bf16[128,128], index: 5, kind: input, shape index: {}]   ;;  %s6719_s6 = inlined_call_operand.vmem [shape: bf16[128,128], index: 6, kind: input, shape index: {}]   ;;  %s6720_s7 = inlined_call_operand.vmem [shape: bf16[128,128], index: 7, kind: input, shape index: {}]   ;;  %s6721_s8 = inlined_call_operand.vmem [shape: bf16[128,128], index: 8, kind: input, shape index: {}]   ;;  %s6722_s9 = inlined_call_operand.vmem [shape: bf16[128,128], index: 9, kind: input, shape index: {}]   ;;  %s6723_s10 = inlined_call_operand.vmem [shape: f32[1,128], index: 10, kind: input, shape index: {}]   ;;  %s6724_s11 = inlined_call_operand.vmem [shape: f32[1,128], index: 11, kind: input, shape index: {}]   ;;  %s6725_s12 = inlined_call_operand.vmem [shape: f32[64,128], index: 12, kind: output, shape index: {0}]   ;;  %s6726_s13 = inlined_call_operand.vmem [shape: f32[512,128], index: 13, kind: output, shape index: {1}]  }
   0x1   :  { %6744 = sst [smem:[#allocation74_spill]] %s6721_s8 }
   0x2 LB: > { %6745 = sst [smem:[#allocation2_spill]] %s4627_s25  ;;  %s4709_s26 = sadd.s32 4294967295, %s4627_s25   ;;  %s4627_s25 = sphi %s4703_s25, %s24_s25  }
   0x3   : > { %p3756_p0 = scmp.ge.s32.totalorder %s4627_s25, 1  ;;  %p418_p1 = scmp.lt.s32.totalorder %s4627_s25, 3 }
   0x5   : > { %p419_p2 = pnand %p3756_p0, %p418_p1 }
   0x7   : > { %422 = sbr.rel (%p419_p2) target bundleno = 1522 (0x5f2), region = 68 }
   0xc   : > { %s3757_s27 = sshll.u32 %s4709_s26, 5  ;;  %s3761_s28 = sshll.u32 %s4709_s26, 1 }
   0xd   : > { %p477_p3 = scmp.lt.s32.totalorder %s3757_s27, 63  ;;  %p489_p4 = scmp.lt.s32.totalorder %s3761_s28, 3 }
   0xe   : > { %p3766_p5 = scmp.ne.s32.totalorder %s4709_s26, 0 }
   0xf   : > { %s6931_s27 = smov (!%p477_p3, %s3757_s27), 63  ;;  %s6933_s28 = smov (!%p489_p4, %s3761_s28), 3 }
  0x10   : > { %s3758_s29 = sshll.u32 %s6931_s27, 3  ;;  %s3763_s30 = sshll.u32 %s6931_s27, 2 }
  0x11   : > { %s4720_s16 = scalar_lea.vmem %s6713_s0, %s3758_s29  ;;  %s4725_s19 = scalar_lea.vmem %s6714_s1, %s3758_s29 }
  0x12   : > { %s4734_s25 = scalar_lea.vmem %s6717_s4, %s3763_s30  ;;  %s4739_s14 = scalar_lea.vmem %s6726_s13, %s3758_s29 }
  0x13   : > { %509 = sbr.rel (%p3766_p5) target bundleno = 33 (0x21), region = 72 }
  0x18   : > { %v4629_v0 = vmov 0.0  }
  0x19   : > { %510 = vst [vmem:[%s6725_s12] sm:$0xff] %v4629_v0 }
  0x1a   : > { %511 = vst [vmem:[%s6725_s12 + $0x8] sm:$0xff] %v4629_v0 }
  0x1b   : > { %512 = vst [vmem:[%s6725_s12 + $0x10] sm:$0xff] %v4629_v0 }
  0x1c   : > { %513 = vst [vmem:[%s6725_s12 + $0x18] sm:$0xff] %v4629_v0 }
  0x1d   : > { %514 = vst [vmem:[%s6725_s12 + $0x20] sm:$0xff] %v4629_v0 }
  0x1e   : > { %515 = vst [vmem:[%s6725_s12 + $0x28] sm:$0xff] %v4629_v0 }
  0x1f   : > { %516 = vst [vmem:[%s6725_s12 + $0x30] sm:$0xff] %v4629_v0 }
  0x20   : > { %517 = vst [vmem:[%s6725_s12 + $0x38] sm:$0xff] %v4629_v0 }
  0x21 PF: > { %v4767_v1 = vld [vmem:[%s4725_s19 + $0x20] sm:$0xff]  ;;  %v4770_v2 = vld [vmem:[%s4725_s19 + $0x10] sm:$0xff]  ;;  %v4630_v4 = vmov 0   ;;  %v4782_v5 = vld [vmem:[%s4725_s19 + $0x28] sm:$0xff]  ;;  %vm1244_vm2 = vcmask 523264   ;;  %s6899_s15 = scalar_lea.vmem %s6715_s2, %s6933_s28  ;;  %p4151_p6 = scmp.ne.s32.totalorder %s4709_s26, 1 }
  0x22   : > { %v4773_v3 = vld [vmem:[%s4725_s19] sm:$0xff]  ;;  %4344 = vset.pattern.permute.xlu2 %v4630_v4  ;;  %4343 = vset.pattern.permute.xlu1 %v4630_v4  ;;  %v4785_v6 = vld [vmem:[%s4725_s19 + $0x18] sm:$0xff]  ;;  %v4788_v7 = vld [vmem:[%s4725_s19 + $0x8] sm:$0xff]  ;;  %s6928_s21 = sld [smem:[#allocation74_spill]] (!%p4151_p6) }
  0x23   : > { %4342 = vset.pattern.permute.xlu0 %v4630_v4  ;;  %837 = vperm.xlu2 %4344, %v4767_v1   ;;  %v4794_v8 = vld [vmem:[%s4725_s19 + $0x40] sm:$0xff]  ;;  %v4797_v9 = vld [vmem:[%s4725_s19 + $0x38] sm:$0xff]  ;;  %v4800_v10 = vld [vmem:[%s4725_s19 + $0x30] sm:$0xff] }
  0x24   : > { %831 = vperm.xlu1 %4343, %v4770_v2   ;;  %825 = vperm.xlu0 %4342, %v4773_v3   ;;  %v4806_v11 = vld [vmem:[%s4725_s19 + $0x58] sm:$0xff]  ;;  %v4809_v12 = vld [vmem:[%s4725_s19 + $0x50] sm:$0xff]  ;;  %v4812_v13 = vld [vmem:[%s4725_s19 + $0x48] sm:$0xff] }
  0x25   : > { %v4818_v14 = vld [vmem:[%s4725_s19 + $0x70] sm:$0xff]  ;;  %v4821_v15 = vld [vmem:[%s4725_s19 + $0x68] sm:$0xff]  ;;  %v4824_v16 = vld [vmem:[%s4725_s19 + $0x60] sm:$0xff] }
  0x26   : > { %v4830_v17 = vld [vmem:[%s4725_s19 + $0x88] sm:$0xff]  ;;  %v4833_v18 = vld [vmem:[%s4725_s19 + $0x80] sm:$0xff]  ;;  %v4836_v19 = vld [vmem:[%s4725_s19 + $0x78] sm:$0xff]  ;;  %vm564_vm13 = vcmp.lt.s32.totalorder %v4818_v14, 64 }
  0x27   : > { %v4842_v20 = vld [vmem:[%s4725_s19 + $0xa0] sm:$0xff]  ;;  %v4845_v21 = vld [vmem:[%s4725_s19 + $0x98] sm:$0xff]  ;;  %v4848_v22 = vld [vmem:[%s4725_s19 + $0x90] sm:$0xff]  ;;  %vm565_vm12 = vcmp.lt.s32.totalorder %v4836_v19, 64 }
  0x28   : > { %v4854_v23 = vld [vmem:[%s4725_s19 + $0xb8] sm:$0xff]  ;;  %v4857_v24 = vld [vmem:[%s4725_s19 + $0xb0] sm:$0xff]  ;;  %v4860_v25 = vld [vmem:[%s4725_s19 + $0xa8] sm:$0xff] }
  0x29   : > { %v4866_v26 = vld [vmem:[%s4725_s19 + $0xd0] sm:$0xff]  ;;  %v4869_v27 = vld [vmem:[%s4725_s19 + $0xc8] sm:$0xff]  ;;  %v4872_v28 = vld [vmem:[%s4725_s19 + $0xc0] sm:$0xff] }
  0x2a   : > { %v4878_v29 = vld [vmem:[%s4725_s19 + $0xe8] sm:$0xff]  ;;  %v3893_v30 = vld [vmem:[%s6716_s3 + $0x50] sm:$0xf]  ;;  %v4261_v31 = vld [vmem:[%s6716_s3 + $0x58] sm:$0xf0] }
  0x2b   : > { %840 = vperm.xlu2 %4344, %v4782_v5   ;;  %v4887_v32 = vld [vmem:[%s4725_s19 + $0xe0] sm:$0xff]  ;;  %v4890_v33 = vld [vmem:[%s4725_s19 + $0xd8] sm:$0xff]  ;;  %v4892_v34 = vor.u32 %v4261_v31, %v3893_v30  ;;  %v3885_v39 = vld [vmem:[%s6716_s3 + $0x48] sm:$0xf] }
  0x2c   : > { %834 = vperm.xlu1 %4343, %v4785_v6   ;;  %828 = vperm.xlu0 %4342, %v4788_v7   ;;  %v3881_v35 = vld [vmem:[%s6716_s3 + $0x38] sm:$0xf]  ;;  %v4258_v36 = vld [vmem:[%s6716_s3 + $0x40] sm:$0xf0]  ;;  %v4260_v40 = vld [vmem:[%s6716_s3 + $0x50] sm:$0xf0] }
  0x2d   : > { %4306 = vmatpush.bf16.msra.mxu2 %v4892_v34  ;;  %v582_v37 = vld [vmem:[%s4720_s16] sm:$0xff]  ;;  %v4905_v38 = vor.u32 %v4258_v36, %v3881_v35  ;;  %v4259_v41 = vld [vmem:[%s6716_s3 + $0x4c] sm:$0xf]  ;;  %v3886_v42 = vor.u32 %v4260_v40, %v3885_v39  ;;  %v3887_v43 = vld [vmem:[%s6716_s3 + $0x54] sm:$0xf0]  ;;  %v6729_v35 = vlaneseq }
  0x2e   : > { %v3869_v44 = vld [vmem:[%s6716_s3 + $0x20] sm:$0xf]  ;;  %v4255_v45 = vld [vmem:[%s6716_s3 + $0x28] sm:$0xf0]  ;;  %v4927_v46 = vld [vmem:[%s4725_s19 + $0xf8] sm:$0xff]  ;;  %v4932_v48 = vor.u32 %v4259_v41, %v3887_v43 }
  0x2f   : > { %v4930_v47 = vld [vmem:[%s4725_s19 + $0xf0] sm:$0xff]  ;;  %v4934_v49 = vor.u32 %v4255_v45, %v3869_v44  ;;  %1297 = vmatpush.bf16.msra.mxu0 %v3886_v42  ;;  %4310 = vmatpush.bf16.msra.mxu3 %v3886_v42  ;;  %v4257_v51 = vld [vmem:[%s6716_s3 + $0x38] sm:$0xf0]  ;;  %v3875_v54 = vld [vmem:[%s6716_s3 + $0x3c] sm:$0xf0]  ;;  %v4989_v43 = vand.u32 127, %v6729_v35 }
  0x30   : > { %1386 = vmatpush.bf16.msra.mxu1 %v4932_v48  ;;  %v3873_v50 = vld [vmem:[%s6716_s3 + $0x30] sm:$0xf]  ;;  %v4256_v52 = vld [vmem:[%s6716_s3 + $0x34] sm:$0xf]  ;;  %v3857_v55 = vld [vmem:[%s6716_s3 + $0x8] sm:$0xf] }
  0x31   : > { %4307 = vmatpush.bf16.msra.mxu2 %v4905_v38  ;;  %v3874_v53 = vor.u32 %v4257_v51, %v3873_v50  ;;  %v4252_v56 = vld [vmem:[%s6716_s3 + $0x10] sm:$0xf0]  ;;  %v585_v57 = vld [vmem:[%s4720_s16 + $0x18] sm:$0xff]  ;;  %v4959_v58 = vor.u32 %v4256_v52, %v3875_v54  ;;  %v4254_v62 = vld [vmem:[%s6716_s3 + $0x20] sm:$0xf0]  ;;  %vm580_vm11 = vcmp.lt.s32.totalorder %v4930_v47, 64 }
  0x32   : > { %v3858_v59 = vor.u32 %v4252_v56, %v3857_v55  ;;  %v584_v60 = vld [vmem:[%s4720_s16 + $0x10] sm:$0xff]  ;;  %v3861_v61 = vld [vmem:[%s6716_s3 + $0x18] sm:$0xf]  ;;  %v583_v63 = vld [vmem:[%s4720_s16 + $0x8] sm:$0xff]  ;;  %v6730_v55 = vmov 0.0  }
  0x33   : > { %849 = vperm.xlu2 %4344, %v4794_v8   ;;  %1298 = vmatpush.bf16.msra.mxu0 %v3874_v53  ;;  %v3862_v0 = vor.u32 %v4254_v62, %v3861_v61  ;;  %v4253_v30 = vld [vmem:[%s6716_s3 + $0x1c] sm:$0xf]  ;;  %v3863_v31 = vld [vmem:[%s6716_s3 + $0x24] sm:$0xf0]  ;;  %v3849_v39 = vld [vmem:[%s6716_s3] sm:$0xf] }
  0x34   : > { %846 = vperm.xlu1 %4343, %v4797_v9   ;;  %843 = vperm.xlu0 %4342, %v4800_v10   ;;  %v4976_v36 = vor.u32 %v4253_v30, %v3863_v31  ;;  %v4251_v40 = vld [vmem:[%s6716_s3 + $0x8] sm:$0xf0]  ;;  %v4250_v41 = vld [vmem:[%s6716_s3 + $0x4] sm:$0xf]  ;;  %v3851_v45 = vld [vmem:[%s6716_s3 + $0xc] sm:$0xf0] }
  0x35   : > { %4308 = vmatpush.bf16.msra.mxu2 %v4934_v49  ;;  %4311 = vmatpush.bf16.msra.mxu3 %v3874_v53  ;;  %v3850_v44 = vor.u32 %v4251_v40, %v3849_v39  ;;  %v4994_v50 = vor.u32 %v4250_v41, %v3851_v45  ;;  %v588_v51 = vld [vmem:[%s4720_s16 + $0x30] sm:$0xff]  ;;  %v587_v52 = vld [vmem:[%s4720_s16 + $0x28] sm:$0xff]  ;;  %v586_v54 = vld [vmem:[%s4720_s16 + $0x20] sm:$0xff] }
  0x36   : > { %1387 = vmatpush.bf16.msra.mxu1 %v4959_v58  ;;  %v590_v61 = vld [vmem:[%s4720_s16 + $0x40] sm:$0xff]  ;;  %v589_v62 = vld [vmem:[%s4720_s16 + $0x38] sm:$0xff]  ;;  %v592_v30 = vld [vmem:[%s4720_s16 + $0x50] sm:$0xff] }
  0x37   : > { %1299 = vmatpush.bf16.msra.mxu0 %v3862_v0  ;;  %v596_v39 = vld [vmem:[%s4720_s16 + $0x70] sm:$0xff]  ;;  %v595_v40 = vld [vmem:[%s4720_s16 + $0x68] sm:$0xff] }
  0x39   : > { %4309 = vmatpush.bf16.msra.mxu2 %v3858_v59  ;;  %4312 = vmatpush.bf16.msra.mxu3 %v3862_v0 }
  0x3a   : > { %1388 = vmatpush.bf16.msra.mxu1 %v4976_v36 }
  0x3b   : > { %858 = vperm.xlu2 %4344, %v4806_v11   ;;  %1300 = vmatpush.bf16.msra.mxu0 %v3850_v44 }
  0x3c   : > { %855 = vperm.xlu1 %4343, %v4809_v12   ;;  %852 = vperm.xlu0 %4342, %v4812_v13  }
  0x3d   : > { %4313 = vmatpush.bf16.msra.mxu3 %v3850_v44 }
  0x3e   : > { %1389 = vmatpush.bf16.msra.mxu1 %v4994_v50 }
  0x3f   : > { %1475 = vmatpush.bf16.msrb.mxu0 %v4892_v34  ;;  %v591_v34 = vld [vmem:[%s4720_s16 + $0x48] sm:$0xff] }
  0x42   : > { %1612 = vmatpush.bf16.msrb.mxu1 %v3886_v42 }
  0x43   : > { %867 = vperm.xlu2 %4344, %v4818_v14   ;;  %1476 = vmatpush.bf16.msrb.mxu0 %v4905_v38  ;;  %v594_v38 = vld [vmem:[%s4720_s16 + $0x60] sm:$0xff] }
  0x44   : > { %864 = vperm.xlu1 %4343, %v4821_v15   ;;  %861 = vperm.xlu0 %4342, %v4824_v16  }
  0x46   : > { %1613 = vmatpush.bf16.msrb.mxu1 %v3874_v53 }
  0x47   : > { %1477 = vmatpush.bf16.msrb.mxu0 %v4934_v49  ;;  %v597_v49 = vld [vmem:[%s4720_s16 + $0x78] sm:$0xff] }
  0x4a   : > { %1614 = vmatpush.bf16.msrb.mxu1 %v3862_v0 }
  0x4b   : > { %876 = vperm.xlu2 %4344, %v4830_v17   ;;  %1478 = vmatpush.bf16.msrb.mxu0 %v3858_v59 }
  0x4c   : > { %873 = vperm.xlu1 %4343, %v4833_v18   ;;  %870 = vperm.xlu0 %4342, %v4836_v19  }
  0x4e   : > { %1615 = vmatpush.bf16.msrb.mxu1 %v3850_v44 }
  0x53   : > { %885 = vperm.xlu2 %4344, %v4842_v20  }
  0x54   : > { %882 = vperm.xlu1 %4343, %v4845_v21   ;;  %879 = vperm.xlu0 %4342, %v4848_v22  }
  0x5b   : > { %894 = vperm.xlu2 %4344, %v4854_v23  }
  0x5c   : > { %891 = vperm.xlu1 %4343, %v4857_v24   ;;  %888 = vperm.xlu0 %4342, %v4860_v25  }
  0x63   : > { %903 = vperm.xlu2 %4344, %v4866_v26  }
  0x64   : > { %900 = vperm.xlu1 %4343, %v4869_v27   ;;  %897 = vperm.xlu0 %4342, %v4872_v28  }
  0x6b   : > { %912 = vperm.xlu2 %4344, %v4878_v29  }
  0x6c   : > { %909 = vperm.xlu1 %4343, %v4887_v32   ;;  %906 = vperm.xlu0 %4342, %v4890_v33  }
  0x73   : > { %617 = vperm.xlu2 %4344, %v582_v37  }
  0x74   : > { %918 = vperm.xlu1 %4343, %v4927_v46   ;;  %915 = vperm.xlu0 %4342, %v4930_v47  }
  0x7b   : > { %626 = vperm.xlu2 %4344, %v585_v57  }
  0x7c   : > { %623 = vperm.xlu1 %4343, %v584_v60   ;;  %620 = vperm.xlu0 %4342, %v583_v63   ;;  %v593_v63 = vld [vmem:[%s4720_s16 + $0x58] sm:$0xff] }
  0x7d   : > { %v838_v37 = vpop.permute.xlu2 %837 }
  0x7e   : > { %vm924_vm0 = vcmp.eq.s32.totalorder %v838_v37, %v4989_v43 }
  0x7f   : > { %v3803_v56 = vsel %vm924_vm0, 1.0, %v6730_v55  ;;  %vm563_vm0 = vcmp.lt.s32.totalorder %v4821_v15, 64 }
  0x83   : > { %635 = vperm.xlu2 %4344, %v588_v51  }
  0x84   : > { %632 = vperm.xlu1 %4343, %v587_v52   ;;  %629 = vperm.xlu0 %4342, %v586_v54   ;;  %v600_v54 = vld [vmem:[%s4720_s16 + $0x90] sm:$0xff] }
  0x85   : > { %v841_v57 = vpop.permute.xlu2 %840 }
  0x86   : > { %vm925_vm1 = vcmp.eq.s32.totalorder %v841_v57, %v4989_v43  ;;  %v598_v57 = vld [vmem:[%s4720_s16 + $0x80] sm:$0xff] }
  0x87   : > { %v3804_v60 = vsel %vm925_vm1, 1.0, %v6730_v55  ;;  %vm562_vm1 = vcmp.lt.s32.totalorder %v4824_v16, 64 }
  0x88   : > { %v5006_v42 = vpack.c.bf16 %v3804_v60, %v3803_v56  ;;  %v599_v56 = vld [vmem:[%s4720_s16 + $0x88] sm:$0xff]  ;;  %v2079_v15 = vsel %vm562_vm1, 1, %v4630_v4 }
  0x8a   : > { %3929 = vmatmul.msk.bf16.vlgmr.msra.gmra.mxu2 %vm1244_vm2, %v5006_v42 }
  0x8b   : > { %644 = vperm.xlu2 %4344, %v591_v34  }
  0x8c   : > { %641 = vperm.xlu1 %4343, %v590_v61   ;;  %638 = vperm.xlu0 %4342, %v589_v62  }
  0x8d   : > { %v5014_v53 = vpop.permute.xlu2 %849 }
  0x8e   : > { %vm928_vm9 = vcmp.eq.s32.totalorder %v5014_v53, %v4989_v43 }
  0x93   : > { %653 = vperm.xlu2 %4344, %v594_v38  }
  0x94   : > { %650 = vperm.xlu1 %4343, %v593_v63   ;;  %647 = vperm.xlu0 %4342, %v592_v30   ;;  %v603_v30 = vld [vmem:[%s4720_s16 + $0xa8] sm:$0xff] }
  0x95   : > { %v5019_v31 = vpop.permute.xlu2 %858 }
  0x96   : > { %v832_v0 = vpop.permute.xlu1 %831  ;;  %v826_v37 = vpop.permute.xlu0 %825  ;;  %vm931_vm14 = vcmp.eq.s32.totalorder %v5019_v31, %v4989_v43 }
  0x97   : > { %vm920_vm3 = vcmp.eq.s32.totalorder %v826_v37, %v4989_v43  ;;  %v602_v37 = vld [vmem:[%s4720_s16 + $0xa0] sm:$0xff]  ;;  %vm922_vm7 = vcmp.eq.s32.totalorder %v832_v0, %v4989_v43  ;;  %v3810_v19 = vsel %vm931_vm14, 1.0, %v6730_v55 }
  0x98   : > { %v3799_v45 = vsel %vm920_vm3, 1.0, %v6730_v55 }
  0x9b   : > { %662 = vperm.xlu2 %4344, %v597_v49   ;;  %v601_v49 = vld [vmem:[%s4720_s16 + $0x98] sm:$0xff] }
  0x9c   : > { %659 = vperm.xlu1 %4343, %v596_v39   ;;  %656 = vperm.xlu0 %4342, %v595_v40   ;;  %v3801_v39 = vsel %vm922_vm7, 1.0, %v6730_v55 }
  0x9d   : > { %v5025_v59 = vpop.permute.xlu2 %867 }
  0x9e   : > { %v835_v41 = vpop.permute.xlu1 %834  ;;  %v829_v44 = vpop.permute.xlu0 %828 }
  0x9f   : > { %vm921_vm4 = vcmp.eq.s32.totalorder %v829_v44, %v4989_v43  ;;  %vm923_vm8 = vcmp.eq.s32.totalorder %v835_v41, %v4989_v43  ;;  %v605_v41 = vld [vmem:[%s4720_s16 + $0xb8] sm:$0xff] }
  0xa0   : > { %v3800_v51 = vsel %vm921_vm4, 1.0, %v6730_v55 }
  0xa1   : > { %v5030_v52 = vpack.c.bf16 %v3800_v51, %v3799_v45  ;;  %v606_v45 = vld [vmem:[%s4720_s16 + $0xc0] sm:$0xff]  ;;  %v604_v51 = vld [vmem:[%s4720_s16 + $0xb0] sm:$0xff] }
  0xa3   : > { %3895 = vmatmul.msk.bf16.vlgmr.msra.gmra.mxu0 %vm1244_vm2, %v5030_v52  ;;  %3911 = vmatmul.msk.bf16.vlgmr.msra.gmra.mxu1 %vm1244_vm2, %v5030_v52 }
  0xa4   : > { %671 = vperm.xlu2 %4344, %v600_v54   ;;  %668 = vperm.xlu1 %4343, %v599_v56  }
  0xa5   : > { %665 = vperm.xlu0 %4342, %v598_v57   ;;  %v5039_v60 = vpop.permute.xlu2 %876  ;;  %1701 = vmatpush.bf16.msra.mxu0 %v4932_v48 }
  0xa6   : > { %v847_v34 = vpop.permute.xlu1 %846  ;;  %v844_v61 = vpop.permute.xlu0 %843 }
  0xa7   : > { %vm927_vm5 = vcmp.eq.s32.totalorder %v847_v34, %v4989_v43  ;;  %vm926_vm6 = vcmp.eq.s32.totalorder %v844_v61, %v4989_v43  ;;  %v609_v34 = vld [vmem:[%s4720_s16 + $0xd8] sm:$0xff]  ;;  %v608_v61 = vld [vmem:[%s4720_s16 + $0xd0] sm:$0xff] }
  0xa8   : > { %v3806_v62 = vsel %vm927_vm5, 1.0, %v6730_v55  ;;  %v3805_v38 = vsel %vm926_vm6, 1.0, %v6730_v55  ;;  %vm581_vm5 = vcmp.lt.s32.totalorder %v4927_v46, 64 }
  0xa9   : > { %v5046_v63 = vpack.c.bf16 %v3806_v62, %v3805_v38  ;;  %1702 = vmatpush.bf16.msra.mxu0 %v4959_v58  ;;  %v3802_v58 = vsel %vm923_vm8, 1.0, %v6730_v55  ;;  %v607_v62 = vld [vmem:[%s4720_s16 + $0xc8] sm:$0xff]  ;;  %v2098_v16 = vsel %vm581_vm5, 1, %v4630_v4  ;;  %vm560_vm8 = vcmp.lt.s32.totalorder %v4809_v12, 64 }
  0xaa   : > { %v5061_v0 = vpack.c.bf16 %v3802_v58, %v3801_v39  ;;  %v2082_v39 = vsel %vm565_vm12, 1, %v4630_v4  ;;  %v2081_v58 = vsel %vm564_vm13, 1, %v4630_v4  ;;  %vm578_vm12 = vcmp.lt.s32.totalorder %v4887_v32, 64 }
  0xab   : > { %3930 = vmatmul.msk.bf16.gmra.mxu2 %vm1244_vm2, %v5046_v63 }
  0xac   : > { %680 = vperm.xlu2 %4344, %v603_v30   ;;  %677 = vperm.xlu1 %4343, %v602_v37  }
  0xad   : > { %674 = vperm.xlu0 %4342, %v601_v49   ;;  %v5056_v48 = vpop.permute.xlu2 %885  ;;  %1703 = vmatpush.bf16.msra.mxu0 %v4976_v36  ;;  %v2097_v49 = vsel %vm580_vm11, 1, %v4630_v4 }
  0xae   : > { %v856_v40 = vpop.permute.xlu1 %855  ;;  %v853_v44 = vpop.permute.xlu0 %852  ;;  %vm940_vm6 = vcmp.eq.s32.totalorder %v5056_v48, %v4989_v43 }
  0xaf   : > { %vm929_vm10 = vcmp.eq.s32.totalorder %v853_v44, %v4989_v43  ;;  %vm930_vm15 = vcmp.eq.s32.totalorder %v856_v40, %v4989_v43 }
  0xb0   : > { %v3808_v54 = vsel %vm929_vm10, 1.0, %v6730_v55  ;;  %v3809_v47 = vsel %vm930_vm15, 1.0, %v6730_v55  ;;  %vm577_vm15 = vcmp.lt.s32.totalorder %v4890_v33, 64 }
  0xb1   : > { %1704 = vmatpush.bf16.msra.mxu0 %v4994_v50  ;;  %v3807_v50 = vsel %vm928_vm9, 1.0, %v6730_v55  ;;  %v5117_v40 = vpack.c.bf16 %v3810_v19, %v3809_v47  ;;  %vm579_vm9 = vcmp.lt.s32.totalorder %v4878_v29, 64  ;;  %v2077_v29 = vsel %vm560_vm8, 1, %v4630_v4 }
  0xb2   : > { %v5080_v53 = vpack.c.bf16 %v3808_v54, %v3807_v50  ;;  %v2094_v33 = vsel %vm577_vm15, 1, %v4630_v4  ;;  %vm559_vm8 = vcmp.lt.s32.totalorder %v4812_v13, 64 }
  0xb3   : > { %3896 = vmatmul.msk.bf16.gmra.mxu0 %vm1244_vm2, %v5061_v0  ;;  %3912 = vmatmul.msk.bf16.gmra.mxu1 %vm1244_vm2, %v5061_v0 }
  0xb4   : > { %689 = vperm.xlu2 %4344, %v606_v45   ;;  %686 = vperm.xlu1 %4343, %v605_v41  }
  0xb5   : > { %683 = vperm.xlu0 %4342, %v604_v51   ;;  %v895_v36 = vpop.permute.xlu2 %894  ;;  %v2080_v51 = vsel %vm563_vm0, 1, %v4630_v4  ;;  %vm576_vm0 = vcmp.lt.s32.totalorder %v4866_v26, 64 }
  0xb6   : > { %v5076_v56 = vpop.permute.xlu1 %864  ;;  %v5078_v57 = vpop.permute.xlu0 %861  ;;  %vm943_vm7 = vcmp.eq.s32.totalorder %v895_v36, %v4989_v43  ;;  %v2093_v26 = vsel %vm576_vm0, 1, %v4630_v4  ;;  %vm575_vm0 = vcmp.lt.s32.totalorder %v4869_v27, 64 }
  0xb7   : > { %v3822_v48 = vsel %vm943_vm7, 1.0, %v6730_v55  ;;  %vm933_vm13 = vcmp.eq.s32.totalorder %v5076_v56, %v4989_v43  ;;  %vm932_vm14 = vcmp.eq.s32.totalorder %v5078_v57, %v4989_v43  ;;  %vm574_vm7 = vcmp.lt.s32.totalorder %v4872_v28, 64 }
  0xb8   : > { %v3812_v32 = vsel %vm933_vm13, 1.0, %v6730_v55  ;;  %v2091_v13 = vsel %vm574_vm7, 1, %v4630_v4  ;;  %v2076_v28 = vsel %vm559_vm8, 1, %v4630_v4  ;;  %vm934_vm13 = vcmp.eq.s32.totalorder %v5025_v59, %v4989_v43 }
  0xb9   : > { %vm556_vm8 = vcmp.lt.s32.totalorder %v4800_v10, 64 }
  0xbb   : > { %3931 = vmatmul.msk.bf16.gmra.mxu2 %vm1244_vm2, %v5080_v53 }
  0xbc   : > { %698 = vperm.xlu2 %4344, %v609_v34   ;;  %695 = vperm.xlu1 %4343, %v608_v61   ;;  %v3819_v34 = vsel %vm940_vm6, 1.0, %v6730_v55 }
  0xbd   : > { %692 = vperm.xlu0 %4342, %v607_v62   ;;  %v5087_v38 = vpop.permute.xlu2 %903 }
  0xbe   : > { %v5089_v30 = vpop.permute.xlu1 %873  ;;  %v5091_v37 = vpop.permute.xlu0 %870  ;;  %vm946_vm5 = vcmp.eq.s32.totalorder %v5087_v38, %v4989_v43 }
  0xc3   : > { %3897 = vmatmul.msk.bf16.gmra.mxu0 %vm1244_vm2, %v5006_v42  ;;  %3913 = vmatmul.msk.bf16.gmra.mxu1 %vm1244_vm2, %v5006_v42 }
  0xc4   : > { %2190 = vperm.xlu2 %4344, %v2097_v49   ;;  %2145 = vperm.xlu1 %4343, %v2082_v39   ;;  %v2096_v49 = vsel %vm579_vm9, 1, %v4630_v4  ;;  %v2095_v39 = vsel %vm578_vm12, 1, %v4630_v4  ;;  %vm935_vm12 = vcmp.eq.s32.totalorder %v5091_v37, %v4989_v43 }
  0xc5   : > { %2142 = vperm.xlu0 %4342, %v2081_v58   ;;  %v5106_v14 = vpop.permute.xlu2 %912  ;;  %v3811_v58 = vsel %vm932_vm14, 1.0, %v6730_v55 }
  0xc6   : > { %v883_v44 = vpop.permute.xlu1 %882  ;;  %v880_v45 = vpop.permute.xlu0 %879  ;;  %v5164_v57 = vpack.c.bf16 %v3812_v32, %v3811_v58  ;;  %vm949_vm6 = vcmp.eq.s32.totalorder %v5106_v14, %v4989_v43  ;;  %v2092_v32 = vsel %vm575_vm0, 1, %v4630_v4  ;;  %vm552_vm0 = vcmp.lt.s32.totalorder %v4770_v2, 64 }
  0xc7   : > { %vm939_vm3 = vcmp.eq.s32.totalorder %v883_v44, %v4989_v43  ;;  %vm938_vm4 = vcmp.eq.s32.totalorder %v880_v45, %v4989_v43  ;;  %v3828_v38 = vsel %vm949_vm6, 1.0, %v6730_v55 }
  0xc8   : > { %v3818_v42 = vsel %vm939_vm3, 1.0, %v6730_v55  ;;  %v3817_v31 = vsel %vm938_vm4, 1.0, %v6730_v55  ;;  %vm561_vm4 = vcmp.lt.s32.totalorder %v4806_v11, 64 }
  0xc9   : > { %v5119_v41 = vpack.c.bf16 %v3818_v42, %v3817_v31  ;;  %v2078_v42 = vsel %vm561_vm4, 1, %v4630_v4  ;;  %vm572_vm4 = vcmp.lt.s32.totalorder %v4857_v24, 64 }
  0xcb   : > { %3932 = vmatmul.msk.bf16.gmra.mxu2 %vm1244_vm2, %v5117_v40 }
  0xcc   : > { %2139 = vperm.xlu2 %4344, %v2080_v51   ;;  %2136 = vperm.xlu1 %4343, %v2079_v15   ;;  %v3825_v51 = vsel %vm946_vm5, 1.0, %v6730_v55  ;;  %vm557_vm5 = vcmp.lt.s32.totalorder %v4797_v9, 64  ;;  %v2089_v9 = vsel %vm572_vm4, 1, %v4630_v4 }
  0xcd   : > { %2193 = vperm.xlu0 %4342, %v2098_v16   ;;  %v5131_v54 = vpop.permute.xlu2 %617  ;;  %v2074_v24 = vsel %vm557_vm5, 1, %v4630_v4 }
  0xce   : > { %v892_v46 = vpop.permute.xlu1 %891  ;;  %v889_v50 = vpop.permute.xlu0 %888 }
  0xcf   : > { %vm942_vm10 = vcmp.eq.s32.totalorder %v892_v46, %v4989_v43  ;;  %vm941_vm11 = vcmp.eq.s32.totalorder %v889_v50, %v4989_v43 }
  0xd0   : > { %v3821_v36 = vsel %vm942_vm10, 1.0, %v6730_v55  ;;  %v3820_v61 = vsel %vm941_vm11, 1.0, %v6730_v55  ;;  %vm558_vm11 = vcmp.lt.s32.totalorder %v4794_v8, 64 }
  0xd1   : > { %v5140_v62 = vpack.c.bf16 %v3822_v48, %v3821_v36  ;;  %v5142_v12 = vpack.c.bf16 %v3820_v61, %v3819_v34  ;;  %v2075_v50 = vsel %vm558_vm11, 1, %v4630_v4  ;;  %v3814_v34 = vsel %vm935_vm12, 1.0, %v6730_v55 }
  0xd2   : > { %vm554_vm11 = vcmp.lt.s32.totalorder %v4767_v1, 64  ;;  %vm555_vm12 = vcmp.lt.s32.totalorder %v4782_v5, 64 }
  0xd3   : > { %3898 = vmatmul.msk.bf16.gmra.mxu0 %vm1244_vm2, %v5046_v63  ;;  %3914 = vmatmul.msk.bf16.gmra.mxu1 %vm1244_vm2, %v5046_v63  ;;  %v2072_v5 = vsel %vm555_vm12, 1, %v4630_v4 }
  0xd4   : > { %2130 = vperm.xlu2 %4344, %v2077_v29   ;;  %2187 = vperm.xlu1 %4343, %v2096_v49   ;;  %v611_v49 = vld [vmem:[%s4720_s16 + $0xe8] sm:$0xff] }
  0xd5   : > { %2184 = vperm.xlu0 %4342, %v2095_v39   ;;  %v5166_v44 = vpop.permute.xlu2 %626  ;;  %v610_v39 = vld [vmem:[%s4720_s16 + $0xe0] sm:$0xff] }
  0xd6   : > { %v901_v19 = vpop.permute.xlu1 %900  ;;  %v898_v47 = vpop.permute.xlu0 %897 }
  0xd7   : > { %vm945_vm1 = vcmp.eq.s32.totalorder %v901_v19, %v4989_v43  ;;  %vm944_vm3 = vcmp.eq.s32.totalorder %v898_v47, %v4989_v43 }
  0xd8   : > { %v3824_v63 = vsel %vm945_vm1, 1.0, %v6730_v55  ;;  %v3823_v56 = vsel %vm944_vm3, 1.0, %v6730_v55  ;;  %vm712_vm1 = vcmp.eq.s32.totalorder %v5131_v54, %v4989_v43  ;;  %vm715_vm3 = vcmp.eq.s32.totalorder %v5166_v44, %v4989_v43 }
  0xd9   : > { %v5168_v45 = vpack.c.bf16 %v3824_v63, %v3823_v56  ;;  %v3767_v54 = vsel %vm712_vm1, 1.0, %v6730_v55  ;;  %v3770_v47 = vsel %vm715_vm3, 1.0, %v6730_v55  ;;  %vm571_vm1 = vcmp.lt.s32.totalorder %v4860_v25, 64 }
  0xda   : > { %vm570_vm3 = vcmp.lt.s32.totalorder %v4842_v20, 64 }
  0xdb   : > { %3933 = vmatmul.msk.bf16.gmra.mxu2 %vm1244_vm2, %v5164_v57 }
  0xdc   : > { %2181 = vperm.xlu2 %4344, %v2094_v33   ;;  %2178 = vperm.xlu1 %4343, %v2093_v26   ;;  %v2073_v26 = vsel %vm556_vm8, 1, %v4630_v4  ;;  %vm553_vm8 = vcmp.lt.s32.totalorder %v4785_v6, 64 }
  0xdd   : > { %2133 = vperm.xlu0 %4342, %v2078_v42   ;;  %v5197_v8 = vpop.permute.xlu2 %635 }
  0xde   : > { %v910_v11 = vpop.permute.xlu1 %909  ;;  %v907_v31 = vpop.permute.xlu0 %906  ;;  %vm718_vm5 = vcmp.eq.s32.totalorder %v5197_v8, %v4989_v43  ;;  %v2070_v8 = vsel %vm553_vm8, 1, %v4630_v4 }
  0xdf   : > { %vm948_vm9 = vcmp.eq.s32.totalorder %v910_v11, %v4989_v43  ;;  %vm947_vm10 = vcmp.eq.s32.totalorder %v907_v31, %v4989_v43  ;;  %v3773_v25 = vsel %vm718_vm5, 1.0, %v6730_v55 }
  0xe0   : > { %v3827_v15 = vsel %vm948_vm9, 1.0, %v6730_v55  ;;  %v3826_v14 = vsel %vm947_vm10, 1.0, %v6730_v55  ;;  %vm936_vm9 = vcmp.eq.s32.totalorder %v5089_v30, %v4989_v43  ;;  %vm937_vm10 = vcmp.eq.s32.totalorder %v5039_v60, %v4989_v43 }
  0xe1   : > { %v5188_v16 = vpack.c.bf16 %v3828_v38, %v3827_v15  ;;  %v5190_v46 = vpack.c.bf16 %v3826_v14, %v3825_v51  ;;  %v3815_v10 = vsel %vm936_vm9, 1.0, %v6730_v55  ;;  %v2071_v38 = vsel %vm554_vm11, 1, %v4630_v4 }
  0xe2   : > { %vm566_vm9 = vcmp.lt.s32.totalorder %v4833_v18, 64  ;;  %vm550_vm11 = vcmp.lt.s32.totalorder %v4773_v3, 64 }
  0xe3   : > { %3899 = vmatmul.msk.bf16.gmra.mxu0 %vm1244_vm2, %v5080_v53  ;;  %3915 = vmatmul.msk.bf16.gmra.mxu1 %vm1244_vm2, %v5080_v53  ;;  %v3813_v53 = vsel %vm934_vm13, 1.0, %v6730_v55 }
  0xe4   : > { %2172 = vperm.xlu2 %4344, %v2091_v13   ;;  %2127 = vperm.xlu1 %4343, %v2076_v28   ;;  %v5212_v29 = vpack.c.bf16 %v3814_v34, %v3813_v53  ;;  %v2088_v28 = vsel %vm571_vm1, 1, %v4630_v4  ;;  %v2087_v34 = vsel %vm570_vm3, 1, %v4630_v4 }
  0xe5   : > { %2124 = vperm.xlu0 %4342, %v2075_v50   ;;  %v5225_v27 = vpop.permute.xlu2 %644  ;;  %v2069_v50 = vsel %vm552_vm0, 1, %v4630_v4 }
  0xe6   : > { %v919_v48 = vpop.permute.xlu1 %918  ;;  %v916_v37 = vpop.permute.xlu0 %915 }
  0xe7   : > { %vm951_vm14 = vcmp.eq.s32.totalorder %v919_v48, %v4989_v43  ;;  %vm950_vm15 = vcmp.eq.s32.totalorder %v916_v37, %v4989_v43 }
  0xe8   : > { %v3830_v36 = vsel %vm951_vm14, 1.0, %v6730_v55  ;;  %v3829_v61 = vsel %vm950_vm15, 1.0, %v6730_v55  ;;  %vm573_vm15 = vcmp.lt.s32.totalorder %v4854_v23, 64 }
  0xe9   : > { %v5214_v59 = vpack.c.bf16 %v3830_v36, %v3829_v61  ;;  %v2090_v15 = vsel %vm573_vm15, 1, %v4630_v4  ;;  %v2067_v36 = vsel %vm550_vm11, 1, %v4630_v4 }
  0xeb   : > { %3934 = vmatmul.msk.bf16.gmra.mxu2 %vm1244_vm2, %v5212_v29 }
  0xec   : > { %704 = vperm.xlu2 %4344, %v611_v49   ;;  %701 = vperm.xlu1 %4343, %v610_v39   ;;  %v613_v39 = vld [vmem:[%s4720_s16 + $0xf8] sm:$0xff] }
  0xed   : > { %2175 = vperm.xlu0 %4342, %v2092_v32   ;;  %v5254_v30 = vpop.permute.xlu2 %653 }
  0xee   : > { %v624_v58 = vpop.permute.xlu1 %623  ;;  %v621_v19 = vpop.permute.xlu0 %620  ;;  %vm724_vm5 = vcmp.eq.s32.totalorder %v5254_v30, %v4989_v43 }
  0xef   : > { %vm714_vm6 = vcmp.eq.s32.totalorder %v624_v58, %v4989_v43  ;;  %vm713_vm7 = vcmp.eq.s32.totalorder %v621_v19, %v4989_v43 }
  0xf0   : > { %v3769_v63 = vsel %vm714_vm6, 1.0, %v6730_v55  ;;  %v3768_v56 = vsel %vm713_vm7, 1.0, %v6730_v55  ;;  %vm568_vm6 = vcmp.lt.s32.totalorder %v4848_v22, 64  ;;  %vm569_vm7 = vcmp.lt.s32.totalorder %v4845_v21, 64 }
  0xf1   : > { %v5236_v44 = vpack.c.bf16 %v3770_v47, %v3769_v63  ;;  %v5238_v33 = vpack.c.bf16 %v3768_v56, %v3767_v54  ;;  %v2086_v37 = vsel %vm569_vm7, 1, %v4630_v4  ;;  %v2083_v21 = vsel %vm566_vm9, 1, %v4630_v4 }
  0xf3   : > { %3900 = vmatmul.msk.bf16.gmra.mxu0 %vm1244_vm2, %v5117_v40  ;;  %3916 = vmatmul.msk.bf16.gmra.mxu1 %vm1244_vm2, %v5117_v40  ;;  %v3816_v40 = vsel %vm937_vm10, 1.0, %v6730_v55  ;;  %vm551_vm10 = vcmp.lt.s32.totalorder %v4788_v7, 64 }
  0xf4   : > { %2166 = vperm.xlu2 %4344, %v2089_v9   ;;  %2121 = vperm.xlu1 %4343, %v2074_v24   ;;  %v5262_v31 = vpack.c.bf16 %v3816_v40, %v3815_v10  ;;  %v2068_v22 = vsel %vm551_vm10, 1, %v4630_v4 }
  0xf5   : > { %2118 = vperm.xlu0 %4342, %v2073_v26   ;;  %v5276_v13 = vpop.permute.xlu2 %662 }
  0xf6   : > { %v633_v42 = vpop.permute.xlu1 %632  ;;  %v630_v11 = vpop.permute.xlu0 %629  ;;  %vm727_vm7 = vcmp.eq.s32.totalorder %v5276_v13, %v4989_v43 }
  0xf7   : > { %vm717_vm13 = vcmp.eq.s32.totalorder %v633_v42, %v4989_v43  ;;  %vm716_vm14 = vcmp.eq.s32.totalorder %v630_v11, %v4989_v43 }
  0xf8   : > { %v3772_v60 = vsel %vm717_vm13, 1.0, %v6730_v55  ;;  %v3771_v1 = vsel %vm716_vm14, 1.0, %v6730_v55  ;;  %vm721_vm13 = vcmp.eq.s32.totalorder %v5225_v27, %v4989_v43  ;;  %vm567_vm14 = vcmp.lt.s32.totalorder %v4830_v17, 64 }
  0xf9   : > { %v5264_v51 = vpack.c.bf16 %v3772_v60, %v3771_v1  ;;  %v3776_v61 = vsel %vm721_vm13, 1.0, %v6730_v55  ;;  %v2084_v32 = vsel %vm567_vm14, 1, %v4630_v4 }
  0xfb   : > { %3935 = vmatmul.msk.bf16.gmra.mxu2 %vm1244_vm2, %v5262_v31  ;;  %3945 = vmatmul.msk.bf16.vlgmr.msra.gmra.mxu3 %vm1244_vm2, %v5264_v51 }
  0xfc   : > { %2115 = vperm.xlu2 %4344, %v2072_v5   ;;  %2112 = vperm.xlu1 %4343, %v2071_v38   ;;  %v3779_v38 = vsel %vm724_vm5, 1.0, %v6730_v55 }
  0xfd   : > { %2169 = vperm.xlu0 %4342, %v2090_v15  }
  0xfe   : > { %v642_v23 = vpop.permute.xlu1 %641  ;;  %v639_v14 = vpop.permute.xlu0 %638 }
  0xff   : > { %vm719_vm4 = vcmp.eq.s32.totalorder %v639_v14, %v4989_v43  ;;  %v5298_v53 = vpop.permute.xlu2 %671  ;;  %vm720_vm12 = vcmp.eq.s32.totalorder %v642_v23, %v4989_v43 }
 0x100   : > { %v3774_v2 = vsel %vm719_vm4, 1.0, %v6730_v55  ;;  %v3775_v7 = vsel %vm720_vm12, 1.0, %v6730_v55  ;;  %vm730_vm11 = vcmp.eq.s32.totalorder %v5298_v53, %v4989_v43 }
 0x101   : > { %v5293_v48 = vpack.c.bf16 %v3774_v2, %v3773_v25  ;;  %v5326_v49 = vpack.c.bf16 %v3776_v61, %v3775_v7 }
 0x103   : > { %3901 = vmatmul.msk.bf16.gmra.mxu0 %vm1244_vm2, %v5164_v57  ;;  %3917 = vmatmul.msk.bf16.gmra.mxu1 %vm1244_vm2, %v5164_v57  ;;  %v2085_v57 = vsel %vm568_vm6, 1, %v4630_v4 }
 0x104   : > { %2163 = vperm.xlu1 %4343, %v2088_v28   ;;  %2106 = vperm.xlu2 %4344, %v2069_v50   ;;  %v3782_v50 = vsel %vm727_vm7, 1.0, %v6730_v55 }
 0x105   : > { %2160 = vperm.xlu0 %4342, %v2087_v34  }
 0x106   : > { %v651_v20 = vpop.permute.xlu1 %650  ;;  %v648_v17 = vpop.permute.xlu0 %647 }
 0x107   : > { %v5319_v3 = vpop.permute.xlu2 %680  ;;  %vm723_vm15 = vcmp.eq.s32.totalorder %v651_v20, %v4989_v43  ;;  %vm722_vm0 = vcmp.eq.s32.totalorder %v648_v17, %v4989_v43 }
 0x108   : > { %v3778_v4 = vsel %vm723_vm15, 1.0, %v6730_v55  ;;  %v3777_v47 = vsel %vm722_vm0, 1.0, %v6730_v55  ;;  %vm733_vm13 = vcmp.eq.s32.totalorder %v5319_v3, %v4989_v43 }
 0x109   : > { %v5357_v24 = vpack.c.bf16 %v3778_v4, %v3777_v47 }
 0x10b   : > { %3936 = vmatmul.msk.bf16.gmra.mxu2 %vm1244_vm2, %v5119_v41  ;;  %3946 = vmatmul.msk.bf16.gmra.mxu3 %vm1244_vm2, %v5293_v48 }
 0x10c   : > { %2154 = vperm.xlu1 %4343, %v2085_v57   ;;  %2157 = vperm.xlu2 %4344, %v2086_v37  }
 0x10d   : > { %2109 = vperm.xlu0 %4342, %v2070_v8  }
 0x10e   : > { %v5304_v6 = vpop.permute.xlu1 %659  ;;  %v657_v42 = vpop.permute.xlu0 %656 }
 0x10f   : > { %v5337_v58 = vpop.permute.xlu2 %689  ;;  %vm725_vm4 = vcmp.eq.s32.totalorder %v657_v42, %v4989_v43  ;;  %vm726_vm6 = vcmp.eq.s32.totalorder %v5304_v6, %v4989_v43 }
 0x110   : > { %v3780_v5 = vsel %vm725_vm4, 1.0, %v6730_v55  ;;  %v3781_v30 = vsel %vm726_vm6, 1.0, %v6730_v55 }
 0x111   : > { %v5386_v14 = vpack.c.bf16 %v3780_v5, %v3779_v38  ;;  %v5410_v20 = vpack.c.bf16 %v3782_v50, %v3781_v30 }
 0x113   : > { %3902 = vmatmul.msk.bf16.gmra.mxu0 %vm1244_vm2, %v5212_v29  ;;  %3918 = vmatmul.msk.bf16.gmra.mxu1 %vm1244_vm2, %v5212_v29  ;;  %v612_v29 = vld [vmem:[%s4720_s16 + $0xf0] sm:$0xff] }
 0x114   : > { %2148 = vperm.xlu2 %4344, %v2083_v21   ;;  %2103 = vperm.xlu1 %4343, %v2068_v22  }
 0x115   : > { %2100 = vperm.xlu0 %4342, %v2067_v36  }
 0x116   : > { %v5322_v18 = vpop.permute.xlu1 %668 }
 0x117   : > { %v699_v26 = vpop.permute.xlu2 %698  ;;  %v666_v25 = vpop.permute.xlu0 %665  ;;  %vm729_vm8 = vcmp.eq.s32.totalorder %v5322_v18, %v4989_v43 }
 0x118   : > { %vm739_vm1 = vcmp.eq.s32.totalorder %v699_v26, %v4989_v43  ;;  %vm728_vm9 = vcmp.eq.s32.totalorder %v666_v25, %v4989_v43  ;;  %v3784_v6 = vsel %vm729_vm8, 1.0, %v6730_v55  ;;  %v3788_v25 = vsel %vm733_vm13, 1.0, %v6730_v55 }
 0x119   : > { %v3794_v11 = vsel %vm739_vm1, 1.0, %v6730_v55  ;;  %v3783_v21 = vsel %vm728_vm9, 1.0, %v6730_v55  ;;  %vm736_vm1 = vcmp.eq.s32.totalorder %v5337_v58, %v4989_v43  ;;  %v4263_v58 = vld [vmem:[%s6718_s5 + $0x8] sm:$0xff] }
 0x11a   : > { %v5441_v18 = vpack.c.bf16 %v3784_v6, %v3783_v21 }
 0x11b   : > { %3937 = vmatmul.msk.bf16.gmra.mxu2 %vm1244_vm2, %v5142_v12  ;;  %3947 = vmatmul.msk.bf16.gmra.mxu3 %vm1244_vm2, %v5326_v49 }
 0x11c   : > { %710 = vperm.xlu2 %4344, %v613_v39   ;;  %707 = vperm.xlu1 %4343, %v612_v29  }
 0x11d   : > { %2151 = vperm.xlu0 %4342, %v2084_v32  }
 0x11e   : > { %v5335_v27 = vpop.permute.xlu1 %677 }
 0x11f   : > { %v5427_v8 = vpop.permute.xlu2 %2190  ;;  %v675_v39 = vpop.permute.xlu0 %674  ;;  %vm732_vm12 = vcmp.eq.s32.totalorder %v5335_v27, %v4989_v43 }
 0x120   : > { %v5339_v19 = vpop.f32.mrf.mxu0  ;;  %v5341_v54 = vpop.f32.mrf.mxu1  ;;  %6748 = vst [vmem:[#allocation5_spill] sm:$0xff] %v5427_v8  ;;  %vm731_vm10 = vcmp.eq.s32.totalorder %v675_v39, %v4989_v43  ;;  %v3787_v50 = vsel %vm732_vm12, 1.0, %v6730_v55 }
 0x121   : > { %v3786_v47 = vsel %vm731_vm10, 1.0, %v6730_v55  ;;  %v5504_v39 = vpack.c.bf16 %v3788_v25, %v3787_v50  ;;  %v4269_v50 = vld [vmem:[%s6718_s5 + $0x38] sm:$0xff] }
 0x122   : > { %1946 = vmatpush.bf16.msra.mxu1 %v4269_v50 }
 0x123   : > { %3903 = vmatmul.msk.bf16.gmra.mxu0 %vm1244_vm2, %v5262_v31  ;;  %3919 = vmatmul.msk.bf16.gmra.mxu1 %vm1244_vm2, %v5262_v31 }
 0x126   : > { %v5351_v63 = vpop.permute.xlu1 %686 }
 0x127   : > { %vm735_vm14 = vcmp.eq.s32.totalorder %v5351_v63, %v4989_v43 }
 0x128   : > { %v5353_v56 = vpop.f32.mrf.mxu0  ;;  %v5355_v9 = vpop.f32.mrf.mxu1  ;;  %v3790_v8 = vsel %vm735_vm14, 1.0, %v6730_v55 }
 0x12b   : > { %3938 = vmatmul.msk.bf16.gmra.mxu2 %vm1244_vm2, %v5140_v62  ;;  %3948 = vmatmul.msk.bf16.gmra.mxu3 %vm1244_vm2, %v5357_v24 }
 0x12e   : > { %v696_v10 = vpop.permute.xlu1 %695 }
 0x12f   : > { %vm738_vm3 = vcmp.eq.s32.totalorder %v696_v10, %v4989_v43  ;;  %v3785_v10 = vsel %vm730_vm11, 1.0, %v6730_v55 }
 0x130   : > { %v3793_v40 = vsel %vm738_vm3, 1.0, %v6730_v55  ;;  %v5367_v60 = vpop.f32.mrf.mxu0  ;;  %v5369_v1 = vpop.f32.mrf.mxu1 }
 0x131   : > { %v5371_v31 = vpack.c.bf16 %v3794_v11, %v3793_v40  ;;  %v5474_v40 = vpack.c.bf16 %v3786_v47, %v3785_v10 }
 0x133   : > { %6746 = vst [vmem:[#allocation3_spill] sm:$0xff] %v5371_v31  ;;  %3904 = vmatmul.msk.bf16.gmra.mxu0 %vm1244_vm2, %v5119_v41  ;;  %3920 = vmatmul.msk.bf16.gmra.mxu1 %vm1244_vm2, %v5119_v41 }
 0x136   : > { %v5422_v37 = vpop.permute.xlu1 %2145 }
 0x137   : > { %6747 = vst [vmem:[#allocation4_spill] sm:$0xff] %v5422_v37 }
 0x138   : > { %v5382_v15 = vpop.f32.mrf.mxu0  ;;  %v5384_v23 = vpop.f32.mrf.mxu1 }
 0x13b   : > { %3939 = vmatmul.msk.bf16.gmra.mxu2 %vm1244_vm2, %v5168_v45  ;;  %3949 = vmatmul.msk.bf16.gmra.mxu3 %vm1244_vm2, %v5386_v14 }
 0x13e   : > { %v5443_v61 = vpop.permute.xlu1 %2136 }
 0x13f   : > { %6750 = vst [vmem:[#allocation7_spill] sm:$0xff] %v5443_v61 }
 0x140   : > { %v5392_v41 = vpop.f32.mrf.mxu0  ;;  %v5394_v28 = vpop.f32.mrf.mxu1 }
 0x143   : > { %3905 = vmatmul.msk.bf16.gmra.mxu0 %vm1244_vm2, %v5142_v12  ;;  %3921 = vmatmul.msk.bf16.gmra.mxu1 %vm1244_vm2, %v5142_v12  ;;  %v5416_v12 = vpop.f32.mrf.mxu2 }
 0x146   : > { %v5464_v4 = vpop.permute.xlu1 %2187 }
 0x147   : > { %6753 = vst [vmem:[#allocation10_spill] sm:$0xff] %v5464_v4 }
 0x148   : > { %v5406_v34 = vpop.f32.mrf.mxu0  ;;  %v5408_v2 = vpop.f32.mrf.mxu1 }
 0x14b   : > { %3940 = vmatmul.msk.bf16.gmra.mxu2 %vm1244_vm2, %v5190_v46  ;;  %3950 = vmatmul.msk.bf16.gmra.mxu3 %vm1244_vm2, %v5410_v20  ;;  %v5435_v22 = vpop.f32.mrf.mxu2 }
 0x150   : > { %v5418_v13 = vpop.f32.mrf.mxu0  ;;  %v5420_v57 = vpop.f32.mrf.mxu1 }
 0x153   : > { %3906 = vmatmul.msk.bf16.gmra.mxu0 %vm1244_vm2, %v5140_v62  ;;  %3922 = vmatmul.msk.bf16.gmra.mxu1 %vm1244_vm2, %v5140_v62  ;;  %v5449_v62 = vpop.permute.xlu2 %2139  ;;  %v5455_v17 = vpop.f32.mrf.mxu2 }
 0x154   : > { %6751 = vst [vmem:[#allocation8_spill] sm:$0xff] %v5449_v62 }
 0x158   : > { %v5437_v36 = vpop.f32.mrf.mxu0  ;;  %v5439_v7 = vpop.f32.mrf.mxu1 }
 0x159   : > { %6749 = vst [vmem:[#allocation6_spill] sm:$0xff] %v5437_v36 }
 0x15b   : > { %3941 = vmatmul.msk.bf16.gmra.mxu2 %vm1244_vm2, %v5188_v16  ;;  %3951 = vmatmul.msk.bf16.gmra.mxu3 %vm1244_vm2, %v5441_v18  ;;  %v5467_v26 = vpop.permute.xlu2 %2130  ;;  %v5476_v5 = vpop.f32.mrf.mxu2 }
 0x15c   : > { %6754 = vst [vmem:[#allocation11_spill] sm:$0xff] %v5467_v26 }
 0x160   : > { %v5451_v29 = vpop.f32.mrf.mxu0  ;;  %v5453_v32 = vpop.f32.mrf.mxu1 }
 0x161   : > { %6752 = vst [vmem:[#allocation9_spill] sm:$0xff] %v5451_v29 }
 0x163   : > { %3907 = vmatmul.msk.bf16.gmra.mxu0 %vm1244_vm2, %v5168_v45  ;;  %3923 = vmatmul.msk.bf16.gmra.mxu1 %vm1244_vm2, %v5168_v45  ;;  %v5482_v45 = vpop.permute.xlu1 %2178  ;;  %v5488_v30 = vpop.permute.xlu2 %2181 }
 0x164   : > { %6756 = vst [vmem:[#allocation13_spill] sm:$0xff] %v5482_v45 }
 0x165   : > { %6759 = vst [vmem:[#allocation16_spill] sm:$0xff] %v5488_v30 }
 0x168   : > { %v5470_v42 = vpop.f32.mrf.mxu0  ;;  %v5472_v11 = vpop.f32.mrf.mxu1 }
 0x169   : > { %6755 = vst [vmem:[#allocation12_spill] sm:$0xff] %v5470_v42 }
 0x16b   : > { %3942 = vmatmul.msk.bf16.gmra.mxu2 %vm1244_vm2, %v5214_v59  ;;  %3952 = vmatmul.msk.bf16.gmra.mxu3 %vm1244_vm2, %v5474_v40  ;;  %v5506_v27 = vpop.permute.xlu1 %2127  ;;  %v5508_v47 = vpop.permute.xlu2 %2172 }
 0x16c   : > { %6762 = vst [vmem:[#allocation19_spill] sm:$0xff] %v5508_v47 }
 0x170   : > { %v5484_v53 = vpop.f32.mrf.mxu0  ;;  %v5486_v38 = vpop.f32.mrf.mxu1 }
 0x171   : > { %6757 = vst [vmem:[#allocation14_spill] sm:$0xff] %v5484_v53 }
 0x172   : > { %6758 = vst [vmem:[#allocation15_spill] sm:$0xff] %v5486_v38 }
 0x173   : > { %3908 = vmatmul.msk.bf16.gmra.mxu0 %vm1244_vm2, %v5190_v46  ;;  %3924 = vmatmul.msk.bf16.gmra.mxu1 %vm1244_vm2, %v5190_v46  ;;  %v684_v46 = vpop.permute.xlu0 %683  ;;  %v5519_v35 = vpop.permute.xlu1 %701 }
 0x174   : > { %vm734_vm15 = vcmp.eq.s32.totalorder %v684_v46, %v4989_v43  ;;  %v705_v25 = vpop.permute.xlu2 %704  ;;  %v4268_v46 = vld [vmem:[%s6718_s5 + $0x30] sm:$0xff]  ;;  %vm740_vm3 = vcmp.eq.s32.totalorder %v5519_v35, %v4989_v43 }
 0x175   : > { %v3789_v63 = vsel %vm734_vm15, 1.0, %v6730_v55  ;;  %1947 = vmatpush.bf16.msra.mxu1 %v4268_v46  ;;  %v4265_v46 = vld [vmem:[%s6718_s5 + $0x18] sm:$0xff]  ;;  %vm741_vm4 = vcmp.eq.s32.totalorder %v705_v25, %v4989_v43 }
 0x176   : > { %v5537_v45 = vpack.c.bf16 %v3790_v8, %v3789_v63 }
 0x178   : > { %v5500_v6 = vpop.f32.mrf.mxu0  ;;  %v5502_v21 = vpop.f32.mrf.mxu1 }
 0x179   : > { %6760 = vst [vmem:[#allocation17_spill] sm:$0xff] %v5500_v6 }
 0x17a   : > { %6761 = vst [vmem:[#allocation18_spill] sm:$0xff] %v5502_v21 }
 0x17b   : > { %3953 = vmatmul.msk.bf16.gmra.mxu3 %vm1244_vm2, %v5504_v39  ;;  %v5544_v50 = vpop.permute.xlu1 %2121  ;;  %v693_v55 = vpop.permute.xlu0 %692 }
 0x17c   : > { %v5546_v47 = vpop.permute.xlu2 %2166  ;;  %vm737_vm0 = vcmp.eq.s32.totalorder %v693_v55, %v4989_v43  ;;  %v4264_v55 = vld [vmem:[%s6718_s5 + $0x10] sm:$0xff]  ;;  %vm2202_vm14 = vcmp.eq.s32.totalorder %v5544_v50, 1  ;;  %v4246_v50 = vld [vmem:[%s4734_s25 + $0x60] sm:$0xff] }
 0x17d   : > { %6767 = vst [vmem:[#allocation24_spill] sm:$0xff] %v5546_v47 }
 0x180   : > { %v5512_v10 = vpop.f32.mrf.mxu0  ;;  %v5514_v3 = vpop.f32.mrf.mxu1 }
 0x181   : > { %6763 = vst [vmem:[#allocation20_spill] sm:$0xff] %v5512_v10 }
 0x182   : > { %6764 = vst [vmem:[#allocation21_spill] sm:$0xff] %v5514_v3 }
 0x183   : > { %3909 = vmatmul.msk.bf16.gmra.mxu0 %vm1244_vm2, %v5188_v16  ;;  %3925 = vmatmul.msk.bf16.gmra.mxu1 %vm1244_vm2, %v5188_v16  ;;  %v4267_v16 = vld [vmem:[%s6718_s5 + $0x28] sm:$0xff] }
 0x184   : > { %1948 = vmatpush.bf16.msra.mxu1 %v4267_v16  ;;  %v6770_v16 = vmov 0.0  }
 0x185   : > { %v3792_v47 = vsel %vm737_vm0, 1.0, %v6770_v16  ;;  %vm2204_vm0 = vcmp.eq.s32.totalorder %v5506_v27, 1 }
 0x188   : > { %v5533_v4 = vpop.f32.mrf.mxu0  ;;  %v5535_v30 = vpop.f32.mrf.mxu1 }
 0x189   : > { %6765 = vst [vmem:[#allocation22_spill] sm:$0xff] %v5533_v4  ;;  %v4266_v4 = vld [vmem:[%s6718_s5 + $0x20] sm:$0xff] }
 0x18a   : > { %6766 = vst [vmem:[#allocation23_spill] sm:$0xff] %v5535_v30  ;;  %1949 = vmatpush.bf16.msra.mxu1 %v4266_v4  ;;  %v3791_v4 = vsel %vm736_vm1, 1.0, %v6770_v16 }
 0x18b   : > { %3954 = vmatmul.msk.bf16.gmra.mxu3 %vm1244_vm2, %v5537_v45  ;;  %v5576_v37 = vpack.c.bf16 %v3792_v47, %v3791_v4 }
 0x18e   : > { %1950 = vmatpush.bf16.msra.mxu1 %v4265_v46  ;;  %v4262_v46 = vld [vmem:[%s6718_s5] sm:$0xff] }
 0x190   : > { %v5551_v8 = vpop.f32.mrf.mxu0  ;;  %v5553_v63 = vpop.f32.mrf.mxu1 }
 0x191   : > { %6768 = vst [vmem:[#allocation25_spill] sm:$0xff] %v5551_v8  ;;  %v5566_v8 = vpop.permute.xlu1 %2112 }
 0x192   : > { %6769 = vst [vmem:[#allocation26_spill] sm:$0xff] %v5553_v63  ;;  %v5578_v63 = vpop.permute.xlu2 %2115  ;;  %1951 = vmatpush.bf16.msra.mxu1 %v4264_v55  ;;  %vm2199_vm11 = vcmp.eq.s32.totalorder %v5566_v8, 1 }
 0x193   : > { %3910 = vmatmul.msk.bf16.gmra.mxu0 %vm1244_vm2, %v5214_v59  ;;  %3926 = vmatmul.msk.bf16.gmra.mxu1 %vm1244_vm2, %v5214_v59  ;;  %vm2200_vm12 = vcmp.eq.s32.totalorder %v5578_v63, 1 }
 0x196   : > { %1952 = vmatpush.bf16.msra.mxu1 %v4263_v58 }
 0x198   : > { %v5572_v10 = vpop.f32.mrf.mxu0  ;;  %v5574_v59 = vpop.f32.mrf.mxu1 }
 0x199   : > { %6771 = vst [vmem:[#allocation27_spill] sm:$0xff] %v5572_v10  ;;  %v5592_v47 = vpop.permute.xlu1 %2163 }
 0x19a   : > { %6772 = vst [vmem:[#allocation28_spill] sm:$0xff] %v5574_v59  ;;  %1953 = vmatpush.bf16.msra.mxu1 %v4262_v46  ;;  %v5594_v55 = vpop.permute.xlu2 %2106  ;;  %v5610_v46 = vpop.f32.mrf.mxu3 }
 0x19b   : > { %3955 = vmatmul.msk.bf16.gmra.mxu3 %vm1244_vm2, %v5576_v37  ;;  %6775 = vst [vmem:[#allocation31_spill] sm:$0xff] %v5592_v47  ;;  %vm2197_vm9 = vcmp.eq.s32.totalorder %v5594_v55, 1 }
 0x1a0   : > { %v5588_v10 = vpop.f32.mrf.mxu0  ;;  %v5590_v59 = vpop.f32.mrf.mxu1 }
 0x1a1   : > { %6773 = vst [vmem:[#allocation29_spill] sm:$0xff] %v5588_v10  ;;  %v5604_v6 = vpop.permute.xlu1 %2154 }
 0x1a2   : > { %6774 = vst [vmem:[#allocation30_spill] sm:$0xff] %v5590_v59  ;;  %v5608_v10 = vpop.permute.xlu2 %2157  ;;  %v4234_v59 = vld [vmem:[%s4734_s25] sm:$0xff] }
 0x1a3   : > { %3927 = vmatmul.msk.bf16.vlgmr.msrb.gmra.mxu0 %vm1244_vm2, %v5030_v52  ;;  %3943 = vmatmul.msk.bf16.vlgmr.msrb.gmra.mxu1 %vm1244_vm2, %v5238_v33  ;;  %6778 = vst [vmem:[#allocation34_spill] sm:$0xff] %v5604_v6 }
 0x1a4   : > { %6779 = vst [vmem:[#allocation35_spill] sm:$0xff] %v5608_v10  ;;  %v3795_v10 = vsel %vm740_vm3, 1.0, %v6770_v16 }
 0x1a8   : > { %v5600_v4 = vpop.f32.mrf.mxu0  ;;  %v5602_v58 = vpop.f32.mrf.mxu1 }
 0x1a9   : > { %6776 = vst [vmem:[#allocation32_spill] sm:$0xff] %v5600_v4  ;;  %v5623_v4 = vpop.permute.xlu1 %2103 }
 0x1aa   : > { %6777 = vst [vmem:[#allocation33_spill] sm:$0xff] %v5602_v58  ;;  %v5626_v6 = vpop.permute.xlu2 %2148  ;;  %vm2196_vm8 = vcmp.eq.s32.totalorder %v5623_v4, 1 }
 0x1ab   : > { %3956 = vmatmul.msk.bf16.gmra.mxu3 %vm1244_vm2, %v5371_v31  ;;  %6782 = vst [vmem:[#allocation38_spill] sm:$0xff] %v5626_v6 }
 0x1b0   : > { %v5612_v47 = vpop.f32.mrf.mxu0  ;;  %v5614_v52 = vpop.f32.mrf.mxu1 }
 0x1b1   : > { %6780 = vst [vmem:[#allocation36_spill] sm:$0xff] %v5612_v47  ;;  %v5628_v47 = vpop.f32.mrf.mxu3  ;;  %v708_v25 = vpop.permute.xlu1 %707 }
 0x1b2   : > { %6781 = vst [vmem:[#allocation37_spill] sm:$0xff] %v5614_v52  ;;  %v3796_v52 = vsel %vm741_vm4, 1.0, %v6770_v16  ;;  %v711_v53 = vpop.permute.xlu2 %710  ;;  %vm742_vm5 = vcmp.eq.s32.totalorder %v708_v25, %v4989_v43  ;;  %v5673_v25 = vpop.permute.xlu0 %2142 }
 0x1b3   : > { %3928 = vmatmul.msk.bf16.gmra.mxu0 %vm1244_vm2, %v5061_v0  ;;  %3944 = vmatmul.msk.bf16.gmra.mxu1 %vm1244_vm2, %v5236_v44  ;;  %v5635_v0 = vpack.c.bf16 %v3796_v52, %v3795_v10  ;;  %vm743_vm6 = vcmp.eq.s32.totalorder %v711_v53, %v4989_v43  ;;  %v3797_v10 = vsel %vm742_vm5, 1.0, %v6770_v16  ;;  %6795 = vst [vmem:[#allocation51_spill] sm:$0xff] %v5673_v25 }
 0x1b4   : > { %v3798_v52 = vsel %vm743_vm6, 1.0, %v6770_v16 }
 0x1b5   : > { %6785 = vst [vmem:[#allocation41_spill] sm:$0xff] %v5635_v0 }
 0x1b8   : > { %v5631_v58 = vpop.f32.mrf.mxu0  ;;  %v5633_v35 = vpop.f32.mrf.mxu1 }
 0x1b9   : > { %6783 = vst [vmem:[#allocation39_spill] sm:$0xff] %v5631_v58  ;;  %v5644_v6 = vpop.f32.mrf.mxu3 }
 0x1ba   : > { %6784 = vst [vmem:[#allocation40_spill] sm:$0xff] %v5633_v35 }
 0x1bb   : > { %3957 = vmatmul.msk.bf16.gmra.mxu3 %vm1244_vm2, %v5635_v0 }
 0x1c0   : > { %v5640_v62 = vpop.f32.mrf.mxu0  ;;  %v5642_v30 = vpop.f32.mrf.mxu1 }
 0x1c1   : > { %6786 = vst [vmem:[#allocation42_spill] sm:$0xff] %v5640_v62  ;;  %v5658_v35 = vpop.f32.mrf.mxu3 }
 0x1c2   : > { %6787 = vst [vmem:[#allocation43_spill] sm:$0xff] %v5642_v30  ;;  %v5656_v30 = vpack.c.bf16 %v3798_v52, %v3797_v10  ;;  %v4236_v10 = vld [vmem:[%s4734_s25 + $0x10] sm:$0xff] }
 0x1c3   : > { %3959 = vmatmul.msk.bf16.vlgmr.msra.gmra.mxu0 %vm1244_vm2, %v5238_v33  ;;  %1954 = vmatmul.bf16.vlgmr.msra.gmra.mxu1 %v4234_v59  ;;  %v4235_v33 = vld [vmem:[%s4734_s25 + $0x8] sm:$0xff] }
 0x1c4   : > { %6790 = vst [vmem:[#allocation46_spill] sm:$0xff] %v5656_v30 }
 0x1c8   : > { %v5652_v58 = vpop.f32.mrf.mxu0  ;;  %v5654_v62 = vpop.f32.mrf.mxu1 }
 0x1c9   : > { %6788 = vst [vmem:[#allocation44_spill] sm:$0xff] %v5652_v58 }
 0x1ca   : > { %6789 = vst [vmem:[#allocation45_spill] sm:$0xff] %v5654_v62 }
 0x1cb   : > { %3958 = vmatmul.msk.bf16.gmra.mxu3 %vm1244_vm2, %v5656_v30 }
 0x1d0   : > { %v5663_v59 = vpop.f32.mrf.mxu0  ;;  %v5665_v43 = vpop.f32.mrf.mxu1 }
 0x1d1   : > { %6791 = vst [vmem:[#allocation47_spill] sm:$0xff] %v5663_v59  ;;  %v5682_v59 = vpop.permute.xlu0 %2193 }
 0x1d2   : > { %6792 = vst [vmem:[#allocation48_spill] sm:$0xff] %v5665_v43 }
 0x1d3   : > { %3960 = vmatmul.msk.bf16.gmra.mxu0 %vm1244_vm2, %v5236_v44  ;;  %1959 = vmatmul.bf16.gmra.mxu1 %v4235_v33  ;;  %6798 = vst [vmem:[#allocation54_spill] sm:$0xff] %v5682_v59 }
 0x1d8   : > { %v5669_v53 = vpop.f32.mrf.mxu0  ;;  %v5671_v16 = vpop.f32.mrf.mxu1 }
 0x1d9   : > { %6793 = vst [vmem:[#allocation49_spill] sm:$0xff] %v5669_v53  ;;  %v5688_v53 = vpop.permute.xlu0 %2184 }
 0x1da   : > { %6794 = vst [vmem:[#allocation50_spill] sm:$0xff] %v5671_v16  ;;  %v4237_v16 = vld [vmem:[%s4734_s25 + $0x18] sm:$0xff] }
 0x1db   : > { %6801 = vst [vmem:[#allocation57_spill] sm:$0xff] %v5688_v53 }
 0x1e0   : > { %v5676_v52 = vpop.f32.mrf.mxu0  ;;  %v5678_v58 = vpop.f32.mrf.mxu1 }
 0x1e1   : > { %6796 = vst [vmem:[#allocation52_spill] sm:$0xff] %v5676_v52  ;;  %v5701_v59 = vpop.permute.xlu0 %2133 }
 0x1e2   : > { %6797 = vst [vmem:[#allocation53_spill] sm:$0xff] %v5678_v58 }
 0x1e3   : > { %3961 = vmatmul.msk.bf16.gmra.mxu0 %vm1244_vm2, %v5264_v51  ;;  %1964 = vmatmul.bf16.gmra.mxu1 %v4236_v10  ;;  %6806 = vst [vmem:[#allocation62_spill] sm:$0xff] %v5701_v59 }
 0x1e8   : > { %v5684_v44 = vpop.f32.mrf.mxu0  ;;  %v5686_v33 = vpop.f32.mrf.mxu1 }
 0x1e9   : > { %6799 = vst [vmem:[#allocation55_spill] sm:$0xff] %v5684_v44  ;;  %v4238_v44 = vld [vmem:[%s4734_s25 + $0x20] sm:$0xff] }
 0x1ea   : > { %6800 = vst [vmem:[#allocation56_spill] sm:$0xff] %v5686_v33 }
 0x1f0   : > { %v5691_v43 = vpop.f32.mrf.mxu0  ;;  %v5693_v52 = vpop.f32.mrf.mxu1 }
 0x1f1   : > { %6802 = vst [vmem:[#allocation58_spill] sm:$0xff] %v5691_v43  ;;  %v5708_v43 = vpop.permute.xlu0 %2124 }
 0x1f2   : > { %6803 = vst [vmem:[#allocation59_spill] sm:$0xff] %v5693_v52  ;;  %vm2203_vm15 = vcmp.eq.s32.totalorder %v5708_v43, 1 }
 0x1f3   : > { %3962 = vmatmul.msk.bf16.gmra.mxu0 %vm1244_vm2, %v5293_v48  ;;  %1969 = vmatmul.bf16.gmra.mxu1 %v4237_v16 }
 0x1f8   : > { %v5697_v51 = vpop.f32.mrf.mxu0  ;;  %v5699_v10 = vpop.f32.mrf.mxu1 }
 0x1f9   : > { %6804 = vst [vmem:[#allocation60_spill] sm:$0xff] %v5697_v51  ;;  %v5716_v51 = vpop.permute.xlu0 %2175 }
 0x1fa   : > { %6805 = vst [vmem:[#allocation61_spill] sm:$0xff] %v5699_v10  ;;  %v4239_v10 = vld [vmem:[%s4734_s25 + $0x28] sm:$0xff] }
 0x1fb   : > { %6811 = vst [vmem:[#allocation67_spill] sm:$0xff] %v5716_v51 }
 0x200   : > { %v5704_v33 = vpop.f32.mrf.mxu0  ;;  %v5706_v53 = vpop.f32.mrf.mxu1 }
 0x201   : > { %6807 = vst [vmem:[#allocation63_spill] sm:$0xff] %v5704_v33 }
 0x202   : > { %6808 = vst [vmem:[#allocation64_spill] sm:$0xff] %v5706_v53  ;;  %v5725_v53 = vpop.permute.xlu0 %2118 }
 0x203   : > { %3963 = vmatmul.msk.bf16.gmra.mxu0 %vm1244_vm2, %v5326_v49  ;;  %1974 = vmatmul.bf16.gmra.mxu1 %v4238_v44  ;;  %vm2201_vm13 = vcmp.eq.s32.totalorder %v5725_v53, 1 }
 0x208   : > { %v5712_v48 = vpop.f32.mrf.mxu0  ;;  %v5714_v16 = vpop.f32.mrf.mxu1 }
 0x209   : > { %6809 = vst [vmem:[#allocation65_spill] sm:$0xff] %v5712_v48  ;;  %v4240_v48 = vld [vmem:[%s4734_s25 + $0x30] sm:$0xff] }
 0x20a   : > { %6810 = vst [vmem:[#allocation66_spill] sm:$0xff] %v5714_v16  ;;  %v5734_v51 = vpop.permute.xlu0 %2169 }
 0x20b   : > { %6816 = vst [vmem:[#allocation72_spill] sm:$0xff] %v5734_v51 }
 0x210   : > { %v5719_v52 = vpop.f32.mrf.mxu0  ;;  %v5721_v33 = vpop.f32.mrf.mxu1 }
 0x211   : > { %6812 = vst [vmem:[#allocation68_spill] sm:$0xff] %v5719_v52 }
 0x212   : > { %6813 = vst [vmem:[#allocation69_spill] sm:$0xff] %v5721_v33  ;;  %v4241_v33 = vld [vmem:[%s4734_s25 + $0x38] sm:$0xff] }
 0x213   : > { %3964 = vmatmul.msk.bf16.gmra.mxu0 %vm1244_vm2, %v5357_v24  ;;  %1979 = vmatmul.bf16.gmra.mxu1 %v4239_v10  ;;  %v5740_v10 = vpop.permute.xlu0 %2160 }
 0x214   : > { %6817 = vst [vmem:[#allocation73_spill] sm:$0xff] %v5740_v10  ;;  %v5757_v10 = vld [vmem:[%s6723_s10] ss:$0 sm:$0xff] }
 0x218   : > { %v5727_v49 = vpop.f32.mrf.mxu0  ;;  %v5729_v44 = vpop.f32.mrf.mxu1 }
 0x219   : > { %6814 = vst [vmem:[#allocation70_spill] sm:$0xff] %v5727_v49 }
 0x21a   : > { %6815 = vst [vmem:[#allocation71_spill] sm:$0xff] %v5729_v44 }
 0x21b   : > { %v5747_v44 = vpop.permute.xlu0 %2109 }
 0x21c   : > { %vm2198_vm10 = vcmp.eq.s32.totalorder %v5747_v44, 1 }
 0x220   : > { %v1480_v16 = vpop.f32.mrf.mxu0  ;;  %v5732_v58 = vpop.f32.mrf.mxu1 }
 0x221   : > { %v2459_v3 = vadd.f32 1e-05, %v1480_v16 }
 0x223   : > { %3965 = vmatmul.msk.bf16.gmra.mxu0 %vm1244_vm2, %v5386_v14  ;;  %1984 = vmatmul.bf16.gmra.mxu1 %v4240_v48  ;;  %v2101_v14 = vpop.permute.xlu0 %2100  ;;  %v4242_v48 = vld [vmem:[%s4734_s25 + $0x40] sm:$0xff]  ;;  %4347 = vrcp.f32 %v2459_v3  ;;  %v4243_v3 = vld [vmem:[%s4734_s25 + $0x48] sm:$0xff] }
 0x224   : > { %vm2195_vm7 = vcmp.eq.s32.totalorder %v2101_v14, 1 }
 0x228   : > { %v1482_v52 = vpop.f32.mrf.mxu0  ;;  %v5738_v24 = vpop.f32.mrf.mxu1 }
 0x230   : > { %v1485_v49 = vpop.f32.mrf.mxu0  ;;  %v5743_v62 = vpop.f32.mrf.mxu1 }
 0x233   : > { %3966 = vmatmul.msk.bf16.gmra.mxu0 %vm1244_vm2, %v5410_v20  ;;  %1989 = vmatmul.bf16.gmra.mxu1 %v4241_v33  ;;  %v5762_v20 = vld [vmem:[%s6724_s11] ss:$0 sm:$0xff] }
 0x238   : > { %v5749_v51 = vpop.f32.mrf.mxu0  ;;  %v5751_v30 = vpop.f32.mrf.mxu1 }
 0x240   : > { %v1706_v25 = vpop.f32.mrf.mxu0  ;;  %v1955_v0 = vpop.f32.mrf.mxu1 }
 0x241   : > { %v2035_v33 = vadd.f32 %v1955_v0, %v5341_v54  ;;  %v2295_v61 = vadd.f32 %v1955_v0, %v1706_v25 }
 0x243   : > { %v2227_v42 = vsel %vm2195_vm7, %v2035_v33, -1e+30  ;;  %v2327_v59 = vsel %vm2195_vm7, %v2295_v61, -1e+30  ;;  %3967 = vmatmul.msk.bf16.gmra.mxu0 %vm1244_vm2, %v5441_v18  ;;  %1994 = vmatmul.bf16.gmra.mxu1 %v4242_v48  ;;  %v2460_v18 = vadd.f32 1e-05, %v1482_v52  ;;  %v5774_v52 = vpop.f32.mrf.mxu2 }
 0x244   : > { %v2263_v21 = vsub.f32 %v2227_v42, %v5757_v10  ;;  %v2363_v29 = vsub.f32 %v2327_v59, %v5762_v20 }
 0x246   : > { %v2395_v31 = vmul.f32 1.442695, %v2263_v21  ;;  %v2685_v26 = vsub.f32 %v2363_v29, %v2263_v21  ;;  %v4348_v29 = vpop.eup %4347 }
 0x248   : > { %4349 = vpow2.f32 %v2395_v31  ;;  %v2717_v38 = vmul.f32 1.442695, %v2685_v26  ;;  %v1708_v36 = vpop.f32.mrf.mxu0  ;;  %v1957_v54 = vpop.f32.mrf.mxu1 }
 0x249   : > { %v2036_v0 = vadd.f32 %v1957_v54, %v5355_v9  ;;  %v2296_v25 = vadd.f32 %v1957_v54, %v1708_v36 }
 0x24a   : > { %4351 = vpow2.f32 %v2717_v38 }
 0x24b   : > { %v2228_v61 = vsel %vm2196_vm8, %v2036_v0, -1e+30  ;;  %v2328_v16 = vsel %vm2196_vm8, %v2296_v25, -1e+30  ;;  %4353 = vrcp.f32 %v2460_v18  ;;  %v1100_v0 = vld [vmem:[%s4734_s25] sm:$0xff]  }
 0x24c   : > { %v2264_v42 = vsub.f32 %v2228_v61, %v5757_v10  ;;  %v2364_v59 = vsub.f32 %v2328_v16, %v5762_v20  ;;  %v2461_v25 = vadd.f32 1e-05, %v1485_v49 }
 0x24e   : > { %v4350_v31 = vpop.eup %4349  ;;  %v2397_v26 = vmul.f32 1.442695, %v2264_v42  ;;  %v2686_v21 = vsub.f32 %v2364_v59, %v2264_v42  ;;  %v1132_v59 = vunpack.c.l.bf16 %v1100_v0 }
 0x24f   : > { %v2523_v14 = vmul.f32 %v4350_v31, %v4348_v29 }
 0x250   : > { %v4352_v9 = vpop.eup %4351  ;;  %4355 = vpow2.f32 %v2397_v26  ;;  %v2719_v36 = vmul.f32 1.442695, %v2686_v21  ;;  %v1711_v4 = vpop.f32.mrf.mxu0 }
 0x251   : > { %v1960_v38 = vpop.f32.mrf.mxu1  ;;  %v2781_v48 = vadd.f32 1.0, %v4352_v9  ;;  %v4354_v29 = vpop.eup %4353  ;;  %v2845_v9 = vsub.f32 %v5339_v19, %v5732_v58 }
 0x252   : > { %v2037_v33 = vadd.f32 %v1960_v38, %v5369_v1  ;;  %v2297_v54 = vadd.f32 %v1960_v38, %v1711_v4  ;;  %4357 = vpow2.f32 %v2719_v36  ;;  %v1133_v1 = vunpack.c.h.bf16 %v1100_v0 }
 0x253   : > { %4359 = vrcp.f32 %v2781_v48  ;;  %3968 = vmatmul.msk.bf16.gmra.mxu0 %vm1244_vm2, %v5474_v40  ;;  %1999 = vmatmul.bf16.gmra.mxu1 %v4243_v3  ;;  %v5785_v4 = vmul.f32 %v2523_v14, %v1132_v59 }
 0x254   : > { %v2229_v18 = vsel %vm2197_vm9, %v2037_v33, -1e+30  ;;  %v2329_v61 = vsel %vm2197_vm9, %v2297_v54, -1e+30  ;;  %4361 = vrcp.f32 %v2461_v25  ;;  %v2462_v25 = vadd.f32 1e-05, %v5749_v51 }
 0x255   : > { %v2265_v16 = vsub.f32 %v2229_v18, %v5757_v10  ;;  %v2365_v42 = vsub.f32 %v2329_v61, %v5762_v20  ;;  %v5792_v18 = vpop.f32.mrf.mxu2 }
 0x256   : > { %v4356_v31 = vpop.eup %4355 }
 0x257   : > { %v2399_v26 = vmul.f32 1.442695, %v2265_v16  ;;  %v2687_v21 = vsub.f32 %v2365_v42, %v2265_v16  ;;  %v2524_v55 = vmul.f32 %v4356_v31, %v4354_v29  ;;  %v4244_v31 = vld [vmem:[%s4734_s25 + $0x50] sm:$0xff]  ;;  %v6835_v16 = vld [vmem:[#allocation46_spill] sm:$0xff] }
 0x258   : > { %v4358_v49 = vpop.eup %4357  ;;  %v1713_v40 = vpop.f32.mrf.mxu0 }
 0x259   : > { %4363 = vpow2.f32 %v2399_v26  ;;  %v2721_v36 = vmul.f32 1.442695, %v2687_v21  ;;  %v1962_v3 = vpop.f32.mrf.mxu1  ;;  %v4360_v38 = vpop.eup %4359  ;;  %v2782_v48 = vadd.f32 1.0, %v4358_v49  ;;  %v5788_v0 = vmul.f32 %v2524_v55, %v1133_v1 }
 0x25a   : > { %v2038_v33 = vadd.f32 %v1962_v3, %v5384_v23  ;;  %v2298_v54 = vadd.f32 %v1962_v3, %v1713_v40  ;;  %v2877_v19 = vmul.f32 %v4360_v38, %v2845_v9  ;;  %v4362_v44 = vpop.eup %4361  ;;  %v2846_v55 = vsub.f32 %v5353_v56, %v5738_v24 }
 0x25b   : > { %4365 = vpow2.f32 %v2721_v36 }
 0x25c   : > { %4367 = vrcp.f32 %v2782_v48  ;;  %v2230_v61 = vsel %vm2198_vm10, %v2038_v33, -1e+30  ;;  %v2330_v14 = vsel %vm2198_vm10, %v2298_v54, -1e+30  ;;  %v5799_v59 = vadd.f32 %v2877_v19, %v5732_v58  ;;  %v1102_v48 = vld [vmem:[%s4734_s25 + $0x8] sm:$0xff]  }
 0x25d   : > { %v2266_v23 = vsub.f32 %v2230_v61, %v5757_v10  ;;  %v2366_v42 = vsub.f32 %v2330_v14, %v5762_v20  ;;  %4369 = vrcp.f32 %v2462_v25  ;;  %v2463_v54 = vadd.f32 1e-05, %v5416_v12 }
 0x25f   : > { %v4364_v51 = vpop.eup %4363  ;;  %v2401_v29 = vmul.f32 1.442695, %v2266_v23  ;;  %v2688_v1 = vsub.f32 %v2366_v42, %v2266_v23  ;;  %v5815_v23 = vpop.f32.mrf.mxu2  ;;  %v1135_v42 = vunpack.c.h.bf16 %v1102_v48 }
 0x260   : > { %v2525_v26 = vmul.f32 %v4364_v51, %v4362_v44  ;;  %v1716_v9 = vpop.f32.mrf.mxu0 }
 0x261   : > { %v4366_v21 = vpop.eup %4365  ;;  %4371 = vpow2.f32 %v2401_v29  ;;  %v2723_v49 = vmul.f32 1.442695, %v2688_v1  ;;  %v1965_v36 = vpop.f32.mrf.mxu1 }
 0x262   : > { %v4368_v40 = vpop.eup %4367  ;;  %v2783_v3 = vadd.f32 1.0, %v4366_v21  ;;  %v2039_v58 = vadd.f32 %v1965_v36, %v5394_v28  ;;  %v2299_v38 = vadd.f32 %v1965_v36, %v1716_v9  ;;  %v1134_v28 = vunpack.c.l.bf16 %v1102_v48 }
 0x263   : > { %4373 = vpow2.f32 %v2723_v49  ;;  %v2878_v33 = vmul.f32 %v4368_v40, %v2846_v55  ;;  %3969 = vmatmul.msk.bf16.gmra.mxu0 %vm1244_vm2, %v5504_v39  ;;  %2004 = vmatmul.bf16.gmra.mxu1 %v4244_v31  ;;  %v4370_v8 = vpop.eup %4369  ;;  %v5819_v39 = vpop.f32.mrf.mxu3  ;;  %v2847_v21 = vsub.f32 %v5367_v60, %v5743_v62  ;;  %v2464_v48 = vadd.f32 1e-05, %v5435_v22 }
 0x264   : > { %4375 = vrcp.f32 %v2783_v3  ;;  %v2231_v25 = vsel %vm2199_vm11, %v2039_v58, -1e+30  ;;  %v2331_v19 = vsel %vm2199_vm11, %v2299_v38, -1e+30  ;;  %v5823_v9 = vmul.f32 %v2525_v26, %v1134_v28 }
 0x265   : > { %v2267_v56 = vsub.f32 %v2231_v25, %v5757_v10  ;;  %v2367_v61 = vsub.f32 %v2331_v19, %v5762_v20  ;;  %v5813_v14 = vadd.f32 %v2878_v33, %v5738_v24  ;;  %4377 = vrcp.f32 %v2463_v54 }
 0x267   : > { %v4372_v12 = vpop.eup %4371  ;;  %v2403_v44 = vmul.f32 1.442695, %v2267_v56  ;;  %v2689_v51 = vsub.f32 %v2367_v61, %v2267_v56  ;;  %v5837_v28 = vpop.f32.mrf.mxu2 }
 0x268   : > { %v2526_v1 = vmul.f32 %v4372_v12, %v4370_v8  ;;  %v1718_v55 = vpop.f32.mrf.mxu0  ;;  %v4245_v8 = vld [vmem:[%s4734_s25 + $0x58] sm:$0xff] }
 0x269   : > { %v4374_v31 = vpop.eup %4373  ;;  %4379 = vpow2.f32 %v2403_v44  ;;  %v2725_v24 = vmul.f32 1.442695, %v2689_v51  ;;  %v1967_v49 = vpop.f32.mrf.mxu1  ;;  %v2848_v44 = vsub.f32 %v5382_v15, %v5751_v30 }
 0x26a   : > { %v4376_v36 = vpop.eup %4375  ;;  %v2784_v40 = vadd.f32 1.0, %v4374_v31  ;;  %v2040_v3 = vadd.f32 %v1967_v49, %v5408_v2  ;;  %v2300_v58 = vadd.f32 %v1967_v49, %v1718_v55  ;;  %v5826_v38 = vmul.f32 %v2526_v1, %v1135_v42 }
 0x26b   : > { %4381 = vpow2.f32 %v2725_v24  ;;  %v2879_v60 = vmul.f32 %v4376_v36, %v2847_v21  ;;  %v4378_v56 = vpop.eup %4377  ;;  %v5842_v21 = vpop.f32.mrf.mxu3  ;;  %v1104_v36 = vld [vmem:[%s4734_s25 + $0x10] sm:$0xff]  }
 0x26c   : > { %4383 = vrcp.f32 %v2784_v40  ;;  %v2232_v33 = vsel %vm2200_vm12, %v2040_v3, -1e+30  ;;  %v2332_v54 = vsel %vm2200_vm12, %v2300_v58, -1e+30  ;;  %v2465_v3 = vadd.f32 1e-05, %v5455_v17 }
 0x26d   : > { %v2268_v25 = vsub.f32 %v2232_v33, %v5757_v10  ;;  %v2368_v2 = vsub.f32 %v2332_v54, %v5762_v20  ;;  %v5835_v19 = vadd.f32 %v2879_v60, %v5743_v62  ;;  %4385 = vrcp.f32 %v2464_v48 }
 0x26e   : > { %v1137_v54 = vunpack.c.h.bf16 %v1104_v36 }
 0x26f   : > { %v4380_v22 = vpop.eup %4379  ;;  %v2405_v61 = vmul.f32 1.442695, %v2268_v25  ;;  %v2690_v63 = vsub.f32 %v2368_v2, %v2268_v25 }
 0x270   : > { %v2527_v42 = vmul.f32 %v4380_v22, %v4378_v56  ;;  %v1721_v1 = vpop.f32.mrf.mxu0 }
 0x271   : > { %v4382_v12 = vpop.eup %4381  ;;  %4387 = vpow2.f32 %v2405_v61  ;;  %v2727_v51 = vmul.f32 1.442695, %v2690_v63  ;;  %v1970_v31 = vpop.f32.mrf.mxu1  ;;  %v2849_v61 = vsub.f32 %v5392_v41, %v5610_v46 }
 0x272   : > { %v4384_v62 = vpop.eup %4383  ;;  %v2785_v24 = vadd.f32 1.0, %v4382_v12  ;;  %v2041_v55 = vadd.f32 %v1970_v31, %v5420_v57  ;;  %v2301_v49 = vadd.f32 %v1970_v31, %v1721_v1  ;;  %v1136_v57 = vunpack.c.l.bf16 %v1104_v36 }
 0x273   : > { %4389 = vpow2.f32 %v2727_v51  ;;  %v2880_v40 = vmul.f32 %v4384_v62, %v2848_v44  ;;  %3970 = vmatmul.msk.bf16.gmra.mxu0 %vm1244_vm2, %v5537_v45  ;;  %2009 = vmatmul.bf16.gmra.mxu1 %v4245_v8  ;;  %v4386_v53 = vpop.eup %4385  ;;  %v5861_v51 = vpop.f32.mrf.mxu2 }
 0x274   : > { %4391 = vrcp.f32 %v2785_v24  ;;  %v2233_v15 = vsel %vm2201_vm13, %v2041_v55, -1e+30  ;;  %v2333_v58 = vsel %vm2201_vm13, %v2301_v49, -1e+30  ;;  %v2466_v55 = vadd.f32 1e-05, %v5476_v5  ;;  %v5868_v49 = vpop.f32.mrf.mxu3 }
 0x275   : > { %v2269_v48 = vsub.f32 %v2233_v15, %v5757_v10  ;;  %v2369_v60 = vsub.f32 %v2333_v58, %v5762_v20  ;;  %v5853_v33 = vadd.f32 %v2880_v40, %v5751_v30  ;;  %4393 = vrcp.f32 %v2465_v3 }
 0x276   : > { %v5859_v30 = vmul.f32 %v2527_v42, %v1136_v57 }
 0x277   : > { %v4388_v25 = vpop.eup %4387  ;;  %v2407_v2 = vmul.f32 1.442695, %v2269_v48  ;;  %v2691_v17 = vsub.f32 %v2369_v60, %v2269_v48 }
 0x278   : > { %v2528_v22 = vmul.f32 %v4388_v25, %v4386_v53  ;;  %v1723_v8 = vpop.f32.mrf.mxu0  ;;  %v2850_v53 = vsub.f32 %v5406_v34, %v5628_v47 }
 0x279   : > { %v4390_v45 = vpop.eup %4389  ;;  %4395 = vpow2.f32 %v2407_v2  ;;  %v2729_v63 = vmul.f32 1.442695, %v2691_v17  ;;  %v1972_v12 = vpop.f32.mrf.mxu1  ;;  %v1106_v17 = vld [vmem:[%s4734_s25 + $0x18] sm:$0xff]  }
 0x27a   : > { %v4392_v44 = vpop.eup %4391  ;;  %v2786_v1 = vadd.f32 1.0, %v4390_v45  ;;  %v2042_v31 = vadd.f32 %v1972_v12, %v5439_v7  ;;  %v2302_v62 = vadd.f32 %v1972_v12, %v1723_v8  ;;  %v5864_v24 = vmul.f32 %v2528_v22, %v1137_v54 }
 0x27b   : > { %4397 = vpow2.f32 %v2729_v63  ;;  %v2881_v41 = vmul.f32 %v4392_v44, %v2849_v61  ;;  %v4394_v15 = vpop.eup %4393  ;;  %v2467_v8 = vadd.f32 1e-05, %v5774_v52  ;;  %v5881_v44 = vpop.f32.mrf.mxu2 }
 0x27c   : > { %4399 = vrcp.f32 %v2786_v1  ;;  %v2234_v42 = vsel %vm2202_vm14, %v2042_v31, -1e+30  ;;  %v2334_v36 = vsel %vm2202_vm14, %v2302_v62, -1e+30  ;;  %v1138_v31 = vunpack.c.l.bf16 %v1106_v17 }
 0x27d   : > { %v2270_v7 = vsub.f32 %v2234_v42, %v5757_v10  ;;  %v2370_v3 = vsub.f32 %v2334_v36, %v5762_v20  ;;  %4401 = vrcp.f32 %v2466_v55  ;;  %v5888_v52 = vadd.f32 %v2881_v41, %v5610_v46  ;;  %v5893_v42 = vpop.f32.mrf.mxu3 }
 0x27e   : > { %v1139_v36 = vunpack.c.h.bf16 %v1106_v17  ;;  %v2851_v46 = vsub.f32 %v5418_v13, %v5644_v6  ;;  %v2468_v17 = vadd.f32 1e-05, %v5792_v18 }
 0x27f   : > { %v4396_v5 = vpop.eup %4395  ;;  %v2409_v58 = vmul.f32 1.442695, %v2270_v7  ;;  %v2692_v48 = vsub.f32 %v2370_v3, %v2270_v7 }
 0x280   : > { %v2529_v60 = vmul.f32 %v4396_v5, %v4394_v15  ;;  %v1726_v25 = vpop.f32.mrf.mxu0 }
 0x281   : > { %v4398_v57 = vpop.eup %4397  ;;  %4403 = vpow2.f32 %v2409_v58  ;;  %v2731_v54 = vmul.f32 1.442695, %v2692_v48  ;;  %v1975_v2 = vpop.f32.mrf.mxu1 }
 0x282   : > { %v4400_v22 = vpop.eup %4399  ;;  %v2787_v45 = vadd.f32 1.0, %v4398_v57  ;;  %v2043_v61 = vadd.f32 %v1975_v2, %v5453_v32  ;;  %v2303_v63 = vadd.f32 %v1975_v2, %v1726_v25 }
 0x283   : > { %4405 = vpow2.f32 %v2731_v54  ;;  %v2882_v12 = vmul.f32 %v4400_v22, %v2850_v53  ;;  %3971 = vmatmul.msk.bf16.gmra.mxu0 %vm1244_vm2, %v5576_v37  ;;  %2014 = vmatmul.bf16.gmra.mxu1 %v4246_v50  ;;  %v4402_v55 = vpop.eup %4401  ;;  %v5899_v50 = vmul.f32 %v2529_v60, %v1138_v31  ;;  %v6834_v37 = vld [vmem:[#allocation51_spill] sm:$0xff] }
 0x284   : > { %4407 = vrcp.f32 %v2787_v45  ;;  %v2235_v34 = vsel %vm2203_vm15, %v2043_v61, -1e+30  ;;  %v2335_v1 = vsel %vm2203_vm15, %v2303_v63, -1e+30  ;;  %vm2209_vm6 = vcmp.eq.s32.totalorder %v6834_v37, 1 }
 0x285   : > { %v2271_v62 = vsub.f32 %v2235_v34, %v5757_v10  ;;  %v2371_v32 = vsub.f32 %v2335_v1, %v5762_v20  ;;  %v5891_v43 = vadd.f32 %v2882_v12, %v5628_v47  ;;  %4409 = vrcp.f32 %v2467_v8  ;;  %v5910_v8 = vpop.f32.mrf.mxu2  ;;  %v5912_v34 = vpop.f32.mrf.mxu3  ;;  %v4247_v1 = vld [vmem:[%s4734_s25 + $0x68] sm:$0xff] }
 0x287   : > { %v4404_v7 = vpop.eup %4403  ;;  %v2411_v3 = vmul.f32 1.442695, %v2271_v62  ;;  %v2693_v15 = vsub.f32 %v2371_v32, %v2271_v62  ;;  %v6818_v32 = vld [vmem:[#allocation6_spill] sm:$0xff] }
 0x288   : > { %v2530_v5 = vmul.f32 %v4404_v7, %v4402_v55  ;;  %v1728_v47 = vpop.f32.mrf.mxu0  ;;  %v2852_v55 = vsub.f32 %v6818_v32, %v5658_v35 }
 0x289   : > { %v4406_v58 = vpop.eup %4405  ;;  %4411 = vpow2.f32 %v2411_v3  ;;  %v2733_v41 = vmul.f32 1.442695, %v2693_v15  ;;  %v1977_v48 = vpop.f32.mrf.mxu1  ;;  %v1108_v15 = vld [vmem:[%s4734_s25 + $0x20] sm:$0xff]  }
 0x28a   : > { %v4408_v57 = vpop.eup %4407  ;;  %v2788_v53 = vadd.f32 1.0, %v4406_v58  ;;  %v2044_v54 = vadd.f32 %v1977_v48, %v5472_v11  ;;  %v2304_v25 = vadd.f32 %v1977_v48, %v1728_v47  ;;  %v5902_v2 = vmul.f32 %v2530_v5, %v1139_v36  ;;  %v6820_v48 = vld [vmem:[#allocation11_spill] sm:$0xff] }
 0x28b   : > { %4413 = vpow2.f32 %v2733_v41  ;;  %v2883_v13 = vmul.f32 %v4408_v57, %v2851_v46  ;;  %v4410_v63 = vpop.eup %4409  ;;  %v6819_v46 = vld [vmem:[#allocation15_spill] sm:$0xff]  ;;  %vm2205_vm1 = vcmp.eq.s32.totalorder %v6820_v48, 1 }
 0x28c   : > { %4415 = vrcp.f32 %v2788_v53  ;;  %v2236_v22 = vsel %vm2204_vm0, %v2044_v54, -1e+30  ;;  %v2336_v45 = vsel %vm2204_vm0, %v2304_v25, -1e+30  ;;  %v6821_v25 = vld [vmem:[#allocation3_spill] sm:$0xff] }
 0x28d   : > { %v2272_v61 = vsub.f32 %v2236_v22, %v5757_v10  ;;  %v2372_v11 = vsub.f32 %v2336_v45, %v5762_v20  ;;  %4417 = vrcp.f32 %v2468_v17  ;;  %v1140_v17 = vunpack.c.l.bf16 %v1108_v15 }
 0x28f   : > { %v4412_v18 = vpop.eup %4411  ;;  %v2413_v12 = vmul.f32 1.442695, %v2272_v61  ;;  %v2694_v27 = vsub.f32 %v2372_v11, %v2272_v61  ;;  %v5927_v61 = vadd.f32 %v2883_v13, %v5644_v6 }
 0x290   : > { %v2531_v31 = vmul.f32 %v4412_v18, %v4410_v63  ;;  %v1731_v7 = vpop.f32.mrf.mxu0  ;;  %v1141_v18 = vunpack.c.h.bf16 %v1108_v15  ;;  %v5941_v15 = vpop.f32.mrf.mxu3 }
 0x291   : > { %v4414_v62 = vpop.eup %4413  ;;  %4419 = vpow2.f32 %v2413_v12  ;;  %v2735_v36 = vmul.f32 1.442695, %v2694_v27  ;;  %v1980_v3 = vpop.f32.mrf.mxu1 }
 0x292   : > { %v4416_v5 = vpop.eup %4415  ;;  %v2789_v58 = vadd.f32 1.0, %v4414_v62  ;;  %v2045_v41 = vadd.f32 %v1980_v3, %v6819_v46  ;;  %v2305_v47 = vadd.f32 %v1980_v3, %v1731_v7  ;;  %v5935_v62 = vpop.f32.mrf.mxu2  ;;  %v6823_v46 = vld [vmem:[#allocation18_spill] sm:$0xff] }
 0x293   : > { %4421 = vpow2.f32 %v2735_v36  ;;  %v2884_v57 = vmul.f32 %v4416_v5, %v2852_v55  ;;  %3972 = vmatmul.msk.bf16.gmra.mxu0 %vm1244_vm2, %v6821_v25  ;;  %2019 = vmatmul.bf16.gmra.mxu1 %v4247_v1  ;;  %v4418_v63 = vpop.eup %4417  ;;  %v6822_v36 = vld [vmem:[#allocation9_spill] sm:$0xff] }
 0x294   : > { %4423 = vrcp.f32 %v2789_v58  ;;  %v2237_v53 = vsel %vm2205_vm1, %v2045_v41, -1e+30  ;;  %v2337_v54 = vsel %vm2205_vm1, %v2305_v47, -1e+30  ;;  %v2853_v7 = vsub.f32 %v6822_v36, %v5819_v39 }
 0x295   : > { %v5923_v22 = vsub.f32 %v2237_v53, %v5757_v10  ;;  %v2373_v45 = vsub.f32 %v2337_v54, %v5762_v20  ;;  %v5930_v11 = vadd.f32 %v2884_v57, %v5658_v35  ;;  %v5939_v35 = vmul.f32 %v2531_v31, %v1140_v17  ;;  %v6824_v57 = vld [vmem:[#allocation62_spill] sm:$0xff] }
 0x296   : > { %vm2206_vm3 = vcmp.eq.s32.totalorder %v6824_v57, 1 }
 0x297   : > { %v4420_v12 = vpop.eup %4419  ;;  %v2695_v27 = vsub.f32 %v2373_v45, %v5923_v22 }
 0x298   : > { %v2532_v32 = vmul.f32 %v4420_v12, %v4418_v63  ;;  %v1733_v13 = vpop.f32.mrf.mxu0  ;;  %v4248_v12 = vld [vmem:[%s4734_s25 + $0x70] sm:$0xff]  ;;  %v5961_v57 = vpop.f32.mrf.mxu3 }
 0x299   : > { %v4422_v55 = vpop.eup %4421  ;;  %v2737_v6 = vmul.f32 1.442695, %v2695_v27  ;;  %v1982_v3 = vpop.f32.mrf.mxu1  ;;  %v6825_v27 = vld [vmem:[#allocation12_spill] sm:$0xff] }
 0x29a   : > { %v4424_v5 = vpop.eup %4423  ;;  %v2790_v58 = vadd.f32 1.0, %v4422_v55  ;;  %v2046_v41 = vadd.f32 %v1982_v3, %v6823_v46  ;;  %v2306_v47 = vadd.f32 %v1982_v3, %v1733_v13  ;;  %v5944_v48 = vmul.f32 %v2532_v32, %v1141_v18  ;;  %v5957_v13 = vpop.f32.mrf.mxu2 }
 0x29b   : > { %4425 = vpow2.f32 %v2737_v6  ;;  %v2885_v53 = vmul.f32 %v4424_v5, %v2853_v7  ;;  %v2854_v32 = vsub.f32 %v6825_v27, %v5842_v21  ;;  %v6826_v5 = vld [vmem:[#allocation21_spill] sm:$0xff] }
 0x29c   : > { %4427 = vrcp.f32 %v2790_v58  ;;  %v2238_v54 = vsel %vm2206_vm3, %v2046_v41, -1e+30  ;;  %v2338_v25 = vsel %vm2206_vm3, %v2306_v47, -1e+30  ;;  %v6827_v41 = vld [vmem:[#allocation7_spill] sm:$0xff] }
 0x29d   : > { %v5950_v17 = vsub.f32 %v2238_v54, %v5757_v10  ;;  %v2374_v45 = vsub.f32 %v2338_v25, %v5762_v20  ;;  %vm2207_vm4 = vcmp.eq.s32.totalorder %v6827_v41, 1  ;;  %v5968_v27 = vadd.f32 %v2885_v53, %v5819_v39  ;;  %v6830_v53 = vld [vmem:[#allocation23_spill] sm:$0xff] }
 0x29f   : > { %v2696_v63 = vsub.f32 %v2374_v45, %v5950_v17  ;;  %v6828_v45 = vld [vmem:[#allocation41_spill] sm:$0xff] }
 0x2a0   : > { %v1736_v36 = vpop.f32.mrf.mxu0 }
 0x2a1   : > { %v4426_v18 = vpop.eup %4425  ;;  %v2739_v55 = vmul.f32 1.442695, %v2696_v63  ;;  %v1985_v7 = vpop.f32.mrf.mxu1 }
 0x2a2   : > { %v4428_v6 = vpop.eup %4427  ;;  %v2791_v3 = vadd.f32 1.0, %v4426_v18  ;;  %v2047_v58 = vadd.f32 %v1985_v7, %v6826_v5  ;;  %v2307_v46 = vadd.f32 %v1985_v7, %v1736_v36 }
 0x2a3   : > { %4429 = vpow2.f32 %v2739_v55  ;;  %v2886_v47 = vmul.f32 %v4428_v6, %v2854_v32  ;;  %3973 = vmatmul.msk.bf16.gmra.mxu0 %vm1244_vm2, %v6828_v45  ;;  %2024 = vmatmul.bf16.gmra.mxu1 %v4248_v12  ;;  %v6829_v12 = vld [vmem:[#allocation14_spill] sm:$0xff] }
 0x2a4   : > { %4431 = vrcp.f32 %v2791_v3  ;;  %v2239_v54 = vsel %vm2207_vm4, %v2047_v58, -1e+30  ;;  %v2339_v25 = vsel %vm2207_vm4, %v2307_v46, -1e+30  ;;  %v2471_v3 = vadd.f32 1e-05, %v5861_v51 }
 0x2a5   : > { %v2275_v63 = vsub.f32 %v2239_v54, %v5757_v10  ;;  %v2375_v18 = vsub.f32 %v2339_v25, %v5762_v20  ;;  %v5971_v36 = vadd.f32 %v2886_v47, %v5842_v21  ;;  %v2855_v5 = vsub.f32 %v6829_v12, %v5868_v49  ;;  %v6831_v25 = vld [vmem:[#allocation8_spill] sm:$0xff] }
 0x2a6   : > { %vm2208_vm5 = vcmp.eq.s32.totalorder %v6831_v25, 1  ;;  %v2472_v51 = vadd.f32 1e-05, %v5881_v44  ;;  %v6832_v44 = vld [vmem:[#allocation17_spill] sm:$0xff] }
 0x2a7   : > { %v2419_v32 = vmul.f32 1.442695, %v2275_v63  ;;  %v2697_v55 = vsub.f32 %v2375_v18, %v2275_v63  ;;  %v5981_v63 = vpop.f32.mrf.mxu2  ;;  %v2856_v25 = vsub.f32 %v6832_v44, %v5893_v42 }
 0x2a8   : > { %v1738_v46 = vpop.f32.mrf.mxu0 }
 0x2a9   : > { %v4430_v6 = vpop.eup %4429  ;;  %v2741_v58 = vmul.f32 1.442695, %v2697_v55  ;;  %v1987_v41 = vpop.f32.mrf.mxu1  ;;  %4433 = vpow2.f32 %v2419_v32 }
 0x2aa   : > { %v4432_v54 = vpop.eup %4431  ;;  %v2792_v39 = vadd.f32 1.0, %v4430_v6  ;;  %v2048_v21 = vadd.f32 %v1987_v41, %v6830_v53  ;;  %v2308_v47 = vadd.f32 %v1987_v41, %v1738_v46  ;;  %v5985_v6 = vpop.f32.mrf.mxu3 }
 0x2ab   : > { %4435 = vpow2.f32 %v2741_v58  ;;  %v2887_v45 = vmul.f32 %v4432_v54, %v2855_v5  ;;  %v4249_v58 = vld [vmem:[%s4734_s25 + $0x78] sm:$0xff]  ;;  %v1112_v5 = vld [vmem:[%s4734_s25 + $0x30] sm:$0xff]  }
 0x2ac   : > { %4437 = vrcp.f32 %v2792_v39  ;;  %v2240_v18 = vsel %vm2208_vm5, %v2048_v21, -1e+30  ;;  %v2340_v55 = vsel %vm2208_vm5, %v2308_v47, -1e+30 }
 0x2ad   : > { %v2276_v12 = vsub.f32 %v2240_v18, %v5757_v10  ;;  %v2376_v32 = vsub.f32 %v2340_v55, %v5762_v20  ;;  %4439 = vrcp.f32 %v2471_v3  ;;  %v6833_v55 = vld [vmem:[#allocation26_spill] sm:$0xff] }
 0x2ae   : > { %4441 = vrcp.f32 %v2472_v51 }
 0x2af   : > { %v2421_v46 = vmul.f32 1.442695, %v2276_v12  ;;  %v2698_v41 = vsub.f32 %v2376_v32, %v2276_v12  ;;  %v4434_v53 = vpop.eup %4433  ;;  %v1144_v12 = vunpack.c.l.bf16 %v1112_v5 }
 0x2b0   : > { %v1741_v21 = vpop.f32.mrf.mxu0 }
 0x2b1   : > { %v4436_v54 = vpop.eup %4435  ;;  %4443 = vpow2.f32 %v2421_v46  ;;  %v2743_v39 = vmul.f32 1.442695, %v2698_v41  ;;  %v1990_v47 = vpop.f32.mrf.mxu1  ;;  %v5996_v46 = vadd.f32 %v2887_v45, %v5868_v49  ;;  %v6836_v49 = vld [vmem:[#allocation4_spill] sm:$0xff] }
 0x2b2   : > { %v4438_v18 = vpop.eup %4437  ;;  %v2793_v7 = vadd.f32 1.0, %v4436_v54  ;;  %v2049_v3 = vadd.f32 %v1990_v47, %v6833_v55  ;;  %v2309_v1 = vadd.f32 %v1990_v47, %v1741_v21  ;;  %v6010_v45 = vpop.f32.mrf.mxu3 }
 0x2b3   : > { %4445 = vpow2.f32 %v2743_v39  ;;  %v2888_v51 = vmul.f32 %v4438_v18, %v2856_v25  ;;  %v4440_v32 = vpop.eup %4439  ;;  %3974 = vmatmul.msk.bf16.gmra.mxu0 %vm1244_vm2, %v6835_v16  ;;  %2029 = vmatmul.bf16.gmra.mxu1 %v4249_v58  ;;  %v6003_v39 = vpop.f32.mrf.mxu2  ;;  %vm2210_vm2 = vcmp.eq.s32.totalorder %v6836_v49, 1  ;;  %v6837_v58 = vld [vmem:[#allocation20_spill] sm:$0xff]  ;;  %v1114_v49 = vld [vmem:[%s4734_s25 + $0x38] sm:$0xff]  }
 0x2b4   : > { %4447 = vrcp.f32 %v2793_v7  ;;  %v2241_v56 = vsel %vm2209_vm6, %v2049_v3, -1e+30  ;;  %v2341_v29 = vsel %vm2209_vm6, %v2309_v1, -1e+30  ;;  %v2535_v44 = vmul.f32 %v4440_v32, %v4434_v53  ;;  %v4442_v25 = vpop.eup %4441 }
 0x2b5   : > { %v2277_v41 = vsub.f32 %v2241_v56, %v5757_v10  ;;  %v2377_v54 = vsub.f32 %v2341_v29, %v5762_v20  ;;  %v6001_v37 = vadd.f32 %v2888_v51, %v5893_v42  ;;  %v1145_v7 = vunpack.c.h.bf16 %v1112_v5 }
 0x2b6   : > { %v2470_v56 = vadd.f32 1e-05, %v5837_v28  ;;  %v2473_v29 = vadd.f32 1e-05, %v5910_v8  ;;  %v2857_v18 = vsub.f32 %v6837_v58, %v5912_v34  ;;  %v6014_v51 = vmul.f32 %v2535_v44, %v1144_v12 }
 0x2b7   : > { %v4444_v1 = vpop.eup %4443  ;;  %v2423_v21 = vmul.f32 1.442695, %v2277_v41  ;;  %v2699_v47 = vsub.f32 %v2377_v54, %v2277_v41  ;;  %v6838_v54 = vld [vmem:[#allocation28_spill] sm:$0xff]  ;;  %v2474_v8 = vadd.f32 1e-05, %v5935_v62 }
 0x2b8   : > { %v2536_v42 = vmul.f32 %v4444_v1, %v4442_v25  ;;  %v1743_v55 = vpop.f32.mrf.mxu0  ;;  %v2415_v25 = vmul.f32 1.442695, %v5923_v22  ;;  %v2417_v22 = vmul.f32 1.442695, %v5950_v17 }
 0x2b9   : > { %v4446_v53 = vpop.eup %4445  ;;  %4449 = vpow2.f32 %v2423_v21  ;;  %v2745_v5 = vmul.f32 1.442695, %v2699_v47  ;;  %v1992_v3 = vpop.f32.mrf.mxu1 }
 0x2ba   : > { %v4448_v32 = vpop.eup %4447  ;;  %v2794_v41 = vadd.f32 1.0, %v4446_v53  ;;  %v2050_v16 = vadd.f32 %v1992_v3, %v6838_v54  ;;  %v2310_v28 = vadd.f32 %v1992_v3, %v1743_v55  ;;  %v6017_v26 = vmul.f32 %v2536_v42, %v1145_v7 }
 0x2bb   : > { %4451 = vpow2.f32 %v2745_v5  ;;  %v2889_v1 = vmul.f32 %v4448_v32, %v2857_v18  ;;  %v6031_v58 = vpop.f32.mrf.mxu2  ;;  %v6839_v5 = vld [vmem:[#allocation38_spill] sm:$0xff] }
 0x2bc   : > { %4453 = vrcp.f32 %v2794_v41  ;;  %v2242_v21 = vsel %vm2210_vm2, %v2050_v16, -1e+30  ;;  %v2342_v12 = vsel %vm2210_vm2, %v2310_v28, -1e+30  ;;  %v2593_v44 = vpack.c.bf16 %v6017_v26, %v6014_v51  ;;  %v6037_v41 = vpop.f32.mrf.mxu3 }
 0x2bd   : > { %4455 = vrcp.f32 %v2470_v56  ;;  %v2278_v7 = vsub.f32 %v2242_v21, %v5757_v10  ;;  %v2378_v62 = vsub.f32 %v2342_v12, %v5762_v20  ;;  %v2469_v16 = vadd.f32 1e-05, %v5815_v23  ;;  %v6840_v56 = vld [vmem:[#allocation22_spill] sm:$0xff] }
 0x2be   : > { %4457 = vrcp.f32 %v2473_v29  ;;  %vm2211_vm7 = vcmp.eq.s32.totalorder %v6839_v5, 1  ;;  %v2858_v55 = vsub.f32 %v6840_v56, %v5941_v15  ;;  %v6841_v23 = vld [vmem:[#allocation30_spill] sm:$0xff]  ;;  %v2475_v21 = vadd.f32 1e-05, %v5957_v13  ;;  %v2152_v56 = vpop.permute.xlu0 %2151 }
 0x2bf   : > { %v4450_v47 = vpop.eup %4449  ;;  %4459 = vrcp.f32 %v2474_v8  ;;  %v2425_v42 = vmul.f32 1.442695, %v2278_v7  ;;  %v2700_v53 = vsub.f32 %v2378_v62, %v2278_v7  ;;  %v1146_v12 = vunpack.c.l.bf16 %v1114_v49 }
 0x2c0   : > { %4461 = vpow2.f32 %v2415_v25  ;;  %v1746_v3 = vpop.f32.mrf.mxu0  ;;  %vm2212_vm8 = vcmp.eq.s32.totalorder %v2152_v56, 1 }
 0x2c1   : > { %v4452_v18 = vpop.eup %4451  ;;  %4463 = vpow2.f32 %v2425_v42  ;;  %v2747_v29 = vmul.f32 1.442695, %v2700_v53  ;;  %v1995_v17 = vpop.f32.mrf.mxu1 }
 0x2c2   : > { %v4454_v32 = vpop.eup %4453  ;;  %4465 = vpow2.f32 %v2417_v22  ;;  %v2795_v54 = vadd.f32 1.0, %v4452_v18  ;;  %v2051_v28 = vadd.f32 %v1995_v17, %v6841_v23  ;;  %v2311_v8 = vadd.f32 %v1995_v17, %v1746_v3 }
 0x2c3   : > { %v4456_v25 = vpop.eup %4455  ;;  %4467 = vpow2.f32 %v2747_v29  ;;  %v2890_v7 = vmul.f32 %v4454_v32, %v2858_v55  ;;  %v6046_v22 = vadd.f32 %v2889_v1, %v5912_v34  ;;  %v1147_v32 = vunpack.c.h.bf16 %v1114_v49  ;;  %v1110_v34 = vld [vmem:[%s4734_s25 + $0x28] sm:$0xff]  }
 0x2c4   : > { %v4458_v62 = vpop.eup %4457  ;;  %4469 = vrcp.f32 %v2795_v54  ;;  %v2243_v42 = vsel %vm2211_vm7, %v2051_v28, -1e+30  ;;  %v2343_v53 = vsel %vm2211_vm7, %v2311_v8, -1e+30  ;;  %v2476_v28 = vadd.f32 1e-05, %v5981_v63 }
 0x2c5   : > { %v4460_v18 = vpop.eup %4459  ;;  %v2279_v3 = vsub.f32 %v2243_v42, %v5757_v10  ;;  %v2379_v13 = vsub.f32 %v2343_v53, %v5762_v20  ;;  %v2537_v29 = vmul.f32 %v4458_v62, %v4450_v47  ;;  %v6051_v55 = vadd.f32 %v2890_v7, %v5941_v15  ;;  %v6842_v15 = vld [vmem:[#allocation25_spill] sm:$0xff]  ;;  %v6058_v42 = vpop.f32.mrf.mxu2 }
 0x2c6   : > { %v4462_v17 = vpop.eup %4461  ;;  %4471 = vrcp.f32 %v2469_v16  ;;  %v2859_v47 = vsub.f32 %v6842_v15, %v5961_v57  ;;  %v6062_v15 = vpop.f32.mrf.mxu3 }
 0x2c7   : > { %v4464_v54 = vpop.eup %4463  ;;  %v2427_v23 = vmul.f32 1.442695, %v2279_v3  ;;  %v2701_v5 = vsub.f32 %v2379_v13, %v2279_v3  ;;  %4473 = vrcp.f32 %v2475_v21  ;;  %v2569_v7 = vmul.f32 %v2537_v29, %v1146_v12  ;;  %v6843_v3 = vld [vmem:[#allocation33_spill] sm:$0xff] }
 0x2c8   : > { %v4466_v1 = vpop.eup %4465  ;;  %v2538_v10 = vmul.f32 %v4464_v54, %v4460_v18  ;;  %v1748_v49 = vpop.f32.mrf.mxu0  ;;  %v1143_v18 = vunpack.c.h.bf16 %v1110_v34 }
 0x2c9   : > { %v4468_v20 = vpop.eup %4467  ;;  %4475 = vpow2.f32 %v2427_v23  ;;  %v2749_v16 = vmul.f32 1.442695, %v2701_v5  ;;  %v1997_v8 = vpop.f32.mrf.mxu1  ;;  %v2534_v54 = vmul.f32 %v4466_v1, %v4456_v25  ;;  %v6069_v5 = vld [vmem:[%s6723_s10] ss:$0 sm:$0xff] }
 0x2ca   : > { %v4470_v62 = vpop.eup %4469  ;;  %v2796_v53 = vadd.f32 1.0, %v4468_v20  ;;  %v2052_v21 = vadd.f32 %v1997_v8, %v6843_v3  ;;  %v2312_v13 = vadd.f32 %v1997_v8, %v1748_v49  ;;  %v2570_v63 = vmul.f32 %v2538_v10, %v1147_v32  ;;  %v6075_v25 = vld [vmem:[%s6724_s11] ss:$0 sm:$0xff] }
 0x2cb   : > { %4477 = vpow2.f32 %v2749_v16  ;;  %v2891_v40 = vmul.f32 %v4470_v62, %v2859_v47  ;;  %v1142_v10 = vunpack.c.l.bf16 %v1110_v34  ;;  %v2566_v8 = vmul.f32 %v2534_v54, %v1143_v18  ;;  %v1116_v34 = vld [vmem:[%s4734_s25 + $0x40] sm:$0xff]  }
 0x2cc   : > { %v4472_v60 = vpop.eup %4471  ;;  %4479 = vrcp.f32 %v2796_v53  ;;  %v2244_v23 = vsel %vm2212_vm8, %v2052_v21, -1e+30  ;;  %v2344_v12 = vsel %vm2212_vm8, %v2312_v13, -1e+30  ;;  %v2594_v29 = vpack.c.bf16 %v2570_v63, %v2569_v7  ;;  %v6844_v53 = vld [vmem:[#allocation27_spill] sm:$0xff] }
 0x2cd   : > { %v2280_v32 = vsub.f32 %v2244_v23, %v6069_v5  ;;  %v2380_v1 = vsub.f32 %v2344_v12, %v6075_v25  ;;  %v2533_v20 = vmul.f32 %v4472_v60, %v4462_v17  ;;  %v4474_v56 = vpop.eup %4473  ;;  %4481 = vrcp.f32 %v2476_v28  ;;  %v6845_v17 = vld [vmem:[#allocation34_spill] sm:$0xff] }
 0x2ce   : > { %2611 = vmatpush.bf16.msrb.mxu2 %v2594_v29  ;;  %v2860_v3 = vsub.f32 %v6844_v53, %v5985_v6  ;;  %vm2213_vm9 = vcmp.eq.s32.totalorder %v6845_v17, 1  ;;  %v6846_v29 = vld [vmem:[#allocation37_spill] sm:$0xff]  ;;  %v2477_v28 = vadd.f32 1e-05, %v6003_v39  ;;  %v6097_v51 = vpop.f32.mrf.mxu3  ;;  %v6848_v17 = vld [vmem:[#allocation40_spill] sm:$0xff] }
 0x2cf   : > { %v4476_v47 = vpop.eup %4475  ;;  %v2429_v16 = vmul.f32 1.442695, %v2280_v32  ;;  %v2702_v49 = vsub.f32 %v2380_v1, %v2280_v32  ;;  %v2565_v23 = vmul.f32 %v2533_v20, %v1142_v10  ;;  %v6087_v1 = vpop.f32.mrf.mxu2 }
 0x2d0   : > { %v2539_v7 = vmul.f32 %v4476_v47, %v4474_v56  ;;  %v1751_v13 = vpop.f32.mrf.mxu0  ;;  %v1148_v56 = vunpack.c.l.bf16 %v1116_v34 }
 0x2d1   : > { %v4478_v62 = vpop.eup %4477  ;;  %4483 = vpow2.f32 %v2429_v16  ;;  %v2751_v21 = vmul.f32 1.442695, %v2702_v49  ;;  %v2000_v63 = vpop.f32.mrf.mxu1  ;;  %v2592_v18 = vpack.c.bf16 %v2566_v8, %v2565_v23  ;;  %v6092_v49 = vadd.f32 %v2891_v40, %v5961_v57  ;;  %v6847_v40 = vld [vmem:[#allocation29_spill] sm:$0xff] }
 0x2d2   : > { %v4480_v60 = vpop.eup %4479  ;;  %v2797_v12 = vadd.f32 1.0, %v4478_v62  ;;  %v2053_v31 = vadd.f32 %v2000_v63, %v6846_v29  ;;  %v2313_v32 = vadd.f32 %v2000_v63, %v1751_v13  ;;  %2612 = vmatpush.bf16.msrb.mxu2 %v2593_v44  ;;  %v1149_v44 = vunpack.c.h.bf16 %v1116_v34 }
 0x2d3   : > { %4485 = vpow2.f32 %v2751_v21  ;;  %v2892_v54 = vmul.f32 %v4480_v60, %v2860_v3  ;;  %v4482_v39 = vpop.eup %4481  ;;  %v2861_v57 = vsub.f32 %v6847_v40, %v6010_v45  ;;  %v6103_v23 = vmul.f32 %v2539_v7, %v1148_v56 }
 0x2d4   : > { %4487 = vrcp.f32 %v2797_v12  ;;  %v2245_v10 = vsel %vm2213_vm9, %v2053_v31, -1e+30  ;;  %v2345_v20 = vsel %vm2213_vm9, %v2313_v32, -1e+30  ;;  %v6849_v32 = vpack.c.bf16 %v5944_v48, %v5939_v35 }
 0x2d5   : > { %v2281_v47 = vsub.f32 %v2245_v10, %v6069_v5  ;;  %v2381_v16 = vsub.f32 %v2345_v20, %v6075_v25  ;;  %v6095_v26 = vadd.f32 %v2892_v54, %v5985_v6  ;;  %4489 = vrcp.f32 %v2477_v28 }
 0x2d6   : > { %2613 = vmatpush.bf16.msrb.mxu2 %v2592_v18  ;;  %v6850_v18 = vld [vmem:[#allocation35_spill] sm:$0xff]  ;;  %v2478_v54 = vadd.f32 1e-05, %v6031_v58 }
 0x2d7   : > { %v4484_v8 = vpop.eup %4483  ;;  %v2431_v62 = vmul.f32 1.442695, %v2281_v47  ;;  %v2703_v31 = vsub.f32 %v2381_v16, %v2281_v47  ;;  %vm2214_vm10 = vcmp.eq.s32.totalorder %v6850_v18, 1  ;;  %v6117_v48 = vpop.f32.mrf.mxu2 }
 0x2d8   : > { %v2540_v3 = vmul.f32 %v4484_v8, %v4482_v39  ;;  %v1753_v13 = vpop.f32.mrf.mxu0  ;;  %v6851_v39 = vpack.c.bf16 %v5902_v2, %v5899_v50  ;;  %v6853_v50 = vld [vmem:[#allocation43_spill] sm:$0xff] }
 0x2d9   : > { %v4486_v21 = vpop.eup %4485  ;;  %4491 = vpow2.f32 %v2431_v62  ;;  %v2753_v6 = vmul.f32 1.442695, %v2703_v31  ;;  %v2002_v63 = vpop.f32.mrf.mxu1 }
 0x2da   : > { %v4488_v60 = vpop.eup %4487  ;;  %v2798_v34 = vadd.f32 1.0, %v4486_v21  ;;  %v2054_v12 = vadd.f32 %v2002_v63, %v6848_v17  ;;  %v2314_v29 = vadd.f32 %v2002_v63, %v1753_v13  ;;  %2614 = vmatpush.bf16.msrb.mxu2 %v6849_v32  ;;  %v6109_v28 = vmul.f32 %v2540_v3, %v1149_v44  ;;  %v6122_v62 = vpop.f32.mrf.mxu3  ;;  %v6852_v21 = vld [vmem:[#allocation32_spill] sm:$0xff] }
 0x2db   : > { %4493 = vpow2.f32 %v2753_v6  ;;  %v2893_v10 = vmul.f32 %v4488_v60, %v2861_v57  ;;  %v4490_v35 = vpop.eup %4489  ;;  %v2862_v40 = vsub.f32 %v6852_v21, %v6037_v41  ;;  %v1118_v63 = vld [vmem:[%s4734_s25 + $0x48] sm:$0xff]   ;;  %v2479_v32 = vadd.f32 1e-05, %v6058_v42 }
 0x2dc   : > { %4495 = vrcp.f32 %v2798_v34  ;;  %v2246_v7 = vsel %vm2214_vm10, %v2054_v12, -1e+30  ;;  %v2346_v20 = vsel %vm2214_vm10, %v2314_v29, -1e+30  ;;  %v6854_v12 = vpack.c.bf16 %v5864_v24, %v5859_v30  ;;  %v6855_v29 = vld [vmem:[#allocation73_spill] sm:$0xff] }
 0x2dd   : > { %v2282_v47 = vsub.f32 %v2246_v7, %v6069_v5  ;;  %v2382_v16 = vsub.f32 %v2346_v20, %v6075_v25  ;;  %4497 = vrcp.f32 %v2478_v54  ;;  %vm2215_vm11 = vcmp.eq.s32.totalorder %v6855_v29, 1  ;;  %v6860_v29 = vld [vmem:[#allocation31_spill] sm:$0xff] }
 0x2de   : > { %2615 = vmatpush.bf16.msrb.mxu2 %v6851_v39  ;;  %v1150_v20 = vunpack.c.l.bf16 %v1118_v63  ;;  %v6856_v42 = vpack.c.bf16 %v5826_v38, %v5823_v9  ;;  %v1151_v39 = vunpack.c.h.bf16 %v1118_v63  ;;  %vm2216_vm12 = vcmp.eq.s32.totalorder %v6860_v29, 1 }
 0x2df   : > { %v4492_v58 = vpop.eup %4491  ;;  %v2433_v44 = vmul.f32 1.442695, %v2282_v47  ;;  %v2704_v8 = vsub.f32 %v2382_v16, %v2282_v47  ;;  %v6146_v21 = vpop.f32.mrf.mxu2 }
 0x2e0   : > { %v2541_v31 = vmul.f32 %v4492_v58, %v4490_v35  ;;  %v1756_v6 = vpop.f32.mrf.mxu0  ;;  %v6136_v35 = vadd.f32 %v2893_v10, %v6010_v45 }
 0x2e1   : > { %v4494_v3 = vpop.eup %4493  ;;  %4499 = vpow2.f32 %v2433_v44  ;;  %v2755_v57 = vmul.f32 1.442695, %v2704_v8  ;;  %v2005_v13 = vpop.f32.mrf.mxu1 }
 0x2e2   : > { %v4496_v60 = vpop.eup %4495  ;;  %v2799_v34 = vadd.f32 1.0, %v4494_v3  ;;  %v2055_v2 = vadd.f32 %v2005_v13, %v6853_v50  ;;  %v2315_v17 = vadd.f32 %v2005_v13, %v1756_v6  ;;  %2616 = vmatpush.bf16.msrb.mxu2 %v6854_v12  ;;  %v6150_v38 = vmul.f32 %v2541_v31, %v1150_v20  ;;  %v6152_v63 = vpop.f32.mrf.mxu3 }
 0x2e3   : > { %4501 = vpow2.f32 %v2755_v57  ;;  %v2894_v18 = vmul.f32 %v4496_v60, %v2862_v40  ;;  %v4498_v24 = vpop.eup %4497 }
 0x2e4   : > { %4503 = vrcp.f32 %v2799_v34  ;;  %v2247_v54 = vsel %vm2215_vm11, %v2055_v2, -1e+30  ;;  %v2347_v7 = vsel %vm2215_vm11, %v2315_v17, -1e+30  ;;  %v6858_v34 = vld [vmem:[#allocation45_spill] sm:$0xff]  ;;  %v6859_v17 = vpack.c.bf16 %v5788_v0, %v5785_v4 }
 0x2e5   : > { %v2283_v47 = vsub.f32 %v2247_v54, %v6069_v5  ;;  %v2383_v16 = vsub.f32 %v2347_v7, %v6075_v25  ;;  %v6139_v30 = vadd.f32 %v2894_v18, %v6037_v41  ;;  %4505 = vrcp.f32 %v2479_v32  ;;  %v6857_v41 = vld [vmem:[#allocation36_spill] sm:$0xff] }
 0x2e6   : > { %2617 = vmatpush.bf16.msrb.mxu2 %v6856_v42  ;;  %v2863_v40 = vsub.f32 %v6857_v41, %v6062_v15  ;;  %v2480_v32 = vadd.f32 1e-05, %v6087_v1 }
 0x2e7   : > { %v4500_v58 = vpop.eup %4499  ;;  %v2435_v44 = vmul.f32 1.442695, %v2283_v47  ;;  %v2705_v8 = vsub.f32 %v2383_v16, %v2283_v47 }
 0x2e8   : > { %v2542_v45 = vmul.f32 %v4500_v58, %v4498_v24  ;;  %v1758_v6 = vpop.f32.mrf.mxu0 }
 0x2e9   : > { %v4502_v10 = vpop.eup %4501  ;;  %4507 = vpow2.f32 %v2435_v44  ;;  %v2757_v57 = vmul.f32 1.442695, %v2705_v8  ;;  %v2007_v9 = vpop.f32.mrf.mxu1 }
 0x2ea   : > { %v4504_v13 = vpop.eup %4503  ;;  %v2800_v60 = vadd.f32 1.0, %v4502_v10  ;;  %v2056_v50 = vadd.f32 %v2007_v9, %v6858_v34  ;;  %v2316_v2 = vadd.f32 %v2007_v9, %v1758_v6  ;;  %2618 = vmatpush.bf16.msrb.mxu2 %v6859_v17  ;;  %v6158_v12 = vmul.f32 %v2542_v45, %v1151_v39  ;;  %v6861_v39 = vld [vmem:[#allocation39_spill] sm:$0xff]  ;;  %v1120_v10 = vld [vmem:[%s4734_s25 + $0x50] sm:$0xff]   ;;  %v6862_v6 = vld [vmem:[#allocation48_spill] sm:$0xff] }
 0x2eb   : > { %4509 = vpow2.f32 %v2757_v57  ;;  %v2895_v31 = vmul.f32 %v4504_v13, %v2863_v40  ;;  %v4506_v0 = vpop.eup %4505  ;;  %v2864_v58 = vsub.f32 %v6861_v39, %v6097_v51  ;;  %v6169_v40 = vpop.f32.mrf.mxu2  ;;  %v2481_v34 = vadd.f32 1e-05, %v6117_v48 }
 0x2ec   : > { %4511 = vrcp.f32 %v2800_v60  ;;  %v2248_v18 = vsel %vm2216_vm12, %v2056_v50, -1e+30  ;;  %v2348_v54 = vsel %vm2216_vm12, %v2316_v2, -1e+30  ;;  %v6863_v60 = vld [vmem:[#allocation24_spill] sm:$0xff]  ;;  %v6174_v2 = vpop.f32.mrf.mxu3  ;;  %v1153_v48 = vunpack.c.h.bf16 %v1120_v10 }
 0x2ed   : > { %v2284_v20 = vsub.f32 %v2248_v18, %v6069_v5  ;;  %v2384_v4 = vsub.f32 %v2348_v54, %v6075_v25  ;;  %4513 = vrcp.f32 %v2480_v32  ;;  %vm2217_vm13 = vcmp.eq.s32.totalorder %v6863_v60, 1  ;;  %v6866_v60 = vld [vmem:[#allocation72_spill] sm:$0xff] }
 0x2ee   : > { %v1152_v32 = vunpack.c.l.bf16 %v1120_v10  ;;  %vm2218_vm14 = vcmp.eq.s32.totalorder %v6866_v60, 1  ;;  %v6869_v60 = vld [vmem:[#allocation19_spill] sm:$0xff] }
 0x2ef   : > { %v4508_v47 = vpop.eup %4507  ;;  %v2437_v16 = vmul.f32 1.442695, %v2284_v20  ;;  %v2706_v24 = vsub.f32 %v2384_v4, %v2284_v20  ;;  %v6179_v20 = vadd.f32 %v2895_v31, %v6062_v15  ;;  %vm2219_vm15 = vcmp.eq.s32.totalorder %v6869_v60, 1 }
 0x2f0   : > { %v2543_v42 = vmul.f32 %v4508_v47, %v4506_v0  ;;  %v1761_v8 = vpop.f32.mrf.mxu0 }
 0x2f1   : > { %v4510_v1 = vpop.eup %4509  ;;  %4515 = vpow2.f32 %v2437_v16  ;;  %v2759_v44 = vmul.f32 1.442695, %v2706_v24  ;;  %v2010_v45 = vpop.f32.mrf.mxu1 }
 0x2f2   : > { %v4512_v41 = vpop.eup %4511  ;;  %v2801_v57 = vadd.f32 1.0, %v4510_v1  ;;  %v2057_v9 = vadd.f32 %v2010_v45, %v6862_v6  ;;  %v2317_v13 = vadd.f32 %v2010_v45, %v1761_v8 }
 0x2f3   : > { %4517 = vpow2.f32 %v2759_v44  ;;  %v2896_v50 = vmul.f32 %v4512_v41, %v2864_v58  ;;  %v4514_v0 = vpop.eup %4513  ;;  %v6864_v44 = vld [vmem:[#allocation42_spill] sm:$0xff] }
 0x2f4   : > { %4519 = vrcp.f32 %v2801_v57  ;;  %v2249_v17 = vsel %vm2217_vm13, %v2057_v9, -1e+30  ;;  %v2349_v29 = vsel %vm2217_vm13, %v2317_v13, -1e+30  ;;  %v2865_v8 = vsub.f32 %v6864_v44, %v6122_v62  ;;  %v6865_v57 = vld [vmem:[#allocation50_spill] sm:$0xff] }
 0x2f5   : > { %v2285_v18 = vsub.f32 %v2249_v17, %v6069_v5  ;;  %v2385_v54 = vsub.f32 %v2349_v29, %v6075_v25  ;;  %v6182_v4 = vadd.f32 %v2896_v50, %v6097_v51  ;;  %4521 = vrcp.f32 %v2481_v34  ;;  %v1542_v17 = vpop.f32.mrf.mxu2 }
 0x2f6   : > { %v6188_v51 = vmul.f32 %v2543_v42, %v1152_v32  ;;  %v2482_v34 = vadd.f32 1e-05, %v6146_v21 }
 0x2f7   : > { %v4516_v47 = vpop.eup %4515  ;;  %v2439_v16 = vmul.f32 1.442695, %v2285_v18  ;;  %v2707_v24 = vsub.f32 %v2385_v54, %v2285_v18 }
 0x2f8   : > { %v2544_v39 = vmul.f32 %v4516_v47, %v4514_v0  ;;  %v1763_v31 = vpop.f32.mrf.mxu0 }
 0x2f9   : > { %v4518_v58 = vpop.eup %4517  ;;  %4523 = vpow2.f32 %v2439_v16  ;;  %v2761_v15 = vmul.f32 1.442695, %v2707_v24  ;;  %v2012_v45 = vpop.f32.mrf.mxu1 }
 0x2fa   : > { %v4520_v41 = vpop.eup %4519  ;;  %v2802_v10 = vadd.f32 1.0, %v4518_v58  ;;  %v2058_v6 = vadd.f32 %v2012_v45, %v6865_v57  ;;  %v2318_v9 = vadd.f32 %v2012_v45, %v1763_v31  ;;  %v6191_v13 = vmul.f32 %v2544_v39, %v1153_v48  ;;  %v6199_v48 = vpop.f32.mrf.mxu3  ;;  %v6867_v58 = vld [vmem:[#allocation44_spill] sm:$0xff]  ;;  %v1122_v45 = vld [vmem:[%s4734_s25 + $0x58] sm:$0xff]   ;;  %v6868_v57 = vld [vmem:[#allocation53_spill] sm:$0xff] }
 0x2fb   : > { %4525 = vpow2.f32 %v2761_v15  ;;  %v2897_v50 = vmul.f32 %v4520_v41, %v2865_v8  ;;  %v4522_v0 = vpop.eup %4521  ;;  %v2866_v44 = vsub.f32 %v6867_v58, %v6152_v63 }
 0x2fc   : > { %4527 = vrcp.f32 %v2802_v10  ;;  %v2250_v29 = vsel %vm2218_vm14, %v2058_v6, -1e+30  ;;  %v2350_v18 = vsel %vm2218_vm14, %v2318_v9, -1e+30 }
 0x2fd   : > { %v2286_v32 = vsub.f32 %v2250_v29, %v6069_v5  ;;  %v2386_v54 = vsub.f32 %v2350_v18, %v6075_v25  ;;  %4529 = vrcp.f32 %v2482_v34  ;;  %v2483_v29 = vadd.f32 1e-05, %v6169_v40  ;;  %v6215_v58 = vpop.f32.mrf.mxu2 }
 0x2fe   : > { %v1155_v40 = vunpack.c.h.bf16 %v1122_v45 }
 0x2ff   : > { %v4524_v47 = vpop.eup %4523  ;;  %v2441_v16 = vmul.f32 1.442695, %v2286_v32  ;;  %v2708_v21 = vsub.f32 %v2386_v54, %v2286_v32  ;;  %v1154_v54 = vunpack.c.l.bf16 %v1122_v45 }
 0x300   : > { %v2545_v24 = vmul.f32 %v4524_v47, %v4522_v0  ;;  %v1766_v15 = vpop.f32.mrf.mxu0 }
 0x301   : > { %v4526_v39 = vpop.eup %4525  ;;  %4531 = vpow2.f32 %v2441_v16  ;;  %v2763_v8 = vmul.f32 1.442695, %v2708_v21  ;;  %v2015_v31 = vpop.f32.mrf.mxu1  ;;  %v6210_v16 = vadd.f32 %v2897_v50, %v6122_v62  ;;  %v6870_v62 = vld [vmem:[#allocation47_spill] sm:$0xff] }
 0x302   : > { %v4528_v41 = vpop.eup %4527  ;;  %v2803_v10 = vadd.f32 1.0, %v4526_v39  ;;  %v2059_v6 = vadd.f32 %v2015_v31, %v6868_v57  ;;  %v2319_v9 = vadd.f32 %v2015_v31, %v1766_v15  ;;  %v2867_v50 = vsub.f32 %v6870_v62, %v6174_v2  ;;  %v6874_v31 = vld [vmem:[#allocation59_spill] sm:$0xff] }
 0x303   : > { %4533 = vpow2.f32 %v2763_v8  ;;  %v2898_v34 = vmul.f32 %v4528_v41, %v2866_v44  ;;  %v4530_v39 = vpop.eup %4529  ;;  %v6219_v41 = vpop.f32.mrf.mxu3  ;;  %v6223_v60 = vmul.f32 %v2545_v24, %v1154_v54 }
 0x304   : > { %4535 = vrcp.f32 %v2803_v10  ;;  %v2251_v18 = vsel %vm2219_vm15, %v2059_v6, -1e+30  ;;  %v2351_v32 = vsel %vm2219_vm15, %v2319_v9, -1e+30 }
 0x305   : > { %v2287_v0 = vsub.f32 %v2251_v18, %v6069_v5  ;;  %v2387_v47 = vsub.f32 %v2351_v32, %v6075_v25  ;;  %v6213_v21 = vadd.f32 %v2898_v34, %v6152_v63  ;;  %4537 = vrcp.f32 %v2483_v29  ;;  %v6871_v18 = vld [vmem:[#allocation56_spill] sm:$0xff]  ;;  %v6872_v29 = vld [vmem:[#allocation67_spill] sm:$0xff] }
 0x306   : > { %vm2220_vm0 = vcmp.eq.s32.totalorder %v6872_v29, 1 }
 0x307   : > { %v4532_v8 = vpop.eup %4531  ;;  %v2443_v44 = vmul.f32 1.442695, %v2287_v0  ;;  %v2709_v15 = vsub.f32 %v2387_v47, %v2287_v0 }
 0x308   : > { %v2546_v10 = vmul.f32 %v4532_v8, %v4530_v39  ;;  %v1768_v6 = vpop.f32.mrf.mxu0  ;;  %v2484_v39 = vadd.f32 1e-05, %v1542_v17 }
 0x309   : > { %v4534_v57 = vpop.eup %4533  ;;  %4539 = vpow2.f32 %v2443_v44  ;;  %v2765_v63 = vmul.f32 1.442695, %v2709_v15  ;;  %v2017_v9 = vpop.f32.mrf.mxu1 }
 0x30a   : > { %v4536_v45 = vpop.eup %4535  ;;  %v2804_v34 = vadd.f32 1.0, %v4534_v57  ;;  %v2060_v32 = vadd.f32 %v2017_v9, %v6871_v18  ;;  %v2320_v0 = vadd.f32 %v2017_v9, %v1768_v6  ;;  %v6226_v47 = vmul.f32 %v2546_v10, %v1155_v40  ;;  %v1547_v9 = vpop.f32.mrf.mxu2 }
 0x30b   : > { %4541 = vpow2.f32 %v2765_v63  ;;  %v2899_v8 = vmul.f32 %v4536_v45, %v2867_v50  ;;  %v4538_v57 = vpop.eup %4537  ;;  %v6873_v50 = vld [vmem:[#allocation49_spill] sm:$0xff] }
 0x30c   : > { %4543 = vrcp.f32 %v2804_v34  ;;  %v2252_v62 = vsel %vm2220_vm0, %v2060_v32, -1e+30  ;;  %v2352_v44 = vsel %vm2220_vm0, %v2320_v0, -1e+30  ;;  %v2868_v45 = vsub.f32 %v6873_v50, %v6199_v48  ;;  %v1124_v0 = vld [vmem:[%s4734_s25 + $0x60] sm:$0xff]  }
 0x30d   : > { %v2288_v24 = vsub.f32 %v2252_v62, %v6069_v5  ;;  %v2388_v54 = vsub.f32 %v2352_v44, %v6075_v25  ;;  %4545 = vrcp.f32 %v2484_v39  ;;  %v6236_v62 = vpop.f32.mrf.mxu3  ;;  %v6243_v50 = vadd.f32 %v2899_v8, %v6174_v2 }
 0x30f   : > { %v4540_v6 = vpop.eup %4539  ;;  %v2445_v40 = vmul.f32 1.442695, %v2288_v24  ;;  %v2710_v10 = vsub.f32 %v2388_v54, %v2288_v24  ;;  %v6875_v24 = vld [vmem:[#allocation13_spill] sm:$0xff]  ;;  %6876 = vst [vmem:[#allocation6_spill] sm:$0xff] %v6243_v50 }
 0x310   : > { %v2547_v17 = vmul.f32 %v4540_v6, %v4538_v57  ;;  %v1771_v18 = vpop.f32.mrf.mxu0  ;;  %vm2221_vm1 = vcmp.eq.s32.totalorder %v6875_v24, 1  ;;  %v1156_v6 = vunpack.c.l.bf16 %v1124_v0 }
 0x311   : > { %v4542_v63 = vpop.eup %4541  ;;  %4547 = vpow2.f32 %v2445_v40  ;;  %v2767_v34 = vmul.f32 1.442695, %v2710_v10  ;;  %v2020_v32 = vpop.f32.mrf.mxu1 }
 0x312   : > { %v4544_v29 = vpop.eup %4543  ;;  %v2805_v44 = vadd.f32 1.0, %v4542_v63  ;;  %v2061_v1 = vadd.f32 %v2020_v32, %v6874_v31  ;;  %v2321_v3 = vadd.f32 %v2020_v32, %v1771_v18  ;;  %v1157_v18 = vunpack.c.h.bf16 %v1124_v0 }
 0x313   : > { %4549 = vpow2.f32 %v2767_v34  ;;  %v2900_v39 = vmul.f32 %v4544_v29, %v2868_v45  ;;  %v4546_v31 = vpop.eup %4545 }
 0x314   : > { %4551 = vrcp.f32 %v2805_v44  ;;  %v2253_v54 = vsel %vm2221_vm1, %v2061_v1, -1e+30  ;;  %v2353_v57 = vsel %vm2221_vm1, %v2321_v3, -1e+30  ;;  %v2485_v3 = vadd.f32 1e-05, %v6215_v58 }
 0x315   : > { %v2289_v40 = vsub.f32 %v2253_v54, %v6069_v5  ;;  %v2389_v10 = vsub.f32 %v2353_v57, %v6075_v25  ;;  %v6246_v63 = vadd.f32 %v2900_v39, %v6199_v48  ;;  %v6878_v44 = vld [vmem:[#allocation52_spill] sm:$0xff]  ;;  %v6253_v39 = vmul.f32 %v2547_v17, %v1156_v6  ;;  %v1550_v57 = vpop.f32.mrf.mxu2  ;;  %v6887_v6 = vld [vmem:[#allocation66_spill] sm:$0xff] }
 0x316   : > { %v2869_v54 = vsub.f32 %v6878_v44, %v6219_v41  ;;  %v6880_v58 = vld [vmem:[#allocation16_spill] sm:$0xff] }
 0x317   : > { %6877 = vst [vmem:[#allocation15_spill] sm:$0xff] %v6246_v63  ;;  %v4548_v32 = vpop.eup %4547  ;;  %v2447_v24 = vmul.f32 1.442695, %v2289_v40  ;;  %v2711_v34 = vsub.f32 %v2389_v10, %v2289_v40  ;;  %v6879_v40 = vld [vmem:[#allocation61_spill] sm:$0xff]  ;;  %vm2222_vm3 = vcmp.eq.s32.totalorder %v6880_v58, 1  ;;  %v6882_v58 = vld [vmem:[#allocation64_spill] sm:$0xff] }
 0x318   : > { %v2548_v45 = vmul.f32 %v4548_v32, %v4546_v31  ;;  %v1773_v8 = vpop.f32.mrf.mxu0  ;;  %v2486_v31 = vadd.f32 1e-05, %v1547_v9  ;;  %v1126_v9 = vld [vmem:[%s4734_s25 + $0x68] sm:$0xff]  }
 0x319   : > { %v4550_v29 = vpop.eup %4549  ;;  %4553 = vpow2.f32 %v2447_v24  ;;  %v2769_v2 = vmul.f32 1.442695, %v2711_v34  ;;  %v2022_v48 = vpop.f32.mrf.mxu1 }
 0x31a   : > { %v4552_v0 = vpop.eup %4551  ;;  %v2806_v53 = vadd.f32 1.0, %v4550_v29  ;;  %v2062_v10 = vadd.f32 %v2022_v48, %v6879_v40  ;;  %v2322_v56 = vadd.f32 %v2022_v48, %v1773_v8  ;;  %v6256_v1 = vmul.f32 %v2548_v45, %v1157_v18  ;;  %v6259_v24 = vpop.f32.mrf.mxu3 }
 0x31b   : > { %4555 = vpow2.f32 %v2769_v2  ;;  %v2901_v32 = vmul.f32 %v4552_v0, %v2869_v54  ;;  %v6881_v54 = vld [vmem:[#allocation55_spill] sm:$0xff] }
 0x31c   : > { %4557 = vrcp.f32 %v2806_v53  ;;  %v2254_v34 = vsel %vm2222_vm3, %v2062_v10, -1e+30  ;;  %v2354_v17 = vsel %vm2222_vm3, %v2322_v56, -1e+30  ;;  %v2870_v48 = vsub.f32 %v6881_v54, %v6236_v62 }
 0x31d   : > { %v2290_v29 = vsub.f32 %v2254_v34, %v6069_v5  ;;  %v2390_v44 = vsub.f32 %v2354_v17, %v6075_v25  ;;  %4559 = vrcp.f32 %v2485_v3  ;;  %v6883_v17 = vld [vmem:[#allocation57_spill] sm:$0xff]  ;;  %v1158_v3 = vunpack.c.l.bf16 %v1126_v9 }
 0x31e   : > { %4561 = vrcp.f32 %v2486_v31  ;;  %vm2223_vm4 = vcmp.eq.s32.totalorder %v6883_v17, 1 }
 0x31f   : > { %v4554_v18 = vpop.eup %4553  ;;  %v2449_v45 = vmul.f32 1.442695, %v2290_v29  ;;  %v2712_v8 = vsub.f32 %v2390_v44, %v2290_v29  ;;  %v1552_v44 = vpop.f32.mrf.mxu2 }
 0x320   : > { %v1776_v56 = vpop.f32.mrf.mxu0 }
 0x321   : > { %v4556_v2 = vpop.eup %4555  ;;  %4563 = vpow2.f32 %v2449_v45  ;;  %v2771_v53 = vmul.f32 1.442695, %v2712_v8  ;;  %v2025_v0 = vpop.f32.mrf.mxu1  ;;  %v6271_v45 = vadd.f32 %v2901_v32, %v6219_v41 }
 0x322   : > { %v4558_v40 = vpop.eup %4557  ;;  %v2807_v10 = vadd.f32 1.0, %v4556_v2  ;;  %v2063_v34 = vadd.f32 %v2025_v0, %v6882_v58  ;;  %v2323_v7 = vadd.f32 %v2025_v0, %v1776_v56  ;;  %v1159_v58 = vunpack.c.h.bf16 %v1126_v9 }
 0x323   : > { %4565 = vpow2.f32 %v2771_v53  ;;  %v2902_v29 = vmul.f32 %v4558_v40, %v2870_v48  ;;  %v4560_v31 = vpop.eup %4559  ;;  %6884 = vst [vmem:[#allocation11_spill] sm:$0xff] %v6271_v45  ;;  %v1684_v53 = vpop.f32.mrf.mxu3 }
 0x324   : > { %4567 = vrcp.f32 %v2807_v10  ;;  %v2255_v42 = vsel %vm2223_vm4, %v2063_v34, -1e+30  ;;  %v2355_v15 = vsel %vm2223_vm4, %v2323_v7, -1e+30  ;;  %v2549_v54 = vmul.f32 %v4560_v31, %v4554_v18  ;;  %v4562_v0 = vpop.eup %4561  ;;  %v6888_v7 = vld [vmem:[#allocation10_spill] sm:$0xff] }
 0x325   : > { %v2291_v8 = vsub.f32 %v2255_v42, %v6069_v5  ;;  %v2391_v2 = vsub.f32 %v2355_v15, %v6075_v25  ;;  %v6276_v56 = vadd.f32 %v2902_v29, %v6236_v62  ;;  %v2487_v10 = vadd.f32 1e-05, %v1550_v57  ;;  %v6886_v42 = vld [vmem:[#allocation58_spill] sm:$0xff] }
 0x326   : > { %v2871_v34 = vsub.f32 %v6886_v42, %v6259_v24  ;;  %v6282_v29 = vmul.f32 %v2549_v54, %v1158_v3  ;;  %vm2224_vm5 = vcmp.eq.s32.totalorder %v6888_v7, 1  ;;  %v2488_v57 = vadd.f32 1e-05, %v1552_v44  ;;  %v1128_v7 = vld [vmem:[%s4734_s25 + $0x70] sm:$0xff]  }
 0x327   : > { %6885 = vst [vmem:[#allocation3_spill] sm:$0xff] %v6276_v56  ;;  %v4564_v48 = vpop.eup %4563  ;;  %v2451_v40 = vmul.f32 1.442695, %v2291_v8  ;;  %v2713_v17 = vsub.f32 %v2391_v2, %v2291_v8 }
 0x328   : > { %v2550_v41 = vmul.f32 %v4564_v48, %v4562_v0  ;;  %v1778_v18 = vpop.f32.mrf.mxu0 }
 0x329   : > { %v4566_v32 = vpop.eup %4565  ;;  %4569 = vpow2.f32 %v2451_v40  ;;  %v2773_v15 = vmul.f32 1.442695, %v2713_v17  ;;  %v2027_v62 = vpop.f32.mrf.mxu1 }
 0x32a   : > { %v4568_v31 = vpop.eup %4567  ;;  %v2808_v9 = vadd.f32 1.0, %v4566_v32  ;;  %v2064_v50 = vadd.f32 %v2027_v62, %v6887_v6  ;;  %v2324_v8 = vadd.f32 %v2027_v62, %v1778_v18  ;;  %v6285_v2 = vmul.f32 %v2550_v41, %v1159_v58  ;;  %v1555_v6 = vpop.f32.mrf.mxu2 }
 0x32b   : > { %4571 = vpow2.f32 %v2773_v15  ;;  %v2903_v0 = vmul.f32 %v4568_v31, %v2871_v34  ;;  %v6292_v44 = vpop.f32.mrf.mxu3  ;;  %v6889_v34 = vld [vmem:[#allocation60_spill] sm:$0xff] }
 0x32c   : > { %4573 = vrcp.f32 %v2808_v9  ;;  %v2256_v48 = vsel %vm2224_vm5, %v2064_v50, -1e+30  ;;  %v2356_v40 = vsel %vm2224_vm5, %v2324_v8, -1e+30  ;;  %v2872_v50 = vsub.f32 %v6889_v34, %v1684_v53  ;;  %v6890_v8 = vld [vmem:[#allocation69_spill] sm:$0xff] }
 0x32d   : > { %v2292_v54 = vsub.f32 %v2256_v48, %v6069_v5  ;;  %v2392_v17 = vsub.f32 %v2356_v40, %v6075_v25  ;;  %4575 = vrcp.f32 %v2487_v10  ;;  %v6891_v40 = vld [vmem:[#allocation5_spill] sm:$0xff]  ;;  %v6299_v34 = vadd.f32 %v2903_v0, %v6259_v24  ;;  %v6895_v0 = vld [vmem:[#allocation63_spill] sm:$0xff] }
 0x32e   : > { %4577 = vrcp.f32 %v2488_v57  ;;  %vm2225_vm6 = vcmp.eq.s32.totalorder %v6891_v40, 1 }
 0x32f   : > { %v4570_v58 = vpop.eup %4569  ;;  %v2453_v41 = vmul.f32 1.442695, %v2292_v54  ;;  %v2714_v32 = vsub.f32 %v2392_v17, %v2292_v54  ;;  %v1160_v54 = vunpack.c.l.bf16 %v1128_v7  ;;  %6892 = vst [vmem:[#allocation9_spill] sm:$0xff] %v6299_v34 }
 0x330   : > { %v1781_v18 = vpop.f32.mrf.mxu0 }
 0x331   : > { %v4572_v42 = vpop.eup %4571  ;;  %4579 = vpow2.f32 %v2453_v41  ;;  %v2775_v15 = vmul.f32 1.442695, %v2714_v32  ;;  %v2030_v62 = vpop.f32.mrf.mxu1 }
 0x332   : > { %v4574_v31 = vpop.eup %4573  ;;  %v2809_v9 = vadd.f32 1.0, %v4572_v42  ;;  %v2065_v48 = vadd.f32 %v2030_v62, %v6890_v8  ;;  %v2325_v10 = vadd.f32 %v2030_v62, %v1781_v18  ;;  %v1161_v62 = vunpack.c.h.bf16 %v1128_v7 }
 0x333   : > { %4581 = vpow2.f32 %v2775_v15  ;;  %v2904_v57 = vmul.f32 %v4574_v31, %v2872_v50  ;;  %v4576_v17 = vpop.eup %4575  ;;  %v6894_v31 = vld [vmem:[#allocation54_spill] sm:$0xff] }
 0x334   : > { %4583 = vrcp.f32 %v2809_v9  ;;  %v2257_v3 = vsel %vm2225_vm6, %v2065_v48, -1e+30  ;;  %v2357_v45 = vsel %vm2225_vm6, %v2325_v10, -1e+30  ;;  %v2551_v42 = vmul.f32 %v4576_v17, %v4570_v58  ;;  %v4578_v18 = vpop.eup %4577  ;;  %v1557_v9 = vpop.f32.mrf.mxu2 }
 0x335   : > { %v2293_v41 = vsub.f32 %v2257_v3, %v6069_v5  ;;  %v2393_v32 = vsub.f32 %v2357_v45, %v6075_v25  ;;  %v6303_v56 = vadd.f32 %v2904_v57, %v1684_v53  ;;  %vm2226_vm2 = vcmp.eq.s32.totalorder %v6894_v31, 1  ;;  %v1689_v57 = vpop.f32.mrf.mxu3 }
 0x336   : > { %v2873_v3 = vsub.f32 %v6895_v0, %v6292_v44  ;;  %v6310_v40 = vmul.f32 %v2551_v42, %v1160_v54  ;;  %v6898_v0 = vld [vmem:[#allocation65_spill] sm:$0xff] }
 0x337   : > { %6893 = vst [vmem:[#allocation18_spill] sm:$0xff] %v6303_v56  ;;  %v4580_v8 = vpop.eup %4579  ;;  %v2715_v15 = vsub.f32 %v2393_v32, %v2293_v41  ;;  %v2455_v10 = vmul.f32 1.442695, %v2293_v41  ;;  %v6896_v32 = vld [vmem:[#allocation71_spill] sm:$0xff]  ;;  %v2489_v56 = vadd.f32 1e-05, %v1555_v6  ;;  %v2874_v31 = vsub.f32 %v6898_v0, %v1689_v57 }
 0x338   : > { %v2552_v48 = vmul.f32 %v4580_v8, %v4578_v18  ;;  %v1783_v58 = vpop.f32.mrf.mxu0  ;;  %v2490_v18 = vadd.f32 1e-05, %v1557_v9 }
 0x339   : > { %v4582_v24 = vpop.eup %4581  ;;  %v2777_v45 = vmul.f32 1.442695, %v2715_v15  ;;  %v2032_v53 = vpop.f32.mrf.mxu1 }
 0x33a   : > { %v4584_v7 = vpop.eup %4583  ;;  %v2810_v17 = vadd.f32 1.0, %v4582_v24  ;;  %v2066_v63 = vadd.f32 %v2032_v53, %v6896_v32  ;;  %v2326_v50 = vadd.f32 %v2032_v53, %v1783_v58  ;;  %v6313_v34 = vmul.f32 %v2552_v48, %v1161_v62 }
 0x33b   : > { %4585 = vpow2.f32 %v2777_v45  ;;  %v2905_v8 = vmul.f32 %v4584_v7, %v2873_v3  ;;  %v6897_v48 = vlaneseq  ;;  %v1130_v45 = vld [vmem:[%s4734_s25 + $0x78] sm:$0xff]  }
 0x33c   : > { %4587 = vrcp.f32 %v2810_v17  ;;  %v2258_v41 = vsel %vm2226_vm2, %v2066_v63, -1e+30  ;;  %v2358_v54 = vsel %vm2226_vm2, %v2326_v50, -1e+30  ;;  %v2601_v42 = vpack.c.bf16 %v6313_v34, %v6310_v40 }
 0x33d   : > { %4589 = vpow2.f32 %v2455_v10  ;;  %v2294_v15 = vsub.f32 %v2258_v41, %v6069_v5  ;;  %v2394_v62 = vsub.f32 %v2358_v54, %v6075_v25  ;;  %v6324_v24 = vshrl.u32 %v6897_v48, 7  ;;  %v1032_v5 = vld [vmem:[%s6899_s15] sm:$0x3]  ;;  %v1692_v53 = vpop.f32.mrf.mxu3 }
 0x33e   : > { %4591 = vrcp.f32 %v2489_v56  ;;  %v6335_v3 = vperm.slane %v1032_v5, 0  ;;  %v6343_v7 = vadd.f32 %v2905_v8, %v6292_v44  ;;  %v1163_v41 = vunpack.c.h.bf16 %v1130_v45 }
 0x33f   : > { %v2457_v6 = vmul.f32 1.442695, %v2294_v15  ;;  %v2716_v9 = vsub.f32 %v2394_v62, %v2294_v15  ;;  %4593 = vrcp.f32 %v2490_v18  ;;  %v6333_v56 = vadd.s32 8, %v6324_v24 }
 0x340   : > { %vm1044_vm7 = vcmp.eq.s32.totalorder %v6324_v24, %v6335_v3  ;;  %v1162_v18 = vunpack.c.l.bf16 %v1130_v45  ;;  %v4632_v15 = vmov 1.0|1.0  }
 0x341   : > { %v4586_v63 = vpop.eup %4585  ;;  %4595 = vpow2.f32 %v2457_v6  ;;  %v2779_v50 = vmul.f32 1.442695, %v2716_v9  ;;  %vm1046_vm8 = vcmp.eq.s32.totalorder %v6333_v56, %v6335_v3 }
 0x342   : > { %v4588_v34 = vpop.eup %4587  ;;  %v2811_v25 = vadd.f32 1.0, %v4586_v63  ;;  %vm4071_vm9 = vmpackc.low %vm1046_vm8, %vm1044_vm7  ;;  %v6900_v63 = vld [vmem:[#allocation68_spill] sm:$0xff] }
 0x343   : > { %v4590_v10 = vpop.eup %4589  ;;  %4597 = vpow2.f32 %v2779_v50  ;;  %v2906_v58 = vmul.f32 %v4588_v34, %v2874_v31  ;;  %4072 = vmatmul.msk.bf16.vlgmr.msrb.gmra.mxu2 %vm4071_vm9, %v4632_v15  ;;  %v2875_v0 = vsub.f32 %v6900_v63, %v1692_v53  ;;  %v6904_v63 = vpack.c.bf16 %v6226_v47, %v6223_v60 }
 0x344   : > { %4599 = vrcp.f32 %v2811_v25  ;;  %v4592_v40 = vpop.eup %4591  ;;  %v1036_v25 = vadd.s32 16, %v6324_v24  ;;  %v1040_v60 = vadd.s32 48, %v6324_v24  ;;  %v1041_v47 = vadd.s32 56, %v6324_v24 }
 0x345   : > { %v6345_v17 = vadd.f32 %v2906_v58, %v1689_v57  ;;  %v4594_v32 = vpop.eup %4593  ;;  %v2553_v54 = vmul.f32 %v4592_v40, %v4590_v10  ;;  %v1037_v10 = vadd.s32 24, %v6324_v24  ;;  %v1694_v45 = vpop.f32.mrf.mxu3  ;;  %v6901_v58 = vld [vmem:[#allocation70_spill] sm:$0xff] }
 0x346   : > { %vm1048_vm10 = vcmp.eq.s32.totalorder %v1036_v25, %v6335_v3  ;;  %v2876_v40 = vsub.f32 %v6901_v58, %v1694_v45  ;;  %vm1056_vm4 = vcmp.eq.s32.totalorder %v1040_v60, %v6335_v3  ;;  %vm1058_vm5 = vcmp.eq.s32.totalorder %v1041_v47, %v6335_v3  ;;  %v4608_v58 = vld [vmem:[%s4734_s25 + $0x18] sm:$0xff] }
 0x347   : > { %v4596_v62 = vpop.eup %4595  ;;  %v2955_v6 = vpack.c.bf16 %v6345_v17, %v6343_v7  ;;  %v2585_v8 = vmul.f32 %v2553_v54, %v1162_v18  ;;  %vm1050_vm11 = vcmp.eq.s32.totalorder %v1037_v10, %v6335_v3  ;;  %vm4077_vm6 = vmpackc.low %vm1058_vm5, %vm1056_vm4 }
 0x348   : > { %v2554_v9 = vmul.f32 %v4596_v62, %v4594_v32  ;;  %vm4073_vm12 = vmpackc.low %vm1050_vm11, %vm1048_vm10  ;;  %v6902_v62 = vpack.c.bf16 %v6285_v2, %v6282_v29  ;;  %v6905_v29 = vpack.c.bf16 %v6191_v13, %v6188_v51  ;;  %v1043_v2 = vperm.slane %v1032_v5, 1  ;;  %v4284_v51 = vld [vmem:[%s6720_s7 + $0x30] sm:$0xff]  ;;  %v4275_v5 = vld [vmem:[%s6719_s6 + $0x28] sm:$0xff] }
 0x349   : > { %v4598_v48 = vpop.eup %4597  ;;  %v6907_v13 = vpack.c.bf16 %v6109_v28, %v6103_v23  ;;  %v4276_v23 = vld [vmem:[%s6719_s6 + $0x30] sm:$0xff]  ;;  %v4282_v28 = vld [vmem:[%s6720_s7 + $0x20] sm:$0xff] }
 0x34a   : > { %v4600_v31 = vpop.eup %4599  ;;  %v2812_v44 = vadd.f32 1.0, %v4598_v48  ;;  %v2586_v57 = vmul.f32 %v2554_v9, %v1163_v41  ;;  %v6903_v48 = vpack.c.bf16 %v6256_v1, %v6253_v39  ;;  %v4285_v1 = vld [vmem:[%s6720_s7 + $0x38] sm:$0xff]  ;;  %v6906_v39 = vpack.c.bf16 %v6158_v12, %v6150_v38  ;;  %v4283_v12 = vld [vmem:[%s6720_s7 + $0x28] sm:$0xff] }
 0x34b   : > { %v2907_v50 = vmul.f32 %v4600_v31, %v2875_v0  ;;  %vm1045_vm0 = vcmp.eq.s32.totalorder %v6324_v24, %v1043_v2  ;;  %vm1047_vm1 = vcmp.eq.s32.totalorder %v6333_v56, %v1043_v2  ;;  %3037 = vmatpush.bf16.msra.mxu2 %v4285_v1  ;;  %v4277_v38 = vld [vmem:[%s6719_s6 + $0x38] sm:$0xff]  ;;  %vm1049_vm2 = vcmp.eq.s32.totalorder %v1036_v25, %v1043_v2  ;;  %v4274_v56 = vld [vmem:[%s6719_s6 + $0x20] sm:$0xff]  ;;  %v4279_v31 = vld [vmem:[%s6720_s7 + $0x8] sm:$0xff] }
 0x34c   : > { %4601 = vrcp.f32 %v2812_v44  ;;  %v2602_v34 = vpack.c.bf16 %v2586_v57, %v2585_v8  ;;  %vm4079_vm3 = vmpackc.low %vm1047_vm1, %vm1045_vm0  ;;  %vm1051_vm7 = vcmp.eq.s32.totalorder %v1037_v10, %v1043_v2  ;;  %v4273_v0 = vld [vmem:[%s6719_s6 + $0x18] sm:$0xff]  ;;  %v4272_v44 = vld [vmem:[%s6719_s6 + $0x10] sm:$0xff] }
 0x34d   : > { %v6356_v41 = vadd.f32 %v2907_v50, %v1692_v53  ;;  %v1039_v53 = vadd.s32 40, %v6324_v24  ;;  %vm4081_vm8 = vmpackc.low %vm1051_vm7, %vm1049_vm2  ;;  %v4278_v8 = vld [vmem:[%s6720_s7] sm:$0xff]  ;;  %v4271_v57 = vld [vmem:[%s6719_s6 + $0x8] sm:$0xff] }
 0x34e   : > { %2640 = vmatpush.bf16.msrb.mxu3 %v2602_v34  ;;  %v4605_v50 = vld [vmem:[%s4734_s25] sm:$0xff]  ;;  %v4606_v25 = vld [vmem:[%s4734_s25 + $0x8] sm:$0xff]  ;;  %v4607_v10 = vld [vmem:[%s4734_s25 + $0x10] sm:$0xff] }
 0x34f   : > { %vm1054_vm14 = vcmp.eq.s32.totalorder %v1039_v53, %v6335_v3  ;;  %3038 = vmatpush.bf16.msra.mxu2 %v4284_v51  ;;  %vm1055_vm10 = vcmp.eq.s32.totalorder %v1039_v53, %v1043_v2  ;;  %v4270_v34 = vld [vmem:[%s6719_s6] sm:$0xff]  ;;  %v4611_v53 = vld [vmem:[%s4734_s25 + $0x30] sm:$0xff]  ;;  %v6913_v51 = vpack.c.bf16 %v6001_v37, %v5996_v46  ;;  %v2606_v46 = vld [vmem:[%s6725_s12 + $0x18] sm:$0xff] }
 0x352   : > { %v4602_v32 = vpop.eup %4601  ;;  %2641 = vmatpush.bf16.msrb.mxu3 %v2601_v42  ;;  %v1038_v42 = vadd.s32 32, %v6324_v24  ;;  %v4281_v24 = vld [vmem:[%s6720_s7 + $0x18] sm:$0xff] }
 0x353   : > { %v2908_v18 = vmul.f32 %v4602_v32, %v2876_v40  ;;  %4074 = vmatmul.msk.bf16.gmra.mxu2 %vm4073_vm12, %v4632_v15  ;;  %vm1057_vm12 = vcmp.eq.s32.totalorder %v1040_v60, %v1043_v2  ;;  %v6909_v40 = vpack.c.bf16 %v5853_v33, %v5835_v19  ;;  %v4609_v32 = vld [vmem:[%s4734_s25 + $0x20] sm:$0xff]  ;;  %v6912_v33 = vpack.c.bf16 %v5971_v36, %v5968_v27 }
 0x354   : > { %vm1052_vm13 = vcmp.eq.s32.totalorder %v1038_v42, %v6335_v3  ;;  %3039 = vmatpush.bf16.msra.mxu2 %v4283_v12  ;;  %v4280_v3 = vld [vmem:[%s6720_s7 + $0x10] sm:$0xff]  ;;  %vm1053_vm9 = vcmp.eq.s32.totalorder %v1038_v42, %v1043_v2 }
 0x355   : > { %v6358_v54 = vadd.f32 %v2908_v18, %v1694_v45  ;;  %vm4075_vm15 = vmpackc.low %vm1054_vm14, %vm1052_vm13  ;;  %vm1059_vm13 = vcmp.eq.s32.totalorder %v1041_v47, %v1043_v2  ;;  %v6908_v45 = vpack.c.bf16 %v5813_v14, %v5799_v59  ;;  %v6911_v59 = vpack.c.bf16 %v5930_v11, %v5927_v61  ;;  %v4612_v61 = vld [vmem:[%s4734_s25 + $0x38] sm:$0xff]  ;;  %v2604_v11 = vld [vmem:[%s6725_s12 + $0x8] sm:$0xff] }
 0x356   : > { %2642 = vmatpush.bf16.msrb.mxu3 %v6902_v62  ;;  %vm4083_vm11 = vmpackc.low %vm1055_vm10, %vm1053_vm9  ;;  %v6910_v62 = vpack.c.bf16 %v5891_v43, %v5888_v52  ;;  %v2603_v52 = vld [vmem:[%s6725_s12] sm:$0xff] }
 0x357   : > { %v2956_v9 = vpack.c.bf16 %v6358_v54, %v6356_v41  ;;  %vm4085_vm14 = vmpackc.low %vm1059_vm13, %vm1057_vm12 }
 0x358   : > { %3040 = vmatpush.bf16.msra.mxu2 %v4282_v28 }
 0x35a   : > { %2643 = vmatpush.bf16.msrb.mxu3 %v6903_v48  ;;  %v4610_v48 = vld [vmem:[%s4734_s25 + $0x28] sm:$0xff] }
 0x35c   : > { %3041 = vmatpush.bf16.msra.mxu2 %v4281_v24 }
 0x35e   : > { %2644 = vmatpush.bf16.msrb.mxu3 %v6904_v63 }
 0x360   : > { %3042 = vmatpush.bf16.msra.mxu2 %v4280_v3  ;;  %v2607_v3 = vld [vmem:[%s6725_s12 + $0x20] sm:$0xff] }
 0x362   : > { %2645 = vmatpush.bf16.msrb.mxu3 %v6905_v29 }
 0x363   : > { %4076 = vmatmul.msk.bf16.gmra.mxu2 %vm4075_vm15, %v4632_v15 }
 0x364   : > { %3043 = vmatpush.bf16.msra.mxu2 %v4279_v31 }
 0x366   : > { %2646 = vmatpush.bf16.msrb.mxu3 %v6906_v39 }
 0x368   : > { %3044 = vmatpush.bf16.msra.mxu2 %v4278_v8 }
 0x36a   : > { %2647 = vmatpush.bf16.msrb.mxu3 %v6907_v13  ;;  %v2605_v13 = vld [vmem:[%s6725_s12 + $0x10] sm:$0xff] }
 0x36d   : > { %4080 = vmatmul.msk.bf16.vlgmr.msrb.gmra.mxu3 %vm4079_vm3, %v4632_v15 }
 0x36e   : > { %3174 = vmatpush.bf16.msra.mxu3 %v4277_v38 }
 0x372   : > { %3175 = vmatpush.bf16.msra.mxu3 %v4276_v23  ;;  %v4613_v23 = vld [vmem:[%s4734_s25 + $0x40] sm:$0xff] }
 0x373   : > { %4078 = vmatmul.msk.bf16.gmra.mxu2 %vm4077_vm6, %v4632_v15 }
 0x376   : > { %3176 = vmatpush.bf16.msra.mxu3 %v4275_v5 }
 0x37a   : > { %3177 = vmatpush.bf16.msra.mxu3 %v4274_v56  ;;  %v6914_v56 = vpack.c.bf16 %v6051_v55, %v6046_v22  ;;  %v2608_v22 = vld [vmem:[%s6725_s12 + $0x28] sm:$0xff] }
 0x37d   : > { %4082 = vmatmul.msk.bf16.gmra.mxu3 %vm4081_vm8, %v4632_v15 }
 0x37e   : > { %3178 = vmatpush.bf16.msra.mxu3 %v4273_v0 }
 0x382   : > { %3179 = vmatpush.bf16.msra.mxu3 %v4272_v44 }
 0x383   : > { %3045 = vmatmul.bf16.vlgmr.msra.gmra.mxu2 %v4605_v50 }
 0x386   : > { %3180 = vmatpush.bf16.msra.mxu3 %v4271_v57  ;;  %v4614_v57 = vld [vmem:[%s4734_s25 + $0x48] sm:$0xff] }
 0x38a   : > { %3181 = vmatpush.bf16.msra.mxu3 %v4270_v34 }
 0x38d   : > { %4084 = vmatmul.msk.bf16.gmra.mxu3 %vm4083_vm11, %v4632_v15 }
 0x393   : > { %3050 = vmatmul.bf16.gmra.mxu2 %v4606_v25 }
 0x39d   : > { %4086 = vmatmul.msk.bf16.gmra.mxu3 %vm4085_vm14, %v4632_v15 }
 0x3a3   : > { %3055 = vmatmul.bf16.gmra.mxu2 %v4607_v10  ;;  %v6915_v10 = vpack.c.bf16 %v6095_v26, %v6092_v49  ;;  %v2610_v49 = vld [vmem:[%s6725_s12 + $0x38] sm:$0xff] }
 0x3ad   : > { %3182 = vmatmul.bf16.vlgmr.msra.gmra.mxu3 %v6908_v45  ;;  %v2609_v45 = vld [vmem:[%s6725_s12 + $0x30] sm:$0xff] }
 0x3b3   : > { %3060 = vmatmul.bf16.gmra.mxu2 %v4608_v58 }
 0x3bd   : > { %3187 = vmatmul.bf16.gmra.mxu3 %v6909_v40 }
 0x3c3   : > { %3065 = vmatmul.bf16.gmra.mxu2 %v4609_v32 }
 0x3c6   : > { %v2620_v18 = vpop.f32.mrf.mxu2 }
 0x3cd   : > { %3192 = vmatmul.bf16.gmra.mxu3 %v6910_v62  ;;  %v4615_v62 = vld [vmem:[%s4734_s25 + $0x50] sm:$0xff] }
 0x3ce   : > { %v2622_v15 = vpop.f32.mrf.mxu2 }
 0x3d3   : > { %3070 = vmatmul.bf16.gmra.mxu2 %v4610_v48 }
 0x3d6   : > { %v2625_v42 = vpop.f32.mrf.mxu2 }
 0x3dd   : > { %3197 = vmatmul.bf16.gmra.mxu3 %v6911_v59  ;;  %v6916_v59 = vpack.c.bf16 %v6139_v30, %v6136_v35  ;;  %v6917_v35 = vpack.c.bf16 %v6182_v4, %v6179_v20  ;;  %v6918_v4 = vpack.c.bf16 %v6213_v21, %v6210_v16  ;;  %v6919_v21 = vld [vmem:[#allocation15_spill] sm:$0xff] }
 0x3de   : > { %v2627_v14 = vpop.f32.mrf.mxu2 }
 0x3e3   : > { %3075 = vmatmul.bf16.gmra.mxu2 %v4611_v53 }
 0x3e6   : > { %v2630_v19 = vpop.f32.mrf.mxu2 }
 0x3ed   : > { %3202 = vmatmul.bf16.gmra.mxu3 %v6912_v33 }
 0x3ee   : > { %v2632_v29 = vpop.f32.mrf.mxu2 }
 0x3f0   : > { %v2649_v43 = vpop.f32.mrf.mxu3 }
 0x3f1   : > { %v2650_v63 = vadd.f32 %v2649_v43, %v2620_v18  ;;  %v4616_v43 = vld [vmem:[%s4734_s25 + $0x58] sm:$0xff] }
 0x3f3   : > { %v2669_v2 = vadd.f32 %v2650_v63, %v2603_v52  ;;  %3080 = vmatmul.bf16.gmra.mxu2 %v4612_v61 }
 0x3f5   : > { %2677 = vst [vmem:[%s6725_s12] sm:$0xff] %v2669_v2 }
 0x3f6   : > { %v2635_v1 = vpop.f32.mrf.mxu2 }
 0x3f8   : > { %v2651_v27 = vpop.f32.mrf.mxu3 }
 0x3f9   : > { %v2652_v36 = vadd.f32 %v2651_v27, %v2622_v15 }
 0x3fb   : > { %v2670_v39 = vadd.f32 %v2652_v36, %v2604_v11 }
 0x3fd   : > { %2678 = vst [vmem:[%s6725_s12 + $0x8] sm:$0xff] %v2670_v39  ;;  %3207 = vmatmul.bf16.gmra.mxu3 %v6913_v51  ;;  %v4617_v51 = vld [vmem:[%s4734_s25 + $0x60] sm:$0xff] }
 0x3fe   : > { %v2637_v60 = vpop.f32.mrf.mxu2 }
 0x400   : > { %v2654_v38 = vpop.f32.mrf.mxu3 }
 0x401   : > { %v2655_v12 = vadd.f32 %v2654_v38, %v2625_v42 }
 0x403   : > { %v2671_v47 = vadd.f32 %v2655_v12, %v2605_v13  ;;  %3085 = vmatmul.bf16.gmra.mxu2 %v4613_v23 }
 0x405   : > { %2679 = vst [vmem:[%s6725_s12 + $0x10] sm:$0xff] %v2671_v47 }
 0x406   : > { %v3046_v5 = vpop.f32.mrf.mxu2 }
 0x408   : > { %v2656_v37 = vpop.f32.mrf.mxu3 }
 0x409   : > { %v2657_v28 = vadd.f32 %v2656_v37, %v2627_v14 }
 0x40b   : > { %v2672_v24 = vadd.f32 %v2657_v28, %v2606_v46 }
 0x40d   : > { %2680 = vst [vmem:[%s6725_s12 + $0x18] sm:$0xff] %v2672_v24  ;;  %3212 = vmatmul.bf16.gmra.mxu3 %v6914_v56 }
 0x40e   : > { %v3048_v44 = vpop.f32.mrf.mxu2 }
 0x410   : > { %v2659_v0 = vpop.f32.mrf.mxu3 }
 0x411   : > { %v2660_v31 = vadd.f32 %v2659_v0, %v2630_v19 }
 0x413   : > { %v2673_v8 = vadd.f32 %v2660_v31, %v2607_v3  ;;  %3090 = vmatmul.bf16.gmra.mxu2 %v4614_v57  ;;  %v6920_v31 = vld [vmem:[#allocation6_spill] sm:$0xff] }
 0x415   : > { %2681 = vst [vmem:[%s6725_s12 + $0x20] sm:$0xff] %v2673_v8 }
 0x416   : > { %v3051_v34 = vpop.f32.mrf.mxu2 }
 0x418   : > { %v2661_v55 = vpop.f32.mrf.mxu3 }
 0x419   : > { %v2662_v50 = vadd.f32 %v2661_v55, %v2632_v29 }
 0x41b   : > { %v2674_v25 = vadd.f32 %v2662_v50, %v2608_v22 }
 0x41d   : > { %2682 = vst [vmem:[%s6725_s12 + $0x28] sm:$0xff] %v2674_v25  ;;  %3217 = vmatmul.bf16.gmra.mxu3 %v6915_v10 }
 0x41e   : > { %v3053_v32 = vpop.f32.mrf.mxu2 }
 0x420   : > { %v2664_v58 = vpop.f32.mrf.mxu3 }
 0x421   : > { %v2665_v40 = vadd.f32 %v2664_v58, %v2635_v1 }
 0x423   : > { %v2675_v18 = vadd.f32 %v2665_v40, %v2609_v45  ;;  %3095 = vmatmul.bf16.gmra.mxu2 %v4615_v62 }
 0x425   : > { %2683 = vst [vmem:[%s6725_s12 + $0x30] sm:$0xff] %v2675_v18  ;;  %v6923_v18 = vld [vmem:[#allocation11_spill] sm:$0xff] }
 0x426   : > { %v3056_v48 = vpop.f32.mrf.mxu2 }
 0x428   : > { %v2666_v26 = vpop.f32.mrf.mxu3 }
 0x429   : > { %v2667_v15 = vadd.f32 %v2666_v26, %v2637_v60 }
 0x42b   : > { %v2676_v42 = vadd.f32 %v2667_v15, %v2610_v49 }
 0x42d   : > { %2684 = vst [vmem:[%s6725_s12 + $0x38] sm:$0xff] %v2676_v42  ;;  %3222 = vmatmul.bf16.gmra.mxu3 %v6916_v59  ;;  %v4620_v59 = vld [vmem:[%s4734_s25 + $0x78] sm:$0xff] }
 0x42e   : > { %v3058_v19 = vpop.f32.mrf.mxu2 }
 0x430   : > { %v3183_v14 = vpop.f32.mrf.mxu3 }
 0x431   : > { %v3184_v53 = vadd.f32 %v3183_v14, %v3046_v5  ;;  %v4618_v5 = vld [vmem:[%s4734_s25 + $0x68] sm:$0xff] }
 0x433   : > { %vm3263_vm15 = vcmp.ge.f32.partialorder %v3184_v53, 0.0  ;;  %v3295_v33 = vmul.f32 0.01, %v3184_v53  ;;  %3100 = vmatmul.bf16.gmra.mxu2 %v4616_v43  ;;  %v6926_v43 = vld [vmem:[#allocation9_spill] sm:$0xff] }
 0x435   : > { %v3327_v52 = vsel %vm3263_vm15, %v3184_v53, %v3295_v33 }
 0x436   : > { %3359 = vst [vmem:[%s4739_s14] sm:$0xff] %v3327_v52  ;;  %v3061_v2 = vpop.f32.mrf.mxu2  ;;  %v6925_v52 = vld [vmem:[#allocation18_spill] sm:$0xff] }
 0x438   : > { %v3185_v63 = vpop.f32.mrf.mxu3 }
 0x439   : > { %v3186_v29 = vadd.f32 %v3185_v63, %v3048_v44  ;;  %v6921_v44 = vpack.c.bf16 %v6919_v21, %v6920_v31  ;;  %v6927_v63 = vpack.c.bf16 %v6925_v52, %v6926_v43 }
 0x43b   : > { %vm3264_vm0 = vcmp.ge.f32.partialorder %v3186_v29, 0.0  ;;  %v3296_v61 = vmul.f32 0.01, %v3186_v29 }
 0x43d   : > { %v3328_v11 = vsel %vm3264_vm0, %v3186_v29, %v3296_v61  ;;  %3227 = vmatmul.bf16.gmra.mxu3 %v6917_v35 }
 0x43e   : > { %3360 = vst [vmem:[%s4739_s14 + $0x8] sm:$0xff] %v3328_v11  ;;  %v3063_v36 = vpop.f32.mrf.mxu2 }
 0x440   : > { %v3188_v30 = vpop.f32.mrf.mxu3 }
 0x441   : > { %v3189_v27 = vadd.f32 %v3188_v30, %v3051_v34  ;;  %v4619_v34 = vld [vmem:[%s4734_s25 + $0x70] sm:$0xff] }
 0x443   : > { %vm3265_vm1 = vcmp.ge.f32.partialorder %v3189_v27, 0.0  ;;  %v3297_v1 = vmul.f32 0.01, %v3189_v27  ;;  %3105 = vmatmul.bf16.gmra.mxu2 %v4617_v51 }
 0x445   : > { %v3329_v39 = vsel %vm3265_vm1, %v3189_v27, %v3297_v1 }
 0x446   : > { %3361 = vst [vmem:[%s4739_s14 + $0x10] sm:$0xff] %v3329_v39  ;;  %v3066_v12 = vpop.f32.mrf.mxu2 }
 0x448   : > { %v3190_v13 = vpop.f32.mrf.mxu3 }
 0x449   : > { %v3191_v38 = vadd.f32 %v3190_v13, %v3053_v32  ;;  %v6922_v32 = vld [vmem:[#allocation3_spill] sm:$0xff] }
 0x44a   : > { %v6924_v62 = vpack.c.bf16 %v6922_v32, %v6923_v18 }
 0x44b   : > { %vm3266_vm3 = vcmp.ge.f32.partialorder %v3191_v38, 0.0  ;;  %v3298_v60 = vmul.f32 0.01, %v3191_v38 }
 0x44d   : > { %v3330_v20 = vsel %vm3266_vm3, %v3191_v38, %v3298_v60  ;;  %3232 = vmatmul.bf16.gmra.mxu3 %v6918_v4 }
 0x44e   : > { %3362 = vst [vmem:[%s4739_s14 + $0x18] sm:$0xff] %v3330_v20  ;;  %v3068_v46 = vpop.f32.mrf.mxu2 }
 0x450   : > { %v3193_v47 = vpop.f32.mrf.mxu3 }
 0x451   : > { %v3194_v23 = vadd.f32 %v3193_v47, %v3056_v48 }
 0x453   : > { %vm3267_vm4 = vcmp.ge.f32.partialorder %v3194_v23, 0.0  ;;  %v3299_v37 = vmul.f32 0.01, %v3194_v23  ;;  %3110 = vmatmul.bf16.gmra.mxu2 %v4618_v5 }
 0x455   : > { %v3331_v28 = vsel %vm3267_vm4, %v3194_v23, %v3299_v37 }
 0x456   : > { %3363 = vst [vmem:[%s4739_s14 + $0x20] sm:$0xff] %v3331_v28  ;;  %v3071_v3 = vpop.f32.mrf.mxu2 }
 0x458   : > { %v3195_v24 = vpop.f32.mrf.mxu3 }
 0x459   : > { %v3196_v56 = vadd.f32 %v3195_v24, %v3058_v19 }
 0x45b   : > { %vm3268_vm5 = vcmp.ge.f32.partialorder %v3196_v56, 0.0  ;;  %v3300_v0 = vmul.f32 0.01, %v3196_v56 }
 0x45d   : > { %v3332_v16 = vsel %vm3268_vm5, %v3196_v56, %v3300_v0  ;;  %3237 = vmatmul.bf16.gmra.mxu3 %v6921_v44 }
 0x45e   : > { %3364 = vst [vmem:[%s4739_s14 + $0x28] sm:$0xff] %v3332_v16  ;;  %v3073_v22 = vpop.f32.mrf.mxu2 }
 0x460   : > { %v3198_v8 = vpop.f32.mrf.mxu3 }
 0x461   : > { %v3199_v57 = vadd.f32 %v3198_v8, %v3061_v2 }
 0x463   : > { %vm3269_vm6 = vcmp.ge.f32.partialorder %v3199_v57, 0.0  ;;  %v3301_v55 = vmul.f32 0.01, %v3199_v57  ;;  %3115 = vmatmul.bf16.gmra.mxu2 %v4619_v34 }
 0x465   : > { %v3333_v50 = vsel %vm3269_vm6, %v3199_v57, %v3301_v55 }
 0x466   : > { %3365 = vst [vmem:[%s4739_s14 + $0x30] sm:$0xff] %v3333_v50  ;;  %v3076_v45 = vpop.f32.mrf.mxu2 }
 0x468   : > { %v3200_v25 = vpop.f32.mrf.mxu3 }
 0x469   : > { %v3201_v10 = vadd.f32 %v3200_v25, %v3063_v36 }
 0x46b   : > { %vm3270_vm2 = vcmp.ge.f32.partialorder %v3201_v10, 0.0  ;;  %v3302_v58 = vmul.f32 0.01, %v3201_v10 }
 0x46d   : > { %v3334_v40 = vsel %vm3270_vm2, %v3201_v10, %v3302_v58  ;;  %3242 = vmatmul.bf16.gmra.mxu3 %v6924_v62 }
 0x46e   : > { %3366 = vst [vmem:[%s4739_s14 + $0x38] sm:$0xff] %v3334_v40  ;;  %v3078_v48 = vpop.f32.mrf.mxu2 }
 0x470   : > { %v3203_v49 = vpop.f32.mrf.mxu3 }
 0x471   : > { %v3204_v26 = vadd.f32 %v3203_v49, %v3066_v12 }
 0x473   : > { %vm3271_vm7 = vcmp.ge.f32.partialorder %v3204_v26, 0.0  ;;  %v3303_v15 = vmul.f32 0.01, %v3204_v26  ;;  %3120 = vmatmul.bf16.gmra.mxu2 %v4620_v59 }
 0x475   : > { %v3335_v42 = vsel %vm3271_vm7, %v3204_v26, %v3303_v15 }
 0x476   : > { %3367 = vst [vmem:[%s4739_s14 + $0x40] sm:$0xff] %v3335_v42  ;;  %v3081_v29 = vpop.f32.mrf.mxu2 }
 0x478   : > { %v3205_v14 = vpop.f32.mrf.mxu3 }
 0x479   : > { %v3206_v53 = vadd.f32 %v3205_v14, %v3068_v46 }
 0x47b   : > { %vm3272_vm8 = vcmp.ge.f32.partialorder %v3206_v53, 0.0  ;;  %v3304_v19 = vmul.f32 0.01, %v3206_v53 }
 0x47d   : > { %v3336_v33 = vsel %vm3272_vm8, %v3206_v53, %v3304_v19  ;;  %3247 = vmatmul.bf16.gmra.mxu3 %v6927_v63 }
 0x47e   : > { %3368 = vst [vmem:[%s4739_s14 + $0x48] sm:$0xff] %v3336_v33  ;;  %v3083_v27 = vpop.f32.mrf.mxu2 }
 0x480   : > { %v3208_v2 = vpop.f32.mrf.mxu3 }
 0x481   : > { %v3209_v61 = vadd.f32 %v3208_v2, %v3071_v3 }
 0x483   : > { %vm3273_vm9 = vcmp.ge.f32.partialorder %v3209_v61, 0.0  ;;  %v3305_v11 = vmul.f32 0.01, %v3209_v61 }
 0x485   : > { %v3337_v35 = vsel %vm3273_vm9, %v3209_v61, %v3305_v11 }
 0x486   : > { %3369 = vst [vmem:[%s4739_s14 + $0x50] sm:$0xff] %v3337_v35  ;;  %v3086_v38 = vpop.f32.mrf.mxu2 }
 0x488   : > { %v3210_v30 = vpop.f32.mrf.mxu3 }
 0x489   : > { %v3211_v36 = vadd.f32 %v3210_v30, %v3073_v22 }
 0x48b   : > { %vm3274_vm10 = vcmp.ge.f32.partialorder %v3211_v36, 0.0  ;;  %v3306_v1 = vmul.f32 0.01, %v3211_v36 }
 0x48d   : > { %v3338_v39 = vsel %vm3274_vm10, %v3211_v36, %v3306_v1  ;;  %3252 = vmatmul.bf16.gmra.mxu3 %v2955_v6 }
 0x48e   : > { %3370 = vst [vmem:[%s4739_s14 + $0x58] sm:$0xff] %v3338_v39  ;;  %v3088_v23 = vpop.f32.mrf.mxu2 }
 0x490   : > { %v3213_v51 = vpop.f32.mrf.mxu3 }
 0x491   : > { %v3214_v13 = vadd.f32 %v3213_v51, %v3076_v45 }
 0x493   : > { %vm3275_vm11 = vcmp.ge.f32.partialorder %v3214_v13, 0.0  ;;  %v3307_v12 = vmul.f32 0.01, %v3214_v13 }
 0x495   : > { %v3339_v60 = vsel %vm3275_vm11, %v3214_v13, %v3307_v12 }
 0x496   : > { %3371 = vst [vmem:[%s4739_s14 + $0x60] sm:$0xff] %v3339_v60  ;;  %v3091_v28 = vpop.f32.mrf.mxu2 }
 0x498   : > { %v3215_v20 = vpop.f32.mrf.mxu3 }
 0x499   : > { %v3216_v4 = vadd.f32 %v3215_v20, %v3078_v48 }
 0x49b   : > { %vm3276_vm12 = vcmp.ge.f32.partialorder %v3216_v4, 0.0  ;;  %v3308_v47 = vmul.f32 0.01, %v3216_v4 }
 0x49d   : > { %v3340_v46 = vsel %vm3276_vm12, %v3216_v4, %v3308_v47  ;;  %3257 = vmatmul.bf16.gmra.mxu3 %v2956_v9 }
 0x49e   : > { %3372 = vst [vmem:[%s4739_s14 + $0x68] sm:$0xff] %v3340_v46  ;;  %v3093_v16 = vpop.f32.mrf.mxu2 }
 0x4a0   : > { %v3218_v7 = vpop.f32.mrf.mxu3 }
 0x4a1   : > { %v3219_v17 = vadd.f32 %v3218_v7, %v3081_v29 }
 0x4a3   : > { %vm3277_vm13 = vcmp.ge.f32.partialorder %v3219_v17, 0.0  ;;  %v3309_v6 = vmul.f32 0.01, %v3219_v17 }
 0x4a5   : > { %v3341_v37 = vsel %vm3277_vm13, %v3219_v17, %v3309_v6 }
 0x4a6   : > { %3373 = vst [vmem:[%s4739_s14 + $0x70] sm:$0xff] %v3341_v37  ;;  %v3096_v44 = vpop.f32.mrf.mxu2 }
 0x4a8   : > { %v3220_v5 = vpop.f32.mrf.mxu3 }
 0x4a9   : > { %v3221_v24 = vadd.f32 %v3220_v5, %v3083_v27 }
 0x4ab   : > { %vm3278_vm14 = vcmp.ge.f32.partialorder %v3221_v24, 0.0  ;;  %v3310_v56 = vmul.f32 0.01, %v3221_v24 }
 0x4ad   : > { %v3342_v3 = vsel %vm3278_vm14, %v3221_v24, %v3310_v56 }
 0x4ae   : > { %3374 = vst [vmem:[%s4739_s14 + $0x78] sm:$0xff] %v3342_v3  ;;  %v3098_v34 = vpop.f32.mrf.mxu2 }
 0x4b0   : > { %v3223_v0 = vpop.f32.mrf.mxu3 }
 0x4b1   : > { %v3224_v41 = vadd.f32 %v3223_v0, %v3086_v38 }
 0x4b3   : > { %vm3279_vm15 = vcmp.ge.f32.partialorder %v3224_v41, 0.0  ;;  %v3311_v54 = vmul.f32 0.01, %v3224_v41 }
 0x4b5   : > { %v3343_v9 = vsel %vm3279_vm15, %v3224_v41, %v3311_v54 }
 0x4b6   : > { %3375 = vst [vmem:[%s4739_s14 + $0x80] sm:$0xff] %v3343_v9  ;;  %v3101_v32 = vpop.f32.mrf.mxu2 }
 0x4b8   : > { %v3225_v21 = vpop.f32.mrf.mxu3 }
 0x4b9   : > { %v3226_v31 = vadd.f32 %v3225_v21, %v3088_v23 }
 0x4bb   : > { %vm3280_vm0 = vcmp.ge.f32.partialorder %v3226_v31, 0.0  ;;  %v3312_v8 = vmul.f32 0.01, %v3226_v31 }
 0x4bd   : > { %v3344_v57 = vsel %vm3280_vm0, %v3226_v31, %v3312_v8 }
 0x4be   : > { %3376 = vst [vmem:[%s4739_s14 + $0x88] sm:$0xff] %v3344_v57  ;;  %v3103_v48 = vpop.f32.mrf.mxu2 }
 0x4c0   : > { %v3228_v22 = vpop.f32.mrf.mxu3 }
 0x4c1   : > { %v3229_v55 = vadd.f32 %v3228_v22, %v3091_v28 }
 0x4c3   : > { %vm3281_vm1 = vcmp.ge.f32.partialorder %v3229_v55, 0.0  ;;  %v3313_v50 = vmul.f32 0.01, %v3229_v55 }
 0x4c5   : > { %v3345_v25 = vsel %vm3281_vm1, %v3229_v55, %v3313_v50 }
 0x4c6   : > { %3377 = vst [vmem:[%s4739_s14 + $0x90] sm:$0xff] %v3345_v25  ;;  %v3106_v33 = vpop.f32.mrf.mxu2 }
 0x4c8   : > { %v3230_v10 = vpop.f32.mrf.mxu3 }
 0x4c9   : > { %v3231_v45 = vadd.f32 %v3230_v10, %v3093_v16 }
 0x4cb   : > { %vm3282_vm3 = vcmp.ge.f32.partialorder %v3231_v45, 0.0  ;;  %v3314_v58 = vmul.f32 0.01, %v3231_v45 }
 0x4cd   : > { %v3346_v40 = vsel %vm3282_vm3, %v3231_v45, %v3314_v58 }
 0x4ce   : > { %3378 = vst [vmem:[%s4739_s14 + $0x98] sm:$0xff] %v3346_v40  ;;  %v3108_v61 = vpop.f32.mrf.mxu2 }
 0x4d0   : > { %v3233_v18 = vpop.f32.mrf.mxu3 }
 0x4d1   : > { %v3234_v62 = vadd.f32 %v3233_v18, %v3096_v44 }
 0x4d3   : > { %vm3283_vm4 = vcmp.ge.f32.partialorder %v3234_v62, 0.0  ;;  %v3315_v49 = vmul.f32 0.01, %v3234_v62 }
 0x4d5   : > { %v3347_v26 = vsel %vm3283_vm4, %v3234_v62, %v3315_v49 }
 0x4d6   : > { %3379 = vst [vmem:[%s4739_s14 + $0xa0] sm:$0xff] %v3347_v26  ;;  %v3111_v1 = vpop.f32.mrf.mxu2 }
 0x4d8   : > { %v3235_v15 = vpop.f32.mrf.mxu3 }
 0x4d9   : > { %v3236_v42 = vadd.f32 %v3235_v15, %v3098_v34 }
 0x4db   : > { %vm3284_vm5 = vcmp.ge.f32.partialorder %v3236_v42, 0.0  ;;  %v3316_v59 = vmul.f32 0.01, %v3236_v42 }
 0x4dd   : > { %v3348_v14 = vsel %vm3284_vm5, %v3236_v42, %v3316_v59 }
 0x4de   : > { %3380 = vst [vmem:[%s4739_s14 + $0xa8] sm:$0xff] %v3348_v14  ;;  %v3113_v60 = vpop.f32.mrf.mxu2 }
 0x4e0   : > { %v3238_v53 = vpop.f32.mrf.mxu3 }
 0x4e1   : > { %v3239_v19 = vadd.f32 %v3238_v53, %v3101_v32 }
 0x4e3   : > { %vm3285_vm6 = vcmp.ge.f32.partialorder %v3239_v19, 0.0  ;;  %v3317_v52 = vmul.f32 0.01, %v3239_v19 }
 0x4e5   : > { %v3349_v43 = vsel %vm3285_vm6, %v3239_v19, %v3317_v52 }
 0x4e6   : > { %3381 = vst [vmem:[%s4739_s14 + $0xb0] sm:$0xff] %v3349_v43  ;;  %v3116_v7 = vpop.f32.mrf.mxu2 }
 0x4e8   : > { %v3240_v63 = vpop.f32.mrf.mxu3 }
 0x4e9   : > { %v3241_v29 = vadd.f32 %v3240_v63, %v3103_v48 }
 0x4eb   : > { %vm3286_vm2 = vcmp.ge.f32.partialorder %v3241_v29, 0.0  ;;  %v3318_v2 = vmul.f32 0.01, %v3241_v29 }
 0x4ed   : > { %v3350_v11 = vsel %vm3286_vm2, %v3241_v29, %v3318_v2 }
 0x4ee   : > { %3382 = vst [vmem:[%s4739_s14 + $0xb8] sm:$0xff] %v3350_v11  ;;  %v3118_v24 = vpop.f32.mrf.mxu2 }
 0x4f0   : > { %v3243_v35 = vpop.f32.mrf.mxu3 }
 0x4f1   : > { %v3244_v30 = vadd.f32 %v3243_v35, %v3106_v33 }
 0x4f3   : > { %vm3287_vm7 = vcmp.ge.f32.partialorder %v3244_v30, 0.0  ;;  %v3319_v27 = vmul.f32 0.01, %v3244_v30 }
 0x4f5   : > { %v3351_v36 = vsel %vm3287_vm7, %v3244_v30, %v3319_v27 }
 0x4f6   : > { %3383 = vst [vmem:[%s4739_s14 + $0xc0] sm:$0xff] %v3351_v36  ;;  %v3121_v54 = vpop.f32.mrf.mxu2 }
 0x4f8   : > { %v3245_v39 = vpop.f32.mrf.mxu3 }
 0x4f9   : > { %v3246_v51 = vadd.f32 %v3245_v39, %v3108_v61 }
 0x4fb   : > { %vm3288_vm8 = vcmp.ge.f32.partialorder %v3246_v51, 0.0  ;;  %v3320_v13 = vmul.f32 0.01, %v3246_v51 }
 0x4fd   : > { %v3352_v38 = vsel %vm3288_vm8, %v3246_v51, %v3320_v13 }
 0x4fe   : > { %3384 = vst [vmem:[%s4739_s14 + $0xc8] sm:$0xff] %v3352_v38  ;;  %v3123_v8 = vpop.f32.mrf.mxu2 }
 0x500   : > { %v3248_v12 = vpop.f32.mrf.mxu3 }
 0x501   : > { %v3249_v20 = vadd.f32 %v3248_v12, %v3111_v1 }
 0x503   : > { %vm3289_vm9 = vcmp.ge.f32.partialorder %v3249_v20, 0.0  ;;  %v3321_v4 = vmul.f32 0.01, %v3249_v20 }
 0x505   : > { %v3353_v47 = vsel %vm3289_vm9, %v3249_v20, %v3321_v4 }
 0x506   : > { %3385 = vst [vmem:[%s4739_s14 + $0xd0] sm:$0xff] %v3353_v47 }
 0x508   : > { %v3250_v23 = vpop.f32.mrf.mxu3 }
 0x509   : > { %v3251_v46 = vadd.f32 %v3250_v23, %v3113_v60 }
 0x50b   : > { %vm3290_vm10 = vcmp.ge.f32.partialorder %v3251_v46, 0.0  ;;  %v3322_v17 = vmul.f32 0.01, %v3251_v46 }
 0x50d   : > { %v3354_v6 = vsel %vm3290_vm10, %v3251_v46, %v3322_v17 }
 0x50e   : > { %3386 = vst [vmem:[%s4739_s14 + $0xd8] sm:$0xff] %v3354_v6 }
 0x510   : > { %v3253_v37 = vpop.f32.mrf.mxu3 }
 0x511   : > { %v3254_v28 = vadd.f32 %v3253_v37, %v3116_v7 }
 0x513   : > { %vm3291_vm11 = vcmp.ge.f32.partialorder %v3254_v28, 0.0  ;;  %v3323_v5 = vmul.f32 0.01, %v3254_v28 }
 0x515   : > { %v3355_v56 = vsel %vm3291_vm11, %v3254_v28, %v3323_v5 }
 0x516   : > { %3387 = vst [vmem:[%s4739_s14 + $0xe0] sm:$0xff] %v3355_v56 }
 0x518   : > { %v3255_v3 = vpop.f32.mrf.mxu3 }
 0x519   : > { %v3256_v0 = vadd.f32 %v3255_v3, %v3118_v24 }
 0x51b   : > { %vm3292_vm12 = vcmp.ge.f32.partialorder %v3256_v0, 0.0  ;;  %v3324_v16 = vmul.f32 0.01, %v3256_v0 }
 0x51d   : > { %v3356_v41 = vsel %vm3292_vm12, %v3256_v0, %v3324_v16 }
 0x51e   : > { %3388 = vst [vmem:[%s4739_s14 + $0xe8] sm:$0xff] %v3356_v41 }
 0x520   : > { %v3258_v9 = vpop.f32.mrf.mxu3 }
 0x521   : > { %v3259_v21 = vadd.f32 %v3258_v9, %v3121_v54 }
 0x523   : > { %vm3293_vm13 = vcmp.ge.f32.partialorder %v3259_v21, 0.0  ;;  %v3325_v31 = vmul.f32 0.01, %v3259_v21 }
 0x525   : > { %v3357_v44 = vsel %vm3293_vm13, %v3259_v21, %v3325_v31 }
 0x526   : > { %3389 = vst [vmem:[%s4739_s14 + $0xf0] sm:$0xff] %v3357_v44 }
 0x528   : > { %v3260_v57 = vpop.f32.mrf.mxu3 }
 0x529   : > { %v3261_v22 = vadd.f32 %v3260_v57, %v3123_v8 }
 0x52a   : > { %3394 = sbr.rel (%p4151_p6) target bundleno = 1522 (0x5f2), region = 76 }
 0x52b   : > { %vm3294_vm14 = vcmp.ge.f32.partialorder %v3261_v22, 0.0  ;;  %v3326_v55 = vmul.f32 0.01, %v3261_v22 }
 0x52d   : > { %v3358_v50 = vsel %vm3294_vm14, %v3261_v22, %v3326_v55 }
 0x52e   : > { %3390 = vst [vmem:[%s4739_s14 + $0xf8] sm:$0xff] %v3358_v50 }
 0x52f   : > { %v4305_v34 = vld [vmem:[%s6722_s9 + $0x38] sm:$0xff]  ;;  %v4304_v10 = vld [vmem:[%s6722_s9 + $0x30] sm:$0xff]  ;;  %v4303_v58 = vld [vmem:[%s6722_s9 + $0x28] sm:$0xff] }
 0x530   : > { %v4297_v25 = vld [vmem:[%s6928_s21 + $0x38] sm:$0xff]  ;;  %3519 = vmatpush.bf16.msra.mxu0 %v4305_v34  ;;  %4314 = vmatpush.bf16.msra.mxu2 %v4305_v34  ;;  %v4296_v45 = vld [vmem:[%s6928_s21 + $0x30] sm:$0xff]  ;;  %v4295_v40 = vld [vmem:[%s6928_s21 + $0x28] sm:$0xff] }
 0x531   : > { %3596 = vmatpush.bf16.msra.mxu1 %v4297_v25  ;;  %4322 = vmatpush.bf16.msra.mxu3 %v4297_v25  ;;  %v4302_v32 = vld [vmem:[%s6722_s9 + $0x20] sm:$0xff]  ;;  %v4301_v62 = vld [vmem:[%s6722_s9 + $0x18] sm:$0xff]  ;;  %v4300_v26 = vld [vmem:[%s6722_s9 + $0x10] sm:$0xff] }
 0x532   : > { %v4294_v18 = vld [vmem:[%s6928_s21 + $0x20] sm:$0xff]  ;;  %v4293_v49 = vld [vmem:[%s6928_s21 + $0x18] sm:$0xff]  ;;  %v4292_v15 = vld [vmem:[%s6928_s21 + $0x10] sm:$0xff] }
 0x533   : > { %v4299_v48 = vld [vmem:[%s6722_s9 + $0x8] sm:$0xff]  ;;  %v4298_v59 = vld [vmem:[%s6722_s9] sm:$0xff]  ;;  %v4162_v33 = vld [vmem:[%s6716_s3 + $0x30] sm:$0xf] }
 0x534   : > { %3520 = vmatpush.bf16.msra.mxu0 %v4304_v10  ;;  %4315 = vmatpush.bf16.msra.mxu2 %v4304_v10  ;;  %v4291_v42 = vld [vmem:[%s6928_s21 + $0x8] sm:$0xff]  ;;  %v4290_v14 = vld [vmem:[%s6928_s21] sm:$0xff]  ;;  %v4288_v52 = vld [vmem:[%s6716_s3 + $0x38] sm:$0xf0] }
 0x535   : > { %3597 = vmatpush.bf16.msra.mxu1 %v4296_v45  ;;  %4323 = vmatpush.bf16.msra.mxu3 %v4296_v45  ;;  %v4154_v53 = vld [vmem:[%s6716_s3] sm:$0xf]  ;;  %v4286_v19 = vld [vmem:[%s6716_s3 + $0x8] sm:$0xf0]  ;;  %v4163_v11 = vor.u32 %v4288_v52, %v4162_v33  ;;  %v4158_v27 = vld [vmem:[%s6716_s3 + $0x18] sm:$0xf] }
 0x536   : > { %v3395_v43 = vld [vmem:[%s6725_s12] sm:$0xff]  ;;  %v3396_v63 = vld [vmem:[%s6725_s12 + $0x8] sm:$0xff]  ;;  %v4155_v61 = vor.u32 %v4286_v19, %v4154_v53  ;;  %v4289_v39 = vld [vmem:[%s6716_s3 + $0x50] sm:$0xf0] }
 0x537   : > { %v3399_v29 = vld [vmem:[%s6725_s12 + $0x20] sm:$0xff]  ;;  %v3400_v2 = vld [vmem:[%s6725_s12 + $0x28] sm:$0xff]  ;;  %v3403_v35 = vpack.c.bf16 %v3396_v63, %v3395_v43  ;;  %v3397_v51 = vld [vmem:[%s6725_s12 + $0x10] sm:$0xff] }
 0x538   : > { %3521 = vmatpush.bf16.msra.mxu0 %v4303_v58  ;;  %4316 = vmatpush.bf16.msra.mxu2 %v4303_v58  ;;  %v3405_v30 = vpack.c.bf16 %v3400_v2, %v3399_v29  ;;  %v4287_v36 = vld [vmem:[%s6716_s3 + $0x20] sm:$0xf0]  ;;  %v4166_v1 = vld [vmem:[%s6716_s3 + $0x48] sm:$0xf]  ;;  %v3398_v13 = vld [vmem:[%s6725_s12 + $0x18] sm:$0xff] }
 0x539   : > { %3598 = vmatpush.bf16.msra.mxu1 %v4295_v40  ;;  %4324 = vmatpush.bf16.msra.mxu3 %v4295_v40  ;;  %v3401_v38 = vld [vmem:[%s6725_s12 + $0x30] sm:$0xff]  ;;  %v3402_v12 = vld [vmem:[%s6725_s12 + $0x38] sm:$0xff]  ;;  %v4159_v60 = vor.u32 %v4287_v36, %v4158_v27  ;;  %v4167_v20 = vor.u32 %v4289_v39, %v4166_v1  ;;  %v3404_v4 = vpack.c.bf16 %v3398_v13, %v3397_v51 }
 0x53a   : > { %v3406_v47 = vpack.c.bf16 %v3402_v12, %v3401_v38 }
 0x53c   : > { %3522 = vmatpush.bf16.msra.mxu0 %v4302_v32  ;;  %4317 = vmatpush.bf16.msra.mxu2 %v4302_v32 }
 0x53d   : > { %3599 = vmatpush.bf16.msra.mxu1 %v4294_v18  ;;  %4325 = vmatpush.bf16.msra.mxu3 %v4294_v18 }
 0x540   : > { %3523 = vmatpush.bf16.msra.mxu0 %v4301_v62  ;;  %4318 = vmatpush.bf16.msra.mxu2 %v4301_v62 }
 0x541   : > { %3600 = vmatpush.bf16.msra.mxu1 %v4293_v49  ;;  %4326 = vmatpush.bf16.msra.mxu3 %v4293_v49 }
 0x544   : > { %3524 = vmatpush.bf16.msra.mxu0 %v4300_v26  ;;  %4319 = vmatpush.bf16.msra.mxu2 %v4300_v26 }
 0x545   : > { %3601 = vmatpush.bf16.msra.mxu1 %v4292_v15  ;;  %4327 = vmatpush.bf16.msra.mxu3 %v4292_v15 }
 0x548   : > { %3525 = vmatpush.bf16.msra.mxu0 %v4299_v48  ;;  %4320 = vmatpush.bf16.msra.mxu2 %v4299_v48 }
 0x549   : > { %3602 = vmatpush.bf16.msra.mxu1 %v4291_v42  ;;  %4328 = vmatpush.bf16.msra.mxu3 %v4291_v42 }
 0x54c   : > { %3526 = vmatpush.bf16.msra.mxu0 %v4298_v59  ;;  %4321 = vmatpush.bf16.msra.mxu2 %v4298_v59 }
 0x54d   : > { %3603 = vmatpush.bf16.msra.mxu1 %v4290_v14  ;;  %4329 = vmatpush.bf16.msra.mxu3 %v4290_v14 }
 0x54f   : > { %3527 = vmatmul.bf16.vlgmr.msra.gmra.mxu0 %v4155_v61  ;;  %3537 = vmatmul.bf16.vlgmr.msra.gmra.mxu2 %v4163_v11 }
 0x550   : > { %3604 = vmatmul.bf16.vlgmr.msra.gmra.mxu1 %v3403_v35  ;;  %3614 = vmatmul.bf16.vlgmr.msra.gmra.mxu3 %v3405_v30 }
 0x55f   : > { %3532 = vmatmul.bf16.gmra.mxu0 %v4159_v60  ;;  %3542 = vmatmul.bf16.gmra.mxu2 %v4167_v20 }
 0x560   : > { %3609 = vmatmul.bf16.gmra.mxu1 %v3404_v4  ;;  %3619 = vmatmul.bf16.gmra.mxu3 %v3406_v47 }
 0x5cc   : > { %v3528_v23 = vpop.f32.mrf.mxu0 }
 0x5cd   : > { %v3605_v46 = vpop.f32.mrf.mxu1 }
 0x5ce   : > { %v3606_v7 = vadd.f32 %v3605_v46, %v3528_v23 }
 0x5d0   : > { %vm3625_vm15 = vcmp.ge.f32.partialorder %v3606_v7, 0.0  ;;  %v3633_v17 = vmul.f32 0.01, %v3606_v7 }
 0x5d2   : > { %v3641_v6 = vsel %vm3625_vm15, %v3606_v7, %v3633_v17  ;;  %v3538_v37 = vpop.f32.mrf.mxu2 }
 0x5d3   : > { %3649 = vst [vmem:[%s6725_s12] sm:$0xff] %v3641_v6  ;;  %v3615_v28 = vpop.f32.mrf.mxu3 }
 0x5d4   : > { %v3616_v5 = vadd.f32 %v3615_v28, %v3538_v37  ;;  %v3530_v24 = vpop.f32.mrf.mxu0 }
 0x5d5   : > { %v3607_v56 = vpop.f32.mrf.mxu1 }
 0x5d6   : > { %vm3629_vm0 = vcmp.ge.f32.partialorder %v3616_v5, 0.0  ;;  %v3637_v3 = vmul.f32 0.01, %v3616_v5  ;;  %v3608_v0 = vadd.f32 %v3607_v56, %v3530_v24 }
 0x5d8   : > { %v3645_v16 = vsel %vm3629_vm0, %v3616_v5, %v3637_v3  ;;  %vm3626_vm1 = vcmp.ge.f32.partialorder %v3608_v0, 0.0  ;;  %v3634_v41 = vmul.f32 0.01, %v3608_v0 }
 0x5d9   : > { %3653 = vst [vmem:[%s6725_s12 + $0x20] sm:$0xff] %v3645_v16 }
 0x5da   : > { %v3642_v54 = vsel %vm3626_vm1, %v3608_v0, %v3634_v41  ;;  %v3540_v9 = vpop.f32.mrf.mxu2 }
 0x5db   : > { %3650 = vst [vmem:[%s6725_s12 + $0x8] sm:$0xff] %v3642_v54  ;;  %v3617_v21 = vpop.f32.mrf.mxu3 }
 0x5dc   : > { %v3618_v31 = vadd.f32 %v3617_v21, %v3540_v9  ;;  %v3533_v44 = vpop.f32.mrf.mxu0 }
 0x5dd   : > { %v3610_v8 = vpop.f32.mrf.mxu1 }
 0x5de   : > { %vm3630_vm3 = vcmp.ge.f32.partialorder %v3618_v31, 0.0  ;;  %v3638_v57 = vmul.f32 0.01, %v3618_v31  ;;  %v3611_v22 = vadd.f32 %v3610_v8, %v3533_v44 }
 0x5e0   : > { %v3646_v55 = vsel %vm3630_vm3, %v3618_v31, %v3638_v57  ;;  %vm3627_vm4 = vcmp.ge.f32.partialorder %v3611_v22, 0.0  ;;  %v3635_v50 = vmul.f32 0.01, %v3611_v22 }
 0x5e1   : > { %3654 = vst [vmem:[%s6725_s12 + $0x28] sm:$0xff] %v3646_v55 }
 0x5e2   : > { %v3643_v34 = vsel %vm3627_vm4, %v3611_v22, %v3635_v50  ;;  %v3543_v25 = vpop.f32.mrf.mxu2 }
 0x5e3   : > { %3651 = vst [vmem:[%s6725_s12 + $0x10] sm:$0xff] %v3643_v34  ;;  %v3620_v10 = vpop.f32.mrf.mxu3 }
 0x5e4   : > { %v3621_v45 = vadd.f32 %v3620_v10, %v3543_v25  ;;  %v3535_v58 = vpop.f32.mrf.mxu0 }
 0x5e5   : > { %v3612_v40 = vpop.f32.mrf.mxu1 }
 0x5e6   : > { %vm3631_vm5 = vcmp.ge.f32.partialorder %v3621_v45, 0.0  ;;  %v3639_v32 = vmul.f32 0.01, %v3621_v45  ;;  %v3613_v18 = vadd.f32 %v3612_v40, %v3535_v58 }
 0x5e8   : > { %v3647_v62 = vsel %vm3631_vm5, %v3621_v45, %v3639_v32  ;;  %vm3628_vm6 = vcmp.ge.f32.partialorder %v3613_v18, 0.0  ;;  %v3636_v49 = vmul.f32 0.01, %v3613_v18 }
 0x5e9   : > { %3655 = vst [vmem:[%s6725_s12 + $0x30] sm:$0xff] %v3647_v62 }
 0x5ea   : > { %v3644_v26 = vsel %vm3628_vm6, %v3613_v18, %v3636_v49  ;;  %v3545_v15 = vpop.f32.mrf.mxu2 }
 0x5eb   : > { %3652 = vst [vmem:[%s6725_s12 + $0x18] sm:$0xff] %v3644_v26  ;;  %v3622_v48 = vpop.f32.mrf.mxu3 }
 0x5ec   : > { %v3623_v42 = vadd.f32 %v3622_v48, %v3545_v15 }
 0x5ee   : > { %vm3632_vm2 = vcmp.ge.f32.partialorder %v3623_v42, 0.0  ;;  %v3640_v59 = vmul.f32 0.01, %v3623_v42 }
 0x5f0   : > { %v3648_v14 = vsel %vm3632_vm2, %v3623_v42, %v3640_v59 }
 0x5f1   : > { %3656 = vst [vmem:[%s6725_s12 + $0x38] sm:$0xff] %v3648_v14 }
 0x5f2 PF: > { %s6929_s15 = sld [smem:[#allocation2_spill]] }
 0x5f8   : > { %s24_s25 = sadd.s32 1, %s6929_s15  }
 0x5f9   : > { %p21_p7 = scmp.ge.s32.totalorder %s24_s25, 4  }
 0x5fb   :  { %23 = sbr.rel (!%p21_p7) target bundleno = 2 (0x2), region = 123 }

</bundles_post_ra>
